<compile_context>
chip_gen: v7x
topology: tpu7x:2x2x1
jax: 0.10.0
libtpu: 0.0.40
codegen_flags: <defaults>
</compile_context>

<pallas_src>
import functools

import jax
import jax.numpy as jnp
from jax import lax
from jax.experimental import pallas as pl
from jax.experimental.pallas import tpu as pltpu

LANES = 128        # TPU lane width; channel padding target for conv outputs.
M_BLOCK_CAP = 256  # Max rows per matmul M block (v7x-safe; 512+ ok on v5e/v6e).


def _round_up(x, m):
    return ((x + m - 1) // m) * m


def _choose_m_blocking(m, cap=M_BLOCK_CAP):
    """Pick (padded_M, block_M): block_M <= cap, multiple of 16, divides padded_M."""
    mp = _round_up(m, 16)
    if mp <= cap:
        return mp, mp
    n_blocks = -(-mp // cap)                       # ceil
    bm = _round_up(-(-mp // n_blocks), 16)
    return bm * n_blocks, bm


# ---------------------------------------------------------------------------
# Pallas kernel 1: out = relu(x @ w + b), single full-K block per grid step.
# ---------------------------------------------------------------------------
def _mm_bias_relu_kernel(x_ref, w_ref, b_ref, o_ref):
    acc = jnp.dot(x_ref[...], w_ref[...], preferred_element_type=jnp.float32)
    o_ref[...] = jnp.maximum(acc + b_ref[...], 0.0).astype(o_ref.dtype)


def matmul_bias_relu(x, w, b, *, out_dtype=jnp.bfloat16):
    """relu(x @ w + b).  x: (M, K); w: (K, N) bf16 pre-padded (K%128==0, N%128==0);
    b: (1, N) f32.  M is tiled with a fixed cap and a "parallel" grid."""
    x = x.astype(jnp.bfloat16)
    M, K = x.shape
    N = w.shape[1]
    assert K % 128 == 0 and N % 128 == 0, (K, N)

    Mp, bm = _choose_m_blocking(M)
    if Mp != M:
        x = jnp.pad(x, ((0, Mp - M), (0, 0)))

    out = pl.pallas_call(
        _mm_bias_relu_kernel,
        out_shape=jax.ShapeDtypeStruct((Mp, N), out_dtype),
        grid_spec=pltpu.PrefetchScalarGridSpec(
            num_scalar_prefetch=0,
            grid=(Mp // bm,),
            in_specs=[
                pl.BlockSpec((bm, K), lambda i: (i, 0)),
                pl.BlockSpec((K, N), lambda i: (0, 0)),   # weight resident across M
                pl.BlockSpec((1, N), lambda i: (0, 0)),
            ],
            out_specs=pl.BlockSpec((bm, N), lambda i: (i, 0)),
        ),
        compiler_params=pltpu.CompilerParams(
            dimension_semantics=("parallel",),
        ),
    )(x, w, b)
    return out[:M] if Mp != M else out


# ---------------------------------------------------------------------------
# Pallas kernel 2: fused fc4 + fc5 (both with ReLU, as in the PyTorch module).
# ---------------------------------------------------------------------------
def _fc45_kernel(x_ref, w4_ref, b4_ref, w5_ref, b5_ref, o_ref):
    h = jnp.dot(x_ref[...], w4_ref[...], preferred_element_type=jnp.float32)
    h = jnp.maximum(h + b4_ref[...], 0.0)                       # relu(fc4), f32
    q = jnp.dot(h.astype(jnp.bfloat16), w5_ref[...],
                preferred_element_type=jnp.float32)
    o_ref[...] = jnp.maximum(q + b5_ref[...], 0.0)              # relu(fc5)


def fc45_fused(x, w4, b4, w5, b5):
    """relu(relu(x @ w4 + b4) @ w5 + b5) in one pallas_call.
    x: (M, 3200); w4: (3200, 512) bf16; w5: (512, 128) bf16 -> (M, 128) f32."""
    x = x.astype(jnp.bfloat16)
    M, K = x.shape
    N1 = w4.shape[1]
    N2 = w5.shape[1]
    assert K % 128 == 0 and N1 % 128 == 0 and N2 % 128 == 0

    Mp, bm = _choose_m_blocking(M)
    if Mp != M:
        x = jnp.pad(x, ((0, Mp - M), (0, 0)))

    # TODO(synk): hide the w4 fetch behind the conv stack with a P10 cross-call
    # future (earlier call DMAs w4 into a VMEM+SEMAPHORE output); at tiny batch
    # that DMA (~3.3 MiB bf16) is still the dominant exposed latency.
    out = pl.pallas_call(
        _fc45_kernel,
        out_shape=jax.ShapeDtypeStruct((Mp, N2), jnp.float32),
        grid_spec=pltpu.PrefetchScalarGridSpec(
            num_scalar_prefetch=0,
            grid=(Mp // bm,),
            in_specs=[
                pl.BlockSpec((bm, K), lambda i: (i, 0)),
                pl.BlockSpec((K, N1), lambda i: (0, 0)),   # constant block index:
                pl.BlockSpec((1, N1), lambda i: (0, 0)),   # weights DMA'd once,
                pl.BlockSpec((N1, N2), lambda i: (0, 0)),  # resident across M steps
                pl.BlockSpec((1, N2), lambda i: (0, 0)),
            ],
            out_specs=pl.BlockSpec((bm, N2), lambda i: (i, 0)),
        ),
        compiler_params=pltpu.CompilerParams(
            dimension_semantics=("parallel",),
        ),
    )(x, w4, b4, w5, b5)
    return out[:M] if Mp != M else out


# ---------------------------------------------------------------------------
# Conv2d + ReLU: im2col on NHWC (XLA glue) + Pallas matmul kernel.
# ---------------------------------------------------------------------------
def conv2d_relu_nhwc(x, wp, bp, *, kh, kw, stride, padding):
    """x: (B, H, W, Cin) bf16; wp: (kh*kw*Cin, Np) bf16 with K ordered (kh,kw,c);
    bp: (1, Np) f32.  Returns (B, Ho, Wo, Np) bf16 (channels beyond real OC = 0)."""
    B, H, W, Cin = x.shape
    if padding:
        x = jnp.pad(x, ((0, 0), (padding, padding), (padding, padding), (0, 0)))
    Hp, Wp_ = H + 2 * padding, W + 2 * padding
    Ho = (Hp - kh) // stride + 1
    Wo = (Wp_ - kw) // stride + 1

    # im2col: lane order of K is (kh, kw, c), matching the prepared weights.
    # TODO(synk): conv1 builds 256 lanes from 4-lane-wide slabs; an in-kernel
    # strided gather (whole-net fusion) would remove this lane-interleave glue.
    slabs = []
    for i in range(kh):
        for j in range(kw):
            slabs.append(x[:, i:i + stride * Ho:stride, j:j + stride * Wo:stride, :])
    cols = jnp.concatenate(slabs, axis=-1).reshape(B * Ho * Wo, kh * kw * Cin)

    out = matmul_bias_relu(cols, wp, bp, out_dtype=jnp.bfloat16)
    return out.reshape(B, Ho, Wo, wp.shape[1])


# ---------------------------------------------------------------------------
# Parameter construction (PyTorch-style uniform bounds) + one-time prep.
# ---------------------------------------------------------------------------
def init_dqn_params(key, history_length, n_actions):
    """fc weights stored as (in, out); fc4 rows indexed by PyTorch (C,H,W) flatten."""
    def uniform(k, shape, fan_in):
        bound = 1.0 / jnp.sqrt(jnp.float32(fan_in))
        return jax.random.uniform(k, shape, jnp.float32, minval=-bound, maxval=bound)

    keys = jax.random.split(key, 10)
    p = {}
    p["w1"] = uniform(keys[0], (32, history_length, 8, 8), history_length * 8 * 8)
    p["b1"] = uniform(keys[1], (32,), history_length * 8 * 8)
    p["w2"] = uniform(keys[2], (64, 32, 4, 4), 32 * 4 * 4)
    p["b2"] = uniform(keys[3], (64,), 32 * 4 * 4)
    p["w3"] = uniform(keys[4], (64, 64, 3, 3), 64 * 3 * 3)
    p["b3"] = uniform(keys[5], (64,), 64 * 3 * 3)
    p["w4"] = uniform(keys[6], (7 * 7 * 64, 512), 7 * 7 * 64)
    p["b4"] = uniform(keys[7], (512,), 7 * 7 * 64)
    p["w5"] = uniform(keys[8], (512, n_actions), 512)
    p["b5"] = uniform(keys[9], (n_actions,), 512)
    return p


def _prep_conv_w(w, cin_p, cout_p):
    """(OC, C, KH, KW) f32 -> (KH*KW*cin_p, cout_p) bf16, K ordered (kh, kw, c)."""
    OC, C, KH, KW = w.shape
    wt = jnp.transpose(w, (2, 3, 1, 0))                                   # (KH,KW,C,OC)
    wt = jnp.pad(wt, ((0, 0), (0, 0), (0, cin_p - C), (0, cout_p - OC)))  # zero-pad
    return wt.reshape(KH * KW * cin_p, cout_p).astype(jnp.bfloat16)


def _prep_bias(b, n_pad):
    return jnp.pad(b, (0, n_pad - b.shape[0])).reshape(1, n_pad).astype(jnp.float32)


def prepare_params(p):
    """One-time re-layout: pad / transpose / bf16-cast every weight for the kernels."""
    hist = p["w1"].shape[1]
    cin1 = hist
    while (8 * 8 * cin1) % 128 != 0:   # conv1 K = 8*8*cin1 must be lane-aligned
        cin1 += 1

    n_actions = p["w5"].shape[1]
    assert n_actions <= LANES

    q = {}
    q["w1"] = _prep_conv_w(p["w1"], cin_p=cin1, cout_p=LANES)
    q["b1"] = _prep_bias(p["b1"], LANES)
    q["w2"] = _prep_conv_w(p["w2"], cin_p=LANES, cout_p=LANES)
    q["b2"] = _prep_bias(p["b2"], LANES)
    q["w3"] = _prep_conv_w(p["w3"], cin_p=LANES, cout_p=LANES)
    q["b3"] = _prep_bias(p["b3"], LANES)
    # fc4: PyTorch flattens NCHW as (C,H,W); our activations flatten as (H,W,C)
    # over the 64 REAL channels only (no padded channels in the contraction);
    # K is then padded 3136 -> 3200 (= 25*128) with zero rows.
    w4 = p["w4"].reshape(64, 7, 7, 512).transpose(1, 2, 0, 3).reshape(7 * 7 * 64, 512)
    q["w4"] = jnp.pad(w4, ((0, 3200 - 3136), (0, 0))).astype(jnp.bfloat16)
    q["b4"] = p["b4"].reshape(1, 512).astype(jnp.float32)
    q["w5"] = jnp.pad(p["w5"], ((0, 0), (0, LANES - n_actions))).astype(jnp.bfloat16)
    q["b5"] = _prep_bias(p["b5"], LANES)
    return q


# ---------------------------------------------------------------------------
# Full DQN forward (Pallas path).
# ---------------------------------------------------------------------------
@functools.partial(jax.jit, static_argnames=("n_actions",))
def dqn_forward(prepped, x, *, n_actions):
    """x: (B, history_length, 84, 84) f32 NCHW (PyTorch layout) -> (B, n_actions)."""
    # TODO(synk): at B <= 16 a single whole-net pallas_call (weights untiled in
    # VMEM, in-kernel patch extraction, activations in VMEM scratch) would cut
    # the 4 dispatches + XLA im2col glue; kept as separate calls for robustness.
    B = x.shape[0]
    h = jnp.transpose(x, (0, 2, 3, 1)).astype(jnp.bfloat16)   # NHWC bf16
    cin1 = prepped["w1"].shape[0] // (8 * 8)
    if cin1 > h.shape[-1]:
        h = jnp.pad(h, ((0, 0), (0, 0), (0, 0), (0, cin1 - h.shape[-1])))

    h = conv2d_relu_nhwc(h, prepped["w1"], prepped["b1"], kh=8, kw=8, stride=4, padding=1)  # (B,20,20,128)
    h = conv2d_relu_nhwc(h, prepped["w2"], prepped["b2"], kh=4, kw=4, stride=2, padding=0)  # (B,9,9,128)
    h = conv2d_relu_nhwc(h, prepped["w3"], prepped["b3"], kh=3, kw=3, stride=1, padding=0)  # (B,7,7,128)

    # Drop the zero-padded channels BEFORE the flatten so fc4 only contracts the
    # 3136 real features (halves the fc4 weight DMA and VMEM vs the padded 6272).
    h = h[..., :64].reshape(B, 7 * 7 * 64)
    h = jnp.pad(h, ((0, 0), (0, 3200 - 3136)))                # lane-align K to 3200
    q = fc45_fused(h, prepped["w4"], prepped["b4"], prepped["w5"], prepped["b5"])
    return q[:, :n_actions]


# ---------------------------------------------------------------------------
# Pure-JAX reference with the same bf16-in / f32-accumulate mixed precision.
# (The PyTorch module itself is pure f32; expect ~1e-2 relative deviation vs it.)
# ---------------------------------------------------------------------------
@jax.jit
def dqn_reference(p, x):
    def conv(h, w, b, stride, padding):
        y = lax.conv_general_dilated(
            h.astype(jnp.bfloat16), w.astype(jnp.bfloat16),
            window_strides=(stride, stride),
            padding=[(padding, padding), (padding, padding)],
            dimension_numbers=("NCHW", "OIHW", "NCHW"),
            preferred_element_type=jnp.float32)
        return jnp.maximum(y + b[None, :, None, None], 0.0).astype(jnp.bfloat16)

    h = conv(x, p["w1"], p["b1"], 4, 1)
    h = conv(h, p["w2"], p["b2"], 2, 0)
    h = conv(h, p["w3"], p["b3"], 1, 0)
    h = h.reshape(h.shape[0], -1)                             # (C,H,W) flatten
    h = jnp.maximum(jnp.dot(h, p["w4"].astype(jnp.bfloat16),
                            preferred_element_type=jnp.float32) + p["b4"], 0.0)
    q = jnp.dot(h.astype(jnp.bfloat16), p["w5"].astype(jnp.bfloat16),
                preferred_element_type=jnp.float32) + p["b5"]
    return jnp.maximum(q, 0.0)


if __name__ == "__main__":
    batch = 2
    history_length = 4
    n_actions = 6

    key = jax.random.PRNGKey(0)
    k_params, k_x = jax.random.split(key)

    params = init_dqn_params(k_params, history_length, n_actions)
    prepped = prepare_params(params)

    # fc4 pins the spatial input to 84x84 (-> 7x7x64 flat features).
    x = jax.random.normal(k_x, (batch, history_length, 84, 84), dtype=jnp.float32)

    out = dqn_forward(prepped, x, n_actions=n_actions)
    out = jax.block_until_ready(out)
    assert out.shape == (batch, n_actions), out.shape
    assert bool(jnp.all(out >= 0.0))          # module applies ReLU to fc5 as well

    ref = jax.block_until_ready(dqn_reference(params, x))
    max_err = float(jnp.max(jnp.abs(out - ref)))
    assert max_err < 5e-2, f"kernel/reference mismatch: max abs err = {max_err}"

    print("KERNEL_OK")
</pallas_src>

<mosaic_0001>
module attributes {stable_mosaic.version = 11 : i64} {
  func.func @_mm_bias_relu_kernel(%arg0: i32, %arg1: memref<208x256xbf16, #tpu.memory_space<vmem>>, %arg2: memref<256x128xbf16, #tpu.memory_space<vmem>>, %arg3: memref<1x128xf32, #tpu.memory_space<vmem>>, %arg4: memref<208x128xbf16, #tpu.memory_space<vmem>>) attributes {dimension_semantics = [#tpu.dimension_semantics<parallel>], iteration_bounds = array<i64: 4>, scalar_prefetch = 0 : i64, scratch_operands = 0 : i64, tpu.core_type = #tpu.core_type<tc>, window_params = [{transform_indices = @transform_0, window_bounds = array<i64: 208, 256>}, {pipeline_mode = #tpu.pipeline_mode<synchronous>, transform_indices = @transform_1, window_bounds = array<i64: 256, 128>}, {pipeline_mode = #tpu.pipeline_mode<synchronous>, transform_indices = @transform_2, window_bounds = array<i64: 1, 128>}, {transform_indices = @transform_3, window_bounds = array<i64: 208, 128>}]} {
    %c0 = arith.constant 0 : index
    %c0_0 = arith.constant 0 : index
    %0 = vector.load %arg1[%c0, %c0_0] : memref<208x256xbf16, #tpu.memory_space<vmem>>, vector<208x256xbf16>
    %c0_1 = arith.constant 0 : index
    %c0_2 = arith.constant 0 : index
    %1 = vector.load %arg2[%c0_1, %c0_2] : memref<256x128xbf16, #tpu.memory_space<vmem>>, vector<256x128xbf16>
    %cst = arith.constant dense<0.000000e+00> : vector<208x128xf32>
    %2 = tpu.matmul %0, %1, %cst {dimension_numbers = #tpu.dot_dimension_numbers<[1], [0], [0], [1], [0, 0, 1, 1], [], []>} : vector<208x256xbf16>, vector<256x128xbf16>, vector<208x128xf32> -> vector<208x128xf32>
    %c0_3 = arith.constant 0 : index
    %c0_4 = arith.constant 0 : index
    %3 = vector.load %arg3[%c0_3, %c0_4] : memref<1x128xf32, #tpu.memory_space<vmem>>, vector<1x128xf32>
    %4 = vector.broadcast %3 : vector<1x128xf32> to vector<208x128xf32>
    %5 = arith.addf %2, %4 : vector<208x128xf32>
    %cst_5 = arith.constant 0.000000e+00 : f32
    %6 = vector.broadcast %cst_5 : f32 to vector<208x128xf32>
    %7 = arith.maximumf %5, %6 : vector<208x128xf32>
    %8 = arith.truncf %7 : vector<208x128xf32> to vector<208x128xbf16>
    %c0_6 = arith.constant 0 : index
    %c0_7 = arith.constant 0 : index
    %9 = vector.load %arg4[%c0_6, %c0_7] : memref<208x128xbf16, #tpu.memory_space<vmem>>, vector<208x128xbf16>
    tpu.vector_store %arg4[%c0_6, %c0_7], %8 {strides = array<i32>} : memref<208x128xbf16, #tpu.memory_space<vmem>>, vector<208x128xbf16>,
    return
  }
  func.func @transform_0(%arg0: i32) -> (i32, i32) {
    %c0_i32 = arith.constant 0 : i32
    %c0_i32_0 = arith.constant 0 : i32
    return %arg0, %c0_i32 : i32, i32
  }
  func.func @transform_1(%arg0: i32) -> (i32, i32) {
    %c0_i32 = arith.constant 0 : i32
    %c0_i32_0 = arith.constant 0 : i32
    %c0_i32_1 = arith.constant 0 : i32
    return %c0_i32, %c0_i32_0 : i32, i32
  }
  func.func @transform_2(%arg0: i32) -> (i32, i32) {
    %c0_i32 = arith.constant 0 : i32
    %c0_i32_0 = arith.constant 0 : i32
    %c0_i32_1 = arith.constant 0 : i32
    return %c0_i32, %c0_i32_0 : i32, i32
  }
  func.func @transform_3(%arg0: i32) -> (i32, i32) {
    %c0_i32 = arith.constant 0 : i32
    %c0_i32_0 = arith.constant 0 : i32
    return %arg0, %c0_i32 : i32, i32
  }
}

module attributes {stable_mosaic.version = 11 : i64} {
  func.func @_mm_bias_relu_kernel(%arg0: i32, %arg1: memref<176x2048xbf16, #tpu.memory_space<vmem>>, %arg2: memref<2048x128xbf16, #tpu.memory_space<vmem>>, %arg3: memref<1x128xf32, #tpu.memory_space<vmem>>, %arg4: memref<176x128xbf16, #tpu.memory_space<vmem>>) attributes {dimension_semantics = [#tpu.dimension_semantics<parallel>], iteration_bounds = array<i64: 1>, scalar_prefetch = 0 : i64, scratch_operands = 0 : i64, tpu.core_type = #tpu.core_type<tc>, window_params = [{transform_indices = @transform_0, window_bounds = array<i64: 176, 2048>}, {pipeline_mode = #tpu.pipeline_mode<synchronous>, transform_indices = @transform_1, window_bounds = array<i64: 2048, 128>}, {pipeline_mode = #tpu.pipeline_mode<synchronous>, transform_indices = @transform_2, window_bounds = array<i64: 1, 128>}, {transform_indices = @transform_3, window_bounds = array<i64: 176, 128>}]} {
    %c0 = arith.constant 0 : index
    %c0_0 = arith.constant 0 : index
    %0 = vector.load %arg1[%c0, %c0_0] : memref<176x2048xbf16, #tpu.memory_space<vmem>>, vector<176x2048xbf16>
    %c0_1 = arith.constant 0 : index
    %c0_2 = arith.constant 0 : index
    %1 = vector.load %arg2[%c0_1, %c0_2] : memref<2048x128xbf16, #tpu.memory_space<vmem>>, vector<2048x128xbf16>
    %cst = arith.constant dense<0.000000e+00> : vector<176x128xf32>
    %2 = tpu.matmul %0, %1, %cst {dimension_numbers = #tpu.dot_dimension_numbers<[1], [0], [0], [1], [0, 0, 1, 1], [], []>} : vector<176x2048xbf16>, vector<2048x128xbf16>, vector<176x128xf32> -> vector<176x128xf32>
    %c0_3 = arith.constant 0 : index
    %c0_4 = arith.constant 0 : index
    %3 = vector.load %arg3[%c0_3, %c0_4] : memref<1x128xf32, #tpu.memory_space<vmem>>, vector<1x128xf32>
    %4 = vector.broadcast %3 : vector<1x128xf32> to vector<176x128xf32>
    %5 = arith.addf %2, %4 : vector<176x128xf32>
    %cst_5 = arith.constant 0.000000e+00 : f32
    %6 = vector.broadcast %cst_5 : f32 to vector<176x128xf32>
    %7 = arith.maximumf %5, %6 : vector<176x128xf32>
    %8 = arith.truncf %7 : vector<176x128xf32> to vector<176x128xbf16>
    %c0_6 = arith.constant 0 : index
    %c0_7 = arith.constant 0 : index
    %9 = vector.load %arg4[%c0_6, %c0_7] : memref<176x128xbf16, #tpu.memory_space<vmem>>, vector<176x128xbf16>
    tpu.vector_store %arg4[%c0_6, %c0_7], %8 {strides = array<i32>} : memref<176x128xbf16, #tpu.memory_space<vmem>>, vector<176x128xbf16>,
    return
  }
  func.func @transform_0(%arg0: i32) -> (i32, i32) {
    %c0_i32 = arith.constant 0 : i32
    %c0_i32_0 = arith.constant 0 : i32
    return %arg0, %c0_i32 : i32, i32
  }
  func.func @transform_1(%arg0: i32) -> (i32, i32) {
    %c0_i32 = arith.constant 0 : i32
    %c0_i32_0 = arith.constant 0 : i32
    %c0_i32_1 = arith.constant 0 : i32
    return %c0_i32, %c0_i32_0 : i32, i32
  }
  func.func @transform_2(%arg0: i32) -> (i32, i32) {
    %c0_i32 = arith.constant 0 : i32
    %c0_i32_0 = arith.constant 0 : i32
    %c0_i32_1 = arith.constant 0 : i32
    return %c0_i32, %c0_i32_0 : i32, i32
  }
  func.func @transform_3(%arg0: i32) -> (i32, i32) {
    %c0_i32 = arith.constant 0 : i32
    %c0_i32_0 = arith.constant 0 : i32
    return %arg0, %c0_i32 : i32, i32
  }
}

module attributes {stable_mosaic.version = 11 : i64} {
  func.func @_mm_bias_relu_kernel(%arg0: i32, %arg1: memref<112x1152xbf16, #tpu.memory_space<vmem>>, %arg2: memref<1152x128xbf16, #tpu.memory_space<vmem>>, %arg3: memref<1x128xf32, #tpu.memory_space<vmem>>, %arg4: memref<112x128xbf16, #tpu.memory_space<vmem>>) attributes {dimension_semantics = [#tpu.dimension_semantics<parallel>], iteration_bounds = array<i64: 1>, scalar_prefetch = 0 : i64, scratch_operands = 0 : i64, tpu.core_type = #tpu.core_type<tc>, window_params = [{transform_indices = @transform_0, window_bounds = array<i64: 112, 1152>}, {pipeline_mode = #tpu.pipeline_mode<synchronous>, transform_indices = @transform_1, window_bounds = array<i64: 1152, 128>}, {pipeline_mode = #tpu.pipeline_mode<synchronous>, transform_indices = @transform_2, window_bounds = array<i64: 1, 128>}, {transform_indices = @transform_3, window_bounds = array<i64: 112, 128>}]} {
    %c0 = arith.constant 0 : index
    %c0_0 = arith.constant 0 : index
    %0 = vector.load %arg1[%c0, %c0_0] : memref<112x1152xbf16, #tpu.memory_space<vmem>>, vector<112x1152xbf16>
    %c0_1 = arith.constant 0 : index
    %c0_2 = arith.constant 0 : index
    %1 = vector.load %arg2[%c0_1, %c0_2] : memref<1152x128xbf16, #tpu.memory_space<vmem>>, vector<1152x128xbf16>
    %cst = arith.constant dense<0.000000e+00> : vector<112x128xf32>
    %2 = tpu.matmul %0, %1, %cst {dimension_numbers = #tpu.dot_dimension_numbers<[1], [0], [0], [1], [0, 0, 1, 1], [], []>} : vector<112x1152xbf16>, vector<1152x128xbf16>, vector<112x128xf32> -> vector<112x128xf32>
    %c0_3 = arith.constant 0 : index
    %c0_4 = arith.constant 0 : index
    %3 = vector.load %arg3[%c0_3, %c0_4] : memref<1x128xf32, #tpu.memory_space<vmem>>, vector<1x128xf32>
    %4 = vector.broadcast %3 : vector<1x128xf32> to vector<112x128xf32>
    %5 = arith.addf %2, %4 : vector<112x128xf32>
    %cst_5 = arith.constant 0.000000e+00 : f32
    %6 = vector.broadcast %cst_5 : f32 to vector<112x128xf32>
    %7 = arith.maximumf %5, %6 : vector<112x128xf32>
    %8 = arith.truncf %7 : vector<112x128xf32> to vector<112x128xbf16>
    %c0_6 = arith.constant 0 : index
    %c0_7 = arith.constant 0 : index
    %9 = vector.load %arg4[%c0_6, %c0_7] : memref<112x128xbf16, #tpu.memory_space<vmem>>, vector<112x128xbf16>
    tpu.vector_store %arg4[%c0_6, %c0_7], %8 {strides = array<i32>} : memref<112x128xbf16, #tpu.memory_space<vmem>>, vector<112x128xbf16>,
    return
  }
  func.func @transform_0(%arg0: i32) -> (i32, i32) {
    %c0_i32 = arith.constant 0 : i32
    %c0_i32_0 = arith.constant 0 : i32
    return %arg0, %c0_i32 : i32, i32
  }
  func.func @transform_1(%arg0: i32) -> (i32, i32) {
    %c0_i32 = arith.constant 0 : i32
    %c0_i32_0 = arith.constant 0 : i32
    %c0_i32_1 = arith.constant 0 : i32
    return %c0_i32, %c0_i32_0 : i32, i32
  }
  func.func @transform_2(%arg0: i32) -> (i32, i32) {
    %c0_i32 = arith.constant 0 : i32
    %c0_i32_0 = arith.constant 0 : i32
    %c0_i32_1 = arith.constant 0 : i32
    return %c0_i32, %c0_i32_0 : i32, i32
  }
  func.func @transform_3(%arg0: i32) -> (i32, i32) {
    %c0_i32 = arith.constant 0 : i32
    %c0_i32_0 = arith.constant 0 : i32
    return %arg0, %c0_i32 : i32, i32
  }
}

module attributes {stable_mosaic.version = 11 : i64} {
  func.func @_fc45_kernel(%arg0: i32, %arg1: memref<16x3200xbf16, #tpu.memory_space<vmem>>, %arg2: memref<3200x512xbf16, #tpu.memory_space<vmem>>, %arg3: memref<1x512xf32, #tpu.memory_space<vmem>>, %arg4: memref<512x128xbf16, #tpu.memory_space<vmem>>, %arg5: memref<1x128xf32, #tpu.memory_space<vmem>>, %arg6: memref<16x128xf32, #tpu.memory_space<vmem>>) attributes {dimension_semantics = [#tpu.dimension_semantics<parallel>], iteration_bounds = array<i64: 1>, scalar_prefetch = 0 : i64, scratch_operands = 0 : i64, tpu.core_type = #tpu.core_type<tc>, window_params = [{transform_indices = @transform_0, window_bounds = array<i64: 16, 3200>}, {pipeline_mode = #tpu.pipeline_mode<synchronous>, transform_indices = @transform_1, window_bounds = array<i64: 3200, 512>}, {pipeline_mode = #tpu.pipeline_mode<synchronous>, transform_indices = @transform_2, window_bounds = array<i64: 1, 512>}, {pipeline_mode = #tpu.pipeline_mode<synchronous>, transform_indices = @transform_3, window_bounds = array<i64: 512, 128>}, {pipeline_mode = #tpu.pipeline_mode<synchronous>, transform_indices = @transform_4, window_bounds = array<i64: 1, 128>}, {transform_indices = @transform_5, window_bounds = array<i64: 16, 128>}]} {
    %c0 = arith.constant 0 : index
    %c0_0 = arith.constant 0 : index
    %0 = vector.load %arg1[%c0, %c0_0] : memref<16x3200xbf16, #tpu.memory_space<vmem>>, vector<16x3200xbf16>
    %c0_1 = arith.constant 0 : index
    %c0_2 = arith.constant 0 : index
    %1 = vector.load %arg2[%c0_1, %c0_2] : memref<3200x512xbf16, #tpu.memory_space<vmem>>, vector<3200x512xbf16>
    %cst = arith.constant dense<0.000000e+00> : vector<16x512xf32>
    %2 = tpu.matmul %0, %1, %cst {dimension_numbers = #tpu.dot_dimension_numbers<[1], [0], [0], [1], [0, 0, 1, 1], [], []>} : vector<16x3200xbf16>, vector<3200x512xbf16>, vector<16x512xf32> -> vector<16x512xf32>
    %c0_3 = arith.constant 0 : index
    %c0_4 = arith.constant 0 : index
    %3 = vector.load %arg3[%c0_3, %c0_4] : memref<1x512xf32, #tpu.memory_space<vmem>>, vector<1x512xf32>
    %4 = vector.broadcast %3 : vector<1x512xf32> to vector<16x512xf32>
    %5 = arith.addf %2, %4 : vector<16x512xf32>
    %cst_5 = arith.constant 0.000000e+00 : f32
    %6 = vector.broadcast %cst_5 : f32 to vector<16x512xf32>
    %7 = arith.maximumf %5, %6 : vector<16x512xf32>
    %8 = arith.truncf %7 : vector<16x512xf32> to vector<16x512xbf16>
    %c0_6 = arith.constant 0 : index
    %c0_7 = arith.constant 0 : index
    %9 = vector.load %arg4[%c0_6, %c0_7] : memref<512x128xbf16, #tpu.memory_space<vmem>>, vector<512x128xbf16>
    %cst_8 = arith.constant dense<0.000000e+00> : vector<16x128xf32>
    %10 = tpu.matmul %8, %9, %cst_8 {dimension_numbers = #tpu.dot_dimension_numbers<[1], [0], [0], [1], [0, 0, 1, 1], [], []>} : vector<16x512xbf16>, vector<512x128xbf16>, vector<16x128xf32> -> vector<16x128xf32>
    %c0_9 = arith.constant 0 : index
    %c0_10 = arith.constant 0 : index
    %11 = vector.load %arg5[%c0_9, %c0_10] : memref<1x128xf32, #tpu.memory_space<vmem>>, vector<1x128xf32>
    %12 = vector.broadcast %11 : vector<1x128xf32> to vector<16x128xf32>
    %13 = arith.addf %10, %12 : vector<16x128xf32>
    %cst_11 = arith.constant 0.000000e+00 : f32
    %14 = vector.broadcast %cst_11 : f32 to vector<16x128xf32>
    %15 = arith.maximumf %13, %14 : vector<16x128xf32>
    %c0_12 = arith.constant 0 : index
    %c0_13 = arith.constant 0 : index
    %16 = vector.load %arg6[%c0_12, %c0_13] : memref<16x128xf32, #tpu.memory_space<vmem>>, vector<16x128xf32>
    tpu.vector_store %arg6[%c0_12, %c0_13], %15 {strides = array<i32>} : memref<16x128xf32, #tpu.memory_space<vmem>>, vector<16x128xf32>,
    return
  }
  func.func @transform_0(%arg0: i32) -> (i32, i32) {
    %c0_i32 = arith.constant 0 : i32
    %c0_i32_0 = arith.constant 0 : i32
    return %arg0, %c0_i32 : i32, i32
  }
  func.func @transform_1(%arg0: i32) -> (i32, i32) {
    %c0_i32 = arith.constant 0 : i32
    %c0_i32_0 = arith.constant 0 : i32
    %c0_i32_1 = arith.constant 0 : i32
    return %c0_i32, %c0_i32_0 : i32, i32
  }
  func.func @transform_2(%arg0: i32) -> (i32, i32) {
    %c0_i32 = arith.constant 0 : i32
    %c0_i32_0 = arith.constant 0 : i32
    %c0_i32_1 = arith.constant 0 : i32
    return %c0_i32, %c0_i32_0 : i32, i32
  }
  func.func @transform_3(%arg0: i32) -> (i32, i32) {
    %c0_i32 = arith.constant 0 : i32
    %c0_i32_0 = arith.constant 0 : i32
    %c0_i32_1 = arith.constant 0 : i32
    return %c0_i32, %c0_i32_0 : i32, i32
  }
  func.func @transform_4(%arg0: i32) -> (i32, i32) {
    %c0_i32 = arith.constant 0 : i32
    %c0_i32_0 = arith.constant 0 : i32
    %c0_i32_1 = arith.constant 0 : i32
    return %c0_i32, %c0_i32_0 : i32, i32
  }
  func.func @transform_5(%arg0: i32) -> (i32, i32) {
    %c0_i32 = arith.constant 0 : i32
    %c0_i32_0 = arith.constant 0 : i32
    return %arg0, %c0_i32 : i32, i32
  }
}

</mosaic_0001>

<bundles_post_ra>
// kernel: dqn_forward.4
= control target key start
LH: loop header
LB: loop body
LE: loop exit
PB: predicated region body
PF: predicated region fallthrough
CT: control target
= control target key end

     0   :  { %s1202_s12 = smov 0   ;;  %s1345_s0 = inlined_call_operand.vmem [shape: bf16[832,256], index: 0, kind: input, shape index: {}]   ;;  %s1346_s1 = inlined_call_operand.vmem [shape: bf16[256,128], index: 1, kind: input, shape index: {}]   ;;  %s1347_s2 = inlined_call_operand.vmem [shape: f32[1,128], index: 2, kind: input, shape index: {}]   ;;  %s1348_s3 = inlined_call_operand.vmem [shape: bf16[832,128], index: 3, kind: output, shape index: {}]  }
   0x1 LB: > { %s818_s13 = sadd.s32 4294967295, %s1180_s12   ;;  %p822_p0 = scmp.ge.s32.totalorder %s1180_s12, 1  ;;  %s1180_s12 = sphi %s1202_s12, %s13_s12  }
   0x2   : > { %p139_p1 = scmp.lt.s32.totalorder %s1180_s12, 5 }
   0x4   : > { %p140_p2 = pnand %p822_p0, %p139_p1 }
   0x5   : > { %v1119_v0 = vld [vmem:[%s1346_s1 + $0x40] sm:$0xff] (!%p140_p2)   ;;  %s164_s16 = smul.u32 (!%p140_p2), 26, %s818_s13  ;;  %v1121_v2 = vld [vmem:[%s1346_s1 + $0x48] sm:$0xff] (!%p140_p2)   ;;  %v1123_v4 = vld [vmem:[%s1346_s1 + $0x50] sm:$0xff] (!%p140_p2)  }
   0x6   : > { %143 = sbr.rel (%p140_p2) target bundleno = 310 (0x136), region = 32  ;;  %v1120_v1 = vld [vmem:[%s1346_s1] sm:$0xff] (!%p140_p2)   ;;  %1001 = vmatprep.subr.bf16.mxu0 (!%p140_p2), %v1119_v0  ;;  %1095 = vmatprep.subr.bf16.mxu1 (!%p140_p2), %v1119_v0  ;;  %v1122_v3 = vld [vmem:[%s1346_s1 + $0x8] sm:$0xff] (!%p140_p2)   ;;  %v1124_v5 = vld [vmem:[%s1346_s1 + $0x10] sm:$0xff] (!%p140_p2)  }
   0x7   : > { %1002 = vmatpush3.bf16.msra.mxu0 (!%p140_p2), %v1120_v1  ;;  %1103 = vmatpush3.bf16.msra.mxu1 (!%p140_p2), %v1120_v1  ;;  %p165_p3 = scmp.lt.s32.totalorder (!%p140_p2), %s164_s16, 103  ;;  %v1125_v6 = vld [vmem:[%s1346_s1 + $0x58] sm:$0xff] (!%p140_p2)   ;;  %v1127_v8 = vld [vmem:[%s1346_s1 + $0x60] sm:$0xff] (!%p140_p2)   ;;  %v1129_v10 = vld [vmem:[%s1346_s1 + $0x68] sm:$0xff] (!%p140_p2)  }
   0x8   : > { %1003 = vmatprep.subr.bf16.mxu0 (!%p140_p2), %v1121_v2  ;;  %1096 = vmatprep.subr.bf16.mxu1 (!%p140_p2), %v1121_v2  ;;  %v1126_v7 = vld [vmem:[%s1346_s1 + $0x18] sm:$0xff] (!%p140_p2)   ;;  %v1128_v9 = vld [vmem:[%s1346_s1 + $0x20] sm:$0xff] (!%p140_p2)   ;;  %v1130_v13 = vld [vmem:[%s1346_s1 + $0x28] sm:$0xff] (!%p140_p2)  }
   0x9   : > { %v1131_v14 = vld [vmem:[%s1346_s1 + $0x70] sm:$0xff] (!%p140_p2)   ;;  %v1133_v16 = vld [vmem:[%s1346_s1 + $0x78] sm:$0xff] (!%p140_p2)   ;;  %v1295_v44 = vld [vmem:[%s1347_s2] ss:$0 sm:$0xff] (!%p140_p2) }
   0xa   : > { %v1132_v15 = vld [vmem:[%s1346_s1 + $0x30] sm:$0xff] (!%p140_p2)   ;;  %v1134_v17 = vld [vmem:[%s1346_s1 + $0x38] sm:$0xff] (!%p140_p2)  }
   0xb   : > { %1004 = vmatpush3.bf16.msra.mxu0 (!%p140_p2), %v1122_v3  ;;  %1104 = vmatpush3.bf16.msra.mxu1 (!%p140_p2), %v1122_v3 }
   0xc   : > { %1005 = vmatprep.subr.bf16.mxu0 (!%p140_p2), %v1123_v4  ;;  %1097 = vmatprep.subr.bf16.mxu1 (!%p140_p2), %v1123_v4 }
   0xd   : > { %s1350_s16 = smov (!%p165_p3, %s164_s16), 103 }
   0xe   : > { %s897_s4 = sshll.u32 %s1350_s16, 3  ;;  %s825_s28 = sshll.u32 %s1350_s16, 2 }
   0xf   : > { %1006 = vmatpush3.bf16.msra.mxu0 %v1124_v5  ;;  %1105 = vmatpush3.bf16.msra.mxu1 %v1124_v5  ;;  %s1243_s9 = scalar_lea.vmem %s1345_s0, %s897_s4  ;;  %s1305_s4 = scalar_lea.vmem %s1348_s3, %s825_s28 }
  0x10   : > { %1007 = vmatprep.subr.bf16.mxu0 %v1125_v6  ;;  %1098 = vmatprep.subr.bf16.mxu1 %v1125_v6  ;;  %v1137_v11 = vld [vmem:[%s1243_s9 + $0x4] ss:$8 sps:$4 sm:$0xff]   ;;  %v1140_v12 = vld [vmem:[%s1243_s9 + $0x74] ss:$8 sps:$4 sm:$0xff]   ;;  %v1135_v18 = vld [vmem:[%s1243_s9] ss:$8 sps:$4 sm:$0xff]  }
  0x11   : > { %501 = vmatprep.mubr.bf16.mxu0 %v1137_v11  ;;  %557 = vmatprep.mubr.bf16.mxu1 %v1140_v12  ;;  %v1138_v19 = vld [vmem:[%s1243_s9 + $0x70] ss:$8 sps:$4 sm:$0xff]   ;;  %v1141_v20 = vld [vmem:[%s1243_s9 + $0x14] ss:$8 sps:$4 sm:$0xff]   ;;  %v1144_v21 = vld [vmem:[%s1243_s9 + $0x84] ss:$8 sps:$4 sm:$0xff]  }
  0x12   : > { %v1143_v22 = vld [vmem:[%s1243_s9 + $0x10] ss:$8 sps:$4 sm:$0xff]   ;;  %v1146_v23 = vld [vmem:[%s1243_s9 + $0x80] ss:$8 sps:$4 sm:$0xff]   ;;  %v1147_v24 = vld [vmem:[%s1243_s9 + $0x24] ss:$8 sps:$4 sm:$0xff]  }
  0x13   : > { %1008 = vmatpush3.bf16.msra.mxu0 %v1126_v7  ;;  %1106 = vmatpush3.bf16.msra.mxu1 %v1126_v7  ;;  %v1150_v25 = vld [vmem:[%s1243_s9 + $0x94] ss:$8 sps:$4 sm:$0xff]   ;;  %v1149_v26 = vld [vmem:[%s1243_s9 + $0x20] ss:$8 sps:$4 sm:$0xff]   ;;  %v1152_v27 = vld [vmem:[%s1243_s9 + $0x90] ss:$8 sps:$4 sm:$0xff]  }
  0x14   : > { %1009 = vmatprep.subr.bf16.mxu0 %v1127_v8  ;;  %1099 = vmatprep.subr.bf16.mxu1 %v1127_v8  ;;  %v1153_v28 = vld [vmem:[%s1243_s9 + $0x34] ss:$8 sps:$4 sm:$0xff]   ;;  %v1156_v29 = vld [vmem:[%s1243_s9 + $0xa4] ss:$8 sps:$4 sm:$0xff]   ;;  %v1155_v30 = vld [vmem:[%s1243_s9 + $0x30] ss:$8 sps:$4 sm:$0xff]  }
  0x15   : > { %v1158_v31 = vld [vmem:[%s1243_s9 + $0xa0] ss:$8 sps:$4 sm:$0xff]   ;;  %v1159_v32 = vld [vmem:[%s1243_s9 + $0x44] ss:$8 sps:$4 sm:$0xff]   ;;  %v1162_v33 = vld [vmem:[%s1243_s9 + $0xb4] ss:$8 sps:$4 sm:$0xff]  }
  0x16   : > { %v1161_v34 = vld [vmem:[%s1243_s9 + $0x40] ss:$8 sps:$4 sm:$0xff]   ;;  %v1164_v35 = vld [vmem:[%s1243_s9 + $0xb0] ss:$8 sps:$4 sm:$0xff]   ;;  %v1165_v36 = vld [vmem:[%s1243_s9 + $0x54] ss:$8 sps:$4 sm:$0xff]  }
  0x17   : > { %1010 = vmatpush3.bf16.msra.mxu0 %v1128_v9  ;;  %1107 = vmatpush3.bf16.msra.mxu1 %v1128_v9  ;;  %v1168_v37 = vld [vmem:[%s1243_s9 + $0xc4] ss:$8 sps:$4 sm:$0xff]   ;;  %v1167_v38 = vld [vmem:[%s1243_s9 + $0x50] ss:$8 sps:$4 sm:$0xff]   ;;  %v1170_v39 = vld [vmem:[%s1243_s9 + $0xc0] ss:$8 sps:$4 sm:$0xff]  }
  0x18   : > { %1011 = vmatprep.subr.bf16.mxu0 %v1129_v10  ;;  %1100 = vmatprep.subr.bf16.mxu1 %v1129_v10  ;;  %v1171_v40 = vld [vmem:[%s1243_s9 + $0x64] ss:$8 sps:$4 sm:$0xff]   ;;  %v1173_v41 = vld [vmem:[%s1243_s9 + $0x60] ss:$8 sps:$4 sm:$0xff]  }
  0x1b   : > { %1012 = vmatpush3.bf16.msra.mxu0 %v1130_v13  ;;  %1108 = vmatpush3.bf16.msra.mxu1 %v1130_v13 }
  0x1c   : > { %1013 = vmatprep.subr.bf16.mxu0 %v1131_v14  ;;  %1101 = vmatprep.subr.bf16.mxu1 %v1131_v14 }
  0x1f   : > { %1014 = vmatpush3.bf16.msra.mxu0 %v1132_v15  ;;  %1109 = vmatpush3.bf16.msra.mxu1 %v1132_v15 }
  0x20   : > { %1015 = vmatprep.subr.bf16.mxu0 %v1133_v16  ;;  %1102 = vmatprep.subr.bf16.mxu1 %v1133_v16 }
  0x23   : > { %1016 = vmatpush3.bf16.msra.mxu0 %v1134_v17  ;;  %1110 = vmatpush3.bf16.msra.mxu1 %v1134_v17 }
  0x26   : > { %502 = vmatmul.mubr.bf16.vlgmr.msra.gmra.mrb[0].mxu0 %v1135_v18  ;;  %558 = vmatmul.mubr.bf16.vlgmr.msra.gmra.mrb[0].mxu1 %v1138_v19 }
  0x27   : > { %509 = vmatprep.mubr.bf16.mxu0 %v1141_v20  ;;  %565 = vmatprep.mubr.bf16.mxu1 %v1144_v21 }
  0x2e   : > { %510 = vmatmul.mubr.bf16.gmra.mrb[4].mxu0 %v1143_v22  ;;  %566 = vmatmul.mubr.bf16.gmra.mrb[4].mxu1 %v1146_v23 }
  0x2f   : > { %517 = vmatprep.mubr.bf16.mxu0 %v1147_v24  ;;  %573 = vmatprep.mubr.bf16.mxu1 %v1150_v25 }
  0x36   : > { %518 = vmatmul.mubr.bf16.gmra.mrb[8].mxu0 %v1149_v26  ;;  %574 = vmatmul.mubr.bf16.gmra.mrb[8].mxu1 %v1152_v27 }
  0x37   : > { %525 = vmatprep.mubr.bf16.mxu0 %v1153_v28  ;;  %581 = vmatprep.mubr.bf16.mxu1 %v1156_v29 }
  0x3e   : > { %526 = vmatmul.mubr.bf16.gmra.mrb[12].mxu0 %v1155_v30  ;;  %582 = vmatmul.mubr.bf16.gmra.mrb[12].mxu1 %v1158_v31 }
  0x3f   : > { %533 = vmatprep.mubr.bf16.mxu0 %v1159_v32  ;;  %589 = vmatprep.mubr.bf16.mxu1 %v1162_v33 }
  0x46   : > { %534 = vmatmul.mubr.bf16.gmra.mrb[16].mxu0 %v1161_v34  ;;  %590 = vmatmul.mubr.bf16.gmra.mrb[16].mxu1 %v1164_v35 }
  0x47   : > { %541 = vmatprep.mubr.bf16.mxu0 %v1165_v36  ;;  %597 = vmatprep.mubr.bf16.mxu1 %v1168_v37 }
  0x4e   : > { %542 = vmatmul.mubr.bf16.gmra.mrb[20].mxu0 %v1167_v38  ;;  %598 = vmatmul.mubr.bf16.gmra.mrb[20].mxu1 %v1170_v39 }
  0x4f   : > { %549 = vmatprep.mubr.bf16.mxu0 %v1171_v40 }
  0x56   : > { %550 = vmatmul.mubr.bf16.gmra.mrb[24].mxu0 %v1173_v41 }
  0xf9   : > { %v1017_v42 = vpop.f32.mrb[0].mxu0  ;;  %v1059_v43 = vpop.f32.mrb[0].mxu1 }
  0xfa   : > { %v1018_v45 = vpop.f32.mrb[1].mxu0  ;;  %v1060_v46 = vpop.f32.mrb[1].mxu1 }
  0xfb   : > { %v1019_v47 = vadd.f32 %v1018_v45, %v1017_v42  ;;  %v1020_v48 = vpop.f32.mrb[2].mxu0  ;;  %v1061_v49 = vadd.f32 %v1060_v46, %v1059_v43  ;;  %v1062_v50 = vpop.f32.mrb[2].mxu1 }
  0xfc   : > { %v1021_v51 = vpop.f32.mrb[3].mxu0  ;;  %v1063_v52 = vpop.f32.mrb[3].mxu1 }
  0xfd   : > { %v504_v53 = vadd.f32 %v1019_v47, %v1295_v44  ;;  %v1022_v54 = vadd.f32 %v1021_v51, %v1020_v48  ;;  %v560_v55 = vadd.f32 %v1061_v49, %v1295_v44  ;;  %v1064_v56 = vadd.f32 %v1063_v52, %v1062_v50 }
  0xff   : > { %v507_v57 = vadd.f32 %v1022_v54, %v1295_v44  ;;  %v620_v58 = vmax.f32 %v560_v55, 0.0  ;;  %v563_v59 = vadd.f32 %v1064_v56, %v1295_v44  ;;  %v606_v60 = vmax.f32 %v504_v53, 0.0 }
 0x101   : > { %v607_v61 = vmax.f32 %v507_v57, 0.0  ;;  %v1023_v62 = vpop.f32.mrb[4].mxu0  ;;  %v621_v63 = vmax.f32 %v563_v59, 0.0  ;;  %v1065_v0 = vpop.f32.mrb[4].mxu1 }
 0x102   : > { %v1024_v1 = vpop.f32.mrb[5].mxu0  ;;  %v1066_v2 = vpop.f32.mrb[5].mxu1 }
 0x103   : > { %v927_v3 = vpack.c.bf16 %v607_v61, %v606_v60  ;;  %v962_v4 = vpack.c.bf16 %v621_v63, %v620_v58  ;;  %v1025_v5 = vadd.f32 %v1024_v1, %v1023_v62  ;;  %v1026_v6 = vpop.f32.mrb[6].mxu0  ;;  %v1067_v7 = vadd.f32 %v1066_v2, %v1065_v0  ;;  %v1068_v8 = vpop.f32.mrb[6].mxu1 }
 0x104   : > { %v1027_v9 = vpop.f32.mrb[7].mxu0  ;;  %v1069_v10 = vpop.f32.mrb[7].mxu1 }
 0x105   : > { %928 = vst [vmem:[%s1305_s4] sm:$0xff] %v927_v3   ;;  %995 = vst [vmem:[%s1305_s4 + $0x38] sm:$0xff] %v962_v4   ;;  %v512_v11 = vadd.f32 %v1025_v5, %v1295_v44  ;;  %v1028_v12 = vadd.f32 %v1027_v9, %v1026_v6  ;;  %v568_v13 = vadd.f32 %v1067_v7, %v1295_v44 }
 0x106   : > { %v1070_v14 = vadd.f32 %v1069_v10, %v1068_v8 }
 0x107   : > { %v515_v15 = vadd.f32 %v1028_v12, %v1295_v44  ;;  %v622_v16 = vmax.f32 %v568_v13, 0.0  ;;  %v608_v18 = vmax.f32 %v512_v11, 0.0 }
 0x108   : > { %v571_v17 = vadd.f32 %v1070_v14, %v1295_v44 }
 0x109   : > { %v609_v19 = vmax.f32 %v515_v15, 0.0  ;;  %v1029_v20 = vpop.f32.mrb[8].mxu0  ;;  %v1071_v22 = vpop.f32.mrb[8].mxu1 }
 0x10a   : > { %v623_v21 = vmax.f32 %v571_v17, 0.0  ;;  %v1030_v23 = vpop.f32.mrb[9].mxu0  ;;  %v1072_v24 = vpop.f32.mrb[9].mxu1 }
 0x10b   : > { %v932_v25 = vpack.c.bf16 %v609_v19, %v608_v18  ;;  %v1031_v27 = vadd.f32 %v1030_v23, %v1029_v20  ;;  %v1032_v28 = vpop.f32.mrb[10].mxu0  ;;  %v1073_v29 = vadd.f32 %v1072_v24, %v1071_v22  ;;  %v1074_v30 = vpop.f32.mrb[10].mxu1 }
 0x10c   : > { %v967_v26 = vpack.c.bf16 %v623_v21, %v622_v16  ;;  %v1033_v31 = vpop.f32.mrb[11].mxu0  ;;  %v1075_v32 = vpop.f32.mrb[11].mxu1 }
 0x10d   : > { %989 = vst [vmem:[%s1305_s4 + $0x8] sm:$0xff] %v932_v25   ;;  %v520_v33 = vadd.f32 %v1031_v27, %v1295_v44  ;;  %v1034_v34 = vadd.f32 %v1033_v31, %v1032_v28  ;;  %v576_v35 = vadd.f32 %v1073_v29, %v1295_v44  ;;  %v1076_v36 = vadd.f32 %v1075_v32, %v1074_v30 }
 0x10e   : > { %996 = vst [vmem:[%s1305_s4 + $0x40] sm:$0xff] %v967_v26  }
 0x10f   : > { %v523_v37 = vadd.f32 %v1034_v34, %v1295_v44  ;;  %v624_v38 = vmax.f32 %v576_v35, 0.0  ;;  %v579_v39 = vadd.f32 %v1076_v36, %v1295_v44  ;;  %v610_v40 = vmax.f32 %v520_v33, 0.0 }
 0x111   : > { %v611_v41 = vmax.f32 %v523_v37, 0.0  ;;  %v1035_v42 = vpop.f32.mrb[12].mxu0  ;;  %v625_v43 = vmax.f32 %v579_v39, 0.0  ;;  %v1077_v45 = vpop.f32.mrb[12].mxu1 }
 0x112   : > { %v1036_v46 = vpop.f32.mrb[13].mxu0  ;;  %v1078_v47 = vpop.f32.mrb[13].mxu1 }
 0x113   : > { %v937_v48 = vpack.c.bf16 %v611_v41, %v610_v40  ;;  %v972_v49 = vpack.c.bf16 %v625_v43, %v624_v38  ;;  %v1037_v50 = vadd.f32 %v1036_v46, %v1035_v42  ;;  %v1038_v51 = vpop.f32.mrb[14].mxu0  ;;  %v1079_v52 = vadd.f32 %v1078_v47, %v1077_v45  ;;  %v1080_v53 = vpop.f32.mrb[14].mxu1 }
 0x114   : > { %v1039_v54 = vpop.f32.mrb[15].mxu0  ;;  %v1081_v55 = vpop.f32.mrb[15].mxu1 }
 0x115   : > { %990 = vst [vmem:[%s1305_s4 + $0x10] sm:$0xff] %v937_v48   ;;  %997 = vst [vmem:[%s1305_s4 + $0x48] sm:$0xff] %v972_v49   ;;  %v528_v56 = vadd.f32 %v1037_v50, %v1295_v44  ;;  %v1040_v57 = vadd.f32 %v1039_v54, %v1038_v51  ;;  %v584_v58 = vadd.f32 %v1079_v52, %v1295_v44 }
 0x116   : > { %v1082_v59 = vadd.f32 %v1081_v55, %v1080_v53 }
 0x117   : > { %v531_v60 = vadd.f32 %v1040_v57, %v1295_v44  ;;  %v626_v61 = vmax.f32 %v584_v58, 0.0  ;;  %v612_v63 = vmax.f32 %v528_v56, 0.0 }
 0x118   : > { %v587_v62 = vadd.f32 %v1082_v59, %v1295_v44 }
 0x119   : > { %v613_v0 = vmax.f32 %v531_v60, 0.0  ;;  %v1041_v1 = vpop.f32.mrb[16].mxu0  ;;  %v1083_v3 = vpop.f32.mrb[16].mxu1 }
 0x11a   : > { %v627_v2 = vmax.f32 %v587_v62, 0.0  ;;  %v1042_v4 = vpop.f32.mrb[17].mxu0  ;;  %v1084_v5 = vpop.f32.mrb[17].mxu1 }
 0x11b   : > { %v942_v6 = vpack.c.bf16 %v613_v0, %v612_v63  ;;  %v1043_v8 = vadd.f32 %v1042_v4, %v1041_v1  ;;  %v1044_v9 = vpop.f32.mrb[18].mxu0  ;;  %v1085_v10 = vadd.f32 %v1084_v5, %v1083_v3  ;;  %v1086_v11 = vpop.f32.mrb[18].mxu1 }
 0x11c   : > { %v977_v7 = vpack.c.bf16 %v627_v2, %v626_v61  ;;  %v1045_v12 = vpop.f32.mrb[19].mxu0  ;;  %v1087_v13 = vpop.f32.mrb[19].mxu1 }
 0x11d   : > { %991 = vst [vmem:[%s1305_s4 + $0x18] sm:$0xff] %v942_v6   ;;  %v536_v14 = vadd.f32 %v1043_v8, %v1295_v44  ;;  %v1046_v15 = vadd.f32 %v1045_v12, %v1044_v9  ;;  %v592_v16 = vadd.f32 %v1085_v10, %v1295_v44  ;;  %v1088_v17 = vadd.f32 %v1087_v13, %v1086_v11 }
 0x11e   : > { %998 = vst [vmem:[%s1305_s4 + $0x50] sm:$0xff] %v977_v7  }
 0x11f   : > { %v539_v18 = vadd.f32 %v1046_v15, %v1295_v44  ;;  %v628_v19 = vmax.f32 %v592_v16, 0.0  ;;  %v595_v20 = vadd.f32 %v1088_v17, %v1295_v44  ;;  %v614_v21 = vmax.f32 %v536_v14, 0.0 }
 0x121   : > { %v615_v22 = vmax.f32 %v539_v18, 0.0  ;;  %v1047_v23 = vpop.f32.mrb[20].mxu0  ;;  %v629_v24 = vmax.f32 %v595_v20, 0.0  ;;  %v1089_v25 = vpop.f32.mrb[20].mxu1 }
 0x122   : > { %v1048_v26 = vpop.f32.mrb[21].mxu0  ;;  %v1090_v27 = vpop.f32.mrb[21].mxu1 }
 0x123   : > { %v947_v28 = vpack.c.bf16 %v615_v22, %v614_v21  ;;  %v982_v29 = vpack.c.bf16 %v629_v24, %v628_v19  ;;  %v1049_v30 = vadd.f32 %v1048_v26, %v1047_v23  ;;  %v1050_v31 = vpop.f32.mrb[22].mxu0  ;;  %v1091_v32 = vadd.f32 %v1090_v27, %v1089_v25  ;;  %v1092_v33 = vpop.f32.mrb[22].mxu1 }
 0x124   : > { %v1051_v34 = vpop.f32.mrb[23].mxu0  ;;  %v1093_v35 = vpop.f32.mrb[23].mxu1 }
 0x125   : > { %992 = vst [vmem:[%s1305_s4 + $0x20] sm:$0xff] %v947_v28   ;;  %999 = vst [vmem:[%s1305_s4 + $0x58] sm:$0xff] %v982_v29   ;;  %v544_v36 = vadd.f32 %v1049_v30, %v1295_v44  ;;  %v1052_v37 = vadd.f32 %v1051_v34, %v1050_v31  ;;  %v600_v38 = vadd.f32 %v1091_v32, %v1295_v44 }
 0x126   : > { %v1094_v39 = vadd.f32 %v1093_v35, %v1092_v33 }
 0x127   : > { %v547_v40 = vadd.f32 %v1052_v37, %v1295_v44  ;;  %v630_v41 = vmax.f32 %v600_v38, 0.0  ;;  %v616_v43 = vmax.f32 %v544_v36, 0.0 }
 0x128   : > { %v603_v42 = vadd.f32 %v1094_v39, %v1295_v44 }
 0x129   : > { %v617_v45 = vmax.f32 %v547_v40, 0.0  ;;  %v1053_v46 = vpop.f32.mrb[24].mxu0 }
 0x12a   : > { %v631_v47 = vmax.f32 %v603_v42, 0.0  ;;  %v1054_v48 = vpop.f32.mrb[25].mxu0 }
 0x12b   : > { %v952_v49 = vpack.c.bf16 %v617_v45, %v616_v43  ;;  %v1055_v51 = vadd.f32 %v1054_v48, %v1053_v46  ;;  %v1056_v52 = vpop.f32.mrb[26].mxu0 }
 0x12c   : > { %v987_v50 = vpack.c.bf16 %v631_v47, %v630_v41  ;;  %v1057_v53 = vpop.f32.mrb[27].mxu0 }
 0x12d   : > { %993 = vst [vmem:[%s1305_s4 + $0x28] sm:$0xff] %v952_v49   ;;  %v552_v54 = vadd.f32 %v1055_v51, %v1295_v44  ;;  %v1058_v55 = vadd.f32 %v1057_v53, %v1056_v52 }
 0x12e   : > { %1000 = vst [vmem:[%s1305_s4 + $0x60] sm:$0xff] %v987_v50  }
 0x12f   : > { %v555_v56 = vadd.f32 %v1058_v55, %v1295_v44  ;;  %v618_v57 = vmax.f32 %v552_v54, 0.0 }
 0x131   : > { %v619_v58 = vmax.f32 %v555_v56, 0.0 }
 0x133   : > { %v957_v59 = vpack.c.bf16 %v619_v58, %v618_v57 }
 0x135   : > { %994 = vst [vmem:[%s1305_s4 + $0x30] sm:$0xff] %v957_v59  }
 0x136 PF: > { %s13_s12 = sadd.s32 1, %s1180_s12  }
 0x137   : > { %p10_p4 = scmp.ge.s32.totalorder %s13_s12, 6  }
 0x139   :  { %12 = sbr.rel (!%p10_p4) target bundleno = 1 (0x1), region = 62 }

// kernel: dqn_forward.5
= control target key start
LH: loop header
LB: loop body
LE: loop exit
PB: predicated region body
PF: predicated region fallthrough
CT: control target
= control target key end

     0   :  { %s5594_s1 = inlined_call_operand.vmem [shape: bf16[2048,128], index: 1, kind: input, shape index: {}]   ;;  %s5595_s0 = inlined_call_operand.vmem [shape: bf16[176,2048], index: 0, kind: input, shape index: {}]   ;;  %s5596_s2 = inlined_call_operand.vmem [shape: f32[1,128], index: 2, kind: input, shape index: {}]   ;;  %s5597_s3 = inlined_call_operand.vmem [shape: bf16[176,128], index: 3, kind: output, shape index: {}]  }
   0x1   :  { %v4276_v0 = vld [vmem:[%s5594_s1 + $0x40] sm:$0xff]   ;;  %v4280_v4 = vld [vmem:[%s5594_s1 + $0x48] sm:$0xff]   ;;  %v4284_v8 = vld [vmem:[%s5594_s1 + $0x50] sm:$0xff]  }
   0x2   :  { %v4277_v1 = vld [vmem:[%s5594_s1 + $0xc0] sm:$0xff]   ;;  %3620 = vmatprep.subr.bf16.mxu0 %v4276_v0  ;;  %v4281_v5 = vld [vmem:[%s5594_s1 + $0xc8] sm:$0xff]   ;;  %v4285_v9 = vld [vmem:[%s5594_s1 + $0xd0] sm:$0xff]  }
   0x3   :  { %v4278_v2 = vld [vmem:[%s5594_s1] sm:$0xff]   ;;  %3702 = vmatprep.subr.bf16.mxu1 %v4277_v1  ;;  %v4282_v6 = vld [vmem:[%s5594_s1 + $0x8] sm:$0xff]   ;;  %v4286_v10 = vld [vmem:[%s5594_s1 + $0x10] sm:$0xff]  }
   0x4   :  { %v4279_v3 = vld [vmem:[%s5594_s1 + $0x80] sm:$0xff]   ;;  %3621 = vmatpush3.bf16.msra.mxu0 %v4278_v2  ;;  %v4283_v7 = vld [vmem:[%s5594_s1 + $0x88] sm:$0xff]   ;;  %v4287_v11 = vld [vmem:[%s5594_s1 + $0x90] sm:$0xff]  }
   0x5   :  { %3703 = vmatpush3.bf16.msra.mxu1 %v4279_v3  ;;  %3622 = vmatprep.subr.bf16.mxu0 %v4280_v4  ;;  %v4288_v12 = vld [vmem:[%s5594_s1 + $0x58] sm:$0xff]   ;;  %v4292_v16 = vld [vmem:[%s5594_s1 + $0x60] sm:$0xff]   ;;  %v4296_v20 = vld [vmem:[%s5594_s1 + $0x68] sm:$0xff]  }
   0x6   :  { %3704 = vmatprep.subr.bf16.mxu1 %v4281_v5  ;;  %v4289_v13 = vld [vmem:[%s5594_s1 + $0xd8] sm:$0xff]   ;;  %v4293_v17 = vld [vmem:[%s5594_s1 + $0xe0] sm:$0xff]   ;;  %v4297_v21 = vld [vmem:[%s5594_s1 + $0xe8] sm:$0xff]  }
   0x7   :  { %v4290_v14 = vld [vmem:[%s5594_s1 + $0x18] sm:$0xff]   ;;  %v4294_v18 = vld [vmem:[%s5594_s1 + $0x20] sm:$0xff]   ;;  %v4298_v22 = vld [vmem:[%s5594_s1 + $0x28] sm:$0xff]  }
   0x8   :  { %3623 = vmatpush3.bf16.msra.mxu0 %v4282_v6  ;;  %v4291_v15 = vld [vmem:[%s5594_s1 + $0x98] sm:$0xff]   ;;  %v4295_v19 = vld [vmem:[%s5594_s1 + $0xa0] sm:$0xff]   ;;  %v4299_v23 = vld [vmem:[%s5594_s1 + $0xa8] sm:$0xff]  }
   0x9   :  { %3705 = vmatpush3.bf16.msra.mxu1 %v4283_v7  ;;  %3624 = vmatprep.subr.bf16.mxu0 %v4284_v8  ;;  %v4300_v24 = vld [vmem:[%s5594_s1 + $0x70] sm:$0xff]   ;;  %v4304_v28 = vld [vmem:[%s5594_s1 + $0x78] sm:$0xff]   ;;  %v15_v32 = vld [vmem:[%s5595_s0] sm:$0xff] }
   0xa   :  { %3706 = vmatprep.subr.bf16.mxu1 %v4285_v9  ;;  %v4301_v25 = vld [vmem:[%s5594_s1 + $0xf0] sm:$0xff]   ;;  %v4305_v29 = vld [vmem:[%s5594_s1 + $0xf8] sm:$0xff]   ;;  %v23_v33 = vld [vmem:[%s5595_s0 + $0x40] sm:$0xff] }
   0xb   :  { %v4302_v26 = vld [vmem:[%s5594_s1 + $0x30] sm:$0xff]   ;;  %v4306_v30 = vld [vmem:[%s5594_s1 + $0x38] sm:$0xff]   ;;  %v16_v34 = vld [vmem:[%s5595_s0 + $0x8] sm:$0xff]  ;;  %v3207_v35 = vcombine.low %v15_v32, %v23_v33  ;;  %v3208_v36 = vcombine.high %v15_v32, %v23_v33 }
   0xc   :  { %3625 = vmatpush3.bf16.msra.mxu0 %v4286_v10  ;;  %v4303_v27 = vld [vmem:[%s5594_s1 + $0xb0] sm:$0xff]   ;;  %v4307_v31 = vld [vmem:[%s5594_s1 + $0xb8] sm:$0xff]   ;;  %v24_v37 = vld [vmem:[%s5595_s0 + $0x48] sm:$0xff] }
   0xd   :  { %3707 = vmatpush3.bf16.msra.mxu1 %v4287_v11  ;;  %3626 = vmatprep.subr.bf16.mxu0 %v4288_v12  ;;  %v3209_v38 = vcombine.low %v16_v34, %v24_v37  ;;  %v3210_v39 = vcombine.high %v16_v34, %v24_v37  ;;  %v4308_v40 = vld [vmem:[%s5594_s1 + $0x140] sm:$0xff]   ;;  %v32_v47 = vld [vmem:[%s5595_s0 + $0x88] sm:$0xff]  ;;  %v4316_v62 = vld [vmem:[%s5594_s1 + $0x150] sm:$0xff]  }
   0xe   :  { %3708 = vmatprep.subr.bf16.mxu1 %v4289_v13  ;;  %2134 = vmatprep.mubr.bf16.mxu0 %v3208_v36  ;;  %v4309_v41 = vld [vmem:[%s5594_s1 + $0x100] sm:$0xff]   ;;  %v40_v48 = vld [vmem:[%s5595_s0 + $0xc8] sm:$0xff]  ;;  %v4317_v3 = vld [vmem:[%s5594_s1 + $0x110] sm:$0xff]  }
   0xf   :  { %2255 = vmatprep.mubr.bf16.mxu1 %v3210_v39  ;;  %v4310_v42 = vld [vmem:[%s5594_s1 + $0x1c0] sm:$0xff]   ;;  %v3226_v49 = vcombine.high %v32_v47, %v40_v48  ;;  %v4312_v50 = vld [vmem:[%s5594_s1 + $0x148] sm:$0xff]   ;;  %v3225_v53 = vcombine.low %v32_v47, %v40_v48  ;;  %v4318_v5 = vld [vmem:[%s5594_s1 + $0x1d0] sm:$0xff]  }
  0x10   :  { %3627 = vmatpush3.bf16.msra.mxu0 %v4290_v14  ;;  %v4311_v43 = vld [vmem:[%s5594_s1 + $0x180] sm:$0xff]   ;;  %v4313_v52 = vld [vmem:[%s5594_s1 + $0x108] sm:$0xff]   ;;  %v4319_v8 = vld [vmem:[%s5594_s1 + $0x190] sm:$0xff]  }
  0x11   :  { %3709 = vmatpush3.bf16.msra.mxu1 %v4291_v15  ;;  %3628 = vmatprep.subr.bf16.mxu0 %v4292_v16  ;;  %v31_v44 = vld [vmem:[%s5595_s0 + $0x80] sm:$0xff]  ;;  %v4314_v54 = vld [vmem:[%s5594_s1 + $0x1c8] sm:$0xff]   ;;  %v4320_v10 = vld [vmem:[%s5594_s1 + $0x158] sm:$0xff]  }
  0x12   :  { %3710 = vmatprep.subr.bf16.mxu1 %v4293_v17  ;;  %v39_v45 = vld [vmem:[%s5595_s0 + $0xc0] sm:$0xff]  ;;  %v4315_v55 = vld [vmem:[%s5594_s1 + $0x188] sm:$0xff]   ;;  %v4321_v12 = vld [vmem:[%s5594_s1 + $0x118] sm:$0xff]  }
  0x13   :  { %v3224_v46 = vcombine.high %v31_v44, %v39_v45  ;;  %v3223_v51 = vcombine.low %v31_v44, %v39_v45  ;;  %v47_v56 = vld [vmem:[%s5595_s0 + $0x100] sm:$0xff]  ;;  %v48_v58 = vld [vmem:[%s5595_s0 + $0x108] sm:$0xff]  ;;  %v4322_v13 = vld [vmem:[%s5594_s1 + $0x1d8] sm:$0xff]  }
  0x14   :  { %3629 = vmatpush3.bf16.msra.mxu0 %v4294_v18  ;;  %v55_v57 = vld [vmem:[%s5595_s0 + $0x140] sm:$0xff]  ;;  %v56_v59 = vld [vmem:[%s5595_s0 + $0x148] sm:$0xff]  ;;  %v4323_v15 = vld [vmem:[%s5594_s1 + $0x198] sm:$0xff]  }
  0x15   :  { %3711 = vmatpush3.bf16.msra.mxu1 %v4295_v19  ;;  %3630 = vmatprep.subr.bf16.mxu0 %v4296_v20  ;;  %v3240_v60 = vcombine.high %v47_v56, %v55_v57  ;;  %v3242_v61 = vcombine.high %v48_v58, %v56_v59  ;;  %v63_v63 = vld [vmem:[%s5595_s0 + $0x180] sm:$0xff]  ;;  %v64_v1 = vld [vmem:[%s5595_s0 + $0x188] sm:$0xff]  ;;  %v3239_v4 = vcombine.low %v47_v56, %v55_v57  ;;  %v4334_v44 = vld [vmem:[%s5594_s1 + $0x1f0] sm:$0xff]  }
  0x16   :  { %3712 = vmatprep.subr.bf16.mxu1 %v4297_v21  ;;  %v71_v0 = vld [vmem:[%s5595_s0 + $0x1c0] sm:$0xff]  ;;  %v72_v2 = vld [vmem:[%s5595_s0 + $0x1c8] sm:$0xff]  ;;  %v3241_v6 = vcombine.low %v48_v58, %v56_v59  ;;  %v4335_v45 = vld [vmem:[%s5594_s1 + $0x1b0] sm:$0xff]  }
  0x17   :  { %v3256_v7 = vcombine.high %v63_v63, %v71_v0  ;;  %v3258_v9 = vcombine.high %v64_v1, %v72_v2  ;;  %v79_v11 = vld [vmem:[%s5595_s0 + $0x200] sm:$0xff]  ;;  %v80_v16 = vld [vmem:[%s5595_s0 + $0x208] sm:$0xff]  ;;  %v3255_v18 = vcombine.low %v63_v63, %v71_v0  ;;  %v3257_v20 = vcombine.low %v64_v1, %v72_v2 }
  0x18   :  { %3631 = vmatpush3.bf16.msra.mxu0 %v4298_v22  ;;  %v87_v14 = vld [vmem:[%s5595_s0 + $0x240] sm:$0xff]  ;;  %v88_v17 = vld [vmem:[%s5595_s0 + $0x248] sm:$0xff] }
  0x19   :  { %3713 = vmatpush3.bf16.msra.mxu1 %v4299_v23  ;;  %3632 = vmatprep.subr.bf16.mxu0 %v4300_v24  ;;  %v4324_v19 = vld [vmem:[%s5594_s1 + $0x160] sm:$0xff]   ;;  %v3272_v21 = vcombine.high %v79_v11, %v87_v14  ;;  %v3274_v23 = vcombine.high %v80_v16, %v88_v17  ;;  %v4329_v32 = vld [vmem:[%s5594_s1 + $0x128] sm:$0xff]   ;;  %v3273_v33 = vcombine.low %v80_v16, %v88_v17 }
  0x1a   :  { %3714 = vmatprep.subr.bf16.mxu1 %v4301_v25  ;;  %v4325_v22 = vld [vmem:[%s5594_s1 + $0x120] sm:$0xff]   ;;  %v4331_v37 = vld [vmem:[%s5594_s1 + $0x1a8] sm:$0xff]  }
  0x1b   :  { %v4326_v24 = vld [vmem:[%s5594_s1 + $0x1e0] sm:$0xff]   ;;  %v128_v56 = vld [vmem:[%s5595_s0 + $0x388] sm:$0xff] }
  0x1c   :  { %3633 = vmatpush3.bf16.msra.mxu0 %v4302_v26  ;;  %v95_v25 = vld [vmem:[%s5595_s0 + $0x280] sm:$0xff]  ;;  %v136_v57 = vld [vmem:[%s5595_s0 + $0x3c8] sm:$0xff] }
  0x1d   :  { %3715 = vmatpush3.bf16.msra.mxu1 %v4303_v27  ;;  %3634 = vmatprep.subr.bf16.mxu0 %v4304_v28  ;;  %v103_v26 = vld [vmem:[%s5595_s0 + $0x2c0] sm:$0xff]  ;;  %v96_v28 = vld [vmem:[%s5595_s0 + $0x288] sm:$0xff] }
  0x1e   :  { %3716 = vmatprep.subr.bf16.mxu1 %v4305_v29  ;;  %v4327_v27 = vld [vmem:[%s5594_s1 + $0x1a0] sm:$0xff]   ;;  %v104_v29 = vld [vmem:[%s5595_s0 + $0x2c8] sm:$0xff]  ;;  %v3288_v34 = vcombine.high %v95_v25, %v103_v26 }
  0x1f   :  { %v3290_v36 = vcombine.high %v96_v28, %v104_v29  ;;  %v119_v39 = vld [vmem:[%s5595_s0 + $0x340] sm:$0xff]  ;;  %v3289_v47 = vcombine.low %v96_v28, %v104_v29  ;;  %v144_v2 = vld [vmem:[%s5595_s0 + $0x408] sm:$0xff] }
  0x20   :  { %3635 = vmatpush3.bf16.msra.mxu0 %v4306_v30  ;;  %v4328_v30 = vld [vmem:[%s5594_s1 + $0x168] sm:$0xff]   ;;  %v4340_v59 = vld [vmem:[%s5594_s1 + $0x240] sm:$0xff]  }
  0x21   :  { %3717 = vmatpush3.bf16.msra.mxu1 %v4307_v31  ;;  %3784 = vmatprep.subr.bf16.mxu0 %v4308_v40  ;;  %v3271_v31 = vcombine.low %v79_v11, %v87_v14  ;;  %v4332_v40 = vld [vmem:[%s5594_s1 + $0x170] sm:$0xff]   ;;  %v4342_v63 = vld [vmem:[%s5594_s1 + $0x2c0] sm:$0xff]   ;;  %v168_v11 = vld [vmem:[%s5595_s0 + $0x4c8] sm:$0xff] }
  0x22   :  { %3866 = vmatprep.subr.bf16.mxu1 %v4310_v42  ;;  %v120_v42 = vld [vmem:[%s5595_s0 + $0x348] sm:$0xff]  ;;  %v143_v0 = vld [vmem:[%s5595_s0 + $0x400] sm:$0xff] }
  0x23   :  { %2135 = vmatmul.mubr.bf16.vlgmr.msra.gmra.mrb[0].mxu0 %v3207_v35  ;;  %v4330_v35 = vld [vmem:[%s5594_s1 + $0x1e8] sm:$0xff]   ;;  %v151_v1 = vld [vmem:[%s5595_s0 + $0x440] sm:$0xff] }
  0x24   :  { %2256 = vmatmul.mubr.bf16.vlgmr.msra.gmra.mrb[0].mxu1 %v3209_v38  ;;  %3785 = vmatpush3.bf16.msra.mxu0 %v4309_v41  ;;  %v111_v38 = vld [vmem:[%s5595_s0 + $0x300] sm:$0xff]  ;;  %v112_v41 = vld [vmem:[%s5595_s0 + $0x308] sm:$0xff] }
  0x25   :  { %3867 = vmatpush3.bf16.msra.mxu1 %v4311_v43  ;;  %2142 = vmatprep.mubr.bf16.mxu0 %v3224_v46  ;;  %v4333_v43 = vld [vmem:[%s5594_s1 + $0x130] sm:$0xff]   ;;  %v3287_v46 = vcombine.low %v95_v25, %v103_v26  ;;  %v3304_v48 = vcombine.high %v111_v38, %v119_v39  ;;  %v3303_v58 = vcombine.low %v111_v38, %v119_v39  ;;  %v175_v16 = vld [vmem:[%s5595_s0 + $0x500] sm:$0xff]  ;;  %v18_v26 = vld [vmem:[%s5595_s0 + $0x18] sm:$0xff] }
  0x26   :  { %2263 = vmatprep.mubr.bf16.mxu1 %v3226_v49  ;;  %3786 = vmatprep.subr.bf16.mxu0 %v4312_v50  ;;  %v3306_v49 = vcombine.high %v112_v41, %v120_v42  ;;  %v4336_v50 = vld [vmem:[%s5594_s1 + $0x178] sm:$0xff]   ;;  %v183_v17 = vld [vmem:[%s5595_s0 + $0x540] sm:$0xff]  ;;  %v25_v25 = vld [vmem:[%s5595_s0 + $0x50] sm:$0xff] }
  0x27   :  { %3868 = vmatprep.subr.bf16.mxu1 %v4314_v54  ;;  %v135_v54 = vld [vmem:[%s5595_s0 + $0x3c0] sm:$0xff]  ;;  %v3367_v28 = vcombine.low %v175_v16, %v183_v17 }
  0x28   :  { %3787 = vmatpush3.bf16.msra.mxu0 %v4313_v52  ;;  %v127_v52 = vld [vmem:[%s5595_s0 + $0x380] sm:$0xff] }
  0x29   :  { %3869 = vmatpush3.bf16.msra.mxu1 %v4315_v55  ;;  %3788 = vmatprep.subr.bf16.mxu0 %v4316_v62  ;;  %v4339_v55 = vld [vmem:[%s5594_s1 + $0x1b8] sm:$0xff]   ;;  %v3322_v62 = vcombine.high %v128_v56, %v136_v57  ;;  %v4341_v38 = vld [vmem:[%s5594_s1 + $0x200] sm:$0xff]  }
  0x2a   :  { %3870 = vmatprep.subr.bf16.mxu1 %v4318_v5  ;;  %v3321_v5 = vcombine.low %v128_v56, %v136_v57  ;;  %v4343_v39 = vld [vmem:[%s5594_s1 + $0x280] sm:$0xff]   ;;  %v4349_v56 = vld [vmem:[%s5594_s1 + $0x210] sm:$0xff]  }
  0x2b   :  { %2143 = vmatmul.mubr.bf16.gmra.mrb[4].mxu0 %v3223_v51  ;;  %v4337_v51 = vld [vmem:[%s5594_s1 + $0x138] sm:$0xff]   ;;  %v4351_v57 = vld [vmem:[%s5594_s1 + $0x290] sm:$0xff]  }
  0x2c   :  { %2264 = vmatmul.mubr.bf16.gmra.mrb[4].mxu1 %v3225_v53  ;;  %2150 = vmatprep.mubr.bf16.mxu0 %v3240_v60  ;;  %v4338_v53 = vld [vmem:[%s5594_s1 + $0x1f8] sm:$0xff]   ;;  %v3305_v60 = vcombine.low %v112_v41, %v120_v42  ;;  %v4344_v41 = vld [vmem:[%s5594_s1 + $0x248] sm:$0xff]  }
  0x2d   :  { %2271 = vmatprep.mubr.bf16.mxu1 %v3242_v61  ;;  %3789 = vmatpush3.bf16.msra.mxu0 %v4317_v3  ;;  %v3320_v61 = vcombine.high %v127_v52, %v135_v54  ;;  %v152_v3 = vld [vmem:[%s5595_s0 + $0x448] sm:$0xff] }
  0x2e   :  { %3871 = vmatpush3.bf16.msra.mxu1 %v4319_v8  ;;  %3790 = vmatprep.subr.bf16.mxu0 %v4320_v10  ;;  %v159_v8 = vld [vmem:[%s5595_s0 + $0x480] sm:$0xff]  ;;  %v160_v10 = vld [vmem:[%s5595_s0 + $0x488] sm:$0xff] }
  0x2f   :  { %3872 = vmatprep.subr.bf16.mxu1 %v4322_v13  ;;  %v3337_v13 = vcombine.low %v144_v2, %v152_v3 }
  0x31   :  { %3791 = vmatpush3.bf16.msra.mxu0 %v4321_v12  ;;  %v3335_v12 = vcombine.low %v143_v0, %v151_v1 }
  0x32   :  { %3873 = vmatpush3.bf16.msra.mxu1 %v4323_v15  ;;  %3792 = vmatprep.subr.bf16.mxu0 %v4324_v19  ;;  %v3354_v15 = vcombine.high %v160_v10, %v168_v11  ;;  %v184_v19 = vld [vmem:[%s5595_s0 + $0x548] sm:$0xff] }
  0x33   :  { %2151 = vmatmul.mubr.bf16.gmra.mrb[8].mxu0 %v3239_v4  ;;  %3874 = vmatprep.subr.bf16.mxu1 %v4326_v24  ;;  %v3319_v4 = vcombine.low %v127_v52, %v135_v54  ;;  %v17_v24 = vld [vmem:[%s5595_s0 + $0x10] sm:$0xff] }
  0x34   :  { %2272 = vmatmul.mubr.bf16.gmra.mrb[8].mxu1 %v3241_v6  ;;  %2158 = vmatprep.mubr.bf16.mxu0 %v3256_v7  ;;  %v3336_v6 = vcombine.high %v143_v0, %v151_v1  ;;  %v3338_v7 = vcombine.high %v144_v2, %v152_v3  ;;  %v4353_v0 = vld [vmem:[%s5594_s1 + $0x218] sm:$0xff]   ;;  %v4356_v2 = vld [vmem:[%s5594_s1 + $0x260] sm:$0xff]  }
  0x35   :  { %2279 = vmatprep.mubr.bf16.mxu1 %v3258_v9  ;;  %3793 = vmatpush3.bf16.msra.mxu0 %v4325_v22  ;;  %v167_v9 = vld [vmem:[%s5595_s0 + $0x4c0] sm:$0xff]  ;;  %v3368_v22 = vcombine.high %v175_v16, %v183_v17  ;;  %v4355_v1 = vld [vmem:[%s5594_s1 + $0x298] sm:$0xff]   ;;  %v4363_v17 = vld [vmem:[%s5594_s1 + $0x2a8] sm:$0xff]  }
  0x36   :  { %3875 = vmatpush3.bf16.msra.mxu1 %v4327_v27  ;;  %3794 = vmatprep.subr.bf16.mxu0 %v4328_v30  ;;  %v3352_v14 = vcombine.high %v159_v8, %v167_v9  ;;  %v26_v27 = vld [vmem:[%s5595_s0 + $0x58] sm:$0xff]  ;;  %v3212_v30 = vcombine.high %v17_v24, %v25_v25 }
  0x37   :  { %3876 = vmatprep.subr.bf16.mxu1 %v4330_v35  ;;  %v3211_v35 = vcombine.low %v17_v24, %v25_v25  ;;  %v90_v16 = vld [vmem:[%s5595_s0 + $0x258] sm:$0xff]  ;;  %v4367_v25 = vld [vmem:[%s5594_s1 + $0x2b0] sm:$0xff]  }
  0x39   :  { %3795 = vmatpush3.bf16.msra.mxu0 %v4329_v32  ;;  %v33_v32 = vld [vmem:[%s5595_s0 + $0x90] sm:$0xff] }
  0x3a   :  { %3877 = vmatpush3.bf16.msra.mxu1 %v4331_v37  ;;  %3796 = vmatprep.subr.bf16.mxu0 %v4332_v40  ;;  %v3213_v37 = vcombine.low %v18_v26, %v26_v27 }
  0x3b   :  { %2159 = vmatmul.mubr.bf16.gmra.mrb[12].mxu0 %v3255_v18  ;;  %3878 = vmatprep.subr.bf16.mxu1 %v4334_v44  ;;  %v176_v18 = vld [vmem:[%s5595_s0 + $0x508] sm:$0xff] }
  0x3c   :  { %2280 = vmatmul.mubr.bf16.gmra.mrb[12].mxu1 %v3257_v20  ;;  %2166 = vmatprep.mubr.bf16.mxu0 %v3272_v21  ;;  %v3351_v20 = vcombine.low %v159_v8, %v167_v9  ;;  %v3353_v21 = vcombine.low %v160_v10, %v168_v11  ;;  %v3369_v29 = vcombine.low %v176_v18, %v184_v19  ;;  %v4346_v44 = vld [vmem:[%s5594_s1 + $0x2c8] sm:$0xff]   ;;  %v4357_v8 = vld [vmem:[%s5594_s1 + $0x220] sm:$0xff]   ;;  %v81_v11 = vld [vmem:[%s5595_s0 + $0x210] sm:$0xff] }
  0x3d   :  { %2287 = vmatprep.mubr.bf16.mxu1 %v3274_v23  ;;  %3797 = vmatpush3.bf16.msra.mxu0 %v4333_v43  ;;  %v3370_v23 = vcombine.high %v176_v18, %v184_v19  ;;  %v4345_v43 = vld [vmem:[%s5594_s1 + $0x208] sm:$0xff]   ;;  %v4359_v9 = vld [vmem:[%s5594_s1 + $0x2a0] sm:$0xff]   ;;  %v4364_v18 = vld [vmem:[%s5594_s1 + $0x270] sm:$0xff]  }
  0x3e   :  { %3879 = vmatpush3.bf16.msra.mxu1 %v4335_v45  ;;  %3798 = vmatprep.subr.bf16.mxu0 %v4336_v50  ;;  %v4347_v45 = vld [vmem:[%s5594_s1 + $0x288] sm:$0xff]   ;;  %v4348_v50 = vld [vmem:[%s5594_s1 + $0x250] sm:$0xff]  }
  0x3f   :  { %3880 = vmatprep.subr.bf16.mxu1 %v4338_v53  ;;  %v4360_v10 = vld [vmem:[%s5594_s1 + $0x268] sm:$0xff]  }
  0x41   :  { %3799 = vmatpush3.bf16.msra.mxu0 %v4337_v51  ;;  %v4350_v51 = vld [vmem:[%s5594_s1 + $0x2d0] sm:$0xff]  }
  0x42   :  { %3881 = vmatpush3.bf16.msra.mxu1 %v4339_v55  ;;  %3948 = vmatprep.subr.bf16.mxu0 %v4340_v59  ;;  %v65_v59 = vld [vmem:[%s5595_s0 + $0x190] sm:$0xff] }
  0x43   :  { %2167 = vmatmul.mubr.bf16.gmra.mrb[16].mxu0 %v3271_v31  ;;  %4030 = vmatprep.subr.bf16.mxu1 %v4342_v63  ;;  %v3214_v31 = vcombine.high %v18_v26, %v26_v27  ;;  %v74_v63 = vld [vmem:[%s5595_s0 + $0x1d8] sm:$0xff]  ;;  %v97_v27 = vld [vmem:[%s5595_s0 + $0x290] sm:$0xff] }
  0x44   :  { %2288 = vmatmul.mubr.bf16.gmra.mrb[16].mxu1 %v3273_v33  ;;  %2174 = vmatprep.mubr.bf16.mxu0 %v3288_v34  ;;  %v41_v33 = vld [vmem:[%s5595_s0 + $0xd0] sm:$0xff]  ;;  %v34_v34 = vld [vmem:[%s5595_s0 + $0x98] sm:$0xff] }
  0x45   :  { %2295 = vmatprep.mubr.bf16.mxu1 %v3290_v36  ;;  %v42_v36 = vld [vmem:[%s5595_s0 + $0xd8] sm:$0xff]  ;;  %v3228_v40 = vcombine.high %v33_v32, %v41_v33  ;;  %v3227_v52 = vcombine.low %v33_v32, %v41_v33 }
  0x46   :  { %v3230_v42 = vcombine.high %v34_v34, %v42_v36  ;;  %v3229_v53 = vcombine.low %v34_v34, %v42_v36  ;;  %v4368_v26 = vld [vmem:[%s5594_s1 + $0x278] sm:$0xff]   ;;  %v4372_v34 = vld [vmem:[%s5594_s1 + $0x340] sm:$0xff]  }
  0x47   :  { %v4369_v32 = vld [vmem:[%s5594_s1 + $0x238] sm:$0xff]   ;;  %v4374_v36 = vld [vmem:[%s5594_s1 + $0x3c0] sm:$0xff]  }
  0x48   :  { %v4371_v33 = vld [vmem:[%s5594_s1 + $0x2b8] sm:$0xff]  }
  0x4b   :  { %2175 = vmatmul.mubr.bf16.gmra.mrb[20].mxu0 %v3287_v46  ;;  %v49_v46 = vld [vmem:[%s5595_s0 + $0x110] sm:$0xff] }
  0x4c   :  { %2296 = vmatmul.mubr.bf16.gmra.mrb[20].mxu1 %v3289_v47  ;;  %2182 = vmatprep.mubr.bf16.mxu0 %v3304_v48  ;;  %v57_v47 = vld [vmem:[%s5595_s0 + $0x150] sm:$0xff]  ;;  %v50_v48 = vld [vmem:[%s5595_s0 + $0x118] sm:$0xff] }
  0x4d   :  { %2303 = vmatprep.mubr.bf16.mxu1 %v3306_v49  ;;  %v58_v49 = vld [vmem:[%s5595_s0 + $0x158] sm:$0xff]  ;;  %v3244_v54 = vcombine.high %v49_v46, %v57_v47  ;;  %v3243_v3 = vcombine.low %v49_v46, %v57_v47 }
  0x4e   :  { %v3246_v55 = vcombine.high %v50_v48, %v58_v49 }
  0x53   :  { %2183 = vmatmul.mubr.bf16.gmra.mrb[24].mxu0 %v3303_v58  ;;  %v4352_v58 = vld [vmem:[%s5594_s1 + $0x258] sm:$0xff]  }
  0x54   :  { %2304 = vmatmul.mubr.bf16.gmra.mrb[24].mxu1 %v3305_v60  ;;  %2190 = vmatprep.mubr.bf16.mxu0 %v3320_v61  ;;  %v73_v60 = vld [vmem:[%s5595_s0 + $0x1d0] sm:$0xff]  ;;  %v4354_v61 = vld [vmem:[%s5594_s1 + $0x2d8] sm:$0xff]  }
  0x55   :  { %2311 = vmatprep.mubr.bf16.mxu1 %v3322_v62  ;;  %v66_v62 = vld [vmem:[%s5595_s0 + $0x198] sm:$0xff]  ;;  %v3259_v19 = vcombine.low %v65_v59, %v73_v60 }
  0x5b   :  { %2191 = vmatmul.mubr.bf16.gmra.mrb[28].mxu0 %v3319_v4  ;;  %v4358_v4 = vld [vmem:[%s5594_s1 + $0x2e0] sm:$0xff]  }
  0x5c   :  { %2312 = vmatmul.mubr.bf16.gmra.mrb[28].mxu1 %v3321_v5  ;;  %2198 = vmatprep.mubr.bf16.mxu0 %v3336_v6  ;;  %v3245_v5 = vcombine.low %v50_v48, %v58_v49  ;;  %v3260_v6 = vcombine.high %v65_v59, %v73_v60  ;;  %v129_v48 = vld [vmem:[%s5595_s0 + $0x390] sm:$0xff]  ;;  %v154_v59 = vld [vmem:[%s5595_s0 + $0x458] sm:$0xff] }
  0x5d   :  { %2319 = vmatprep.mubr.bf16.mxu1 %v3338_v7  ;;  %v3262_v7 = vcombine.high %v66_v62, %v74_v63  ;;  %v137_v49 = vld [vmem:[%s5595_s0 + $0x3d0] sm:$0xff] }
  0x5e   :  { %v3323_v60 = vcombine.low %v129_v48, %v137_v49 }
  0x63   :  { %2199 = vmatmul.mubr.bf16.gmra.mrb[32].mxu0 %v3335_v12  ;;  %v4362_v12 = vld [vmem:[%s5594_s1 + $0x2e8] sm:$0xff]  }
  0x64   :  { %2320 = vmatmul.mubr.bf16.gmra.mrb[32].mxu1 %v3337_v13  ;;  %2206 = vmatprep.mubr.bf16.mxu0 %v3352_v14  ;;  %v89_v13 = vld [vmem:[%s5595_s0 + $0x250] sm:$0xff]  ;;  %v82_v14 = vld [vmem:[%s5595_s0 + $0x218] sm:$0xff] }
  0x65   :  { %2327 = vmatprep.mubr.bf16.mxu1 %v3354_v15  ;;  %v4361_v15 = vld [vmem:[%s5594_s1 + $0x228] sm:$0xff]   ;;  %v3278_v24 = vcombine.high %v82_v14, %v90_v16 }
  0x6b   :  { %2207 = vmatmul.mubr.bf16.gmra.mrb[36].mxu0 %v3351_v20  ;;  %v4366_v20 = vld [vmem:[%s5594_s1 + $0x2f0] sm:$0xff]  }
  0x6c   :  { %2328 = vmatmul.mubr.bf16.gmra.mrb[36].mxu1 %v3353_v21  ;;  %2214 = vmatprep.mubr.bf16.mxu0 %v3368_v22  ;;  %v3261_v21 = vcombine.low %v66_v62, %v74_v63  ;;  %v3276_v22 = vcombine.high %v81_v11, %v89_v13 }
  0x6d   :  { %2335 = vmatprep.mubr.bf16.mxu1 %v3370_v23  ;;  %v4365_v23 = vld [vmem:[%s5594_s1 + $0x230] sm:$0xff]  }
  0x73   :  { %2215 = vmatmul.mubr.bf16.gmra.mrb[40].mxu0 %v3367_v28  ;;  %v105_v28 = vld [vmem:[%s5595_s0 + $0x2d0] sm:$0xff] }
  0x74   :  { %2336 = vmatmul.mubr.bf16.gmra.mrb[40].mxu1 %v3369_v29  ;;  %2376 = vmatprep.mubr.bf16.mxu0 %v3212_v30  ;;  %v4370_v29 = vld [vmem:[%s5594_s1 + $0x2f8] sm:$0xff]  }
  0x75   :  { %2497 = vmatprep.mubr.bf16.mxu1 %v3214_v31  ;;  %v98_v30 = vld [vmem:[%s5595_s0 + $0x298] sm:$0xff] }
  0x76   :  { %v106_v31 = vld [vmem:[%s5595_s0 + $0x2d8] sm:$0xff] }
  0x7b   :  { %2377 = vmatmul.mubr.bf16.vlgmr.msra.gmra.mrb[44].mxu0 %v3211_v35  ;;  %v3275_v35 = vcombine.low %v81_v11, %v89_v13  ;;  %v186_v11 = vld [vmem:[%s5595_s0 + $0x558] sm:$0xff] }
  0x7c   :  { %2498 = vmatmul.mubr.bf16.vlgmr.msra.gmra.mrb[44].mxu1 %v3213_v37  ;;  %3949 = vmatpush3.bf16.msra.mxu0 %v4341_v38  ;;  %v3277_v37 = vcombine.low %v82_v14, %v90_v16  ;;  %v3292_v38 = vcombine.high %v97_v27, %v105_v28  ;;  %v19_v16 = vld [vmem:[%s5595_s0 + $0x20] sm:$0xff] }
  0x7d   :  { %4031 = vmatpush3.bf16.msra.mxu1 %v4343_v39  ;;  %2384 = vmatprep.mubr.bf16.mxu0 %v3228_v40  ;;  %v3294_v39 = vcombine.high %v98_v30, %v106_v31  ;;  %v113_v40 = vld [vmem:[%s5595_s0 + $0x310] sm:$0xff] }
  0x7e   :  { %2505 = vmatprep.mubr.bf16.mxu1 %v3230_v42  ;;  %3950 = vmatprep.subr.bf16.mxu0 %v4344_v41  ;;  %v121_v41 = vld [vmem:[%s5595_s0 + $0x350] sm:$0xff]  ;;  %v114_v42 = vld [vmem:[%s5595_s0 + $0x318] sm:$0xff] }
  0x7f   :  { %4032 = vmatprep.subr.bf16.mxu1 %v4346_v44  ;;  %v3291_v44 = vcombine.low %v97_v27, %v105_v28  ;;  %v3308_v46 = vcombine.high %v113_v40, %v121_v41  ;;  %v36_v27 = vld [vmem:[%s5595_s0 + $0xa8] sm:$0xff] }
  0x80   :  { %3951 = vmatpush3.bf16.msra.mxu0 %v4345_v43  ;;  %v122_v43 = vld [vmem:[%s5595_s0 + $0x358] sm:$0xff]  ;;  %v44_v28 = vld [vmem:[%s5595_s0 + $0xe8] sm:$0xff] }
  0x81   :  { %4033 = vmatpush3.bf16.msra.mxu1 %v4347_v45  ;;  %3952 = vmatprep.subr.bf16.mxu0 %v4348_v50  ;;  %v3293_v45 = vcombine.low %v98_v30, %v106_v31  ;;  %v3310_v47 = vcombine.high %v114_v42, %v122_v43  ;;  %v130_v50 = vld [vmem:[%s5595_s0 + $0x398] sm:$0xff]  ;;  %v4373_v30 = vld [vmem:[%s5594_s1 + $0x300] sm:$0xff]  }
  0x82   :  { %4034 = vmatprep.subr.bf16.mxu1 %v4350_v51  ;;  %v138_v51 = vld [vmem:[%s5595_s0 + $0x3d8] sm:$0xff]  ;;  %v4375_v31 = vld [vmem:[%s5594_s1 + $0x380] sm:$0xff]  }
  0x83   :  { %2385 = vmatmul.mubr.bf16.gmra.mrb[48].mxu0 %v3227_v52  ;;  %v3307_v52 = vcombine.low %v113_v40, %v121_v41  ;;  %v4380_v40 = vld [vmem:[%s5594_s1 + $0x350] sm:$0xff]   ;;  %v52_v41 = vld [vmem:[%s5595_s0 + $0x128] sm:$0xff] }
  0x84   :  { %2506 = vmatmul.mubr.bf16.gmra.mrb[48].mxu1 %v3229_v53  ;;  %2392 = vmatprep.mubr.bf16.mxu0 %v3244_v54  ;;  %v3309_v53 = vcombine.low %v114_v42, %v122_v43  ;;  %v3324_v54 = vcombine.high %v129_v48, %v137_v49  ;;  %v60_v42 = vld [vmem:[%s5595_s0 + $0x168] sm:$0xff]  ;;  %v4382_v43 = vld [vmem:[%s5594_s1 + $0x3d0] sm:$0xff]  }
  0x85   :  { %2513 = vmatprep.mubr.bf16.mxu1 %v3246_v55  ;;  %3953 = vmatpush3.bf16.msra.mxu0 %v4349_v56  ;;  %v3326_v55 = vcombine.high %v130_v50, %v138_v51  ;;  %v145_v56 = vld [vmem:[%s5595_s0 + $0x410] sm:$0xff] }
  0x86   :  { %4035 = vmatpush3.bf16.msra.mxu1 %v4351_v57  ;;  %3954 = vmatprep.subr.bf16.mxu0 %v4352_v58  ;;  %v153_v57 = vld [vmem:[%s5595_s0 + $0x450] sm:$0xff]  ;;  %v146_v58 = vld [vmem:[%s5595_s0 + $0x418] sm:$0xff] }
  0x87   :  { %4036 = vmatprep.subr.bf16.mxu1 %v4354_v61  ;;  %v3325_v61 = vcombine.low %v130_v50, %v138_v51  ;;  %v3340_v62 = vcombine.high %v145_v56, %v153_v57  ;;  %v3342_v63 = vcombine.high %v146_v58, %v154_v59  ;;  %v4381_v48 = vld [vmem:[%s5594_s1 + $0x310] sm:$0xff]   ;;  %v4384_v50 = vld [vmem:[%s5594_s1 + $0x358] sm:$0xff]  }
  0x88   :  { %v4383_v49 = vld [vmem:[%s5594_s1 + $0x390] sm:$0xff]   ;;  %v4386_v51 = vld [vmem:[%s5594_s1 + $0x3d8] sm:$0xff]  }
  0x89   :  { %3955 = vmatpush3.bf16.msra.mxu0 %v4353_v0  ;;  %v161_v0 = vld [vmem:[%s5595_s0 + $0x490] sm:$0xff] }
  0x8a   :  { %4037 = vmatpush3.bf16.msra.mxu1 %v4355_v1  ;;  %3956 = vmatprep.subr.bf16.mxu0 %v4356_v2  ;;  %v169_v1 = vld [vmem:[%s5595_s0 + $0x4d0] sm:$0xff]  ;;  %v162_v2 = vld [vmem:[%s5595_s0 + $0x498] sm:$0xff] }
  0x8b   :  { %2393 = vmatmul.mubr.bf16.gmra.mrb[52].mxu0 %v3243_v3  ;;  %4038 = vmatprep.subr.bf16.mxu1 %v4358_v4  ;;  %v170_v3 = vld [vmem:[%s5595_s0 + $0x4d8] sm:$0xff]  ;;  %v3339_v4 = vcombine.low %v145_v56, %v153_v57  ;;  %v76_v56 = vld [vmem:[%s5595_s0 + $0x1e8] sm:$0xff] }
  0x8c   :  { %2514 = vmatmul.mubr.bf16.gmra.mrb[52].mxu1 %v3245_v5  ;;  %2400 = vmatprep.mubr.bf16.mxu0 %v3260_v6  ;;  %v3341_v5 = vcombine.low %v146_v58, %v154_v59  ;;  %v3356_v6 = vcombine.high %v161_v0, %v169_v1  ;;  %v3357_v13 = vcombine.low %v162_v2, %v170_v3  ;;  %v4387_v57 = vld [vmem:[%s5594_s1 + $0x398] sm:$0xff]   ;;  %v4388_v58 = vld [vmem:[%s5594_s1 + $0x360] sm:$0xff]  }
  0x8d   :  { %2521 = vmatprep.mubr.bf16.mxu1 %v3262_v7  ;;  %3957 = vmatpush3.bf16.msra.mxu0 %v4357_v8  ;;  %v3358_v7 = vcombine.high %v162_v2, %v170_v3  ;;  %v177_v8 = vld [vmem:[%s5595_s0 + $0x510] sm:$0xff]  ;;  %v4392_v2 = vld [vmem:[%s5594_s1 + $0x368] sm:$0xff]  }
  0x8e   :  { %4039 = vmatpush3.bf16.msra.mxu1 %v4359_v9  ;;  %3958 = vmatprep.subr.bf16.mxu0 %v4360_v10  ;;  %v185_v9 = vld [vmem:[%s5595_s0 + $0x550] sm:$0xff]  ;;  %v178_v10 = vld [vmem:[%s5595_s0 + $0x518] sm:$0xff]  ;;  %v4394_v3 = vld [vmem:[%s5594_s1 + $0x3e8] sm:$0xff]  }
  0x8f   :  { %4040 = vmatprep.subr.bf16.mxu1 %v4362_v12  ;;  %v3355_v12 = vcombine.low %v161_v0, %v169_v1  ;;  %v3372_v14 = vcombine.high %v177_v8, %v185_v9  ;;  %v4389_v0 = vld [vmem:[%s5594_s1 + $0x320] sm:$0xff]  }
  0x90   :  { %v4391_v1 = vld [vmem:[%s5594_s1 + $0x3a0] sm:$0xff]  }
  0x91   :  { %3959 = vmatpush3.bf16.msra.mxu0 %v4361_v15  ;;  %v3374_v15 = vcombine.high %v178_v10, %v186_v11 }
  0x92   :  { %4041 = vmatpush3.bf16.msra.mxu1 %v4363_v17  ;;  %3960 = vmatprep.subr.bf16.mxu0 %v4364_v18  ;;  %v27_v17 = vld [vmem:[%s5595_s0 + $0x60] sm:$0xff]  ;;  %v20_v18 = vld [vmem:[%s5595_s0 + $0x28] sm:$0xff] }
  0x93   :  { %2401 = vmatmul.mubr.bf16.gmra.mrb[56].mxu0 %v3259_v19  ;;  %4042 = vmatprep.subr.bf16.mxu1 %v4366_v20  ;;  %v28_v19 = vld [vmem:[%s5595_s0 + $0x68] sm:$0xff]  ;;  %v3371_v20 = vcombine.low %v177_v8, %v185_v9 }
  0x94   :  { %2522 = vmatmul.mubr.bf16.gmra.mrb[56].mxu1 %v3261_v21  ;;  %2408 = vmatprep.mubr.bf16.mxu0 %v3276_v22  ;;  %v3373_v21 = vcombine.low %v178_v10, %v186_v11  ;;  %v3216_v22 = vcombine.high %v19_v16, %v27_v17  ;;  %v92_v8 = vld [vmem:[%s5595_s0 + $0x268] sm:$0xff]  ;;  %v4396_v10 = vld [vmem:[%s5594_s1 + $0x370] sm:$0xff]  }
  0x95   :  { %2529 = vmatprep.mubr.bf16.mxu1 %v3278_v24  ;;  %3961 = vmatpush3.bf16.msra.mxu0 %v4365_v23  ;;  %v3218_v23 = vcombine.high %v20_v18, %v28_v19  ;;  %v35_v24 = vld [vmem:[%s5595_s0 + $0xa0] sm:$0xff]  ;;  %v4395_v9 = vld [vmem:[%s5594_s1 + $0x3a8] sm:$0xff]  }
  0x96   :  { %4043 = vmatpush3.bf16.msra.mxu1 %v4367_v25  ;;  %3962 = vmatprep.subr.bf16.mxu0 %v4368_v26  ;;  %v43_v25 = vld [vmem:[%s5595_s0 + $0xe0] sm:$0xff]  ;;  %v3215_v26 = vcombine.low %v19_v16, %v27_v17  ;;  %v4397_v16 = vld [vmem:[%s5594_s1 + $0x330] sm:$0xff]  }
  0x97   :  { %4044 = vmatprep.subr.bf16.mxu1 %v4370_v29  ;;  %v3217_v29 = vcombine.low %v20_v18, %v28_v19  ;;  %v4399_v17 = vld [vmem:[%s5594_s1 + $0x3b0] sm:$0xff]   ;;  %v4400_v18 = vld [vmem:[%s5594_s1 + $0x378] sm:$0xff]  }
  0x98   :  { %v4402_v19 = vld [vmem:[%s5594_s1 + $0x3f8] sm:$0xff]  }
  0x99   :  { %3963 = vmatpush3.bf16.msra.mxu0 %v4369_v32  ;;  %v3232_v32 = vcombine.high %v35_v24, %v43_v25 }
  0x9a   :  { %4045 = vmatpush3.bf16.msra.mxu1 %v4371_v33  ;;  %4112 = vmatprep.subr.bf16.mxu0 %v4372_v34  ;;  %v3234_v33 = vcombine.high %v36_v27, %v44_v28  ;;  %v4376_v34 = vld [vmem:[%s5594_s1 + $0x348] sm:$0xff]  }
  0x9b   :  { %2409 = vmatmul.mubr.bf16.gmra.mrb[60].mxu0 %v3275_v35  ;;  %4194 = vmatprep.subr.bf16.mxu1 %v4374_v36  ;;  %v4378_v35 = vld [vmem:[%s5594_s1 + $0x3c8] sm:$0xff]  }
  0x9c   :  { %2530 = vmatmul.mubr.bf16.gmra.mrb[60].mxu1 %v3277_v37  ;;  %2416 = vmatprep.mubr.bf16.mxu0 %v3292_v38  ;;  %v4377_v36 = vld [vmem:[%s5594_s1 + $0x308] sm:$0xff]   ;;  %v51_v38 = vld [vmem:[%s5595_s0 + $0x120] sm:$0xff] }
  0x9d   :  { %2537 = vmatprep.mubr.bf16.mxu1 %v3294_v39  ;;  %v4379_v37 = vld [vmem:[%s5594_s1 + $0x388] sm:$0xff]   ;;  %v59_v39 = vld [vmem:[%s5595_s0 + $0x160] sm:$0xff] }
  0x9e   :  { %v3247_v59 = vcombine.low %v51_v38, %v59_v39 }
  0xa3   :  { %2417 = vmatmul.mubr.bf16.gmra.mrb[64].mxu0 %v3291_v44  ;;  %v3231_v44 = vcombine.low %v35_v24, %v43_v25  ;;  %v108_v24 = vld [vmem:[%s5595_s0 + $0x2e8] sm:$0xff]  ;;  %v4403_v25 = vld [vmem:[%s5594_s1 + $0x3b8] sm:$0xff]  }
  0xa4   :  { %2538 = vmatmul.mubr.bf16.gmra.mrb[64].mxu1 %v3293_v45  ;;  %2424 = vmatprep.mubr.bf16.mxu0 %v3308_v46  ;;  %v3233_v45 = vcombine.low %v36_v27, %v44_v28  ;;  %v3248_v46 = vcombine.high %v51_v38, %v59_v39 }
  0xa5   :  { %2545 = vmatprep.mubr.bf16.mxu1 %v3310_v47  ;;  %v3250_v47 = vcombine.high %v52_v41, %v60_v42 }
  0xab   :  { %2425 = vmatmul.mubr.bf16.gmra.mrb[68].mxu0 %v3307_v52  ;;  %v67_v52 = vld [vmem:[%s5595_s0 + $0x1a0] sm:$0xff] }
  0xac   :  { %2546 = vmatmul.mubr.bf16.gmra.mrb[68].mxu1 %v3309_v53  ;;  %2432 = vmatprep.mubr.bf16.mxu0 %v3324_v54  ;;  %v75_v53 = vld [vmem:[%s5595_s0 + $0x1e0] sm:$0xff]  ;;  %v68_v54 = vld [vmem:[%s5595_s0 + $0x1a8] sm:$0xff] }
  0xad   :  { %2553 = vmatprep.mubr.bf16.mxu1 %v3326_v55  ;;  %v4385_v55 = vld [vmem:[%s5594_s1 + $0x318] sm:$0xff]   ;;  %v3263_v11 = vcombine.low %v67_v52, %v75_v53 }
  0xb3   :  { %2433 = vmatmul.mubr.bf16.gmra.mrb[72].mxu0 %v3323_v60  ;;  %v4390_v60 = vld [vmem:[%s5594_s1 + $0x3e0] sm:$0xff]  }
  0xb4   :  { %2554 = vmatmul.mubr.bf16.gmra.mrb[72].mxu1 %v3325_v61  ;;  %2440 = vmatprep.mubr.bf16.mxu0 %v3340_v62  ;;  %v3249_v61 = vcombine.low %v52_v41, %v60_v42  ;;  %v3264_v62 = vcombine.high %v67_v52, %v75_v53 }
  0xb5   :  { %2561 = vmatprep.mubr.bf16.mxu1 %v3342_v63  ;;  %v3266_v63 = vcombine.high %v68_v54, %v76_v56 }
  0xbb   :  { %2441 = vmatmul.mubr.bf16.gmra.mrb[76].mxu0 %v3339_v4  ;;  %v83_v4 = vld [vmem:[%s5595_s0 + $0x220] sm:$0xff] }
  0xbc   :  { %2562 = vmatmul.mubr.bf16.gmra.mrb[76].mxu1 %v3341_v5  ;;  %2448 = vmatprep.mubr.bf16.mxu0 %v3356_v6  ;;  %v91_v5 = vld [vmem:[%s5595_s0 + $0x260] sm:$0xff]  ;;  %v84_v6 = vld [vmem:[%s5595_s0 + $0x228] sm:$0xff] }
  0xbd   :  { %2569 = vmatprep.mubr.bf16.mxu1 %v3358_v7  ;;  %v4393_v7 = vld [vmem:[%s5594_s1 + $0x328] sm:$0xff]   ;;  %v3281_v27 = vcombine.low %v84_v6, %v92_v8 }
  0xc3   :  { %2449 = vmatmul.mubr.bf16.gmra.mrb[80].mxu0 %v3355_v12  ;;  %v4398_v12 = vld [vmem:[%s5594_s1 + $0x3f0] sm:$0xff]  }
  0xc4   :  { %2570 = vmatmul.mubr.bf16.gmra.mrb[80].mxu1 %v3357_v13  ;;  %2456 = vmatprep.mubr.bf16.mxu0 %v3372_v14  ;;  %v3265_v13 = vcombine.low %v68_v54, %v76_v56  ;;  %v3280_v14 = vcombine.high %v83_v4, %v91_v5  ;;  %v131_v54 = vld [vmem:[%s5595_s0 + $0x3a0] sm:$0xff] }
  0xc5   :  { %2577 = vmatprep.mubr.bf16.mxu1 %v3374_v15  ;;  %v3282_v15 = vcombine.high %v84_v6, %v92_v8 }
  0xcb   :  { %2457 = vmatmul.mubr.bf16.gmra.mrb[84].mxu0 %v3371_v20  ;;  %v99_v20 = vld [vmem:[%s5595_s0 + $0x2a0] sm:$0xff] }
  0xcc   :  { %2578 = vmatmul.mubr.bf16.gmra.mrb[84].mxu1 %v3373_v21  ;;  %2618 = vmatprep.mubr.bf16.mxu0 %v3216_v22  ;;  %v107_v21 = vld [vmem:[%s5595_s0 + $0x2e0] sm:$0xff]  ;;  %v4401_v22 = vld [vmem:[%s5594_s1 + $0x338] sm:$0xff]  }
  0xcd   :  { %2739 = vmatprep.mubr.bf16.mxu1 %v3218_v23  ;;  %v100_v23 = vld [vmem:[%s5595_s0 + $0x2a8] sm:$0xff]  ;;  %v3296_v28 = vcombine.high %v99_v20, %v107_v21  ;;  %v3295_v38 = vcombine.low %v99_v20, %v107_v21 }
  0xce   :  { %v3297_v42 = vcombine.low %v100_v23, %v108_v24 }
  0xd3   :  { %2619 = vmatmul.mubr.bf16.vlgmr.msra.gmra.mrb[88].mxu0 %v3215_v26  ;;  %v3279_v26 = vcombine.low %v83_v4, %v91_v5 }
  0xd4   :  { %2740 = vmatmul.mubr.bf16.vlgmr.msra.gmra.mrb[88].mxu1 %v3217_v29  ;;  %4113 = vmatpush3.bf16.msra.mxu0 %v4373_v30  ;;  %v3298_v29 = vcombine.high %v100_v23, %v108_v24  ;;  %v115_v30 = vld [vmem:[%s5595_s0 + $0x320] sm:$0xff] }
  0xd5   :  { %4195 = vmatpush3.bf16.msra.mxu1 %v4375_v31  ;;  %2626 = vmatprep.mubr.bf16.mxu0 %v3232_v32  ;;  %v123_v31 = vld [vmem:[%s5595_s0 + $0x360] sm:$0xff] }
  0xd6   :  { %2747 = vmatprep.mubr.bf16.mxu1 %v3234_v33  ;;  %4114 = vmatprep.subr.bf16.mxu0 %v4376_v34  ;;  %v116_v33 = vld [vmem:[%s5595_s0 + $0x328] sm:$0xff] }
  0xd7   :  { %4196 = vmatprep.subr.bf16.mxu1 %v4378_v35  ;;  %v124_v34 = vld [vmem:[%s5595_s0 + $0x368] sm:$0xff] }
  0xd8   :  { %4115 = vmatpush3.bf16.msra.mxu0 %v4377_v36  ;;  %v5159_v36 = vld [vmem:[%s5596_s2] ss:$0 sm:$0xff] }
  0xd9   :  { %4197 = vmatpush3.bf16.msra.mxu1 %v4379_v37  ;;  %4116 = vmatprep.subr.bf16.mxu0 %v4380_v40 }
  0xda   :  { %4198 = vmatprep.subr.bf16.mxu1 %v4382_v43  ;;  %v3312_v43 = vcombine.high %v115_v30, %v123_v31 }
  0xdb   :  { %2627 = vmatmul.mubr.bf16.gmra.mrb[92].mxu0 %v3231_v44 }
  0xdc   :  { %2748 = vmatmul.mubr.bf16.gmra.mrb[92].mxu1 %v3233_v45  ;;  %2634 = vmatprep.mubr.bf16.mxu0 %v3248_v46 }
  0xdd   :  { %2755 = vmatprep.mubr.bf16.mxu1 %v3250_v47  ;;  %4117 = vmatpush3.bf16.msra.mxu0 %v4381_v48  ;;  %v3314_v47 = vcombine.high %v116_v33, %v124_v34 }
  0xde   :  { %4199 = vmatpush3.bf16.msra.mxu1 %v4383_v49  ;;  %4118 = vmatprep.subr.bf16.mxu0 %v4384_v50 }
  0xdf   :  { %4200 = vmatprep.subr.bf16.mxu1 %v4386_v51 }
  0xe1   :  { %4119 = vmatpush3.bf16.msra.mxu0 %v4385_v55  ;;  %v139_v55 = vld [vmem:[%s5595_s0 + $0x3e0] sm:$0xff] }
  0xe2   :  { %4201 = vmatpush3.bf16.msra.mxu1 %v4387_v57  ;;  %4120 = vmatprep.subr.bf16.mxu0 %v4388_v58  ;;  %v132_v58 = vld [vmem:[%s5595_s0 + $0x3a8] sm:$0xff] }
  0xe3   :  { %2635 = vmatmul.mubr.bf16.gmra.mrb[96].mxu0 %v3247_v59  ;;  %4202 = vmatprep.subr.bf16.mxu1 %v4390_v60  ;;  %v140_v59 = vld [vmem:[%s5595_s0 + $0x3e8] sm:$0xff] }
  0xe4   :  { %2756 = vmatmul.mubr.bf16.gmra.mrb[96].mxu1 %v3249_v61  ;;  %2642 = vmatprep.mubr.bf16.mxu0 %v3264_v62  ;;  %v3311_v62 = vcombine.low %v115_v30, %v123_v31 }
  0xe5   :  { %2763 = vmatprep.mubr.bf16.mxu1 %v3266_v63  ;;  %4121 = vmatpush3.bf16.msra.mxu0 %v4389_v0 }
  0xe6   :  { %4203 = vmatpush3.bf16.msra.mxu1 %v4391_v1  ;;  %4122 = vmatprep.subr.bf16.mxu0 %v4392_v2  ;;  %v3313_v2 = vcombine.low %v116_v33, %v124_v34 }
  0xe7   :  { %4204 = vmatprep.subr.bf16.mxu1 %v4394_v3  ;;  %v3328_v3 = vcombine.high %v131_v54, %v139_v55 }
  0xe9   :  { %4123 = vmatpush3.bf16.msra.mxu0 %v4393_v7  ;;  %v3330_v7 = vcombine.high %v132_v58, %v140_v59 }
  0xea   :  { %4205 = vmatpush3.bf16.msra.mxu1 %v4395_v9  ;;  %4124 = vmatprep.subr.bf16.mxu0 %v4396_v10 }
  0xeb   :  { %2643 = vmatmul.mubr.bf16.gmra.mrb[100].mxu0 %v3263_v11  ;;  %4206 = vmatprep.subr.bf16.mxu1 %v4398_v12 }
  0xec   :  { %2764 = vmatmul.mubr.bf16.gmra.mrb[100].mxu1 %v3265_v13  ;;  %2650 = vmatprep.mubr.bf16.mxu0 %v3280_v14  ;;  %v147_v14 = vld [vmem:[%s5595_s0 + $0x420] sm:$0xff] }
  0xed   :  { %2771 = vmatprep.mubr.bf16.mxu1 %v3282_v15  ;;  %4125 = vmatpush3.bf16.msra.mxu0 %v4397_v16  ;;  %v155_v15 = vld [vmem:[%s5595_s0 + $0x460] sm:$0xff] }
  0xee   :  { %4207 = vmatpush3.bf16.msra.mxu1 %v4399_v17  ;;  %4126 = vmatprep.subr.bf16.mxu0 %v4400_v18  ;;  %v148_v18 = vld [vmem:[%s5595_s0 + $0x428] sm:$0xff] }
  0xef   :  { %4208 = vmatprep.subr.bf16.mxu1 %v4402_v19  ;;  %v156_v19 = vld [vmem:[%s5595_s0 + $0x468] sm:$0xff] }
  0xf0   :  { %v3346_v31 = vcombine.high %v148_v18, %v156_v19 }
  0xf1   :  { %4127 = vmatpush3.bf16.msra.mxu0 %v4401_v22  ;;  %v3327_v22 = vcombine.low %v131_v54, %v139_v55 }
  0xf2   :  { %4209 = vmatpush3.bf16.msra.mxu1 %v4403_v25 }
  0xf3   :  { %2651 = vmatmul.mubr.bf16.gmra.mrb[104].mxu0 %v3279_v26  ;;  %v3329_v26 = vcombine.low %v132_v58, %v140_v59 }
  0xf4   :  { %2772 = vmatmul.mubr.bf16.gmra.mrb[104].mxu1 %v3281_v27  ;;  %2658 = vmatprep.mubr.bf16.mxu0 %v3296_v28  ;;  %v3344_v27 = vcombine.high %v147_v14, %v155_v15 }
  0xf5   :  { %2779 = vmatprep.mubr.bf16.mxu1 %v3298_v29 }
  0xf6   :  { %v3636_v32 = vpop.f32.mrb[0].mxu0 }
  0xf7   :  { %v3718_v35 = vpop.f32.mrb[0].mxu1  ;;  %v3637_v37 = vpop.f32.mrb[1].mxu0 }
  0xf8   :  { %v3638_v39 = vadd.f32 %v3637_v37, %v3636_v32  ;;  %v3719_v40 = vpop.f32.mrb[1].mxu1  ;;  %v3639_v41 = vpop.f32.mrb[2].mxu0 }
  0xf9   :  { %v3720_v44 = vadd.f32 %v3719_v40, %v3718_v35  ;;  %v3721_v45 = vpop.f32.mrb[2].mxu1  ;;  %v3640_v46 = vpop.f32.mrb[3].mxu0  ;;  %v171_v40 = vld [vmem:[%s5595_s0 + $0x4e0] sm:$0xff] }
  0xfa   :  { %v2137_v48 = vadd.f32 %v3638_v39, %v5159_v36  ;;  %v3641_v49 = vadd.f32 %v3640_v46, %v3639_v41  ;;  %v3722_v50 = vpop.f32.mrb[3].mxu1  ;;  %v163_v39 = vld [vmem:[%s5595_s0 + $0x4a0] sm:$0xff] }
  0xfb   :  { %v3723_v51 = vadd.f32 %v3722_v50, %v3721_v45  ;;  %2659 = vmatmul.mubr.bf16.gmra.mrb[108].mxu0 %v3295_v38 }
  0xfc   :  { %v5162_v52 = vadd.f32 %v3720_v44, %v2137_v48  ;;  %v2140_v53 = vadd.f32 %v3641_v49, %v5159_v36  ;;  %2780 = vmatmul.mubr.bf16.gmra.mrb[108].mxu1 %v3297_v42  ;;  %2666 = vmatprep.mubr.bf16.mxu0 %v3312_v43  ;;  %v164_v43 = vld [vmem:[%s5595_s0 + $0x4a8] sm:$0xff] }
  0xfd   :  { %2787 = vmatprep.mubr.bf16.mxu1 %v3314_v47  ;;  %v172_v44 = vld [vmem:[%s5595_s0 + $0x4e8] sm:$0xff]  ;;  %v3343_v47 = vcombine.low %v147_v14, %v155_v15 }
  0xfe   :  { %v5171_v56 = vadd.f32 %v3723_v51, %v2140_v53  ;;  %v3642_v57 = vpop.f32.mrb[4].mxu0  ;;  %v3345_v51 = vcombine.low %v148_v18, %v156_v19  ;;  %v3360_v53 = vcombine.high %v163_v39, %v171_v40  ;;  %v3362_v58 = vcombine.high %v164_v43, %v172_v44 }
  0xff   :  { %v3724_v60 = vpop.f32.mrb[4].mxu1  ;;  %v3643_v61 = vpop.f32.mrb[5].mxu0  ;;  %v3361_v14 = vcombine.low %v164_v43, %v172_v44 }
 0x100   :  { %v3644_v63 = vadd.f32 %v3643_v61, %v3642_v57  ;;  %v3725_v0 = vpop.f32.mrb[5].mxu1  ;;  %v3645_v1 = vpop.f32.mrb[6].mxu0 }
 0x101   :  { %v3726_v4 = vadd.f32 %v3725_v0, %v3724_v60  ;;  %v3727_v5 = vpop.f32.mrb[6].mxu1  ;;  %v3646_v6 = vpop.f32.mrb[7].mxu0 }
 0x102   :  { %v2145_v8 = vadd.f32 %v3644_v63, %v5159_v36  ;;  %v3647_v9 = vadd.f32 %v3646_v6, %v3645_v1  ;;  %v3728_v10 = vpop.f32.mrb[7].mxu1  ;;  %v179_v1 = vld [vmem:[%s5595_s0 + $0x520] sm:$0xff]  ;;  %v188_v6 = vld [vmem:[%s5595_s0 + $0x568] sm:$0xff] }
 0x103   :  { %v3729_v11 = vadd.f32 %v3728_v10, %v3727_v5  ;;  %2667 = vmatmul.mubr.bf16.gmra.mrb[112].mxu0 %v3311_v62  ;;  %v180_v5 = vld [vmem:[%s5595_s0 + $0x528] sm:$0xff] }
 0x104   :  { %v5180_v12 = vadd.f32 %v3726_v4, %v2145_v8  ;;  %v2148_v13 = vadd.f32 %v3647_v9, %v5159_v36  ;;  %2788 = vmatmul.mubr.bf16.gmra.mrb[112].mxu1 %v3313_v2  ;;  %2674 = vmatprep.mubr.bf16.mxu0 %v3328_v3  ;;  %v187_v2 = vld [vmem:[%s5595_s0 + $0x560] sm:$0xff]  ;;  %v3359_v9 = vcombine.low %v163_v39, %v171_v40 }
 0x105   :  { %2795 = vmatprep.mubr.bf16.mxu1 %v3330_v7  ;;  %v3376_v15 = vcombine.high %v179_v1, %v187_v2 }
 0x106   :  { %v5189_v16 = vadd.f32 %v3729_v11, %v2148_v13  ;;  %v3648_v17 = vpop.f32.mrb[8].mxu0 }
 0x107   :  { %v3730_v20 = vpop.f32.mrb[8].mxu1  ;;  %v3649_v21 = vpop.f32.mrb[9].mxu0 }
 0x108   :  { %v3650_v23 = vadd.f32 %v3649_v21, %v3648_v17  ;;  %v3731_v24 = vpop.f32.mrb[9].mxu1  ;;  %v3651_v25 = vpop.f32.mrb[10].mxu0 }
 0x109   :  { %v3732_v28 = vadd.f32 %v3731_v24, %v3730_v20  ;;  %v3733_v29 = vpop.f32.mrb[10].mxu1  ;;  %v3652_v30 = vpop.f32.mrb[11].mxu0  ;;  %v3378_v20 = vcombine.high %v180_v5, %v188_v6 }
 0x10a   :  { %v2153_v32 = vadd.f32 %v3650_v23, %v5159_v36  ;;  %v3653_v33 = vadd.f32 %v3652_v30, %v3651_v25  ;;  %v3734_v34 = vpop.f32.mrb[11].mxu1 }
 0x10b   :  { %v3735_v35 = vadd.f32 %v3734_v34, %v3733_v29  ;;  %2675 = vmatmul.mubr.bf16.gmra.mrb[116].mxu0 %v3327_v22 }
 0x10c   :  { %v5198_v37 = vadd.f32 %v3732_v28, %v2153_v32  ;;  %v2156_v38 = vadd.f32 %v3653_v33, %v5159_v36  ;;  %2796 = vmatmul.mubr.bf16.gmra.mrb[116].mxu1 %v3329_v26  ;;  %2682 = vmatprep.mubr.bf16.mxu0 %v3344_v27  ;;  %v21_v27 = vld [vmem:[%s5595_s0 + $0x30] sm:$0xff]  ;;  %v30_v32 = vld [vmem:[%s5595_s0 + $0x78] sm:$0xff] }
 0x10d   :  { %2803 = vmatprep.mubr.bf16.mxu1 %v3346_v31  ;;  %v29_v28 = vld [vmem:[%s5595_s0 + $0x70] sm:$0xff]  ;;  %v22_v31 = vld [vmem:[%s5595_s0 + $0x38] sm:$0xff] }
 0x10e   :  { %v5207_v41 = vadd.f32 %v3735_v35, %v2156_v38  ;;  %v3654_v42 = vpop.f32.mrb[12].mxu0  ;;  %v3375_v35 = vcombine.low %v179_v1, %v187_v2  ;;  %v3220_v43 = vcombine.high %v21_v27, %v29_v28  ;;  %v3219_v1 = vcombine.low %v21_v27, %v29_v28 }
 0x10f   :  { %v3736_v45 = vpop.f32.mrb[12].mxu1  ;;  %v3655_v46 = vpop.f32.mrb[13].mxu0 }
 0x110   :  { %v3656_v48 = vadd.f32 %v3655_v46, %v3654_v42  ;;  %v3737_v49 = vpop.f32.mrb[13].mxu1  ;;  %v3657_v50 = vpop.f32.mrb[14].mxu0  ;;  %v3377_v42 = vcombine.low %v180_v5, %v188_v6  ;;  %v3221_v6 = vcombine.low %v22_v31, %v30_v32 }
 0x111   :  { %v3738_v54 = vadd.f32 %v3737_v49, %v3736_v45  ;;  %v3739_v55 = vpop.f32.mrb[14].mxu1  ;;  %v3658_v57 = vpop.f32.mrb[15].mxu0 }
 0x112   :  { %v2161_v59 = vadd.f32 %v3656_v48, %v5159_v36  ;;  %v3659_v60 = vadd.f32 %v3658_v57, %v3657_v50  ;;  %v3740_v61 = vpop.f32.mrb[15].mxu1  ;;  %v45_v57 = vld [vmem:[%s5595_s0 + $0xf0] sm:$0xff] }
 0x113   :  { %v3741_v62 = vadd.f32 %v3740_v61, %v3739_v55  ;;  %2683 = vmatmul.mubr.bf16.gmra.mrb[120].mxu0 %v3343_v47  ;;  %v3222_v47 = vcombine.high %v22_v31, %v30_v32  ;;  %v37_v55 = vld [vmem:[%s5595_s0 + $0xb0] sm:$0xff]  ;;  %v46_v61 = vld [vmem:[%s5595_s0 + $0xf8] sm:$0xff] }
 0x114   :  { %v5216_v63 = vadd.f32 %v3738_v54, %v2161_v59  ;;  %v2164_v0 = vadd.f32 %v3659_v60, %v5159_v36  ;;  %2804 = vmatmul.mubr.bf16.gmra.mrb[120].mxu1 %v3345_v51  ;;  %2690 = vmatprep.mubr.bf16.mxu0 %v3360_v53  ;;  %v38_v60 = vld [vmem:[%s5595_s0 + $0xb8] sm:$0xff] }
 0x115   :  { %2811 = vmatprep.mubr.bf16.mxu1 %v3362_v58 }
 0x116   :  { %v5225_v3 = vadd.f32 %v3741_v62, %v2164_v0  ;;  %v3660_v4 = vpop.f32.mrb[16].mxu0 }
 0x117   :  { %v3742_v7 = vpop.f32.mrb[16].mxu1  ;;  %v3661_v8 = vpop.f32.mrb[17].mxu0 }
 0x118   :  { %v3662_v10 = vadd.f32 %v3661_v8, %v3660_v4  ;;  %v3743_v11 = vpop.f32.mrb[17].mxu1  ;;  %v3663_v13 = vpop.f32.mrb[18].mxu0 }
 0x119   :  { %v3744_v17 = vadd.f32 %v3743_v11, %v3742_v7  ;;  %v3745_v18 = vpop.f32.mrb[18].mxu1  ;;  %v3664_v19 = vpop.f32.mrb[19].mxu0  ;;  %v3236_v7 = vcombine.high %v37_v55, %v45_v57  ;;  %v3238_v11 = vcombine.high %v38_v60, %v46_v61 }
 0x11a   :  { %v2169_v21 = vadd.f32 %v3662_v10, %v5159_v36  ;;  %v3665_v22 = vadd.f32 %v3664_v19, %v3663_v13  ;;  %v3746_v23 = vpop.f32.mrb[19].mxu1 }
 0x11b   :  { %v3747_v24 = vadd.f32 %v3746_v23, %v3745_v18  ;;  %2691 = vmatmul.mubr.bf16.gmra.mrb[124].mxu0 %v3359_v9 }
 0x11c   :  { %v5234_v25 = vadd.f32 %v3744_v17, %v2169_v21  ;;  %v2172_v26 = vadd.f32 %v3665_v22, %v5159_v36  ;;  %2812 = vmatmul.mubr.bf16.gmra.mrb[124].mxu1 %v3361_v14  ;;  %2698 = vmatprep.mubr.bf16.mxu0 %v3376_v15  ;;  %v61_v21 = vld [vmem:[%s5595_s0 + $0x170] sm:$0xff] }
 0x11d   :  { %2819 = vmatprep.mubr.bf16.mxu1 %v3378_v20  ;;  %v53_v20 = vld [vmem:[%s5595_s0 + $0x130] sm:$0xff] }
 0x11e   :  { %v5243_v29 = vadd.f32 %v3747_v24, %v2172_v26  ;;  %v3666_v30 = vpop.f32.mrb[20].mxu0  ;;  %v54_v24 = vld [vmem:[%s5595_s0 + $0x138] sm:$0xff] }
 0x11f   :  { %v3748_v33 = vpop.f32.mrb[20].mxu1  ;;  %v3667_v34 = vpop.f32.mrb[21].mxu0  ;;  %v62_v26 = vld [vmem:[%s5595_s0 + $0x178] sm:$0xff] }
 0x120   :  { %v3668_v38 = vadd.f32 %v3667_v34, %v3666_v30  ;;  %v3749_v39 = vpop.f32.mrb[21].mxu1  ;;  %v3669_v40 = vpop.f32.mrb[22].mxu0  ;;  %v3235_v30 = vcombine.low %v37_v55, %v45_v57  ;;  %v3237_v34 = vcombine.low %v38_v60, %v46_v61  ;;  %v70_v55 = vld [vmem:[%s5595_s0 + $0x1b8] sm:$0xff]  ;;  %v3251_v61 = vcombine.low %v53_v20, %v61_v21 }
 0x121   :  { %v3750_v44 = vadd.f32 %v3749_v39, %v3748_v33  ;;  %v3751_v45 = vpop.f32.mrb[22].mxu1  ;;  %v3670_v46 = vpop.f32.mrb[23].mxu0  ;;  %v78_v57 = vld [vmem:[%s5595_s0 + $0x1f8] sm:$0xff] }
 0x122   :  { %v2177_v48 = vadd.f32 %v3668_v38, %v5159_v36  ;;  %v3671_v49 = vadd.f32 %v3670_v46, %v3669_v40  ;;  %v3752_v50 = vpop.f32.mrb[23].mxu1 }
 0x123   :  { %v3753_v51 = vadd.f32 %v3752_v50, %v3751_v45  ;;  %2699 = vmatmul.mubr.bf16.gmra.mrb[128].mxu0 %v3375_v35  ;;  %v3252_v35 = vcombine.high %v53_v20, %v61_v21  ;;  %v77_v50 = vld [vmem:[%s5595_s0 + $0x1f0] sm:$0xff] }
 0x124   :  { %v5252_v53 = vadd.f32 %v3750_v44, %v2177_v48  ;;  %v2180_v54 = vadd.f32 %v3671_v49, %v5159_v36  ;;  %2820 = vmatmul.mubr.bf16.gmra.mrb[128].mxu1 %v3377_v42  ;;  %2860 = vmatprep.mubr.bf16.mxu0 %v3220_v43  ;;  %v3254_v42 = vcombine.high %v54_v24, %v62_v26  ;;  %v69_v49 = vld [vmem:[%s5595_s0 + $0x1b0] sm:$0xff] }
 0x125   :  { %2981 = vmatprep.mubr.bf16.mxu1 %v3222_v47 }
 0x126   :  { %v5261_v58 = vadd.f32 %v3753_v51, %v2180_v54  ;;  %v3672_v59 = vpop.f32.mrb[24].mxu0 }
 0x127   :  { %v3754_v62 = vpop.f32.mrb[24].mxu1  ;;  %v3673_v0 = vpop.f32.mrb[25].mxu0 }
 0x128   :  { %v3674_v2 = vadd.f32 %v3673_v0, %v3672_v59  ;;  %v3755_v4 = vpop.f32.mrb[25].mxu1  ;;  %v3675_v5 = vpop.f32.mrb[26].mxu0 }
 0x129   :  { %v3756_v8 = vadd.f32 %v3755_v4, %v3754_v62  ;;  %v3757_v9 = vpop.f32.mrb[26].mxu1  ;;  %v3676_v10 = vpop.f32.mrb[27].mxu0  ;;  %v3268_v4 = vcombine.high %v69_v49, %v77_v50 }
 0x12a   :  { %v2185_v13 = vadd.f32 %v3674_v2, %v5159_v36  ;;  %v3677_v14 = vadd.f32 %v3676_v10, %v3675_v5  ;;  %v3758_v15 = vpop.f32.mrb[27].mxu1  ;;  %v3253_v2 = vcombine.low %v54_v24, %v62_v26  ;;  %v94_v24 = vld [vmem:[%s5595_s0 + $0x278] sm:$0xff] }
 0x12b   :  { %v3759_v17 = vadd.f32 %v3758_v15, %v3757_v9  ;;  %2861 = vmatmul.mubr.bf16.vlgmr.msra.gmra.mrb[132].mxu0 %v3219_v1 }
 0x12c   :  { %v5270_v18 = vadd.f32 %v3756_v8, %v2185_v13  ;;  %v2188_v19 = vadd.f32 %v3677_v14, %v5159_v36  ;;  %2982 = vmatmul.mubr.bf16.vlgmr.msra.gmra.mrb[132].mxu1 %v3221_v6  ;;  %2868 = vmatprep.mubr.bf16.mxu0 %v3236_v7  ;;  %v3270_v8 = vcombine.high %v70_v55, %v78_v57 }
 0x12d   :  { %2989 = vmatprep.mubr.bf16.mxu1 %v3238_v11 }
 0x12e   :  { %v5279_v22 = vadd.f32 %v3759_v17, %v2188_v19  ;;  %v3678_v23 = vpop.f32.mrb[28].mxu0  ;;  %v85_v17 = vld [vmem:[%s5595_s0 + $0x230] sm:$0xff] }
 0x12f   :  { %v3760_v27 = vpop.f32.mrb[28].mxu1  ;;  %v3679_v28 = vpop.f32.mrb[29].mxu0  ;;  %v93_v19 = vld [vmem:[%s5595_s0 + $0x270] sm:$0xff] }
 0x130   :  { %v3680_v31 = vadd.f32 %v3679_v28, %v3678_v23  ;;  %v3761_v32 = vpop.f32.mrb[29].mxu1  ;;  %v3681_v33 = vpop.f32.mrb[30].mxu0  ;;  %v86_v23 = vld [vmem:[%s5595_s0 + $0x238] sm:$0xff]  ;;  %v3267_v28 = vcombine.low %v69_v49, %v77_v50  ;;  %v101_v49 = vld [vmem:[%s5595_s0 + $0x2b0] sm:$0xff] }
 0x131   :  { %v3762_v38 = vadd.f32 %v3761_v32, %v3760_v27  ;;  %v3763_v39 = vpop.f32.mrb[30].mxu1  ;;  %v3682_v40 = vpop.f32.mrb[31].mxu0  ;;  %v109_v50 = vld [vmem:[%s5595_s0 + $0x2f0] sm:$0xff] }
 0x132   :  { %v2193_v43 = vadd.f32 %v3680_v31, %v5159_v36  ;;  %v3683_v44 = vadd.f32 %v3682_v40, %v3681_v33  ;;  %v3764_v45 = vpop.f32.mrb[31].mxu1  ;;  %v3269_v33 = vcombine.low %v70_v55, %v78_v57  ;;  %v3286_v40 = vcombine.high %v86_v23, %v94_v24  ;;  %v102_v57 = vld [vmem:[%s5595_s0 + $0x2b8] sm:$0xff] }
 0x133   :  { %v3765_v46 = vadd.f32 %v3764_v45, %v3763_v39  ;;  %2869 = vmatmul.mubr.bf16.gmra.mrb[136].mxu0 %v3235_v30 }
 0x134   :  { %v5288_v47 = vadd.f32 %v3762_v38, %v2193_v43  ;;  %v2196_v48 = vadd.f32 %v3683_v44, %v5159_v36  ;;  %2990 = vmatmul.mubr.bf16.gmra.mrb[136].mxu1 %v3237_v34  ;;  %2876 = vmatprep.mubr.bf16.mxu0 %v3252_v35  ;;  %v3284_v34 = vcombine.high %v85_v17, %v93_v19 }
 0x135   :  { %2997 = vmatprep.mubr.bf16.mxu1 %v3254_v42 }
 0x136   :  { %v5297_v51 = vadd.f32 %v3765_v46, %v2196_v48  ;;  %v3684_v54 = vpop.f32.mrb[32].mxu0 }
 0x137   :  { %v3766_v59 = vpop.f32.mrb[32].mxu1  ;;  %v3685_v60 = vpop.f32.mrb[33].mxu0 }
 0x138   :  { %v3686_v62 = vadd.f32 %v3685_v60, %v3684_v54  ;;  %v3767_v0 = vpop.f32.mrb[33].mxu1  ;;  %v3687_v1 = vpop.f32.mrb[34].mxu0 }
 0x139   :  { %v3768_v5 = vadd.f32 %v3767_v0, %v3766_v59  ;;  %v3769_v6 = vpop.f32.mrb[34].mxu1  ;;  %v3688_v7 = vpop.f32.mrb[35].mxu0  ;;  %v110_v59 = vld [vmem:[%s5595_s0 + $0x2f8] sm:$0xff] }
 0x13a   :  { %v2201_v9 = vadd.f32 %v3686_v62, %v5159_v36  ;;  %v3689_v10 = vadd.f32 %v3688_v7, %v3687_v1  ;;  %v3770_v11 = vpop.f32.mrb[35].mxu1  ;;  %v3283_v62 = vcombine.low %v85_v17, %v93_v19  ;;  %v117_v17 = vld [vmem:[%s5595_s0 + $0x330] sm:$0xff] }
 0x13b   :  { %v3771_v13 = vadd.f32 %v3770_v11, %v3769_v6  ;;  %2877 = vmatmul.mubr.bf16.gmra.mrb[140].mxu0 %v3251_v61  ;;  %v125_v19 = vld [vmem:[%s5595_s0 + $0x370] sm:$0xff] }
 0x13c   :  { %v5306_v14 = vadd.f32 %v3768_v5, %v2201_v9  ;;  %v2204_v15 = vadd.f32 %v3689_v10, %v5159_v36  ;;  %2998 = vmatmul.mubr.bf16.gmra.mrb[140].mxu1 %v3253_v2  ;;  %2884 = vmatprep.mubr.bf16.mxu0 %v3268_v4  ;;  %v3285_v4 = vcombine.low %v86_v23, %v94_v24 }
 0x13d   :  { %3005 = vmatprep.mubr.bf16.mxu1 %v3270_v8  ;;  %v3300_v5 = vcombine.high %v101_v49, %v109_v50  ;;  %v3302_v9 = vcombine.high %v102_v57, %v110_v59 }
 0x13e   :  { %v5315_v20 = vadd.f32 %v3771_v13, %v2204_v15  ;;  %v3690_v21 = vpop.f32.mrb[36].mxu0 }
 0x13f   :  { %v3772_v26 = vpop.f32.mrb[36].mxu1  ;;  %v3691_v27 = vpop.f32.mrb[37].mxu0 }
 0x140   :  { %v3692_v30 = vadd.f32 %v3691_v27, %v3690_v21  ;;  %v3773_v31 = vpop.f32.mrb[37].mxu1  ;;  %v3693_v32 = vpop.f32.mrb[38].mxu0  ;;  %v118_v27 = vld [vmem:[%s5595_s0 + $0x338] sm:$0xff] }
 0x141   :  { %v3774_v35 = vadd.f32 %v3773_v31, %v3772_v26  ;;  %v3775_v38 = vpop.f32.mrb[38].mxu1  ;;  %v3694_v39 = vpop.f32.mrb[39].mxu0  ;;  %v3299_v31 = vcombine.low %v101_v49, %v109_v50  ;;  %v133_v49 = vld [vmem:[%s5595_s0 + $0x3b0] sm:$0xff] }
 0x142   :  { %v2209_v42 = vadd.f32 %v3692_v30, %v5159_v36  ;;  %v3695_v43 = vadd.f32 %v3694_v39, %v3693_v32  ;;  %v3776_v44 = vpop.f32.mrb[39].mxu1  ;;  %v141_v50 = vld [vmem:[%s5595_s0 + $0x3f0] sm:$0xff] }
 0x143   :  { %v3777_v45 = vadd.f32 %v3776_v44, %v3775_v38  ;;  %2885 = vmatmul.mubr.bf16.gmra.mrb[144].mxu0 %v3267_v28  ;;  %v3316_v38 = vcombine.high %v117_v17, %v125_v19 }
 0x144   :  { %v5324_v46 = vadd.f32 %v3774_v35, %v2209_v42  ;;  %v2212_v48 = vadd.f32 %v3695_v43, %v5159_v36  ;;  %3006 = vmatmul.mubr.bf16.gmra.mrb[144].mxu1 %v3269_v33  ;;  %2892 = vmatprep.mubr.bf16.mxu0 %v3284_v34  ;;  %v3301_v35 = vcombine.low %v102_v57, %v110_v59  ;;  %v134_v59 = vld [vmem:[%s5595_s0 + $0x3b8] sm:$0xff] }
 0x145   :  { %3013 = vmatprep.mubr.bf16.mxu1 %v3286_v40 }
 0x146   :  { %v5333_v54 = vadd.f32 %v3777_v45, %v2212_v48  ;;  %v3696_v55 = vpop.f32.mrb[40].mxu0 }
 0x147   :  { %v3778_v60 = vpop.f32.mrb[40].mxu1  ;;  %v3697_v61 = vpop.f32.mrb[41].mxu0 }
 0x148   :  { %v3698_v0 = vadd.f32 %v3697_v61, %v3696_v55  ;;  %v3779_v1 = vpop.f32.mrb[41].mxu1  ;;  %v3699_v2 = vpop.f32.mrb[42].mxu0 }
 0x149   :  { %v3780_v6 = vadd.f32 %v3779_v1, %v3778_v60  ;;  %v3781_v7 = vpop.f32.mrb[42].mxu1  ;;  %v3700_v8 = vpop.f32.mrb[43].mxu0  ;;  %v3315_v1 = vcombine.low %v117_v17, %v125_v19  ;;  %v149_v17 = vld [vmem:[%s5595_s0 + $0x430] sm:$0xff] }
 0x14a   :  { %v2217_v10 = vadd.f32 %v3698_v0, %v5159_v36  ;;  %v3701_v11 = vadd.f32 %v3700_v8, %v3699_v2  ;;  %v3782_v13 = vpop.f32.mrb[43].mxu1  ;;  %v157_v19 = vld [vmem:[%s5595_s0 + $0x470] sm:$0xff] }
 0x14b   :  { %v3783_v15 = vadd.f32 %v3782_v13, %v3781_v7  ;;  %2893 = vmatmul.mubr.bf16.gmra.mrb[148].mxu0 %v3283_v62  ;;  %v3332_v7 = vcombine.high %v133_v49, %v141_v50 }
 0x14c   :  { %v5342_v21 = vadd.f32 %v3780_v6, %v2217_v10  ;;  %v2220_v26 = vadd.f32 %v3701_v11, %v5159_v36  ;;  %3014 = vmatmul.mubr.bf16.gmra.mrb[148].mxu1 %v3285_v4  ;;  %2900 = vmatprep.mubr.bf16.mxu0 %v3300_v5  ;;  %v126_v36 = vld [vmem:[%s5595_s0 + $0x378] sm:$0xff] }
 0x14d   :  { %3021 = vmatprep.mubr.bf16.mxu1 %v3302_v9  ;;  %v3318_v43 = vcombine.high %v118_v27, %v126_v36  ;;  %v3317_v6 = vcombine.low %v118_v27, %v126_v36  ;;  %v150_v36 = vld [vmem:[%s5595_s0 + $0x438] sm:$0xff] }
 0x14e   :  { %v5351_v23 = vadd.f32 %v3783_v15, %v2220_v26  ;;  %v3800_v24 = vpop.f32.mrb[44].mxu0 }
 0x14f   :  { %v3882_v28 = vpop.f32.mrb[44].mxu1  ;;  %v3801_v30 = vpop.f32.mrb[45].mxu0 }
 0x150   :  { %v3802_v32 = vadd.f32 %v3801_v30, %v3800_v24  ;;  %v3883_v33 = vpop.f32.mrb[45].mxu1  ;;  %v3803_v34 = vpop.f32.mrb[46].mxu0 }
 0x151   :  { %v3884_v39 = vadd.f32 %v3883_v33, %v3882_v28  ;;  %v3885_v40 = vpop.f32.mrb[46].mxu1  ;;  %v3804_v42 = vpop.f32.mrb[47].mxu0  ;;  %v3331_v33 = vcombine.low %v133_v49, %v141_v50  ;;  %v165_v49 = vld [vmem:[%s5595_s0 + $0x4b0] sm:$0xff] }
 0x152   :  { %v2379_v44 = vadd.f32 %v3802_v32, %v5162_v52  ;;  %v3805_v45 = vadd.f32 %v3804_v42, %v3803_v34  ;;  %v3886_v48 = vpop.f32.mrb[47].mxu1  ;;  %v173_v50 = vld [vmem:[%s5595_s0 + $0x4f0] sm:$0xff] }
 0x153   :  { %v3887_v55 = vadd.f32 %v3886_v48, %v3885_v40  ;;  %2901 = vmatmul.mubr.bf16.gmra.mrb[152].mxu0 %v3299_v31  ;;  %v3348_v40 = vcombine.high %v149_v17, %v157_v19 }
 0x154   :  { %v5360_v60 = vadd.f32 %v3884_v39, %v2379_v44  ;;  %v2382_v61 = vadd.f32 %v3805_v45, %v5171_v56  ;;  %3022 = vmatmul.mubr.bf16.gmra.mrb[152].mxu1 %v3301_v35  ;;  %2908 = vmatprep.mubr.bf16.mxu0 %v3316_v38  ;;  %v142_v56 = vld [vmem:[%s5595_s0 + $0x3f8] sm:$0xff] }
 0x155   :  { %3029 = vmatprep.mubr.bf16.mxu1 %v3318_v43  ;;  %v3334_v11 = vcombine.high %v134_v59, %v142_v56  ;;  %v3333_v39 = vcombine.low %v134_v59, %v142_v56  ;;  %v166_v56 = vld [vmem:[%s5595_s0 + $0x4b8] sm:$0xff] }
 0x156   :  { %v5369_v52 = vadd.f32 %v3887_v55, %v2382_v61  ;;  %v3806_v57 = vpop.f32.mrb[48].mxu0 }
 0x157   :  { %v3888_v62 = vpop.f32.mrb[48].mxu1  ;;  %v3807_v0 = vpop.f32.mrb[49].mxu0 }
 0x158   :  { %v3808_v2 = vadd.f32 %v3807_v0, %v3806_v57  ;;  %v3889_v4 = vpop.f32.mrb[49].mxu1  ;;  %v3809_v5 = vpop.f32.mrb[50].mxu0 }
 0x159   :  { %v3890_v8 = vadd.f32 %v3889_v4, %v3888_v62  ;;  %v3891_v9 = vpop.f32.mrb[50].mxu1  ;;  %v3810_v10 = vpop.f32.mrb[51].mxu0  ;;  %v3347_v4 = vcombine.low %v149_v17, %v157_v19  ;;  %v181_v17 = vld [vmem:[%s5595_s0 + $0x530] sm:$0xff] }
 0x15a   :  { %v2387_v13 = vadd.f32 %v3808_v2, %v5180_v12  ;;  %v3811_v15 = vadd.f32 %v3810_v10, %v3809_v5  ;;  %v3892_v26 = vpop.f32.mrb[51].mxu1  ;;  %v189_v19 = vld [vmem:[%s5595_s0 + $0x570] sm:$0xff] }
 0x15b   :  { %v3893_v24 = vadd.f32 %v3892_v26, %v3891_v9  ;;  %2909 = vmatmul.mubr.bf16.gmra.mrb[156].mxu0 %v3315_v1  ;;  %v3364_v9 = vcombine.high %v165_v49, %v173_v50 }
 0x15c   :  { %v5378_v28 = vadd.f32 %v3890_v8, %v2387_v13  ;;  %v2390_v30 = vadd.f32 %v3811_v15, %v5189_v16  ;;  %3030 = vmatmul.mubr.bf16.gmra.mrb[156].mxu1 %v3317_v6  ;;  %2916 = vmatprep.mubr.bf16.mxu0 %v3332_v7  ;;  %v158_v16 = vld [vmem:[%s5595_s0 + $0x478] sm:$0xff] }
 0x15d   :  { %3037 = vmatprep.mubr.bf16.mxu1 %v3334_v11  ;;  %v3350_v45 = vcombine.high %v150_v36, %v158_v16  ;;  %v3349_v8 = vcombine.low %v150_v36, %v158_v16  ;;  %v182_v16 = vld [vmem:[%s5595_s0 + $0x538] sm:$0xff] }
 0x15e   :  { %v5387_v12 = vadd.f32 %v3893_v24, %v2390_v30  ;;  %v3812_v27 = vpop.f32.mrb[52].mxu0 }
 0x15f   :  { %v3894_v31 = vpop.f32.mrb[52].mxu1  ;;  %v3813_v32 = vpop.f32.mrb[53].mxu0 }
 0x160   :  { %v3814_v34 = vadd.f32 %v3813_v32, %v3812_v27  ;;  %v3895_v35 = vpop.f32.mrb[53].mxu1  ;;  %v3815_v38 = vpop.f32.mrb[54].mxu0 }
 0x161   :  { %v3896_v42 = vadd.f32 %v3895_v35, %v3894_v31  ;;  %v3897_v43 = vpop.f32.mrb[54].mxu1  ;;  %v3816_v44 = vpop.f32.mrb[55].mxu0  ;;  %v3363_v35 = vcombine.low %v165_v49, %v173_v50 }
 0x162   :  { %v2395_v48 = vadd.f32 %v3814_v34, %v5198_v37  ;;  %v3817_v55 = vadd.f32 %v3816_v44, %v3815_v38  ;;  %v3898_v61 = vpop.f32.mrb[55].mxu1 }
 0x163   :  { %v3899_v57 = vadd.f32 %v3898_v61, %v3897_v43  ;;  %2917 = vmatmul.mubr.bf16.gmra.mrb[160].mxu0 %v3331_v33  ;;  %v3380_v43 = vcombine.high %v181_v17, %v189_v19 }
 0x164   :  { %v5396_v62 = vadd.f32 %v3896_v42, %v2395_v48  ;;  %v2398_v0 = vadd.f32 %v3817_v55, %v5207_v41  ;;  %3038 = vmatmul.mubr.bf16.gmra.mrb[160].mxu1 %v3333_v39  ;;  %2924 = vmatprep.mubr.bf16.mxu0 %v3348_v40  ;;  %v174_v41 = vld [vmem:[%s5595_s0 + $0x4f8] sm:$0xff] }
 0x165   :  { %3045 = vmatprep.mubr.bf16.mxu1 %v3350_v45  ;;  %v3366_v15 = vcombine.high %v166_v56, %v174_v41  ;;  %v3365_v42 = vcombine.low %v166_v56, %v174_v41 }
 0x166   :  { %v5405_v37 = vadd.f32 %v3899_v57, %v2398_v0  ;;  %v3818_v59 = vpop.f32.mrb[56].mxu0 }
 0x167   :  { %v3900_v1 = vpop.f32.mrb[56].mxu1  ;;  %v3819_v2 = vpop.f32.mrb[57].mxu0 }
 0x168   :  { %v3820_v5 = vadd.f32 %v3819_v2, %v3818_v59  ;;  %v3901_v6 = vpop.f32.mrb[57].mxu1  ;;  %v3821_v7 = vpop.f32.mrb[58].mxu0 }
 0x169   :  { %v3902_v10 = vadd.f32 %v3901_v6, %v3900_v1  ;;  %v3903_v11 = vpop.f32.mrb[58].mxu1  ;;  %v3822_v13 = vpop.f32.mrb[59].mxu0 }
 0x16a   :  { %v2403_v26 = vadd.f32 %v3820_v5, %v5216_v63  ;;  %v3823_v24 = vadd.f32 %v3822_v13, %v3821_v7  ;;  %v3904_v30 = vpop.f32.mrb[59].mxu1 }
 0x16b   :  { %v3905_v27 = vadd.f32 %v3904_v30, %v3903_v11  ;;  %2925 = vmatmul.mubr.bf16.gmra.mrb[164].mxu0 %v3347_v4  ;;  %v3379_v4 = vcombine.low %v181_v17, %v189_v19 }
 0x16c   :  { %v5414_v31 = vadd.f32 %v3902_v10, %v2403_v26  ;;  %v2406_v32 = vadd.f32 %v3823_v24, %v5225_v3  ;;  %3046 = vmatmul.mubr.bf16.gmra.mrb[164].mxu1 %v3349_v8  ;;  %2932 = vmatprep.mubr.bf16.mxu0 %v3364_v9  ;;  %v190_v3 = vld [vmem:[%s5595_s0 + $0x578] sm:$0xff] }
 0x16d   :  { %3053 = vmatprep.mubr.bf16.mxu1 %v3366_v15  ;;  %v3382_v55 = vcombine.high %v182_v16, %v190_v3  ;;  %v3381_v7 = vcombine.low %v182_v16, %v190_v3 }
 0x16e   :  { %v5423_v63 = vadd.f32 %v3905_v27, %v2406_v32  ;;  %v3824_v36 = vpop.f32.mrb[60].mxu0 }
 0x16f   :  { %v3906_v33 = vpop.f32.mrb[60].mxu1  ;;  %v3825_v34 = vpop.f32.mrb[61].mxu0 }
 0x170   :  { %v3826_v38 = vadd.f32 %v3825_v34, %v3824_v36  ;;  %v3907_v39 = vpop.f32.mrb[61].mxu1  ;;  %v3827_v40 = vpop.f32.mrb[62].mxu0 }
 0x171   :  { %v3908_v44 = vadd.f32 %v3907_v39, %v3906_v33  ;;  %v3909_v45 = vpop.f32.mrb[62].mxu1  ;;  %v3828_v48 = vpop.f32.mrb[63].mxu0 }
 0x172   :  { %v2411_v61 = vadd.f32 %v3826_v38, %v5234_v25  ;;  %v3829_v57 = vadd.f32 %v3828_v48, %v3827_v40  ;;  %v3910_v0 = vpop.f32.mrb[63].mxu1 }
 0x173   :  { %v3911_v59 = vadd.f32 %v3910_v0, %v3909_v45  ;;  %2933 = vmatmul.mubr.bf16.gmra.mrb[168].mxu0 %v3363_v35 }
 0x174   :  { %v5432_v1 = vadd.f32 %v3908_v44, %v2411_v61  ;;  %v2414_v2 = vadd.f32 %v3829_v57, %v5243_v29  ;;  %3054 = vmatmul.mubr.bf16.gmra.mrb[168].mxu1 %v3365_v42  ;;  %2940 = vmatprep.mubr.bf16.mxu0 %v3380_v43 }
 0x175   :  { %3061 = vmatprep.mubr.bf16.mxu1 %v3382_v55 }
 0x176   :  { %v5435_v49 = vadd.f32 %v3911_v59, %v2414_v2  ;;  %v3830_v50 = vpop.f32.mrb[64].mxu0 }
 0x177   :  { %v3912_v56 = vpop.f32.mrb[64].mxu1  ;;  %v3831_v41 = vpop.f32.mrb[65].mxu0 }
 0x178   :  { %v3832_v5 = vadd.f32 %v3831_v41, %v3830_v50  ;;  %v3913_v6 = vpop.f32.mrb[65].mxu1  ;;  %v3833_v25 = vpop.f32.mrb[66].mxu0 }
 0x179   :  { %v3914_v8 = vadd.f32 %v3913_v6, %v3912_v56  ;;  %v3915_v9 = vpop.f32.mrb[66].mxu1  ;;  %v3834_v10 = vpop.f32.mrb[67].mxu0 }
 0x17a   :  { %v2419_v11 = vadd.f32 %v3832_v5, %v5252_v53  ;;  %v3835_v13 = vadd.f32 %v3834_v10, %v3833_v25  ;;  %v3916_v29 = vpop.f32.mrb[67].mxu1 }
 0x17b   :  { %v3917_v15 = vadd.f32 %v3916_v29, %v3915_v9  ;;  %2941 = vmatmul.mubr.bf16.gmra.mrb[172].mxu0 %v3379_v4 }
 0x17c   :  { %v5438_v26 = vadd.f32 %v3914_v8, %v2419_v11  ;;  %v2422_v24 = vadd.f32 %v3835_v13, %v5261_v58  ;;  %3062 = vmatmul.mubr.bf16.gmra.mrb[172].mxu1 %v3381_v7 }
 0x17e   :  { %v5441_v30 = vadd.f32 %v3917_v15, %v2422_v24  ;;  %v3836_v27 = vpop.f32.mrb[68].mxu0 }
 0x17f   :  { %v3918_v32 = vpop.f32.mrb[68].mxu1  ;;  %v3837_v17 = vpop.f32.mrb[69].mxu0 }
 0x180   :  { %v3838_v19 = vadd.f32 %v3837_v17, %v3836_v27  ;;  %v3919_v36 = vpop.f32.mrb[69].mxu1  ;;  %v3839_v16 = vpop.f32.mrb[70].mxu0 }
 0x181   :  { %v3920_v3 = vadd.f32 %v3919_v36, %v3918_v32  ;;  %v3921_v33 = vpop.f32.mrb[70].mxu1  ;;  %v3840_v53 = vpop.f32.mrb[71].mxu0 }
 0x182   :  { %v2427_v34 = vadd.f32 %v3838_v19, %v5270_v18  ;;  %v3841_v35 = vadd.f32 %v3840_v53, %v3839_v16  ;;  %v3922_v38 = vpop.f32.mrb[71].mxu1 }
 0x183   :  { %v3923_v39 = vadd.f32 %v3922_v38, %v3921_v33 }
 0x184   :  { %v5444_v40 = vadd.f32 %v3920_v3, %v2427_v34  ;;  %v2430_v58 = vadd.f32 %v3841_v35, %v5279_v22 }
 0x186   :  { %v5447_v42 = vadd.f32 %v3923_v39, %v2430_v58  ;;  %v3842_v43 = vpop.f32.mrb[72].mxu0 }
 0x187   :  { %v3924_v44 = vpop.f32.mrb[72].mxu1  ;;  %v3843_v45 = vpop.f32.mrb[73].mxu0 }
 0x188   :  { %v3844_v48 = vadd.f32 %v3843_v45, %v3842_v43  ;;  %v3925_v55 = vpop.f32.mrb[73].mxu1  ;;  %v3845_v61 = vpop.f32.mrb[74].mxu0 }
 0x189   :  { %v3926_v57 = vadd.f32 %v3925_v55, %v3924_v44  ;;  %v3927_v0 = vpop.f32.mrb[74].mxu1  ;;  %v3846_v59 = vpop.f32.mrb[75].mxu0 }
 0x18a   :  { %v2435_v18 = vadd.f32 %v3844_v48, %v5288_v47  ;;  %v3847_v2 = vadd.f32 %v3846_v59, %v3845_v61  ;;  %v3928_v50 = vpop.f32.mrb[75].mxu1 }
 0x18b   :  { %v3929_v56 = vadd.f32 %v3928_v50, %v3927_v0 }
 0x18c   :  { %v5450_v41 = vadd.f32 %v3926_v57, %v2435_v18  ;;  %v2438_v22 = vadd.f32 %v3847_v2, %v5297_v51 }
 0x18e   :  { %v5453_v4 = vadd.f32 %v3929_v56, %v2438_v22  ;;  %v3848_v5 = vpop.f32.mrb[76].mxu0 }
 0x18f   :  { %v3930_v6 = vpop.f32.mrb[76].mxu1  ;;  %v3849_v25 = vpop.f32.mrb[77].mxu0 }
 0x190   :  { %v3850_v7 = vadd.f32 %v3849_v25, %v3848_v5  ;;  %v3931_v8 = vpop.f32.mrb[77].mxu1  ;;  %v3851_v9 = vpop.f32.mrb[78].mxu0 }
 0x191   :  { %v3932_v10 = vadd.f32 %v3931_v8, %v3930_v6  ;;  %v3933_v11 = vpop.f32.mrb[78].mxu1  ;;  %v3852_v13 = vpop.f32.mrb[79].mxu0 }
 0x192   :  { %v2443_v47 = vadd.f32 %v3850_v7, %v5306_v14  ;;  %v3853_v29 = vadd.f32 %v3852_v13, %v3851_v9  ;;  %v3934_v15 = vpop.f32.mrb[79].mxu1 }
 0x193   :  { %v3935_v24 = vadd.f32 %v3934_v15, %v3933_v11 }
 0x194   :  { %v5456_v27 = vadd.f32 %v3932_v10, %v2443_v47  ;;  %v2446_v51 = vadd.f32 %v3853_v29, %v5315_v20 }
 0x196   :  { %v5459_v32 = vadd.f32 %v3935_v24, %v2446_v51  ;;  %v3854_v17 = vpop.f32.mrb[80].mxu0 }
 0x197   :  { %v3936_v19 = vpop.f32.mrb[80].mxu1  ;;  %v3855_v36 = vpop.f32.mrb[81].mxu0 }
 0x198   :  { %v3856_v16 = vadd.f32 %v3855_v36, %v3854_v17  ;;  %v3937_v3 = vpop.f32.mrb[81].mxu1  ;;  %v3857_v33 = vpop.f32.mrb[82].mxu0 }
 0x199   :  { %v3938_v53 = vadd.f32 %v3937_v3, %v3936_v19  ;;  %v3939_v34 = vpop.f32.mrb[82].mxu1  ;;  %v3858_v35 = vpop.f32.mrb[83].mxu0 }
 0x19a   :  { %v2451_v14 = vadd.f32 %v3856_v16, %v5324_v46  ;;  %v3859_v38 = vadd.f32 %v3858_v35, %v3857_v33  ;;  %v3940_v39 = vpop.f32.mrb[83].mxu1 }
 0x19b   :  { %v3941_v58 = vadd.f32 %v3940_v39, %v3939_v34 }
 0x19c   :  { %v5462_v43 = vadd.f32 %v3938_v53, %v2451_v14  ;;  %v2454_v20 = vadd.f32 %v3859_v38, %v5333_v54 }
 0x19e   :  { %v5465_v44 = vadd.f32 %v3941_v58, %v2454_v20  ;;  %v3860_v45 = vpop.f32.mrb[84].mxu0 }
 0x19f   :  { %v3942_v48 = vpop.f32.mrb[84].mxu1  ;;  %v3861_v55 = vpop.f32.mrb[85].mxu0 }
 0x1a0   :  { %v3862_v61 = vadd.f32 %v3861_v55, %v3860_v45  ;;  %v3943_v57 = vpop.f32.mrb[85].mxu1  ;;  %v3863_v0 = vpop.f32.mrb[86].mxu0 }
 0x1a1   :  { %v3944_v59 = vadd.f32 %v3943_v57, %v3942_v48  ;;  %v3945_v18 = vpop.f32.mrb[86].mxu1  ;;  %v3864_v2 = vpop.f32.mrb[87].mxu0 }
 0x1a2   :  { %v2459_v46 = vadd.f32 %v3862_v61, %v5342_v21  ;;  %v3865_v50 = vadd.f32 %v3864_v2, %v3863_v0  ;;  %v3946_v56 = vpop.f32.mrb[87].mxu1 }
 0x1a3   :  { %v3947_v22 = vadd.f32 %v3946_v56, %v3945_v18 }
 0x1a4   :  { %v5468_v5 = vadd.f32 %v3944_v59, %v2459_v46  ;;  %v2462_v54 = vadd.f32 %v3865_v50, %v5351_v23 }
 0x1a6   :  { %v5471_v6 = vadd.f32 %v3947_v22, %v2462_v54  ;;  %v3964_v25 = vpop.f32.mrb[88].mxu0 }
 0x1a7   :  { %v4046_v7 = vpop.f32.mrb[88].mxu1  ;;  %v3965_v8 = vpop.f32.mrb[89].mxu0 }
 0x1a8   :  { %v3966_v9 = vadd.f32 %v3965_v8, %v3964_v25  ;;  %v4047_v10 = vpop.f32.mrb[89].mxu1  ;;  %v3967_v11 = vpop.f32.mrb[90].mxu0 }
 0x1a9   :  { %v4048_v13 = vadd.f32 %v4047_v10, %v4046_v7  ;;  %v4049_v47 = vpop.f32.mrb[90].mxu1  ;;  %v3968_v29 = vpop.f32.mrb[91].mxu0 }
 0x1aa   :  { %v2621_v21 = vadd.f32 %v3966_v9, %v5360_v60  ;;  %v3969_v15 = vadd.f32 %v3968_v29, %v3967_v11  ;;  %v4050_v24 = vpop.f32.mrb[91].mxu1 }
 0x1ab   :  { %v4051_v51 = vadd.f32 %v4050_v24, %v4049_v47 }
 0x1ac   :  { %v5474_v17 = vadd.f32 %v4048_v13, %v2621_v21  ;;  %v2624_v23 = vadd.f32 %v3969_v15, %v5369_v52 }
 0x1ae   :  { %v5477_v19 = vadd.f32 %v4051_v51, %v2624_v23  ;;  %v3970_v36 = vpop.f32.mrb[92].mxu0 }
 0x1af   :  { %v4052_v16 = vpop.f32.mrb[92].mxu1  ;;  %v3971_v3 = vpop.f32.mrb[93].mxu0 }
 0x1b0   :  { %v3972_v33 = vadd.f32 %v3971_v3, %v3970_v36  ;;  %v4053_v53 = vpop.f32.mrb[93].mxu1  ;;  %v3973_v34 = vpop.f32.mrb[94].mxu0 }
 0x1b1   :  { %v4054_v35 = vadd.f32 %v4053_v53, %v4052_v16  ;;  %v4055_v14 = vpop.f32.mrb[94].mxu1  ;;  %v3974_v38 = vpop.f32.mrb[95].mxu0 }
 0x1b2   :  { %v2629_v60 = vadd.f32 %v3972_v33, %v5378_v28  ;;  %v3975_v39 = vadd.f32 %v3974_v38, %v3973_v34  ;;  %v4056_v58 = vpop.f32.mrb[95].mxu1 }
 0x1b3   :  { %v4057_v20 = vadd.f32 %v4056_v58, %v4055_v14 }
 0x1b4   :  { %v5480_v45 = vadd.f32 %v4054_v35, %v2629_v60  ;;  %v2632_v52 = vadd.f32 %v3975_v39, %v5387_v12 }
 0x1b6   :  { %v5483_v48 = vadd.f32 %v4057_v20, %v2632_v52  ;;  %v3976_v55 = vpop.f32.mrb[96].mxu0 }
 0x1b7   :  { %v4058_v61 = vpop.f32.mrb[96].mxu1  ;;  %v3977_v57 = vpop.f32.mrb[97].mxu0 }
 0x1b8   :  { %v3978_v0 = vadd.f32 %v3977_v57, %v3976_v55  ;;  %v4059_v59 = vpop.f32.mrb[97].mxu1  ;;  %v3979_v18 = vpop.f32.mrb[98].mxu0 }
 0x1b9   :  { %v4060_v2 = vadd.f32 %v4059_v59, %v4058_v61  ;;  %v4061_v46 = vpop.f32.mrb[98].mxu1  ;;  %v3980_v50 = vpop.f32.mrb[99].mxu0 }
 0x1ba   :  { %v2637_v28 = vadd.f32 %v3978_v0, %v5396_v62  ;;  %v3981_v56 = vadd.f32 %v3980_v50, %v3979_v18  ;;  %v4062_v22 = vpop.f32.mrb[99].mxu1 }
 0x1bb   :  { %v4063_v54 = vadd.f32 %v4062_v22, %v4061_v46 }
 0x1bc   :  { %v5486_v25 = vadd.f32 %v4060_v2, %v2637_v28  ;;  %v2640_v12 = vadd.f32 %v3981_v56, %v5405_v37 }
 0x1be   :  { %v5489_v7 = vadd.f32 %v4063_v54, %v2640_v12  ;;  %v3982_v8 = vpop.f32.mrb[100].mxu0 }
 0x1bf   :  { %v4064_v9 = vpop.f32.mrb[100].mxu1  ;;  %v3983_v10 = vpop.f32.mrb[101].mxu0 }
 0x1c0   :  { %v3984_v11 = vadd.f32 %v3983_v10, %v3982_v8  ;;  %v4065_v13 = vpop.f32.mrb[101].mxu1  ;;  %v3985_v47 = vpop.f32.mrb[102].mxu0 }
 0x1c1   :  { %v4066_v29 = vadd.f32 %v4065_v13, %v4064_v9  ;;  %v4067_v21 = vpop.f32.mrb[102].mxu1  ;;  %v3986_v15 = vpop.f32.mrb[103].mxu0 }
 0x1c2   :  { %v2645_v62 = vadd.f32 %v3984_v11, %v5414_v31  ;;  %v3987_v24 = vadd.f32 %v3986_v15, %v3985_v47  ;;  %v4068_v51 = vpop.f32.mrb[103].mxu1 }
 0x1c3   :  { %v4069_v23 = vadd.f32 %v4068_v51, %v4067_v21 }
 0x1c4   :  { %v5492_v36 = vadd.f32 %v4066_v29, %v2645_v62  ;;  %v2648_v37 = vadd.f32 %v3987_v24, %v5423_v63 }
 0x1c6   :  { %v5495_v16 = vadd.f32 %v4069_v23, %v2648_v37  ;;  %v3988_v3 = vpop.f32.mrb[104].mxu0 }
 0x1c7   :  { %v4070_v33 = vpop.f32.mrb[104].mxu1  ;;  %v3989_v53 = vpop.f32.mrb[105].mxu0 }
 0x1c8   :  { %v3990_v34 = vadd.f32 %v3989_v53, %v3988_v3  ;;  %v4071_v35 = vpop.f32.mrb[105].mxu1  ;;  %v3991_v14 = vpop.f32.mrb[106].mxu0 }
 0x1c9   :  { %v4072_v38 = vadd.f32 %v4071_v35, %v4070_v33  ;;  %v4073_v60 = vpop.f32.mrb[106].mxu1  ;;  %v3992_v39 = vpop.f32.mrb[107].mxu0 }
 0x1ca   :  { %v2653_v31 = vadd.f32 %v3990_v34, %v5432_v1  ;;  %v3993_v58 = vadd.f32 %v3992_v39, %v3991_v14  ;;  %v4074_v20 = vpop.f32.mrb[107].mxu1 }
 0x1cb   :  { %v4075_v52 = vadd.f32 %v4074_v20, %v4073_v60 }
 0x1cc   :  { %v5498_v55 = vadd.f32 %v4072_v38, %v2653_v31  ;;  %v2656_v63 = vadd.f32 %v3993_v58, %v5435_v49 }
 0x1ce   :  { %v5501_v61 = vadd.f32 %v4075_v52, %v2656_v63  ;;  %v3994_v57 = vpop.f32.mrb[108].mxu0 }
 0x1cf   :  { %v4076_v0 = vpop.f32.mrb[108].mxu1  ;;  %v3995_v59 = vpop.f32.mrb[109].mxu0 }
 0x1d0   :  { %v3996_v18 = vadd.f32 %v3995_v59, %v3994_v57  ;;  %v4077_v2 = vpop.f32.mrb[109].mxu1  ;;  %v3997_v46 = vpop.f32.mrb[110].mxu0 }
 0x1d1   :  { %v4078_v50 = vadd.f32 %v4077_v2, %v4076_v0  ;;  %v4079_v28 = vpop.f32.mrb[110].mxu1  ;;  %v3998_v56 = vpop.f32.mrb[111].mxu0 }
 0x1d2   :  { %v2661_v1 = vadd.f32 %v3996_v18, %v5438_v26  ;;  %v3999_v22 = vadd.f32 %v3998_v56, %v3997_v46  ;;  %v4080_v54 = vpop.f32.mrb[111].mxu1 }
 0x1d3   :  { %v4081_v12 = vadd.f32 %v4080_v54, %v4079_v28 }
 0x1d4   :  { %v5504_v8 = vadd.f32 %v4078_v50, %v2661_v1  ;;  %v2664_v49 = vadd.f32 %v3999_v22, %v5441_v30 }
 0x1d6   :  { %v5507_v9 = vadd.f32 %v4081_v12, %v2664_v49  ;;  %v4000_v10 = vpop.f32.mrb[112].mxu0 }
 0x1d7   :  { %v4082_v11 = vpop.f32.mrb[112].mxu1  ;;  %v4001_v13 = vpop.f32.mrb[113].mxu0 }
 0x1d8   :  { %v4002_v47 = vadd.f32 %v4001_v13, %v4000_v10  ;;  %v4083_v29 = vpop.f32.mrb[113].mxu1  ;;  %v4003_v21 = vpop.f32.mrb[114].mxu0 }
 0x1d9   :  { %v4084_v15 = vadd.f32 %v4083_v29, %v4082_v11  ;;  %v4085_v62 = vpop.f32.mrb[114].mxu1  ;;  %v4004_v24 = vpop.f32.mrb[115].mxu0 }
 0x1da   :  { %v2669_v26 = vadd.f32 %v4002_v47, %v5444_v40  ;;  %v4005_v51 = vadd.f32 %v4004_v24, %v4003_v21  ;;  %v4086_v23 = vpop.f32.mrb[115].mxu1 }
 0x1db   :  { %v4087_v37 = vadd.f32 %v4086_v23, %v4085_v62 }
 0x1dc   :  { %v5510_v3 = vadd.f32 %v4084_v15, %v2669_v26  ;;  %v2672_v30 = vadd.f32 %v4005_v51, %v5447_v42 }
 0x1de   :  { %v5513_v33 = vadd.f32 %v4087_v37, %v2672_v30  ;;  %v4006_v53 = vpop.f32.mrb[116].mxu0 }
 0x1df   :  { %v4088_v34 = vpop.f32.mrb[116].mxu1  ;;  %v4007_v35 = vpop.f32.mrb[117].mxu0 }
 0x1e0   :  { %v4008_v14 = vadd.f32 %v4007_v35, %v4006_v53  ;;  %v4089_v38 = vpop.f32.mrb[117].mxu1  ;;  %v4009_v60 = vpop.f32.mrb[118].mxu0 }
 0x1e1   :  { %v4090_v39 = vadd.f32 %v4089_v38, %v4088_v34  ;;  %v4091_v31 = vpop.f32.mrb[118].mxu1  ;;  %v4010_v58 = vpop.f32.mrb[119].mxu0 }
 0x1e2   :  { %v2677_v40 = vadd.f32 %v4008_v14, %v5450_v41  ;;  %v4011_v20 = vadd.f32 %v4010_v58, %v4009_v60  ;;  %v4092_v52 = vpop.f32.mrb[119].mxu1 }
 0x1e3   :  { %v4093_v63 = vadd.f32 %v4092_v52, %v4091_v31 }
 0x1e4   :  { %v5516_v57 = vadd.f32 %v4090_v39, %v2677_v40  ;;  %v2680_v42 = vadd.f32 %v4011_v20, %v5453_v4 }
 0x1e6   :  { %v5519_v0 = vadd.f32 %v4093_v63, %v2680_v42  ;;  %v4012_v59 = vpop.f32.mrb[120].mxu0 }
 0x1e7   :  { %v4094_v18 = vpop.f32.mrb[120].mxu1  ;;  %v4013_v2 = vpop.f32.mrb[121].mxu0 }
 0x1e8   :  { %v4014_v46 = vadd.f32 %v4013_v2, %v4012_v59  ;;  %v4095_v50 = vpop.f32.mrb[121].mxu1  ;;  %v4015_v28 = vpop.f32.mrb[122].mxu0 }
 0x1e9   :  { %v4096_v56 = vadd.f32 %v4095_v50, %v4094_v18  ;;  %v4097_v1 = vpop.f32.mrb[122].mxu1  ;;  %v4016_v22 = vpop.f32.mrb[123].mxu0 }
 0x1ea   :  { %v2685_v41 = vadd.f32 %v4014_v46, %v5456_v27  ;;  %v4017_v54 = vadd.f32 %v4016_v22, %v4015_v28  ;;  %v4098_v12 = vpop.f32.mrb[123].mxu1 }
 0x1eb   :  { %v4099_v49 = vadd.f32 %v4098_v12, %v4097_v1 }
 0x1ec   :  { %v5522_v10 = vadd.f32 %v4096_v56, %v2685_v41  ;;  %v2688_v4 = vadd.f32 %v4017_v54, %v5459_v32 }
 0x1ee   :  { %v5525_v11 = vadd.f32 %v4099_v49, %v2688_v4  ;;  %v4018_v13 = vpop.f32.mrb[124].mxu0 }
 0x1ef   :  { %v4100_v47 = vpop.f32.mrb[124].mxu1  ;;  %v4019_v29 = vpop.f32.mrb[125].mxu0 }
 0x1f0   :  { %v4020_v21 = vadd.f32 %v4019_v29, %v4018_v13  ;;  %v4101_v15 = vpop.f32.mrb[125].mxu1  ;;  %v4021_v62 = vpop.f32.mrb[126].mxu0 }
 0x1f1   :  { %v4102_v24 = vadd.f32 %v4101_v15, %v4100_v47  ;;  %v4103_v26 = vpop.f32.mrb[126].mxu1  ;;  %v4022_v51 = vpop.f32.mrb[127].mxu0 }
 0x1f2   :  { %v2693_v27 = vadd.f32 %v4020_v21, %v5462_v43  ;;  %v4023_v23 = vadd.f32 %v4022_v51, %v4021_v62  ;;  %v4104_v37 = vpop.f32.mrb[127].mxu1 }
 0x1f3   :  { %v4105_v30 = vadd.f32 %v4104_v37, %v4103_v26 }
 0x1f4   :  { %v5528_v53 = vadd.f32 %v4102_v24, %v2693_v27  ;;  %v2696_v32 = vadd.f32 %v4023_v23, %v5465_v44 }
 0x1f6   :  { %v5531_v34 = vadd.f32 %v4105_v30, %v2696_v32  ;;  %v4024_v35 = vpop.f32.mrb[128].mxu0 }
 0x1f7   :  { %v4106_v14 = vpop.f32.mrb[128].mxu1  ;;  %v4025_v38 = vpop.f32.mrb[129].mxu0 }
 0x1f8   :  { %v4026_v60 = vadd.f32 %v4025_v38, %v4024_v35  ;;  %v4107_v39 = vpop.f32.mrb[129].mxu1  ;;  %v4027_v31 = vpop.f32.mrb[130].mxu0 }
 0x1f9   :  { %v4108_v58 = vadd.f32 %v4107_v39, %v4106_v14  ;;  %v4109_v40 = vpop.f32.mrb[130].mxu1  ;;  %v4028_v20 = vpop.f32.mrb[131].mxu0 }
 0x1fa   :  { %v2701_v43 = vadd.f32 %v4026_v60, %v5468_v5  ;;  %v4029_v52 = vadd.f32 %v4028_v20, %v4027_v31  ;;  %v4110_v63 = vpop.f32.mrb[131].mxu1 }
 0x1fb   :  { %v4111_v42 = vadd.f32 %v4110_v63, %v4109_v40 }
 0x1fc   :  { %v5534_v59 = vadd.f32 %v4108_v58, %v2701_v43  ;;  %v2704_v44 = vadd.f32 %v4029_v52, %v5471_v6 }
 0x1fe   :  { %v5537_v18 = vadd.f32 %v4111_v42, %v2704_v44  ;;  %v4128_v2 = vpop.f32.mrb[132].mxu0 }
 0x1ff   :  { %v4210_v46 = vpop.f32.mrb[132].mxu1  ;;  %v4129_v50 = vpop.f32.mrb[133].mxu0 }
 0x200   :  { %v4130_v28 = vadd.f32 %v4129_v50, %v4128_v2  ;;  %v4211_v56 = vpop.f32.mrb[133].mxu1  ;;  %v4131_v1 = vpop.f32.mrb[134].mxu0 }
 0x201   :  { %v4212_v22 = vadd.f32 %v4211_v56, %v4210_v46  ;;  %v4213_v41 = vpop.f32.mrb[134].mxu1  ;;  %v4132_v54 = vpop.f32.mrb[135].mxu0 }
 0x202   :  { %v2863_v5 = vadd.f32 %v4130_v28, %v5474_v17  ;;  %v4133_v12 = vadd.f32 %v4132_v54, %v4131_v1  ;;  %v4214_v49 = vpop.f32.mrb[135].mxu1 }
 0x203   :  { %v4215_v4 = vadd.f32 %v4214_v49, %v4213_v41 }
 0x204   :  { %v2984_v13 = vadd.f32 %v4212_v22, %v2863_v5  ;;  %v2866_v47 = vadd.f32 %v4133_v12, %v5477_v19 }
 0x206   :  { %v2987_v6 = vadd.f32 %v4215_v4, %v2866_v47  ;;  %v4134_v29 = vpop.f32.mrb[136].mxu0  ;;  %v3070_v62 = vmax.f32 %v2984_v13, 0.0 }
 0x207   :  { %v4216_v21 = vpop.f32.mrb[136].mxu1  ;;  %v4135_v15 = vpop.f32.mrb[137].mxu0 }
 0x208   :  { %v3071_v24 = vmax.f32 %v2987_v6, 0.0  ;;  %v4136_v26 = vadd.f32 %v4135_v15, %v4134_v29  ;;  %v4217_v51 = vpop.f32.mrb[137].mxu1  ;;  %v4137_v27 = vpop.f32.mrb[138].mxu0 }
 0x209   :  { %v4218_v23 = vadd.f32 %v4217_v51, %v4216_v21  ;;  %v4219_v37 = vpop.f32.mrb[138].mxu1  ;;  %v4138_v30 = vpop.f32.mrb[139].mxu0 }
 0x20a   :  { %v3558_v32 = vpack.c.bf16 %v3071_v24, %v3070_v62  ;;  %v2871_v17 = vadd.f32 %v4136_v26, %v5480_v45  ;;  %v4139_v35 = vadd.f32 %v4138_v30, %v4137_v27  ;;  %v4220_v14 = vpop.f32.mrb[139].mxu1 }
 0x20b   :  { %v4221_v38 = vadd.f32 %v4220_v14, %v4219_v37 }
 0x20c   :  { %3559 = vst [vmem:[%s5597_s3] sm:$0xff] %v3558_v32   ;;  %v2992_v19 = vadd.f32 %v4218_v23, %v2871_v17  ;;  %v2874_v60 = vadd.f32 %v4139_v35, %v5483_v48 }
 0x20e   :  { %v2995_v39 = vadd.f32 %v4221_v38, %v2874_v60  ;;  %v4140_v31 = vpop.f32.mrb[140].mxu0  ;;  %v3072_v20 = vmax.f32 %v2992_v19, 0.0 }
 0x20f   :  { %v4222_v58 = vpop.f32.mrb[140].mxu1  ;;  %v4141_v40 = vpop.f32.mrb[141].mxu0 }
 0x210   :  { %v3073_v43 = vmax.f32 %v2995_v39, 0.0  ;;  %v4142_v52 = vadd.f32 %v4141_v40, %v4140_v31  ;;  %v4223_v63 = vpop.f32.mrb[141].mxu1  ;;  %v4143_v42 = vpop.f32.mrb[142].mxu0 }
 0x211   :  { %v4224_v45 = vadd.f32 %v4223_v63, %v4222_v58  ;;  %v4225_v44 = vpop.f32.mrb[142].mxu1  ;;  %v4144_v2 = vpop.f32.mrb[143].mxu0 }
 0x212   :  { %v3563_v46 = vpack.c.bf16 %v3073_v43, %v3072_v20  ;;  %v2879_v50 = vadd.f32 %v4142_v52, %v5486_v25  ;;  %v4145_v28 = vadd.f32 %v4144_v2, %v4143_v42  ;;  %v4226_v56 = vpop.f32.mrb[143].mxu1 }
 0x213   :  { %v4227_v1 = vadd.f32 %v4226_v56, %v4225_v44 }
 0x214   :  { %3610 = vst [vmem:[%s5597_s3 + $0x8] sm:$0xff] %v3563_v46   ;;  %v3000_v48 = vadd.f32 %v4224_v45, %v2879_v50  ;;  %v2882_v22 = vadd.f32 %v4145_v28, %v5489_v7 }
 0x216   :  { %v3003_v41 = vadd.f32 %v4227_v1, %v2882_v22  ;;  %v4146_v54 = vpop.f32.mrb[144].mxu0  ;;  %v3074_v49 = vmax.f32 %v3000_v48, 0.0 }
 0x217   :  { %v4228_v5 = vpop.f32.mrb[144].mxu1  ;;  %v4147_v12 = vpop.f32.mrb[145].mxu0 }
 0x218   :  { %v3075_v4 = vmax.f32 %v3003_v41, 0.0  ;;  %v4148_v13 = vadd.f32 %v4147_v12, %v4146_v54  ;;  %v4229_v47 = vpop.f32.mrb[145].mxu1  ;;  %v4149_v6 = vpop.f32.mrb[146].mxu0 }
 0x219   :  { %v4230_v25 = vadd.f32 %v4229_v47, %v4228_v5  ;;  %v4231_v29 = vpop.f32.mrb[146].mxu1  ;;  %v4150_v21 = vpop.f32.mrb[147].mxu0 }
 0x21a   :  { %v3568_v15 = vpack.c.bf16 %v3075_v4, %v3074_v49  ;;  %v2887_v62 = vadd.f32 %v4148_v13, %v5492_v36  ;;  %v4151_v24 = vadd.f32 %v4150_v21, %v4149_v6  ;;  %v4232_v26 = vpop.f32.mrb[147].mxu1 }
 0x21b   :  { %v4233_v51 = vadd.f32 %v4232_v26, %v4231_v29 }
 0x21c   :  { %3611 = vst [vmem:[%s5597_s3 + $0x10] sm:$0xff] %v3568_v15   ;;  %v3008_v7 = vadd.f32 %v4230_v25, %v2887_v62  ;;  %v2890_v27 = vadd.f32 %v4151_v24, %v5495_v16 }
 0x21e   :  { %v3011_v23 = vadd.f32 %v4233_v51, %v2890_v27  ;;  %v4152_v37 = vpop.f32.mrb[148].mxu0  ;;  %v3076_v17 = vmax.f32 %v3008_v7, 0.0 }
 0x21f   :  { %v4234_v30 = vpop.f32.mrb[148].mxu1  ;;  %v4153_v32 = vpop.f32.mrb[149].mxu0 }
 0x220   :  { %v3077_v35 = vmax.f32 %v3011_v23, 0.0  ;;  %v4154_v14 = vadd.f32 %v4153_v32, %v4152_v37  ;;  %v4235_v38 = vpop.f32.mrb[149].mxu1  ;;  %v4155_v19 = vpop.f32.mrb[150].mxu0 }
 0x221   :  { %v4236_v36 = vadd.f32 %v4235_v38, %v4234_v30  ;;  %v4237_v60 = vpop.f32.mrb[150].mxu1  ;;  %v4156_v39 = vpop.f32.mrb[151].mxu0 }
 0x222   :  { %v3573_v31 = vpack.c.bf16 %v3077_v35, %v3076_v17  ;;  %v2895_v58 = vadd.f32 %v4154_v14, %v5498_v55  ;;  %v4157_v40 = vadd.f32 %v4156_v39, %v4155_v19  ;;  %v4238_v20 = vpop.f32.mrb[151].mxu1 }
 0x223   :  { %v4239_v43 = vadd.f32 %v4238_v20, %v4237_v60 }
 0x224   :  { %3612 = vst [vmem:[%s5597_s3 + $0x18] sm:$0xff] %v3573_v31   ;;  %v3016_v16 = vadd.f32 %v4236_v36, %v2895_v58  ;;  %v2898_v52 = vadd.f32 %v4157_v40, %v5501_v61 }
 0x226   :  { %v3019_v63 = vadd.f32 %v4239_v43, %v2898_v52  ;;  %v4158_v42 = vpop.f32.mrb[152].mxu0  ;;  %v3078_v2 = vmax.f32 %v3016_v16, 0.0 }
 0x227   :  { %v4240_v45 = vpop.f32.mrb[152].mxu1  ;;  %v4159_v44 = vpop.f32.mrb[153].mxu0 }
 0x228   :  { %v3079_v46 = vmax.f32 %v3019_v63, 0.0  ;;  %v4160_v50 = vadd.f32 %v4159_v44, %v4158_v42  ;;  %v4241_v28 = vpop.f32.mrb[153].mxu1  ;;  %v4161_v56 = vpop.f32.mrb[154].mxu0 }
 0x229   :  { %v4242_v55 = vadd.f32 %v4241_v28, %v4240_v45  ;;  %v4243_v1 = vpop.f32.mrb[154].mxu1  ;;  %v4162_v48 = vpop.f32.mrb[155].mxu0 }
 0x22a   :  { %v3578_v22 = vpack.c.bf16 %v3079_v46, %v3078_v2  ;;  %v2903_v41 = vadd.f32 %v4160_v50, %v5504_v8  ;;  %v4163_v54 = vadd.f32 %v4162_v48, %v4161_v56  ;;  %v4244_v5 = vpop.f32.mrb[155].mxu1 }
 0x22b   :  { %v4245_v12 = vadd.f32 %v4244_v5, %v4243_v1 }
 0x22c   :  { %3613 = vst [vmem:[%s5597_s3 + $0x20] sm:$0xff] %v3578_v22   ;;  %v3024_v61 = vadd.f32 %v4242_v55, %v2903_v41  ;;  %v2906_v49 = vadd.f32 %v4163_v54, %v5507_v9 }
 0x22e   :  { %v3027_v4 = vadd.f32 %v4245_v12, %v2906_v49  ;;  %v4164_v13 = vpop.f32.mrb[156].mxu0  ;;  %v3080_v25 = vmax.f32 %v3024_v61, 0.0 }
 0x22f   :  { %v4246_v47 = vpop.f32.mrb[156].mxu1  ;;  %v4165_v6 = vpop.f32.mrb[157].mxu0 }
 0x230   :  { %v3081_v29 = vmax.f32 %v3027_v4, 0.0  ;;  %v4166_v21 = vadd.f32 %v4165_v6, %v4164_v13  ;;  %v4247_v15 = vpop.f32.mrb[157].mxu1  ;;  %v4167_v62 = vpop.f32.mrb[158].mxu0 }
 0x231   :  { %v4248_v8 = vadd.f32 %v4247_v15, %v4246_v47  ;;  %v4249_v24 = vpop.f32.mrb[158].mxu1  ;;  %v4168_v26 = vpop.f32.mrb[159].mxu0 }
 0x232   :  { %v3583_v51 = vpack.c.bf16 %v3081_v29, %v3080_v25  ;;  %v2911_v7 = vadd.f32 %v4166_v21, %v5510_v3  ;;  %v4169_v27 = vadd.f32 %v4168_v26, %v4167_v62  ;;  %v4250_v23 = vpop.f32.mrb[159].mxu1 }
 0x233   :  { %v4251_v37 = vadd.f32 %v4250_v23, %v4249_v24 }
 0x234   :  { %3614 = vst [vmem:[%s5597_s3 + $0x28] sm:$0xff] %v3583_v51   ;;  %v3032_v9 = vadd.f32 %v4248_v8, %v2911_v7  ;;  %v2914_v30 = vadd.f32 %v4169_v27, %v5513_v33 }
 0x236   :  { %v3035_v32 = vadd.f32 %v4251_v37, %v2914_v30  ;;  %v4170_v17 = vpop.f32.mrb[160].mxu0  ;;  %v3082_v38 = vmax.f32 %v3032_v9, 0.0 }
 0x237   :  { %v4252_v35 = vpop.f32.mrb[160].mxu1  ;;  %v4171_v14 = vpop.f32.mrb[161].mxu0 }
 0x238   :  { %v3083_v19 = vmax.f32 %v3035_v32, 0.0  ;;  %v4172_v36 = vadd.f32 %v4171_v14, %v4170_v17  ;;  %v4253_v60 = vpop.f32.mrb[161].mxu1  ;;  %v4173_v39 = vpop.f32.mrb[162].mxu0 }
 0x239   :  { %v4254_v3 = vadd.f32 %v4253_v60, %v4252_v35  ;;  %v4255_v31 = vpop.f32.mrb[162].mxu1  ;;  %v4174_v58 = vpop.f32.mrb[163].mxu0 }
 0x23a   :  { %v3588_v40 = vpack.c.bf16 %v3083_v19, %v3082_v38  ;;  %v2919_v20 = vadd.f32 %v4172_v36, %v5516_v57  ;;  %v4175_v43 = vadd.f32 %v4174_v58, %v4173_v39  ;;  %v4256_v16 = vpop.f32.mrb[163].mxu1 }
 0x23b   :  { %v4257_v52 = vadd.f32 %v4256_v16, %v4255_v31 }
 0x23c   :  { %3615 = vst [vmem:[%s5597_s3 + $0x30] sm:$0xff] %v3588_v40   ;;  %v3040_v33 = vadd.f32 %v4254_v3, %v2919_v20  ;;  %v2922_v63 = vadd.f32 %v4175_v43, %v5519_v0 }
 0x23e   :  { %v3043_v42 = vadd.f32 %v4257_v52, %v2922_v63  ;;  %v4176_v45 = vpop.f32.mrb[164].mxu0  ;;  %v3084_v46 = vmax.f32 %v3040_v33, 0.0 }
 0x23f   :  { %v4258_v44 = vpop.f32.mrb[164].mxu1  ;;  %v4177_v2 = vpop.f32.mrb[165].mxu0 }
 0x240   :  { %v3085_v50 = vmax.f32 %v3043_v42, 0.0  ;;  %v4178_v28 = vadd.f32 %v4177_v2, %v4176_v45  ;;  %v4259_v56 = vpop.f32.mrb[165].mxu1  ;;  %v4179_v55 = vpop.f32.mrb[166].mxu0 }
 0x241   :  { %v4260_v57 = vadd.f32 %v4259_v56, %v4258_v44  ;;  %v4261_v1 = vpop.f32.mrb[166].mxu1  ;;  %v4180_v48 = vpop.f32.mrb[167].mxu0 }
 0x242   :  { %v3593_v22 = vpack.c.bf16 %v3085_v50, %v3084_v46  ;;  %v2927_v41 = vadd.f32 %v4178_v28, %v5522_v10  ;;  %v4181_v54 = vadd.f32 %v4180_v48, %v4179_v55  ;;  %v4262_v5 = vpop.f32.mrb[167].mxu1 }
 0x243   :  { %v4263_v12 = vadd.f32 %v4262_v5, %v4261_v1 }
 0x244   :  { %3616 = vst [vmem:[%s5597_s3 + $0x38] sm:$0xff] %v3593_v22   ;;  %v3048_v0 = vadd.f32 %v4260_v57, %v2927_v41  ;;  %v2930_v61 = vadd.f32 %v4181_v54, %v5525_v11 }
 0x246   :  { %v3051_v49 = vadd.f32 %v4263_v12, %v2930_v61  ;;  %v4182_v4 = vpop.f32.mrb[168].mxu0  ;;  %v3086_v6 = vmax.f32 %v3048_v0, 0.0 }
 0x247   :  { %v4264_v13 = vpop.f32.mrb[168].mxu1  ;;  %v4183_v47 = vpop.f32.mrb[169].mxu0 }
 0x248   :  { %v3087_v25 = vmax.f32 %v3051_v49, 0.0  ;;  %v4184_v29 = vadd.f32 %v4183_v47, %v4182_v4  ;;  %v4265_v21 = vpop.f32.mrb[169].mxu1  ;;  %v4185_v15 = vpop.f32.mrb[170].mxu0 }
 0x249   :  { %v4266_v10 = vadd.f32 %v4265_v21, %v4264_v13  ;;  %v4267_v62 = vpop.f32.mrb[170].mxu1  ;;  %v4186_v8 = vpop.f32.mrb[171].mxu0 }
 0x24a   :  { %v3598_v24 = vpack.c.bf16 %v3087_v25, %v3086_v6  ;;  %v2935_v26 = vadd.f32 %v4184_v29, %v5528_v53  ;;  %v4187_v51 = vadd.f32 %v4186_v8, %v4185_v15  ;;  %v4268_v7 = vpop.f32.mrb[171].mxu1 }
 0x24b   :  { %v4269_v27 = vadd.f32 %v4268_v7, %v4267_v62 }
 0x24c   :  { %3617 = vst [vmem:[%s5597_s3 + $0x40] sm:$0xff] %v3598_v24   ;;  %v3056_v11 = vadd.f32 %v4266_v10, %v2935_v26  ;;  %v2938_v23 = vadd.f32 %v4187_v51, %v5531_v34 }
 0x24e   :  { %v3059_v37 = vadd.f32 %v4269_v27, %v2938_v23  ;;  %v4188_v9 = vpop.f32.mrb[172].mxu0  ;;  %v3088_v17 = vmax.f32 %v3056_v11, 0.0 }
 0x24f   :  { %v4270_v30 = vpop.f32.mrb[172].mxu1  ;;  %v4189_v32 = vpop.f32.mrb[173].mxu0 }
 0x250   :  { %v3089_v35 = vmax.f32 %v3059_v37, 0.0  ;;  %v4190_v14 = vadd.f32 %v4189_v32, %v4188_v9  ;;  %v4271_v38 = vpop.f32.mrb[173].mxu1  ;;  %v4191_v19 = vpop.f32.mrb[174].mxu0 }
 0x251   :  { %v4272_v53 = vadd.f32 %v4271_v38, %v4270_v30  ;;  %v4273_v36 = vpop.f32.mrb[174].mxu1  ;;  %v4192_v60 = vpop.f32.mrb[175].mxu0 }
 0x252   :  { %v3603_v39 = vpack.c.bf16 %v3089_v35, %v3088_v17  ;;  %v2943_v3 = vadd.f32 %v4190_v14, %v5534_v59  ;;  %v4193_v31 = vadd.f32 %v4192_v60, %v4191_v19  ;;  %v4274_v58 = vpop.f32.mrb[175].mxu1 }
 0x253   :  { %v4275_v40 = vadd.f32 %v4274_v58, %v4273_v36 }
 0x254   :  { %3618 = vst [vmem:[%s5597_s3 + $0x48] sm:$0xff] %v3603_v39   ;;  %v3064_v34 = vadd.f32 %v4272_v53, %v2943_v3  ;;  %v2946_v20 = vadd.f32 %v4193_v31, %v5537_v18 }
 0x256   :  { %v3067_v43 = vadd.f32 %v4275_v40, %v2946_v20  ;;  %v3090_v16 = vmax.f32 %v3064_v34, 0.0 }
 0x258   :  { %v3091_v52 = vmax.f32 %v3067_v43, 0.0 }
 0x25a   :  { %v3608_v33 = vpack.c.bf16 %v3091_v52, %v3090_v16 }
 0x25c   :  { %3619 = vst [vmem:[%s5597_s3 + $0x50] sm:$0xff] %v3608_v33  }

// kernel: dqn_forward.6
= control target key start
LH: loop header
LB: loop body
LE: loop exit
PB: predicated region body
PF: predicated region fallthrough
CT: control target
= control target key end

     0   :  { %vm2201_vm0 = vmmov 0   ;;  %s2755_s1 = inlined_call_operand.vmem [shape: bf16[1152,128], index: 1, kind: input, shape index: {}]   ;;  %s2756_s0 = inlined_call_operand.vmem [shape: bf16[112,1152], index: 0, kind: input, shape index: {}]   ;;  %s2757_s2 = inlined_call_operand.vmem [shape: f32[1,128], index: 2, kind: input, shape index: {}]   ;;  %s2758_s3 = inlined_call_operand.vmem [shape: bf16[112,128], index: 3, kind: output, shape index: {}]  }
   0x1   :  { %v2037_v0 = vld [vmem:[%s2755_s1 + $0x40] sm:$0xff]   ;;  %v2039_v2 = vld [vmem:[%s2755_s1 + $0x48] sm:$0xff]   ;;  %v2041_v4 = vld [vmem:[%s2755_s1 + $0x50] sm:$0xff]  }
   0x2   :  { %v2038_v1 = vld [vmem:[%s2755_s1] sm:$0xff]   ;;  %2019 = vmatprep.subr.bf16.mxu1 %v2037_v0  ;;  %1728 = vmatprep.subr.bf16.mxu0 %v2037_v0  ;;  %v2040_v3 = vld [vmem:[%s2755_s1 + $0x8] sm:$0xff]   ;;  %v2042_v5 = vld [vmem:[%s2755_s1 + $0x10] sm:$0xff]  }
   0x3   :  { %2027 = vmatpush3.bf16.msra.mxu1 %v2038_v1  ;;  %1729 = vmatpush3.bf16.msra.mxu0 %v2038_v1  ;;  %v2043_v6 = vld [vmem:[%s2755_s1 + $0x58] sm:$0xff]   ;;  %v2045_v8 = vld [vmem:[%s2755_s1 + $0x60] sm:$0xff]   ;;  %v2047_v10 = vld [vmem:[%s2755_s1 + $0x68] sm:$0xff]  }
   0x4   :  { %2020 = vmatprep.subr.bf16.mxu1 %v2039_v2  ;;  %1730 = vmatprep.subr.bf16.mxu0 %v2039_v2  ;;  %v2044_v7 = vld [vmem:[%s2755_s1 + $0x18] sm:$0xff]   ;;  %v2046_v9 = vld [vmem:[%s2755_s1 + $0x20] sm:$0xff]   ;;  %v2048_v12 = vld [vmem:[%s2755_s1 + $0x28] sm:$0xff]  }
   0x5   :  { %v2055_v11 = vld [vmem:[%s2756_s0 + $0x124] ss:$36 sps:$4 sm:$0xff]   ;;  %v2049_v14 = vld [vmem:[%s2755_s1 + $0x70] sm:$0xff]   ;;  %v2051_v16 = vld [vmem:[%s2755_s1 + $0x78] sm:$0xff]  }
   0x6   :  { %v2059_v13 = vld [vmem:[%s2756_s0 + $0x4] ss:$36 sps:$4 sm:$0xff]   ;;  %1054 = vmatprep.mubr.bf16.mxu1 %v2055_v11  ;;  %v2050_v15 = vld [vmem:[%s2755_s1 + $0x30] sm:$0xff]   ;;  %v2052_v17 = vld [vmem:[%s2755_s1 + $0x38] sm:$0xff]  }
   0x7   :  { %2028 = vmatpush3.bf16.msra.mxu1 %v2040_v3  ;;  %1731 = vmatpush3.bf16.msra.mxu0 %v2040_v3  ;;  %v2056_v18 = vld [vmem:[%s2755_s1 + $0xc0] sm:$0xff]   ;;  %v2063_v24 = vld [vmem:[%s2755_s1 + $0xc8] sm:$0xff]   ;;  %v2067_v30 = vld [vmem:[%s2755_s1 + $0xd0] sm:$0xff]  }
   0x8   :  { %2021 = vmatprep.subr.bf16.mxu1 %v2041_v4  ;;  %1732 = vmatprep.subr.bf16.mxu0 %v2041_v4  ;;  %v2053_v19 = vld [vmem:[%s2756_s0 + $0x120] ss:$36 sps:$4 sm:$0xff]   ;;  %v2065_v25 = vld [vmem:[%s2755_s1 + $0x148] sm:$0xff]   ;;  %v2072_v31 = vld [vmem:[%s2755_s1 + $0x150] sm:$0xff]  }
   0x9   :  { %1022 = vmatprep.mubr.bf16.mxu0 %v2059_v13  ;;  %v2057_v20 = vld [vmem:[%s2756_s0] ss:$36 sps:$4 sm:$0xff]   ;;  %v2068_v26 = vld [vmem:[%s2756_s0 + $0x4c] ss:$36 sps:$4 sm:$0xff]   ;;  %v2074_v36 = vld [vmem:[%s2755_s1 + $0xd8] sm:$0xff]  }
   0xa   :  { %v2061_v21 = vld [vmem:[%s2755_s1 + $0x140] sm:$0xff]   ;;  %v2064_v27 = vld [vmem:[%s2755_s1 + $0x88] sm:$0xff]   ;;  %v2070_v32 = vld [vmem:[%s2755_s1 + $0x90] sm:$0xff]  }
   0xb   :  { %2029 = vmatpush3.bf16.msra.mxu1 %v2042_v5  ;;  %1733 = vmatpush3.bf16.msra.mxu0 %v2042_v5  ;;  %v2060_v22 = vld [vmem:[%s2755_s1 + $0x80] sm:$0xff]   ;;  %v2075_v28 = vld [vmem:[%s2756_s0 + $0x16c] ss:$36 sps:$4 sm:$0xff]   ;;  %v2079_v37 = vld [vmem:[%s2755_s1 + $0x158] sm:$0xff]  }
   0xc   :  { %2022 = vmatprep.subr.bf16.mxu1 %v2043_v6  ;;  %1734 = vmatprep.subr.bf16.mxu0 %v2043_v6  ;;  %v2062_v23 = vld [vmem:[%s2755_s1 + $0x100] sm:$0xff]   ;;  %v2066_v29 = vld [vmem:[%s2755_s1 + $0x108] sm:$0xff]   ;;  %v2073_v35 = vld [vmem:[%s2755_s1 + $0x110] sm:$0xff]   ;;  %v2200_v6 = vmov 0.0  }
   0xd   :  { %v2071_v33 = vld [vmem:[%s2756_s0 + $0x48] ss:$36 sps:$4 sm:$0xff]   ;;  %v2077_v38 = vld [vmem:[%s2755_s1 + $0x98] sm:$0xff]   ;;  %v2081_v41 = vld [vmem:[%s2755_s1 + $0xe0] sm:$0xff]  }
   0xe   :  { %v2078_v34 = vld [vmem:[%s2756_s0 + $0x168] ss:$36 sps:$4 sm:$0xff]   ;;  %v2080_v39 = vld [vmem:[%s2755_s1 + $0x118] sm:$0xff]   ;;  %v2086_v42 = vld [vmem:[%s2755_s1 + $0x160] sm:$0xff]  }
   0xf   :  { %2030 = vmatpush3.bf16.msra.mxu1 %v2044_v7  ;;  %1735 = vmatpush3.bf16.msra.mxu0 %v2044_v7  ;;  %v2082_v40 = vld [vmem:[%s2756_s0 + $0x94] ss:$36 sps:$4 sm:$0xff]   ;;  %v2084_v44 = vld [vmem:[%s2755_s1 + $0xa0] sm:$0xff]   ;;  %v2088_v48 = vld [vmem:[%s2755_s1 + $0xe8] sm:$0xff]  }
  0x10   :  { %2023 = vmatprep.subr.bf16.mxu1 %v2045_v8  ;;  %1736 = vmatprep.subr.bf16.mxu0 %v2045_v8  ;;  %v2089_v43 = vld [vmem:[%s2756_s0 + $0x1b4] ss:$36 sps:$4 sm:$0xff]   ;;  %v2087_v46 = vld [vmem:[%s2755_s1 + $0x120] sm:$0xff]   ;;  %v2093_v49 = vld [vmem:[%s2755_s1 + $0x168] sm:$0xff]  }
  0x11   :  { %v2085_v45 = vld [vmem:[%s2756_s0 + $0x90] ss:$36 sps:$4 sm:$0xff]   ;;  %v2091_v50 = vld [vmem:[%s2755_s1 + $0xa8] sm:$0xff]   ;;  %v2096_v51 = vld [vmem:[%s2756_s0 + $0xdc] ss:$36 sps:$4 sm:$0xff]  }
  0x12   :  { %v2092_v47 = vld [vmem:[%s2756_s0 + $0x1b0] ss:$36 sps:$4 sm:$0xff]   ;;  %v2094_v52 = vld [vmem:[%s2755_s1 + $0x128] sm:$0xff]   ;;  %v2099_v56 = vld [vmem:[%s2756_s0 + $0xd8] ss:$36 sps:$4 sm:$0xff]  }
  0x13   :  { %2031 = vmatpush3.bf16.msra.mxu1 %v2046_v9  ;;  %1737 = vmatpush3.bf16.msra.mxu0 %v2046_v9  ;;  %v2095_v53 = vld [vmem:[%s2755_s1 + $0xf0] sm:$0xff]   ;;  %v2102_v58 = vld [vmem:[%s2755_s1 + $0xf8] sm:$0xff]   ;;  %v2109_v63 = vld [vmem:[%s2755_s1 + $0x1c0] sm:$0xff]  }
  0x14   :  { %2024 = vmatprep.subr.bf16.mxu1 %v2047_v10  ;;  %1738 = vmatprep.subr.bf16.mxu0 %v2047_v10  ;;  %v2100_v54 = vld [vmem:[%s2755_s1 + $0x170] sm:$0xff]   ;;  %v2104_v59 = vld [vmem:[%s2755_s1 + $0x178] sm:$0xff]   ;;  %v2105_v0 = vld [vmem:[%s2756_s0 + $0x8] ss:$36 sps:$4 sm:$0xff]  }
  0x15   :  { %v2098_v55 = vld [vmem:[%s2755_s1 + $0xb0] sm:$0xff]   ;;  %v2103_v60 = vld [vmem:[%s2755_s1 + $0xb8] sm:$0xff]   ;;  %v2113_v3 = vld [vmem:[%s2755_s1 + $0x180] sm:$0xff]  }
  0x16   :  { %v2101_v57 = vld [vmem:[%s2755_s1 + $0x130] sm:$0xff]   ;;  %v2108_v62 = vld [vmem:[%s2755_s1 + $0x138] sm:$0xff]   ;;  %v2114_v4 = vld [vmem:[%s2755_s1 + $0x200] sm:$0xff]  }
  0x17   :  { %2032 = vmatpush3.bf16.msra.mxu1 %v2048_v12  ;;  %1739 = vmatpush3.bf16.msra.mxu0 %v2048_v12  ;;  %v2107_v61 = vld [vmem:[%s2756_s0 + $0xc] ss:$36 sps:$4 sm:$0xff]   ;;  %v2112_v2 = vld [vmem:[%s2756_s0 + $0x14] ss:$36 sps:$4 sm:$0xff]   ;;  %v2120_v9 = vld [vmem:[%s2756_s0 + $0x5c] ss:$36 sps:$4 sm:$0xff]  }
  0x18   :  { %2025 = vmatprep.subr.bf16.mxu1 %v2049_v14  ;;  %1740 = vmatprep.subr.bf16.mxu0 %v2049_v14  ;;  %v2110_v1 = vld [vmem:[%s2756_s0 + $0x10] ss:$36 sps:$4 sm:$0xff]   ;;  %v2117_v7 = vld [vmem:[%s2755_s1 + $0x1c8] sm:$0xff]   ;;  %v2122_v13 = vld [vmem:[%s2756_s0 + $0x58] ss:$36 sps:$4 sm:$0xff]  }
  0x19   :  { %v2115_v5 = vld [vmem:[%s2756_s0 + $0x54] ss:$36 sps:$4 sm:$0xff]   ;;  %v2119_v8 = vld [vmem:[%s2755_s1 + $0x188] sm:$0xff]   ;;  %v2125_v14 = vld [vmem:[%s2756_s0 + $0x9c] ss:$36 sps:$4 sm:$0xff]  }
  0x1a   :  { %v2118_v10 = vld [vmem:[%s2756_s0 + $0x50] ss:$36 sps:$4 sm:$0xff]   ;;  %v2123_v11 = vld [vmem:[%s2755_s1 + $0x208] sm:$0xff]  }
  0x1b   :  { %2033 = vmatpush3.bf16.msra.mxu1 %v2050_v15  ;;  %1741 = vmatpush3.bf16.msra.mxu0 %v2050_v15  ;;  %v2124_v12 = vld [vmem:[%s2755_s1 + $0x1d0] sm:$0xff]  }
  0x1c   :  { %2026 = vmatprep.subr.bf16.mxu1 %v2051_v16  ;;  %1742 = vmatprep.subr.bf16.mxu0 %v2051_v16  ;;  %v2127_v15 = vld [vmem:[%s2755_s1 + $0x190] sm:$0xff]   ;;  %v2129_v16 = vld [vmem:[%s2756_s0 + $0xa4] ss:$36 sps:$4 sm:$0xff]  }
  0x1f   :  { %2034 = vmatpush3.bf16.msra.mxu1 %v2052_v17  ;;  %1743 = vmatpush3.bf16.msra.mxu0 %v2052_v17  ;;  %v2132_v17 = vld [vmem:[%s2755_s1 + $0x210] sm:$0xff]  }
  0x20   :  { %1786 = vmatprep.subr.bf16.mxu1 %v2056_v18  ;;  %1844 = vmatprep.subr.bf16.mxu0 %v2061_v21  ;;  %v2133_v18 = vld [vmem:[%s2755_s1 + $0x1d8] sm:$0xff]   ;;  %v2131_v21 = vld [vmem:[%s2756_s0 + $0xa0] ss:$36 sps:$4 sm:$0xff]  }
  0x22   :  { %1055 = vmatmul.mubr.bf16.vlgmr.msra.gmra.mrb[0].mxu1 %v2053_v19  ;;  %1023 = vmatmul.mubr.bf16.vlgmr.msra.gmra.mrb[0].mxu0 %v2057_v20  ;;  %v2134_v19 = vld [vmem:[%s2755_s1 + $0x198] sm:$0xff]  }
  0x23   :  { %1787 = vmatpush3.bf16.msra.mxu1 %v2060_v22  ;;  %1845 = vmatpush3.bf16.msra.mxu0 %v2062_v23  ;;  %v2128_v20 = vld [vmem:[%s2756_s0 + $0x98] ss:$36 sps:$4 sm:$0xff]   ;;  %v2135_v22 = vld [vmem:[%s2756_s0 + $0xe4] ss:$36 sps:$4 sm:$0xff]   ;;  %v2138_v23 = vld [vmem:[%s2756_s0 + $0xec] ss:$36 sps:$4 sm:$0xff]  }
  0x24   :  { %1788 = vmatprep.subr.bf16.mxu1 %v2063_v24  ;;  %1846 = vmatprep.subr.bf16.mxu0 %v2065_v25  ;;  %v2141_v24 = vld [vmem:[%s2755_s1 + $0x218] sm:$0xff]   ;;  %v2142_v25 = vld [vmem:[%s2755_s1 + $0x1e0] sm:$0xff]  }
  0x25   :  { %1030 = vmatprep.mubr.bf16.mxu0 %v2068_v26  ;;  %1062 = vmatprep.mubr.bf16.mxu1 %v2075_v28  ;;  %v2143_v26 = vld [vmem:[%s2755_s1 + $0x1a0] sm:$0xff]   ;;  %v2140_v28 = vld [vmem:[%s2756_s0 + $0xe8] ss:$36 sps:$4 sm:$0xff]  }
  0x27   :  { %1789 = vmatpush3.bf16.msra.mxu1 %v2064_v27  ;;  %1847 = vmatpush3.bf16.msra.mxu0 %v2066_v29  ;;  %v2137_v27 = vld [vmem:[%s2756_s0 + $0xe0] ss:$36 sps:$4 sm:$0xff]   ;;  %v2144_v29 = vld [vmem:[%s2756_s0 + $0x12c] ss:$36 sps:$4 sm:$0xff]  }
  0x28   :  { %1790 = vmatprep.subr.bf16.mxu1 %v2067_v30  ;;  %1848 = vmatprep.subr.bf16.mxu0 %v2072_v31  ;;  %v2147_v30 = vld [vmem:[%s2756_s0 + $0x134] ss:$36 sps:$4 sm:$0xff]   ;;  %v2150_v31 = vld [vmem:[%s2755_s1 + $0x220] sm:$0xff]  }
  0x2a   :  { %1031 = vmatmul.mubr.bf16.gmra.mrb[4].mxu0 %v2071_v33  ;;  %1063 = vmatmul.mubr.bf16.gmra.mrb[4].mxu1 %v2078_v34  ;;  %v2152_v33 = vld [vmem:[%s2755_s1 + $0x1a8] sm:$0xff]  }
  0x2b   :  { %1791 = vmatpush3.bf16.msra.mxu1 %v2070_v32  ;;  %1849 = vmatpush3.bf16.msra.mxu0 %v2073_v35  ;;  %v2151_v32 = vld [vmem:[%s2755_s1 + $0x1e8] sm:$0xff]  }
  0x2c   :  { %1792 = vmatprep.subr.bf16.mxu1 %v2074_v36  ;;  %1850 = vmatprep.subr.bf16.mxu0 %v2079_v37  ;;  %v2158_v34 = vld [vmem:[%s2755_s1 + $0x228] sm:$0xff]   ;;  %v2149_v36 = vld [vmem:[%s2756_s0 + $0x130] ss:$36 sps:$4 sm:$0xff]  }
  0x2d   :  { %1038 = vmatprep.mubr.bf16.mxu0 %v2082_v40  ;;  %1070 = vmatprep.mubr.bf16.mxu1 %v2089_v43  ;;  %v2146_v35 = vld [vmem:[%s2756_s0 + $0x128] ss:$36 sps:$4 sm:$0xff]   ;;  %v2160_v37 = vld [vmem:[%s2755_s1 + $0x1f0] sm:$0xff]   ;;  %v2156_v40 = vld [vmem:[%s2756_s0 + $0x17c] ss:$36 sps:$4 sm:$0xff]  }
  0x2e   :  { %v2170_v43 = vld [vmem:[%s2755_s1 + $0x1b8] sm:$0xff]  }
  0x2f   :  { %1793 = vmatpush3.bf16.msra.mxu1 %v2077_v38  ;;  %1851 = vmatpush3.bf16.msra.mxu0 %v2080_v39  ;;  %v2161_v38 = vld [vmem:[%s2755_s1 + $0x1b0] sm:$0xff]  }
  0x30   :  { %1794 = vmatprep.subr.bf16.mxu1 %v2081_v41  ;;  %1852 = vmatprep.subr.bf16.mxu0 %v2086_v42  ;;  %v2153_v39 = vld [vmem:[%s2756_s0 + $0x174] ss:$36 sps:$4 sm:$0xff]  }
  0x31   :  { %v2165_v41 = vld [vmem:[%s2755_s1 + $0x230] sm:$0xff]   ;;  %v2168_v42 = vld [vmem:[%s2755_s1 + $0x1f8] sm:$0xff]  }
  0x32   :  { %1039 = vmatmul.mubr.bf16.gmra.mrb[8].mxu0 %v2085_v45  ;;  %1071 = vmatmul.mubr.bf16.gmra.mrb[8].mxu1 %v2092_v47  ;;  %v2174_v45 = vld [vmem:[%s2755_s1 + $0x238] sm:$0xff]  }
  0x33   :  { %1795 = vmatpush3.bf16.msra.mxu1 %v2084_v44  ;;  %1853 = vmatpush3.bf16.msra.mxu0 %v2087_v46  ;;  %v2155_v44 = vld [vmem:[%s2756_s0 + $0x170] ss:$36 sps:$4 sm:$0xff]   ;;  %v2159_v46 = vld [vmem:[%s2756_s0 + $0x178] ss:$36 sps:$4 sm:$0xff]  }
  0x34   :  { %1796 = vmatprep.subr.bf16.mxu1 %v2088_v48  ;;  %1854 = vmatprep.subr.bf16.mxu0 %v2093_v49  ;;  %v2162_v47 = vld [vmem:[%s2756_s0 + $0x1bc] ss:$36 sps:$4 sm:$0xff]   ;;  %v2166_v48 = vld [vmem:[%s2756_s0 + $0x1c4] ss:$36 sps:$4 sm:$0xff]  }
  0x35   :  { %1046 = vmatprep.mubr.bf16.mxu0 %v2096_v51  ;;  %1111 = vmatprep.mubr.bf16.mxu1 %v2107_v61  ;;  %v2164_v49 = vld [vmem:[%s2756_s0 + $0x1b8] ss:$36 sps:$4 sm:$0xff]   ;;  %v2186_v61 = vld [vmem:[%s2756_s0 + $0xf0] ss:$36 sps:$4 sm:$0xff]  }
  0x36   :  { %v2173_v51 = vld [vmem:[%s2756_s0 + $0x1c] ss:$36 sps:$4 sm:$0xff]  }
  0x37   :  { %1797 = vmatpush3.bf16.msra.mxu1 %v2091_v50  ;;  %1855 = vmatpush3.bf16.msra.mxu0 %v2094_v52  ;;  %v2169_v50 = vld [vmem:[%s2756_s0 + $0x1c0] ss:$36 sps:$4 sm:$0xff]   ;;  %v2171_v52 = vld [vmem:[%s2756_s0 + $0x18] ss:$36 sps:$4 sm:$0xff]  }
  0x38   :  { %1798 = vmatprep.subr.bf16.mxu1 %v2095_v53  ;;  %1856 = vmatprep.subr.bf16.mxu0 %v2100_v54  ;;  %v2175_v53 = vld [vmem:[%s2756_s0 + $0x20] ss:$36 sps:$4 sm:$0xff]  }
  0x39   :  { %v2176_v54 = vld [vmem:[%s2756_s0 + $0x64] ss:$36 sps:$4 sm:$0xff]  }
  0x3a   :  { %1047 = vmatmul.mubr.bf16.gmra.mrb[12].mxu0 %v2099_v56  ;;  %v2179_v56 = vld [vmem:[%s2756_s0 + $0x68] ss:$36 sps:$4 sm:$0xff]  }
  0x3b   :  { %1799 = vmatpush3.bf16.msra.mxu1 %v2098_v55  ;;  %1857 = vmatpush3.bf16.msra.mxu0 %v2101_v57  ;;  %v2178_v55 = vld [vmem:[%s2756_s0 + $0x60] ss:$36 sps:$4 sm:$0xff]   ;;  %v2180_v57 = vld [vmem:[%s2756_s0 + $0xac] ss:$36 sps:$4 sm:$0xff]  }
  0x3c   :  { %1800 = vmatprep.subr.bf16.mxu1 %v2102_v58  ;;  %1858 = vmatprep.subr.bf16.mxu0 %v2104_v59  ;;  %v2182_v58 = vld [vmem:[%s2756_s0 + $0xa8] ss:$36 sps:$4 sm:$0xff]   ;;  %v2183_v59 = vld [vmem:[%s2756_s0 + $0xb0] ss:$36 sps:$4 sm:$0xff]  }
  0x3d   :  { %1200 = vmatprep.mubr.bf16.mxu0 %v2112_v2  ;;  %v2192_v2 = vld [vmem:[%s2756_s0 + $0x184] ss:$36 sps:$4 sm:$0xff]  }
  0x3f   :  { %1801 = vmatpush3.bf16.msra.mxu1 %v2103_v60  ;;  %1859 = vmatpush3.bf16.msra.mxu0 %v2108_v62  ;;  %v2184_v60 = vld [vmem:[%s2756_s0 + $0xf4] ss:$36 sps:$4 sm:$0xff]  }
  0x40   :  { %1902 = vmatprep.subr.bf16.mxu1 %v2109_v63  ;;  %1975 = vmatprep.subr.bf16.mxu0 %v2200_v6  ;;  %v2187_v62 = vld [vmem:[%s2756_s0 + $0xf8] ss:$36 sps:$4 sm:$0xff]  }
  0x41   :  { %v2188_v63 = vld [vmem:[%s2756_s0 + $0x13c] ss:$36 sps:$4 sm:$0xff]  }
  0x42   :  { %1112 = vmatmul.mubr.bf16.vlgmr.msra.gmra.mrb[12].mxu1 %v2105_v0  ;;  %1201 = vmatmul.mubr.bf16.vlgmr.msra.gmra.mrb[16].mxu0 %v2110_v1  ;;  %v2190_v0 = vld [vmem:[%s2756_s0 + $0x138] ss:$36 sps:$4 sm:$0xff]   ;;  %v2191_v1 = vld [vmem:[%s2756_s0 + $0x140] ss:$36 sps:$4 sm:$0xff]  }
  0x43   :  { %1903 = vmatpush3.bf16.msra.mxu1 %v2113_v3  ;;  %1976 = vmatpush3.bf16.msra.mxu0 %v2114_v4  ;;  %v2194_v3 = vld [vmem:[%s2756_s0 + $0x180] ss:$36 sps:$4 sm:$0xff]   ;;  %v2195_v4 = vld [vmem:[%s2756_s0 + $0x188] ss:$36 sps:$4 sm:$0xff]  }
  0x44   :  { %1119 = vmatprep.mubr.bf16.mxu1 %v2115_v5  ;;  %1904 = vmatprep.subr.bf16.mxu1 %v2117_v7  ;;  %v2196_v5 = vld [vmem:[%s2756_s0 + $0x1cc] ss:$36 sps:$4 sm:$0xff]  }
  0x45   :  { %1208 = vmatprep.mubr.bf16.mxu0 %v2120_v9  ;;  %1977 = vmatprep.subr.bf16.mxu0 %v2200_v6  ;;  %v2198_v7 = vld [vmem:[%s2756_s0 + $0x1c8] ss:$36 sps:$4 sm:$0xff]  }
  0x47   :  { %1905 = vmatpush3.bf16.msra.mxu1 %v2119_v8  ;;  %1978 = vmatpush3.bf16.msra.mxu0 %v2123_v11  ;;  %v2199_v8 = vld [vmem:[%s2756_s0 + $0x1d0] ss:$36 sps:$4 sm:$0xff]  }
  0x48   :  { %1906 = vmatprep.subr.bf16.mxu1 %v2124_v12  ;;  %1979 = vmatprep.subr.bf16.mxu0 %v2200_v6 }
  0x4a   :  { %1120 = vmatmul.mubr.bf16.gmra.mrb[16].mxu1 %v2118_v10  ;;  %1209 = vmatmul.mubr.bf16.gmra.mrb[20].mxu0 %v2122_v13 }
  0x4b   :  { %1127 = vmatprep.mubr.bf16.mxu1 %v2125_v14  ;;  %1907 = vmatpush3.bf16.msra.mxu1 %v2127_v15 }
  0x4c   :  { %1216 = vmatprep.mubr.bf16.mxu0 %v2129_v16  ;;  %1980 = vmatpush3.bf16.msra.mxu0 %v2132_v17 }
  0x4d   :  { %1908 = vmatprep.subr.bf16.mxu1 %v2133_v18  ;;  %1981 = vmatprep.subr.bf16.mxu0 %v2200_v6 }
  0x4f   :  { %1909 = vmatpush3.bf16.msra.mxu1 %v2134_v19 }
  0x50   :  { %1982 = vmatpush3.bf16.msra.mxu0 %v2141_v24  ;;  %1910 = vmatprep.subr.bf16.mxu1 %v2142_v25 }
  0x51   :  { %1983 = vmatprep.subr.bf16.mxu0 %v2200_v6 }
  0x52   :  { %1128 = vmatmul.mubr.bf16.gmra.mrb[20].mxu1 %v2128_v20  ;;  %1217 = vmatmul.mubr.bf16.gmra.mrb[24].mxu0 %v2131_v21 }
  0x53   :  { %1135 = vmatprep.mubr.bf16.mxu1 %v2135_v22  ;;  %1224 = vmatprep.mubr.bf16.mxu0 %v2138_v23 }
  0x54   :  { %1911 = vmatpush3.bf16.msra.mxu1 %v2143_v26  ;;  %1984 = vmatpush3.bf16.msra.mxu0 %v2150_v31 }
  0x55   :  { %1912 = vmatprep.subr.bf16.mxu1 %v2151_v32  ;;  %1985 = vmatprep.subr.bf16.mxu0 %v2200_v6 }
  0x58   :  { %1913 = vmatpush3.bf16.msra.mxu1 %v2152_v33  ;;  %1986 = vmatpush3.bf16.msra.mxu0 %v2158_v34 }
  0x59   :  { %1987 = vmatprep.subr.bf16.mxu0 %v2200_v6  ;;  %1914 = vmatprep.subr.bf16.mxu1 %v2160_v37 }
  0x5a   :  { %1136 = vmatmul.mubr.bf16.gmra.mrb[24].mxu1 %v2137_v27  ;;  %1225 = vmatmul.mubr.bf16.gmra.mrb[28].mxu0 %v2140_v28 }
  0x5b   :  { %1143 = vmatprep.mubr.bf16.mxu1 %v2144_v29  ;;  %1232 = vmatprep.mubr.bf16.mxu0 %v2147_v30 }
  0x5c   :  { %1915 = vmatpush3.bf16.msra.mxu1 %v2161_v38  ;;  %1988 = vmatpush3.bf16.msra.mxu0 %v2165_v41 }
  0x5d   :  { %1916 = vmatprep.subr.bf16.mxu1 %v2168_v42  ;;  %1989 = vmatprep.subr.bf16.mxu0 %v2200_v6 }
  0x60   :  { %1917 = vmatpush3.bf16.msra.mxu1 %v2170_v43  ;;  %1990 = vmatpush3.bf16.msra.mxu0 %v2174_v45 }
  0x62   :  { %1144 = vmatmul.mubr.bf16.gmra.mrb[28].mxu1 %v2146_v35  ;;  %1233 = vmatmul.mubr.bf16.gmra.mrb[32].mxu0 %v2149_v36 }
  0x63   :  { %1151 = vmatprep.mubr.bf16.mxu1 %v2153_v39  ;;  %1240 = vmatprep.mubr.bf16.mxu0 %v2156_v40 }
  0x6a   :  { %1152 = vmatmul.mubr.bf16.gmra.mrb[32].mxu1 %v2155_v44  ;;  %1241 = vmatmul.mubr.bf16.gmra.mrb[36].mxu0 %v2159_v46 }
  0x6b   :  { %1159 = vmatprep.mubr.bf16.mxu1 %v2162_v47  ;;  %1248 = vmatprep.mubr.bf16.mxu0 %v2166_v48 }
  0x72   :  { %1160 = vmatmul.mubr.bf16.gmra.mrb[36].mxu1 %v2164_v49  ;;  %1249 = vmatmul.mubr.bf16.gmra.mrb[40].mxu0 %v2169_v50 }
  0x73   :  { %1289 = vmatprep.mubr.bf16.mxu1 %v2173_v51  ;;  %1991 = vmatprep.mubr.msk.bf16.mxu0 %vm2201_vm0, %v2200_v6 }
  0x7a   :  { %1290 = vmatmul.mubr.bf16.vlgmr.msra.gmra.mrb[40].mxu1 %v2171_v52  ;;  %1992 = vmatmul.mubr.bf16.vlgmr.msra.gmra.mrb[44].mxu0 %v2175_v53  ;;  %v2668_v52 = vld [vmem:[%s2757_s2] ss:$0 sm:$0xff] }
  0x7b   :  { %1297 = vmatprep.mubr.bf16.mxu1 %v2176_v54  ;;  %1995 = vmatprep.mubr.msk.bf16.mxu0 %vm2201_vm0, %v2200_v6 }
  0x82   :  { %1298 = vmatmul.mubr.bf16.gmra.mrb[44].mxu1 %v2178_v55  ;;  %1996 = vmatmul.mubr.bf16.gmra.mrb[48].mxu0 %v2179_v56 }
  0x83   :  { %1305 = vmatprep.mubr.bf16.mxu1 %v2180_v57  ;;  %1999 = vmatprep.mubr.msk.bf16.mxu0 %vm2201_vm0, %v2200_v6 }
  0x8a   :  { %1306 = vmatmul.mubr.bf16.gmra.mrb[48].mxu1 %v2182_v58  ;;  %2000 = vmatmul.mubr.bf16.gmra.mrb[52].mxu0 %v2183_v59 }
  0x8b   :  { %1313 = vmatprep.mubr.bf16.mxu1 %v2184_v60  ;;  %2003 = vmatprep.mubr.msk.bf16.mxu0 %vm2201_vm0, %v2200_v6 }
  0x92   :  { %1314 = vmatmul.mubr.bf16.gmra.mrb[52].mxu1 %v2186_v61  ;;  %2004 = vmatmul.mubr.bf16.gmra.mrb[56].mxu0 %v2187_v62 }
  0x93   :  { %1321 = vmatprep.mubr.bf16.mxu1 %v2188_v63  ;;  %2007 = vmatprep.mubr.msk.bf16.mxu0 %vm2201_vm0, %v2200_v6 }
  0x9a   :  { %1322 = vmatmul.mubr.bf16.gmra.mrb[56].mxu1 %v2190_v0  ;;  %2008 = vmatmul.mubr.bf16.gmra.mrb[60].mxu0 %v2191_v1 }
  0x9b   :  { %1329 = vmatprep.mubr.bf16.mxu1 %v2192_v2  ;;  %2011 = vmatprep.mubr.msk.bf16.mxu0 %vm2201_vm0, %v2200_v6 }
  0xa2   :  { %1330 = vmatmul.mubr.bf16.gmra.mrb[60].mxu1 %v2194_v3  ;;  %2012 = vmatmul.mubr.bf16.gmra.mrb[64].mxu0 %v2195_v4 }
  0xa3   :  { %1337 = vmatprep.mubr.bf16.mxu1 %v2196_v5  ;;  %2015 = vmatprep.mubr.msk.bf16.mxu0 %vm2201_vm0, %v2200_v6 }
  0xaa   :  { %1338 = vmatmul.mubr.bf16.gmra.mrb[64].mxu1 %v2198_v7  ;;  %2016 = vmatmul.mubr.bf16.gmra.mrb[68].mxu0 %v2199_v8 }
  0xf5   :  { %v1768_v9 = vpop.f32.mrb[0].mxu1  ;;  %v1744_v10 = vpop.f32.mrb[0].mxu0 }
  0xf6   :  { %v1769_v11 = vpop.f32.mrb[1].mxu1  ;;  %v1745_v12 = vpop.f32.mrb[1].mxu0 }
  0xf7   :  { %v2649_v13 = vadd.f32 %v1769_v11, %v1768_v9  ;;  %v1771_v14 = vpop.f32.mrb[2].mxu1  ;;  %v1746_v15 = vadd.f32 %v1745_v12, %v1744_v10  ;;  %v1747_v16 = vpop.f32.mrb[2].mxu0 }
  0xf8   :  { %v1772_v6 = vpop.f32.mrb[3].mxu1  ;;  %v1748_v17 = vpop.f32.mrb[3].mxu0 }
  0xf9   :  { %v2651_v18 = vadd.f32 %v1772_v6, %v1771_v14  ;;  %v1749_v19 = vadd.f32 %v1748_v17, %v1747_v16  ;;  %v1025_v55 = vadd.f32 %v1746_v15, %v2668_v52 }
  0xfb   :  { %v1028_v62 = vadd.f32 %v1749_v19, %v2668_v52 }
  0xfd   :  { %v1750_v20 = vpop.f32.mrb[4].mxu0  ;;  %v1774_v21 = vpop.f32.mrb[4].mxu1 }
  0xfe   :  { %v1751_v22 = vpop.f32.mrb[5].mxu0  ;;  %v1775_v23 = vpop.f32.mrb[5].mxu1 }
  0xff   :  { %v1752_v24 = vadd.f32 %v1751_v22, %v1750_v20  ;;  %v1753_v25 = vpop.f32.mrb[6].mxu0  ;;  %v2653_v26 = vadd.f32 %v1775_v23, %v1774_v21  ;;  %v1777_v27 = vpop.f32.mrb[6].mxu1 }
 0x100   :  { %v1754_v28 = vpop.f32.mrb[7].mxu0  ;;  %v1778_v29 = vpop.f32.mrb[7].mxu1 }
 0x101   :  { %v1755_v30 = vadd.f32 %v1754_v28, %v1753_v25  ;;  %v2655_v31 = vadd.f32 %v1778_v29, %v1777_v27  ;;  %v1033_v10 = vadd.f32 %v1752_v24, %v2668_v52 }
 0x103   :  { %v1036_v17 = vadd.f32 %v1755_v30, %v2668_v52 }
 0x105   :  { %v1756_v32 = vpop.f32.mrb[8].mxu0  ;;  %v1780_v33 = vpop.f32.mrb[8].mxu1 }
 0x106   :  { %v1757_v34 = vpop.f32.mrb[9].mxu0  ;;  %v1781_v35 = vpop.f32.mrb[9].mxu1 }
 0x107   :  { %v1758_v36 = vadd.f32 %v1757_v34, %v1756_v32  ;;  %v1759_v37 = vpop.f32.mrb[10].mxu0  ;;  %v2657_v38 = vadd.f32 %v1781_v35, %v1780_v33  ;;  %v1783_v39 = vpop.f32.mrb[10].mxu1 }
 0x108   :  { %v1760_v40 = vpop.f32.mrb[11].mxu0  ;;  %v1784_v41 = vpop.f32.mrb[11].mxu1 }
 0x109   :  { %v1761_v42 = vadd.f32 %v1760_v40, %v1759_v37  ;;  %v2659_v43 = vadd.f32 %v1784_v41, %v1783_v39  ;;  %v1041_v32 = vadd.f32 %v1758_v36, %v2668_v52 }
 0x10b   :  { %v1044_v40 = vadd.f32 %v1761_v42, %v2668_v52 }
 0x10d   :  { %v1762_v44 = vpop.f32.mrb[12].mxu0 }
 0x10e   :  { %v1763_v45 = vpop.f32.mrb[13].mxu0 }
 0x10f   :  { %v2661_v46 = vadd.f32 %v1763_v45, %v1762_v44  ;;  %v1765_v47 = vpop.f32.mrb[14].mxu0 }
 0x110   :  { %v1766_v48 = vpop.f32.mrb[15].mxu0 }
 0x111   :  { %v2663_v49 = vadd.f32 %v1766_v48, %v1765_v47 }
 0x115   :  { %v1802_v50 = vpop.f32.mrb[12].mxu1  ;;  %v1860_v51 = vpop.f32.mrb[16].mxu0 }
 0x116   :  { %v1803_v53 = vpop.f32.mrb[13].mxu1  ;;  %v1861_v54 = vpop.f32.mrb[17].mxu0 }
 0x117   :  { %v1804_v56 = vadd.f32 %v1803_v53, %v1802_v50  ;;  %v1805_v57 = vpop.f32.mrb[14].mxu1  ;;  %v1862_v58 = vadd.f32 %v1861_v54, %v1860_v51  ;;  %v1863_v59 = vpop.f32.mrb[18].mxu0 }
 0x118   :  { %v1806_v60 = vpop.f32.mrb[15].mxu1  ;;  %v1864_v61 = vpop.f32.mrb[19].mxu0 }
 0x119   :  { %v1114_v63 = vadd.f32 %v1804_v56, %v1025_v55  ;;  %v1807_v0 = vadd.f32 %v1806_v60, %v1805_v57  ;;  %v1865_v1 = vadd.f32 %v1864_v61, %v1863_v59  ;;  %v1049_v55 = vadd.f32 %v2661_v46, %v2668_v52 }
 0x11a   :  { %v1052_v61 = vadd.f32 %v2663_v49, %v2668_v52 }
 0x11b   :  { %v1117_v2 = vadd.f32 %v1807_v0, %v1028_v62  ;;  %v2672_v3 = vadd.f32 %v1862_v58, %v1114_v63 }
 0x11d   :  { %v2674_v4 = vadd.f32 %v1865_v1, %v1117_v2  ;;  %v1808_v5 = vpop.f32.mrb[16].mxu1  ;;  %v1866_v7 = vpop.f32.mrb[20].mxu0 }
 0x11e   :  { %v1809_v8 = vpop.f32.mrb[17].mxu1  ;;  %v1867_v9 = vpop.f32.mrb[21].mxu0 }
 0x11f   :  { %v1810_v11 = vadd.f32 %v1809_v8, %v1808_v5  ;;  %v1811_v12 = vpop.f32.mrb[18].mxu1  ;;  %v1868_v14 = vadd.f32 %v1867_v9, %v1866_v7  ;;  %v1869_v15 = vpop.f32.mrb[22].mxu0 }
 0x120   :  { %v1812_v16 = vpop.f32.mrb[19].mxu1  ;;  %v1870_v6 = vpop.f32.mrb[23].mxu0 }
 0x121   :  { %v1122_v19 = vadd.f32 %v1810_v11, %v1033_v10  ;;  %v1813_v20 = vadd.f32 %v1812_v16, %v1811_v12  ;;  %v1871_v21 = vadd.f32 %v1870_v6, %v1869_v15  ;;  %v1057_v10 = vadd.f32 %v2649_v13, %v2668_v52 }
 0x122   :  { %v1060_v6 = vadd.f32 %v2651_v18, %v2668_v52 }
 0x123   :  { %v1125_v22 = vadd.f32 %v1813_v20, %v1036_v17  ;;  %v2678_v23 = vadd.f32 %v1868_v14, %v1122_v19 }
 0x125   :  { %v2680_v25 = vadd.f32 %v1871_v21, %v1125_v22  ;;  %v1814_v27 = vpop.f32.mrb[20].mxu1  ;;  %v1872_v28 = vpop.f32.mrb[24].mxu0 }
 0x126   :  { %v1815_v29 = vpop.f32.mrb[21].mxu1  ;;  %v1873_v24 = vpop.f32.mrb[25].mxu0 }
 0x127   :  { %v1816_v33 = vadd.f32 %v1815_v29, %v1814_v27  ;;  %v1817_v34 = vpop.f32.mrb[22].mxu1  ;;  %v1874_v35 = vadd.f32 %v1873_v24, %v1872_v28  ;;  %v1875_v37 = vpop.f32.mrb[26].mxu0 }
 0x128   :  { %v1818_v39 = vpop.f32.mrb[23].mxu1  ;;  %v1876_v30 = vpop.f32.mrb[27].mxu0 }
 0x129   :  { %v1130_v41 = vadd.f32 %v1816_v33, %v1041_v32  ;;  %v1819_v44 = vadd.f32 %v1818_v39, %v1817_v34  ;;  %v1877_v45 = vadd.f32 %v1876_v30, %v1875_v37  ;;  %v1065_v32 = vadd.f32 %v2653_v26, %v2668_v52 }
 0x12a   :  { %v1068_v30 = vadd.f32 %v2655_v31, %v2668_v52 }
 0x12b   :  { %v1133_v47 = vadd.f32 %v1819_v44, %v1044_v40  ;;  %v2684_v48 = vadd.f32 %v1874_v35, %v1130_v41 }
 0x12d   :  { %v2686_v50 = vadd.f32 %v1877_v45, %v1133_v47  ;;  %v1820_v51 = vpop.f32.mrb[24].mxu1  ;;  %v1878_v53 = vpop.f32.mrb[28].mxu0 }
 0x12e   :  { %v1821_v54 = vpop.f32.mrb[25].mxu1  ;;  %v1879_v36 = vpop.f32.mrb[29].mxu0 }
 0x12f   :  { %v1822_v56 = vadd.f32 %v1821_v54, %v1820_v51  ;;  %v1823_v57 = vpop.f32.mrb[26].mxu1  ;;  %v1880_v58 = vadd.f32 %v1879_v36, %v1878_v53  ;;  %v1881_v59 = vpop.f32.mrb[30].mxu0 }
 0x130   :  { %v1824_v42 = vpop.f32.mrb[27].mxu1  ;;  %v1882_v60 = vpop.f32.mrb[31].mxu0 }
 0x131   :  { %v1138_v62 = vadd.f32 %v1822_v56, %v1049_v55  ;;  %v1825_v63 = vadd.f32 %v1824_v42, %v1823_v57  ;;  %v1883_v0 = vadd.f32 %v1882_v60, %v1881_v59  ;;  %v1073_v55 = vadd.f32 %v2657_v38, %v2668_v52 }
 0x132   :  { %v1076_v60 = vadd.f32 %v2659_v43, %v2668_v52 }
 0x133   :  { %v1141_v1 = vadd.f32 %v1825_v63, %v1052_v61  ;;  %v2692_v2 = vadd.f32 %v1880_v58, %v1138_v62 }
 0x135   :  { %v2694_v5 = vadd.f32 %v1883_v0, %v1141_v1  ;;  %v1826_v7 = vpop.f32.mrb[28].mxu1  ;;  %v1884_v8 = vpop.f32.mrb[32].mxu0 }
 0x136   :  { %v1827_v46 = vpop.f32.mrb[29].mxu1  ;;  %v1885_v9 = vpop.f32.mrb[33].mxu0 }
 0x137   :  { %v1828_v11 = vadd.f32 %v1827_v46, %v1826_v7  ;;  %v1829_v12 = vpop.f32.mrb[30].mxu1  ;;  %v1886_v14 = vadd.f32 %v1885_v9, %v1884_v8  ;;  %v1887_v15 = vpop.f32.mrb[34].mxu0 }
 0x138   :  { %v1830_v49 = vpop.f32.mrb[31].mxu1  ;;  %v1888_v16 = vpop.f32.mrb[35].mxu0 }
 0x139   :  { %v1146_v17 = vadd.f32 %v1828_v11, %v1057_v10  ;;  %v1831_v19 = vadd.f32 %v1830_v49, %v1829_v12  ;;  %v1889_v20 = vadd.f32 %v1888_v16, %v1887_v15 }
 0x13b   :  { %v1149_v21 = vadd.f32 %v1831_v19, %v1060_v6  ;;  %v2700_v22 = vadd.f32 %v1886_v14, %v1146_v17 }
 0x13d   :  { %v2702_v27 = vadd.f32 %v1889_v20, %v1149_v21  ;;  %v1832_v28 = vpop.f32.mrb[32].mxu1  ;;  %v1890_v29 = vpop.f32.mrb[36].mxu0 }
 0x13e   :  { %v1833_v13 = vpop.f32.mrb[33].mxu1  ;;  %v1891_v24 = vpop.f32.mrb[37].mxu0 }
 0x13f   :  { %v1834_v33 = vadd.f32 %v1833_v13, %v1832_v28  ;;  %v1835_v34 = vpop.f32.mrb[34].mxu1  ;;  %v1892_v35 = vadd.f32 %v1891_v24, %v1890_v29  ;;  %v1893_v37 = vpop.f32.mrb[38].mxu0 }
 0x140   :  { %v1836_v18 = vpop.f32.mrb[35].mxu1  ;;  %v1894_v39 = vpop.f32.mrb[39].mxu0 }
 0x141   :  { %v1154_v40 = vadd.f32 %v1834_v33, %v1065_v32  ;;  %v1837_v41 = vadd.f32 %v1836_v18, %v1835_v34  ;;  %v1895_v44 = vadd.f32 %v1894_v39, %v1893_v37 }
 0x143   :  { %v1157_v45 = vadd.f32 %v1837_v41, %v1068_v30  ;;  %v2708_v47 = vadd.f32 %v1892_v35, %v1154_v40 }
 0x145   :  { %v2710_v51 = vadd.f32 %v1895_v44, %v1157_v45  ;;  %v1838_v53 = vpop.f32.mrb[36].mxu1  ;;  %v1896_v54 = vpop.f32.mrb[40].mxu0 }
 0x146   :  { %v1839_v26 = vpop.f32.mrb[37].mxu1  ;;  %v1897_v36 = vpop.f32.mrb[41].mxu0 }
 0x147   :  { %v1840_v56 = vadd.f32 %v1839_v26, %v1838_v53  ;;  %v1841_v57 = vpop.f32.mrb[38].mxu1  ;;  %v1898_v58 = vadd.f32 %v1897_v36, %v1896_v54  ;;  %v1899_v59 = vpop.f32.mrb[42].mxu0 }
 0x148   :  { %v1842_v31 = vpop.f32.mrb[39].mxu1  ;;  %v1900_v42 = vpop.f32.mrb[43].mxu0 }
 0x149   :  { %v1162_v61 = vadd.f32 %v1840_v56, %v1073_v55  ;;  %v1843_v62 = vadd.f32 %v1842_v31, %v1841_v57  ;;  %v1901_v63 = vadd.f32 %v1900_v42, %v1899_v59 }
 0x14b   :  { %v1165_v0 = vadd.f32 %v1843_v62, %v1076_v60  ;;  %v2716_v1 = vadd.f32 %v1898_v58, %v1162_v61 }
 0x14d   :  { %v2718_v7 = vadd.f32 %v1901_v63, %v1165_v0  ;;  %v1918_v8 = vpop.f32.mrb[40].mxu1  ;;  %v1380_v46 = vpop.f32.mrb[44].mxu0 }
 0x14e   :  { %v1919_v38 = vpop.f32.mrb[41].mxu1  ;;  %v1993_v9 = vpop.f32.mrb[45].mxu0 }
 0x14f   :  { %v1920_v10 = vadd.f32 %v1919_v38, %v1918_v8  ;;  %v1921_v11 = vpop.f32.mrb[42].mxu1  ;;  %v1383_v12 = vpop.f32.mrb[46].mxu0 }
 0x150   :  { %v1922_v14 = vpop.f32.mrb[43].mxu1  ;;  %v1994_v15 = vpop.f32.mrb[47].mxu0 }
 0x151   :  { %v1923_v49 = vadd.f32 %v1922_v14, %v1921_v11  ;;  %v1292_v43 = vadd.f32 %v1920_v10, %v2672_v3 }
 0x153   :  { %v1381_v52 = vadd.f32 %v1380_v46, %v1292_v43  ;;  %v1295_v16 = vadd.f32 %v1923_v49, %v2674_v4 }
 0x155   :  { %v1384_v6 = vadd.f32 %v1383_v12, %v1295_v16  ;;  %v1924_v17 = vpop.f32.mrb[44].mxu1  ;;  %v1388_v19 = vpop.f32.mrb[48].mxu0  ;;  %v1435_v28 = vmax.f32 %v1381_v52, 0.0 }
 0x156   :  { %v1925_v20 = vpop.f32.mrb[45].mxu1  ;;  %v1997_v21 = vpop.f32.mrb[49].mxu0 }
 0x157   :  { %v1436_v29 = vmax.f32 %v1384_v6, 0.0  ;;  %v1926_v13 = vadd.f32 %v1925_v20, %v1924_v17  ;;  %v1927_v24 = vpop.f32.mrb[46].mxu1  ;;  %v1391_v32 = vpop.f32.mrb[50].mxu0 }
 0x158   :  { %v1928_v33 = vpop.f32.mrb[47].mxu1  ;;  %v1998_v34 = vpop.f32.mrb[51].mxu0 }
 0x159   :  { %v1690_v35 = vpack.c.bf16 %v1436_v29, %v1435_v28  ;;  %v1929_v37 = vadd.f32 %v1928_v33, %v1927_v24  ;;  %v1300_v18 = vadd.f32 %v1926_v13, %v2678_v23 }
 0x15b   :  { %1691 = vst [vmem:[%s2758_s3] sm:$0xff] %v1690_v35   ;;  %v1389_v3 = vadd.f32 %v1388_v19, %v1300_v18  ;;  %v1303_v4 = vadd.f32 %v1929_v37, %v2680_v25 }
 0x15d   :  { %v1392_v39 = vadd.f32 %v1391_v32, %v1303_v4  ;;  %v1930_v30 = vpop.f32.mrb[48].mxu1  ;;  %v1396_v40 = vpop.f32.mrb[52].mxu0  ;;  %v1437_v45 = vmax.f32 %v1389_v3, 0.0 }
 0x15e   :  { %v1931_v41 = vpop.f32.mrb[49].mxu1  ;;  %v2001_v44 = vpop.f32.mrb[53].mxu0 }
 0x15f   :  { %v1438_v53 = vmax.f32 %v1392_v39, 0.0  ;;  %v1932_v54 = vadd.f32 %v1931_v41, %v1930_v30  ;;  %v1933_v26 = vpop.f32.mrb[50].mxu1  ;;  %v1399_v36 = vpop.f32.mrb[54].mxu0 }
 0x160   :  { %v1934_v55 = vpop.f32.mrb[51].mxu1  ;;  %v2002_v56 = vpop.f32.mrb[55].mxu0 }
 0x161   :  { %v1695_v23 = vpack.c.bf16 %v1438_v53, %v1437_v45  ;;  %v1935_v57 = vadd.f32 %v1934_v55, %v1933_v26  ;;  %v1308_v58 = vadd.f32 %v1932_v54, %v2684_v48 }
 0x163   :  { %1722 = vst [vmem:[%s2758_s3 + $0x8] sm:$0xff] %v1695_v23   ;;  %v1397_v25 = vadd.f32 %v1396_v40, %v1308_v58  ;;  %v1311_v59 = vadd.f32 %v1935_v57, %v2686_v50 }
 0x165   :  { %v1400_v31 = vadd.f32 %v1399_v36, %v1311_v59  ;;  %v1936_v42 = vpop.f32.mrb[52].mxu1  ;;  %v1404_v60 = vpop.f32.mrb[56].mxu0  ;;  %v1439_v63 = vmax.f32 %v1397_v25, 0.0 }
 0x166   :  { %v1937_v61 = vpop.f32.mrb[53].mxu1  ;;  %v2005_v62 = vpop.f32.mrb[57].mxu0 }
 0x167   :  { %v1440_v0 = vmax.f32 %v1400_v31, 0.0  ;;  %v1938_v8 = vadd.f32 %v1937_v61, %v1936_v42  ;;  %v1939_v46 = vpop.f32.mrb[54].mxu1  ;;  %v1407_v38 = vpop.f32.mrb[58].mxu0 }
 0x168   :  { %v1940_v9 = vpop.f32.mrb[55].mxu1  ;;  %v2006_v10 = vpop.f32.mrb[59].mxu0 }
 0x169   :  { %v1700_v48 = vpack.c.bf16 %v1440_v0, %v1439_v63  ;;  %v1941_v11 = vadd.f32 %v1940_v9, %v1939_v46  ;;  %v1316_v12 = vadd.f32 %v1938_v8, %v2692_v2 }
 0x16b   :  { %1723 = vst [vmem:[%s2758_s3 + $0x10] sm:$0xff] %v1700_v48   ;;  %v1405_v50 = vadd.f32 %v1404_v60, %v1316_v12  ;;  %v1319_v14 = vadd.f32 %v1941_v11, %v2694_v5 }
 0x16d   :  { %v1408_v15 = vadd.f32 %v1407_v38, %v1319_v14  ;;  %v1942_v49 = vpop.f32.mrb[56].mxu1  ;;  %v1412_v43 = vpop.f32.mrb[60].mxu0  ;;  %v1441_v6 = vmax.f32 %v1405_v50, 0.0 }
 0x16e   :  { %v1943_v52 = vpop.f32.mrb[57].mxu1  ;;  %v2009_v16 = vpop.f32.mrb[61].mxu0 }
 0x16f   :  { %v1442_v17 = vmax.f32 %v1408_v15, 0.0  ;;  %v1944_v19 = vadd.f32 %v1943_v52, %v1942_v49  ;;  %v1945_v20 = vpop.f32.mrb[58].mxu1  ;;  %v1415_v21 = vpop.f32.mrb[62].mxu0 }
 0x170   :  { %v1946_v28 = vpop.f32.mrb[59].mxu1  ;;  %v2010_v29 = vpop.f32.mrb[63].mxu0 }
 0x171   :  { %v1705_v2 = vpack.c.bf16 %v1442_v17, %v1441_v6  ;;  %v1947_v13 = vadd.f32 %v1946_v28, %v1945_v20  ;;  %v1324_v24 = vadd.f32 %v1944_v19, %v2700_v22 }
 0x173   :  { %1724 = vst [vmem:[%s2758_s3 + $0x18] sm:$0xff] %v1705_v2   ;;  %v1413_v5 = vadd.f32 %v1412_v43, %v1324_v24  ;;  %v1327_v32 = vadd.f32 %v1947_v13, %v2702_v27 }
 0x175   :  { %v1416_v33 = vadd.f32 %v1415_v21, %v1327_v32  ;;  %v1948_v34 = vpop.f32.mrb[60].mxu1  ;;  %v1420_v35 = vpop.f32.mrb[64].mxu0  ;;  %v1443_v3 = vmax.f32 %v1413_v5, 0.0 }
 0x176   :  { %v1949_v37 = vpop.f32.mrb[61].mxu1  ;;  %v2013_v18 = vpop.f32.mrb[65].mxu0 }
 0x177   :  { %v1444_v4 = vmax.f32 %v1416_v33, 0.0  ;;  %v1950_v39 = vadd.f32 %v1949_v37, %v1948_v34  ;;  %v1951_v30 = vpop.f32.mrb[62].mxu1  ;;  %v1423_v40 = vpop.f32.mrb[66].mxu0 }
 0x178   :  { %v1952_v41 = vpop.f32.mrb[63].mxu1  ;;  %v2014_v44 = vpop.f32.mrb[67].mxu0 }
 0x179   :  { %v1710_v22 = vpack.c.bf16 %v1444_v4, %v1443_v3  ;;  %v1953_v45 = vadd.f32 %v1952_v41, %v1951_v30  ;;  %v1332_v53 = vadd.f32 %v1950_v39, %v2708_v47 }
 0x17b   :  { %1725 = vst [vmem:[%s2758_s3 + $0x20] sm:$0xff] %v1710_v22   ;;  %v1421_v27 = vadd.f32 %v1420_v35, %v1332_v53  ;;  %v1335_v54 = vadd.f32 %v1953_v45, %v2710_v51 }
 0x17d   :  { %v1424_v26 = vadd.f32 %v1423_v40, %v1335_v54  ;;  %v1954_v36 = vpop.f32.mrb[64].mxu1  ;;  %v1428_v55 = vpop.f32.mrb[68].mxu0  ;;  %v1445_v57 = vmax.f32 %v1421_v27, 0.0 }
 0x17e   :  { %v1955_v56 = vpop.f32.mrb[65].mxu1  ;;  %v2017_v23 = vpop.f32.mrb[69].mxu0 }
 0x17f   :  { %v1446_v58 = vmax.f32 %v1424_v26, 0.0  ;;  %v1956_v25 = vadd.f32 %v1955_v56, %v1954_v36  ;;  %v1957_v59 = vpop.f32.mrb[66].mxu1  ;;  %v1431_v31 = vpop.f32.mrb[70].mxu0 }
 0x180   :  { %v1958_v42 = vpop.f32.mrb[67].mxu1  ;;  %v2018_v60 = vpop.f32.mrb[71].mxu0 }
 0x181   :  { %v1715_v47 = vpack.c.bf16 %v1446_v58, %v1445_v57  ;;  %v1959_v61 = vadd.f32 %v1958_v42, %v1957_v59  ;;  %v1340_v62 = vadd.f32 %v1956_v25, %v2716_v1 }
 0x183   :  { %1726 = vst [vmem:[%s2758_s3 + $0x28] sm:$0xff] %v1715_v47   ;;  %v1429_v51 = vadd.f32 %v1428_v55, %v1340_v62  ;;  %v1343_v63 = vadd.f32 %v1959_v61, %v2718_v7 }
 0x185   :  { %v1432_v0 = vadd.f32 %v1431_v31, %v1343_v63  ;;  %v1447_v8 = vmax.f32 %v1429_v51, 0.0 }
 0x187   :  { %v1448_v46 = vmax.f32 %v1432_v0, 0.0 }
 0x189   :  { %v1720_v38 = vpack.c.bf16 %v1448_v46, %v1447_v8 }
 0x18b   :  { %1727 = vst [vmem:[%s2758_s3 + $0x30] sm:$0xff] %v1720_v38  }

// kernel: dqn_forward.7
= control target key start
LH: loop header
LB: loop body
LE: loop exit
PB: predicated region body
PF: predicated region fallthrough
CT: control target
= control target key end

     0   :  { %s11368_s1 = inlined_call_operand.vmem [shape: bf16[3200,512], index: 1, kind: input, shape index: {}]   ;;  %s11369_s0 = inlined_call_operand.vmem [shape: bf16[16,3200], index: 0, kind: input, shape index: {}]   ;;  %s11370_s3 = inlined_call_operand.vmem [shape: bf16[512,128], index: 3, kind: input, shape index: {}]   ;;  %s11371_s2 = inlined_call_operand.vmem [shape: f32[1,512], index: 2, kind: input, shape index: {}]   ;;  %s11372_s4 = inlined_call_operand.vmem [shape: f32[1,128], index: 4, kind: input, shape index: {}]   ;;  %s11373_s5 = inlined_call_operand.vmem [shape: f32[16,128], index: 5, kind: output, shape index: {}]  }
   0x1   :  { %v7485_v0 = vld [vmem:[%s11368_s1 + $0x4] ss:$16 sps:$4 sm:$0xff]   ;;  %v7487_v1 = vld [vmem:[%s11368_s1 + $0xc] ss:$16 sps:$4 sm:$0xff]   ;;  %v7489_v2 = vld [vmem:[%s11368_s1] ss:$16 sps:$4 sm:$0xff]  }
   0x2   :  { %4995 = vmatprep.subr.bf16.mxu0 %v7485_v0  ;;  %v7490_v3 = vld [vmem:[%s11368_s1 + $0x8] ss:$16 sps:$4 sm:$0xff]   ;;  %5554 = vmatprep.subr.bf16.mxu1 %v7487_v1  ;;  %v7491_v4 = vld [vmem:[%s11368_s1 + $0x24] ss:$16 sps:$4 sm:$0xff]   ;;  %v7493_v5 = vld [vmem:[%s11368_s1 + $0x2c] ss:$16 sps:$4 sm:$0xff]  }
   0x3   :  { %4996 = vmatpush1.bf16.msra.mxu0 %v7489_v2  ;;  %5555 = vmatpush1.bf16.msra.mxu1 %v7490_v3  ;;  %v7495_v6 = vld [vmem:[%s11368_s1 + $0x20] ss:$16 sps:$4 sm:$0xff]   ;;  %v7496_v7 = vld [vmem:[%s11368_s1 + $0x28] ss:$16 sps:$4 sm:$0xff]   ;;  %v7497_v8 = vld [vmem:[%s11368_s1 + $0x44] ss:$16 sps:$4 sm:$0xff]  }
   0x4   :  { %4997 = vmatprep.subr.bf16.mxu0 %v7491_v4  ;;  %5556 = vmatprep.subr.bf16.mxu1 %v7493_v5  ;;  %v7499_v9 = vld [vmem:[%s11368_s1 + $0x4c] ss:$16 sps:$4 sm:$0xff]   ;;  %v7501_v10 = vld [vmem:[%s11368_s1 + $0x40] ss:$16 sps:$4 sm:$0xff]   ;;  %v7502_v11 = vld [vmem:[%s11368_s1 + $0x48] ss:$16 sps:$4 sm:$0xff]  }
   0x5   :  { %v7503_v12 = vld [vmem:[%s11368_s1 + $0x64] ss:$16 sps:$4 sm:$0xff]   ;;  %v7505_v13 = vld [vmem:[%s11368_s1 + $0x6c] ss:$16 sps:$4 sm:$0xff]   ;;  %v7507_v14 = vld [vmem:[%s11368_s1 + $0x60] ss:$16 sps:$4 sm:$0xff]  }
   0x6   :  { %v7508_v15 = vld [vmem:[%s11368_s1 + $0x68] ss:$16 sps:$4 sm:$0xff]   ;;  %v7509_v16 = vld [vmem:[%s11368_s1 + $0x84] ss:$16 sps:$4 sm:$0xff]   ;;  %v7511_v17 = vld [vmem:[%s11368_s1 + $0x8c] ss:$16 sps:$4 sm:$0xff]  }
   0x7   :  { %4998 = vmatpush1.bf16.msra.mxu0 %v7495_v6  ;;  %5557 = vmatpush1.bf16.msra.mxu1 %v7496_v7  ;;  %v7513_v18 = vld [vmem:[%s11368_s1 + $0x80] ss:$16 sps:$4 sm:$0xff]   ;;  %v7514_v19 = vld [vmem:[%s11368_s1 + $0x88] ss:$16 sps:$4 sm:$0xff]   ;;  %v7515_v20 = vld [vmem:[%s11368_s1 + $0xa4] ss:$16 sps:$4 sm:$0xff]  }
   0x8   :  { %4999 = vmatprep.subr.bf16.mxu0 %v7497_v8  ;;  %5558 = vmatprep.subr.bf16.mxu1 %v7499_v9  ;;  %v7517_v21 = vld [vmem:[%s11368_s1 + $0xac] ss:$16 sps:$4 sm:$0xff]   ;;  %v7519_v22 = vld [vmem:[%s11368_s1 + $0xa0] ss:$16 sps:$4 sm:$0xff]   ;;  %v7520_v23 = vld [vmem:[%s11368_s1 + $0xa8] ss:$16 sps:$4 sm:$0xff]  }
   0x9   :  { %v7521_v24 = vld [vmem:[%s11368_s1 + $0xc4] ss:$16 sps:$4 sm:$0xff]   ;;  %v7523_v25 = vld [vmem:[%s11368_s1 + $0xcc] ss:$16 sps:$4 sm:$0xff]   ;;  %v7525_v26 = vld [vmem:[%s11368_s1 + $0xc0] ss:$16 sps:$4 sm:$0xff]  }
   0xa   :  { %v7526_v27 = vld [vmem:[%s11368_s1 + $0xc8] ss:$16 sps:$4 sm:$0xff]   ;;  %v7527_v28 = vld [vmem:[%s11368_s1 + $0xe4] ss:$16 sps:$4 sm:$0xff]   ;;  %v7529_v29 = vld [vmem:[%s11368_s1 + $0xec] ss:$16 sps:$4 sm:$0xff]  }
   0xb   :  { %5000 = vmatpush1.bf16.msra.mxu0 %v7501_v10  ;;  %5559 = vmatpush1.bf16.msra.mxu1 %v7502_v11  ;;  %v7531_v30 = vld [vmem:[%s11368_s1 + $0xe0] ss:$16 sps:$4 sm:$0xff]   ;;  %v7532_v31 = vld [vmem:[%s11368_s1 + $0xe8] ss:$16 sps:$4 sm:$0xff]   ;;  %v7533_v32 = vld [vmem:[%s11368_s1 + $0x104] ss:$16 sps:$4 sm:$0xff]  }
   0xc   :  { %5001 = vmatprep.subr.bf16.mxu0 %v7503_v12  ;;  %5560 = vmatprep.subr.bf16.mxu1 %v7505_v13  ;;  %v7535_v33 = vld [vmem:[%s11368_s1 + $0x10c] ss:$16 sps:$4 sm:$0xff]   ;;  %v7537_v34 = vld [vmem:[%s11368_s1 + $0x100] ss:$16 sps:$4 sm:$0xff]   ;;  %v7538_v35 = vld [vmem:[%s11368_s1 + $0x108] ss:$16 sps:$4 sm:$0xff]  }
   0xd   :  { %v7539_v36 = vld [vmem:[%s11368_s1 + $0x124] ss:$16 sps:$4 sm:$0xff]   ;;  %v7541_v37 = vld [vmem:[%s11368_s1 + $0x12c] ss:$16 sps:$4 sm:$0xff]   ;;  %v7543_v38 = vld [vmem:[%s11368_s1 + $0x120] ss:$16 sps:$4 sm:$0xff]  }
   0xe   :  { %v7544_v39 = vld [vmem:[%s11368_s1 + $0x128] ss:$16 sps:$4 sm:$0xff]   ;;  %v7545_v40 = vld [vmem:[%s11368_s1 + $0x144] ss:$16 sps:$4 sm:$0xff]   ;;  %v7547_v41 = vld [vmem:[%s11368_s1 + $0x14c] ss:$16 sps:$4 sm:$0xff]  }
   0xf   :  { %5002 = vmatpush1.bf16.msra.mxu0 %v7507_v14  ;;  %5561 = vmatpush1.bf16.msra.mxu1 %v7508_v15  ;;  %v7549_v42 = vld [vmem:[%s11368_s1 + $0x140] ss:$16 sps:$4 sm:$0xff]   ;;  %v7550_v43 = vld [vmem:[%s11368_s1 + $0x148] ss:$16 sps:$4 sm:$0xff]   ;;  %v7551_v44 = vld [vmem:[%s11368_s1 + $0x164] ss:$16 sps:$4 sm:$0xff]  }
  0x10   :  { %5003 = vmatprep.subr.bf16.mxu0 %v7509_v16  ;;  %5562 = vmatprep.subr.bf16.mxu1 %v7511_v17  ;;  %v7553_v45 = vld [vmem:[%s11368_s1 + $0x16c] ss:$16 sps:$4 sm:$0xff]   ;;  %v7555_v46 = vld [vmem:[%s11368_s1 + $0x160] ss:$16 sps:$4 sm:$0xff]   ;;  %v7556_v47 = vld [vmem:[%s11368_s1 + $0x168] ss:$16 sps:$4 sm:$0xff]  }
  0x11   :  { %v7583_v48 = vld [vmem:[%s11369_s0 + $0x4] ss:$100 sps:$4 sm:$0xff]   ;;  %v7559_v50 = vld [vmem:[%s11368_s1 + $0x18c] ss:$16 sps:$4 sm:$0xff]   ;;  %v7561_v51 = vld [vmem:[%s11368_s1 + $0x180] ss:$16 sps:$4 sm:$0xff]  }
  0x12   :  { %v7557_v49 = vld [vmem:[%s11368_s1 + $0x184] ss:$16 sps:$4 sm:$0xff]   ;;  %5027 = vmatprep.mubr.bf16.mxu0 %v7583_v48  ;;  %5586 = vmatprep.mubr.bf16.mxu1 %v7583_v48  ;;  %v7562_v52 = vld [vmem:[%s11368_s1 + $0x188] ss:$16 sps:$4 sm:$0xff]   ;;  %v7565_v54 = vld [vmem:[%s11368_s1 + $0x1ac] ss:$16 sps:$4 sm:$0xff]  }
  0x13   :  { %5004 = vmatpush1.bf16.msra.mxu0 %v7513_v18  ;;  %5563 = vmatpush1.bf16.msra.mxu1 %v7514_v19  ;;  %v7563_v53 = vld [vmem:[%s11368_s1 + $0x1a4] ss:$16 sps:$4 sm:$0xff]   ;;  %v7567_v55 = vld [vmem:[%s11368_s1 + $0x1a0] ss:$16 sps:$4 sm:$0xff]   ;;  %v7568_v56 = vld [vmem:[%s11368_s1 + $0x1a8] ss:$16 sps:$4 sm:$0xff]  }
  0x14   :  { %5005 = vmatprep.subr.bf16.mxu0 %v7515_v20  ;;  %5564 = vmatprep.subr.bf16.mxu1 %v7517_v21  ;;  %v7569_v57 = vld [vmem:[%s11368_s1 + $0x1c4] ss:$16 sps:$4 sm:$0xff]   ;;  %v7571_v58 = vld [vmem:[%s11368_s1 + $0x1cc] ss:$16 sps:$4 sm:$0xff]   ;;  %v7573_v59 = vld [vmem:[%s11368_s1 + $0x1c0] ss:$16 sps:$4 sm:$0xff]  }
  0x15   :  { %v7574_v60 = vld [vmem:[%s11368_s1 + $0x1c8] ss:$16 sps:$4 sm:$0xff]   ;;  %v7575_v61 = vld [vmem:[%s11368_s1 + $0x1e4] ss:$16 sps:$4 sm:$0xff]   ;;  %v7577_v62 = vld [vmem:[%s11368_s1 + $0x1ec] ss:$16 sps:$4 sm:$0xff]  }
  0x16   :  { %v7579_v63 = vld [vmem:[%s11368_s1 + $0x1e0] ss:$16 sps:$4 sm:$0xff]   ;;  %v7580_v0 = vld [vmem:[%s11368_s1 + $0x1e8] ss:$16 sps:$4 sm:$0xff]   ;;  %v7586_v1 = vld [vmem:[%s11368_s1 + $0x204] ss:$16 sps:$4 sm:$0xff]  }
  0x17   :  { %5006 = vmatpush1.bf16.msra.mxu0 %v7519_v22  ;;  %5565 = vmatpush1.bf16.msra.mxu1 %v7520_v23  ;;  %v7589_v2 = vld [vmem:[%s11368_s1 + $0x20c] ss:$16 sps:$4 sm:$0xff]   ;;  %v7581_v3 = vld [vmem:[%s11369_s0] ss:$100 sps:$4 sm:$0xff]   ;;  %v7587_v5 = vld [vmem:[%s11368_s1 + $0x208] ss:$16 sps:$4 sm:$0xff]  }
  0x18   :  { %5007 = vmatprep.subr.bf16.mxu0 %v7521_v24  ;;  %5566 = vmatprep.subr.bf16.mxu1 %v7523_v25  ;;  %v7584_v4 = vld [vmem:[%s11368_s1 + $0x200] ss:$16 sps:$4 sm:$0xff]   ;;  %v7592_v6 = vld [vmem:[%s11368_s1 + $0x224] ss:$16 sps:$4 sm:$0xff]   ;;  %v7595_v7 = vld [vmem:[%s11368_s1 + $0x22c] ss:$16 sps:$4 sm:$0xff]  }
  0x19   :  { %v7590_v8 = vld [vmem:[%s11368_s1 + $0x220] ss:$16 sps:$4 sm:$0xff]   ;;  %v7593_v9 = vld [vmem:[%s11368_s1 + $0x228] ss:$16 sps:$4 sm:$0xff]   ;;  %v7598_v10 = vld [vmem:[%s11368_s1 + $0x244] ss:$16 sps:$4 sm:$0xff]  }
  0x1a   :  { %v7601_v11 = vld [vmem:[%s11368_s1 + $0x24c] ss:$16 sps:$4 sm:$0xff]   ;;  %v7596_v12 = vld [vmem:[%s11368_s1 + $0x240] ss:$16 sps:$4 sm:$0xff]   ;;  %v7599_v13 = vld [vmem:[%s11368_s1 + $0x248] ss:$16 sps:$4 sm:$0xff]  }
  0x1b   :  { %5008 = vmatpush1.bf16.msra.mxu0 %v7525_v26  ;;  %5567 = vmatpush1.bf16.msra.mxu1 %v7526_v27  ;;  %v7604_v14 = vld [vmem:[%s11368_s1 + $0x264] ss:$16 sps:$4 sm:$0xff]   ;;  %v7607_v15 = vld [vmem:[%s11368_s1 + $0x26c] ss:$16 sps:$4 sm:$0xff]   ;;  %v7602_v16 = vld [vmem:[%s11368_s1 + $0x260] ss:$16 sps:$4 sm:$0xff]  }
  0x1c   :  { %5009 = vmatprep.subr.bf16.mxu0 %v7527_v28  ;;  %5568 = vmatprep.subr.bf16.mxu1 %v7529_v29  ;;  %v7605_v17 = vld [vmem:[%s11368_s1 + $0x268] ss:$16 sps:$4 sm:$0xff]   ;;  %v7610_v18 = vld [vmem:[%s11368_s1 + $0x284] ss:$16 sps:$4 sm:$0xff]   ;;  %v7613_v19 = vld [vmem:[%s11368_s1 + $0x28c] ss:$16 sps:$4 sm:$0xff]  }
  0x1d   :  { %v7608_v20 = vld [vmem:[%s11368_s1 + $0x280] ss:$16 sps:$4 sm:$0xff]   ;;  %v7611_v21 = vld [vmem:[%s11368_s1 + $0x288] ss:$16 sps:$4 sm:$0xff]   ;;  %v7616_v22 = vld [vmem:[%s11368_s1 + $0x2a4] ss:$16 sps:$4 sm:$0xff]  }
  0x1e   :  { %v7619_v23 = vld [vmem:[%s11368_s1 + $0x2ac] ss:$16 sps:$4 sm:$0xff]   ;;  %v7614_v24 = vld [vmem:[%s11368_s1 + $0x2a0] ss:$16 sps:$4 sm:$0xff]   ;;  %v7617_v25 = vld [vmem:[%s11368_s1 + $0x2a8] ss:$16 sps:$4 sm:$0xff]  }
  0x1f   :  { %5010 = vmatpush1.bf16.msra.mxu0 %v7531_v30  ;;  %5569 = vmatpush1.bf16.msra.mxu1 %v7532_v31  ;;  %v7622_v26 = vld [vmem:[%s11368_s1 + $0x2c4] ss:$16 sps:$4 sm:$0xff]   ;;  %v7625_v27 = vld [vmem:[%s11368_s1 + $0x2cc] ss:$16 sps:$4 sm:$0xff]   ;;  %v7620_v28 = vld [vmem:[%s11368_s1 + $0x2c0] ss:$16 sps:$4 sm:$0xff]  }
  0x20   :  { %5011 = vmatprep.subr.bf16.mxu0 %v7533_v32  ;;  %5570 = vmatprep.subr.bf16.mxu1 %v7535_v33  ;;  %v7623_v29 = vld [vmem:[%s11368_s1 + $0x2c8] ss:$16 sps:$4 sm:$0xff]   ;;  %v7682_v30 = vld [vmem:[%s11369_s0 + $0xc] ss:$100 sps:$4 sm:$0xff]   ;;  %v7628_v31 = vld [vmem:[%s11368_s1 + $0x2e4] ss:$16 sps:$4 sm:$0xff]  }
  0x21   :  { %v7631_v32 = vld [vmem:[%s11368_s1 + $0x2ec] ss:$16 sps:$4 sm:$0xff]   ;;  %v7626_v33 = vld [vmem:[%s11368_s1 + $0x2e0] ss:$16 sps:$4 sm:$0xff]  }
  0x22   :  { %v7655_v48 = vld [vmem:[%s11368_s1 + $0x36c] ss:$16 sps:$4 sm:$0xff]  }
  0x23   :  { %5012 = vmatpush1.bf16.msra.mxu0 %v7537_v34  ;;  %5571 = vmatpush1.bf16.msra.mxu1 %v7538_v35  ;;  %v7629_v34 = vld [vmem:[%s11368_s1 + $0x2e8] ss:$16 sps:$4 sm:$0xff]   ;;  %v7634_v35 = vld [vmem:[%s11368_s1 + $0x304] ss:$16 sps:$4 sm:$0xff]  }
  0x24   :  { %5013 = vmatprep.subr.bf16.mxu0 %v7539_v36  ;;  %5572 = vmatprep.subr.bf16.mxu1 %v7541_v37  ;;  %v7637_v36 = vld [vmem:[%s11368_s1 + $0x30c] ss:$16 sps:$4 sm:$0xff]   ;;  %v7632_v37 = vld [vmem:[%s11368_s1 + $0x300] ss:$16 sps:$4 sm:$0xff]  }
  0x27   :  { %5014 = vmatpush1.bf16.msra.mxu0 %v7543_v38  ;;  %5573 = vmatpush1.bf16.msra.mxu1 %v7544_v39  ;;  %v7635_v38 = vld [vmem:[%s11368_s1 + $0x308] ss:$16 sps:$4 sm:$0xff]   ;;  %v7640_v39 = vld [vmem:[%s11368_s1 + $0x324] ss:$16 sps:$4 sm:$0xff]  }
  0x28   :  { %5015 = vmatprep.subr.bf16.mxu0 %v7545_v40  ;;  %5574 = vmatprep.subr.bf16.mxu1 %v7547_v41  ;;  %v7643_v40 = vld [vmem:[%s11368_s1 + $0x32c] ss:$16 sps:$4 sm:$0xff]   ;;  %v7638_v41 = vld [vmem:[%s11368_s1 + $0x320] ss:$16 sps:$4 sm:$0xff]  }
  0x2b   :  { %5016 = vmatpush1.bf16.msra.mxu0 %v7549_v42  ;;  %5575 = vmatpush1.bf16.msra.mxu1 %v7550_v43  ;;  %v7641_v42 = vld [vmem:[%s11368_s1 + $0x328] ss:$16 sps:$4 sm:$0xff]   ;;  %v7646_v43 = vld [vmem:[%s11368_s1 + $0x344] ss:$16 sps:$4 sm:$0xff]  }
  0x2c   :  { %5017 = vmatprep.subr.bf16.mxu0 %v7551_v44  ;;  %5576 = vmatprep.subr.bf16.mxu1 %v7553_v45  ;;  %v7649_v44 = vld [vmem:[%s11368_s1 + $0x34c] ss:$16 sps:$4 sm:$0xff]   ;;  %v7644_v45 = vld [vmem:[%s11368_s1 + $0x340] ss:$16 sps:$4 sm:$0xff]  }
  0x2f   :  { %5018 = vmatpush1.bf16.msra.mxu0 %v7555_v46  ;;  %5577 = vmatpush1.bf16.msra.mxu1 %v7556_v47  ;;  %v7647_v46 = vld [vmem:[%s11368_s1 + $0x348] ss:$16 sps:$4 sm:$0xff]   ;;  %v7652_v47 = vld [vmem:[%s11368_s1 + $0x364] ss:$16 sps:$4 sm:$0xff]  }
  0x30   :  { %5019 = vmatprep.subr.bf16.mxu0 %v7557_v49  ;;  %5578 = vmatprep.subr.bf16.mxu1 %v7559_v50  ;;  %v7650_v49 = vld [vmem:[%s11368_s1 + $0x360] ss:$16 sps:$4 sm:$0xff]   ;;  %v7653_v50 = vld [vmem:[%s11368_s1 + $0x368] ss:$16 sps:$4 sm:$0xff]  }
  0x33   :  { %5020 = vmatpush1.bf16.msra.mxu0 %v7561_v51  ;;  %5579 = vmatpush1.bf16.msra.mxu1 %v7562_v52  ;;  %v7658_v51 = vld [vmem:[%s11368_s1 + $0x384] ss:$16 sps:$4 sm:$0xff]   ;;  %v7661_v52 = vld [vmem:[%s11368_s1 + $0x38c] ss:$16 sps:$4 sm:$0xff]  }
  0x34   :  { %5021 = vmatprep.subr.bf16.mxu0 %v7563_v53  ;;  %5580 = vmatprep.subr.bf16.mxu1 %v7565_v54  ;;  %v7656_v53 = vld [vmem:[%s11368_s1 + $0x380] ss:$16 sps:$4 sm:$0xff]   ;;  %v7659_v54 = vld [vmem:[%s11368_s1 + $0x388] ss:$16 sps:$4 sm:$0xff]  }
  0x37   :  { %5022 = vmatpush1.bf16.msra.mxu0 %v7567_v55  ;;  %5581 = vmatpush1.bf16.msra.mxu1 %v7568_v56  ;;  %v7664_v55 = vld [vmem:[%s11368_s1 + $0x3a4] ss:$16 sps:$4 sm:$0xff]   ;;  %v7667_v56 = vld [vmem:[%s11368_s1 + $0x3ac] ss:$16 sps:$4 sm:$0xff]  }
  0x38   :  { %5023 = vmatprep.subr.bf16.mxu0 %v7569_v57  ;;  %5582 = vmatprep.subr.bf16.mxu1 %v7571_v58  ;;  %v7662_v57 = vld [vmem:[%s11368_s1 + $0x3a0] ss:$16 sps:$4 sm:$0xff]   ;;  %v7665_v58 = vld [vmem:[%s11368_s1 + $0x3a8] ss:$16 sps:$4 sm:$0xff]  }
  0x3b   :  { %5024 = vmatpush1.bf16.msra.mxu0 %v7573_v59  ;;  %5583 = vmatpush1.bf16.msra.mxu1 %v7574_v60  ;;  %v7670_v59 = vld [vmem:[%s11368_s1 + $0x3c4] ss:$16 sps:$4 sm:$0xff]   ;;  %v7673_v60 = vld [vmem:[%s11368_s1 + $0x3cc] ss:$16 sps:$4 sm:$0xff]  }
  0x3c   :  { %5025 = vmatprep.subr.bf16.mxu0 %v7575_v61  ;;  %5584 = vmatprep.subr.bf16.mxu1 %v7577_v62  ;;  %v7668_v61 = vld [vmem:[%s11368_s1 + $0x3c0] ss:$16 sps:$4 sm:$0xff]   ;;  %v7671_v62 = vld [vmem:[%s11368_s1 + $0x3c8] ss:$16 sps:$4 sm:$0xff]  }
  0x3f   :  { %5026 = vmatpush1.bf16.msra.mxu0 %v7579_v63  ;;  %5585 = vmatpush1.bf16.msra.mxu1 %v7580_v0  ;;  %v7676_v63 = vld [vmem:[%s11368_s1 + $0x3e4] ss:$16 sps:$4 sm:$0xff]   ;;  %v7679_v0 = vld [vmem:[%s11368_s1 + $0x3ec] ss:$16 sps:$4 sm:$0xff]  }
  0x40   :  { %5038 = vmatprep.subr.bf16.mxu0 %v7586_v1  ;;  %5597 = vmatprep.subr.bf16.mxu1 %v7589_v2  ;;  %v7674_v1 = vld [vmem:[%s11368_s1 + $0x3e0] ss:$16 sps:$4 sm:$0xff]   ;;  %v7677_v2 = vld [vmem:[%s11368_s1 + $0x3e8] ss:$16 sps:$4 sm:$0xff]  }
  0x42   :  { %5028 = vmatmul.mubr.bf16.vlgmr.msra.gmra.mrb[0].mxu0 %v7581_v3  ;;  %5587 = vmatmul.mubr.bf16.vlgmr.msra.gmra.mrb[0].mxu1 %v7581_v3  ;;  %v7685_v3 = vld [vmem:[%s11368_s1 + $0x404] ss:$16 sps:$4 sm:$0xff]  }
  0x43   :  { %5039 = vmatpush1.bf16.msra.mxu0 %v7584_v4  ;;  %5598 = vmatpush1.bf16.msra.mxu1 %v7587_v5  ;;  %v7688_v4 = vld [vmem:[%s11368_s1 + $0x40c] ss:$16 sps:$4 sm:$0xff]  }
  0x44   :  { %5040 = vmatprep.subr.bf16.mxu0 %v7592_v6  ;;  %5599 = vmatprep.subr.bf16.mxu1 %v7595_v7  ;;  %v7680_v5 = vld [vmem:[%s11369_s0 + $0x8] ss:$100 sps:$4 sm:$0xff]   ;;  %v7683_v6 = vld [vmem:[%s11368_s1 + $0x400] ss:$16 sps:$4 sm:$0xff]  }
  0x45   :  { %5070 = vmatprep.mubr.bf16.mxu0 %v7682_v30  ;;  %5629 = vmatprep.mubr.bf16.mxu1 %v7682_v30  ;;  %v7686_v7 = vld [vmem:[%s11368_s1 + $0x408] ss:$16 sps:$4 sm:$0xff]   ;;  %v7724_v30 = vld [vmem:[%s11368_s1 + $0x4cc] ss:$16 sps:$4 sm:$0xff]  }
  0x47   :  { %5041 = vmatpush1.bf16.msra.mxu0 %v7590_v8  ;;  %5600 = vmatpush1.bf16.msra.mxu1 %v7593_v9  ;;  %v7691_v8 = vld [vmem:[%s11368_s1 + $0x424] ss:$16 sps:$4 sm:$0xff]   ;;  %v7694_v9 = vld [vmem:[%s11368_s1 + $0x42c] ss:$16 sps:$4 sm:$0xff]  }
  0x48   :  { %5042 = vmatprep.subr.bf16.mxu0 %v7598_v10  ;;  %5601 = vmatprep.subr.bf16.mxu1 %v7601_v11  ;;  %v7689_v10 = vld [vmem:[%s11368_s1 + $0x420] ss:$16 sps:$4 sm:$0xff]   ;;  %v7692_v11 = vld [vmem:[%s11368_s1 + $0x428] ss:$16 sps:$4 sm:$0xff]  }
  0x4b   :  { %5043 = vmatpush1.bf16.msra.mxu0 %v7596_v12  ;;  %5602 = vmatpush1.bf16.msra.mxu1 %v7599_v13  ;;  %v7781_v12 = vld [vmem:[%s11369_s0 + $0x14] ss:$100 sps:$4 sm:$0xff]  }
  0x4c   :  { %5044 = vmatprep.subr.bf16.mxu0 %v7604_v14  ;;  %5603 = vmatprep.subr.bf16.mxu1 %v7607_v15  ;;  %v7697_v13 = vld [vmem:[%s11368_s1 + $0x444] ss:$16 sps:$4 sm:$0xff]   ;;  %v7700_v14 = vld [vmem:[%s11368_s1 + $0x44c] ss:$16 sps:$4 sm:$0xff]   ;;  %v7695_v15 = vld [vmem:[%s11368_s1 + $0x440] ss:$16 sps:$4 sm:$0xff]  }
  0x4f   :  { %5045 = vmatpush1.bf16.msra.mxu0 %v7602_v16  ;;  %5604 = vmatpush1.bf16.msra.mxu1 %v7605_v17  ;;  %v7698_v16 = vld [vmem:[%s11368_s1 + $0x448] ss:$16 sps:$4 sm:$0xff]   ;;  %v7703_v17 = vld [vmem:[%s11368_s1 + $0x464] ss:$16 sps:$4 sm:$0xff]  }
  0x50   :  { %5046 = vmatprep.subr.bf16.mxu0 %v7610_v18  ;;  %5605 = vmatprep.subr.bf16.mxu1 %v7613_v19  ;;  %v7706_v18 = vld [vmem:[%s11368_s1 + $0x46c] ss:$16 sps:$4 sm:$0xff]   ;;  %v7701_v19 = vld [vmem:[%s11368_s1 + $0x460] ss:$16 sps:$4 sm:$0xff]  }
  0x53   :  { %5047 = vmatpush1.bf16.msra.mxu0 %v7608_v20  ;;  %5606 = vmatpush1.bf16.msra.mxu1 %v7611_v21  ;;  %v7704_v20 = vld [vmem:[%s11368_s1 + $0x468] ss:$16 sps:$4 sm:$0xff]   ;;  %v7709_v21 = vld [vmem:[%s11368_s1 + $0x484] ss:$16 sps:$4 sm:$0xff]  }
  0x54   :  { %5048 = vmatprep.subr.bf16.mxu0 %v7616_v22  ;;  %5607 = vmatprep.subr.bf16.mxu1 %v7619_v23  ;;  %v7712_v22 = vld [vmem:[%s11368_s1 + $0x48c] ss:$16 sps:$4 sm:$0xff]   ;;  %v7707_v23 = vld [vmem:[%s11368_s1 + $0x480] ss:$16 sps:$4 sm:$0xff]  }
  0x57   :  { %5049 = vmatpush1.bf16.msra.mxu0 %v7614_v24  ;;  %5608 = vmatpush1.bf16.msra.mxu1 %v7617_v25  ;;  %v7710_v24 = vld [vmem:[%s11368_s1 + $0x488] ss:$16 sps:$4 sm:$0xff]   ;;  %v7715_v25 = vld [vmem:[%s11368_s1 + $0x4a4] ss:$16 sps:$4 sm:$0xff]  }
  0x58   :  { %5050 = vmatprep.subr.bf16.mxu0 %v7622_v26  ;;  %5609 = vmatprep.subr.bf16.mxu1 %v7625_v27  ;;  %v7718_v26 = vld [vmem:[%s11368_s1 + $0x4ac] ss:$16 sps:$4 sm:$0xff]   ;;  %v7713_v27 = vld [vmem:[%s11368_s1 + $0x4a0] ss:$16 sps:$4 sm:$0xff]  }
  0x5b   :  { %5051 = vmatpush1.bf16.msra.mxu0 %v7620_v28  ;;  %5610 = vmatpush1.bf16.msra.mxu1 %v7623_v29  ;;  %v7716_v28 = vld [vmem:[%s11368_s1 + $0x4a8] ss:$16 sps:$4 sm:$0xff]   ;;  %v7721_v29 = vld [vmem:[%s11368_s1 + $0x4c4] ss:$16 sps:$4 sm:$0xff]  }
  0x5c   :  { %5052 = vmatprep.subr.bf16.mxu0 %v7628_v31  ;;  %5611 = vmatprep.subr.bf16.mxu1 %v7631_v32  ;;  %v7719_v31 = vld [vmem:[%s11368_s1 + $0x4c0] ss:$16 sps:$4 sm:$0xff]   ;;  %v7722_v32 = vld [vmem:[%s11368_s1 + $0x4c8] ss:$16 sps:$4 sm:$0xff]  }
  0x5f   :  { %5053 = vmatpush1.bf16.msra.mxu0 %v7626_v33  ;;  %5612 = vmatpush1.bf16.msra.mxu1 %v7629_v34  ;;  %v7727_v33 = vld [vmem:[%s11368_s1 + $0x4e4] ss:$16 sps:$4 sm:$0xff]   ;;  %v7730_v34 = vld [vmem:[%s11368_s1 + $0x4ec] ss:$16 sps:$4 sm:$0xff]  }
  0x60   :  { %5054 = vmatprep.subr.bf16.mxu0 %v7634_v35  ;;  %5613 = vmatprep.subr.bf16.mxu1 %v7637_v36  ;;  %v7725_v35 = vld [vmem:[%s11368_s1 + $0x4e0] ss:$16 sps:$4 sm:$0xff]   ;;  %v7728_v36 = vld [vmem:[%s11368_s1 + $0x4e8] ss:$16 sps:$4 sm:$0xff]  }
  0x63   :  { %5055 = vmatpush1.bf16.msra.mxu0 %v7632_v37  ;;  %5614 = vmatpush1.bf16.msra.mxu1 %v7635_v38  ;;  %v7733_v37 = vld [vmem:[%s11368_s1 + $0x504] ss:$16 sps:$4 sm:$0xff]   ;;  %v7736_v38 = vld [vmem:[%s11368_s1 + $0x50c] ss:$16 sps:$4 sm:$0xff]  }
  0x64   :  { %5056 = vmatprep.subr.bf16.mxu0 %v7640_v39  ;;  %5615 = vmatprep.subr.bf16.mxu1 %v7643_v40  ;;  %v7731_v39 = vld [vmem:[%s11368_s1 + $0x500] ss:$16 sps:$4 sm:$0xff]   ;;  %v7734_v40 = vld [vmem:[%s11368_s1 + $0x508] ss:$16 sps:$4 sm:$0xff]  }
  0x67   :  { %5057 = vmatpush1.bf16.msra.mxu0 %v7638_v41  ;;  %5616 = vmatpush1.bf16.msra.mxu1 %v7641_v42  ;;  %v7739_v41 = vld [vmem:[%s11368_s1 + $0x524] ss:$16 sps:$4 sm:$0xff]   ;;  %v7742_v42 = vld [vmem:[%s11368_s1 + $0x52c] ss:$16 sps:$4 sm:$0xff]  }
  0x68   :  { %5058 = vmatprep.subr.bf16.mxu0 %v7646_v43  ;;  %5617 = vmatprep.subr.bf16.mxu1 %v7649_v44  ;;  %v7737_v43 = vld [vmem:[%s11368_s1 + $0x520] ss:$16 sps:$4 sm:$0xff]   ;;  %v7740_v44 = vld [vmem:[%s11368_s1 + $0x528] ss:$16 sps:$4 sm:$0xff]  }
  0x6b   :  { %5059 = vmatpush1.bf16.msra.mxu0 %v7644_v45  ;;  %5618 = vmatpush1.bf16.msra.mxu1 %v7647_v46  ;;  %v7745_v45 = vld [vmem:[%s11368_s1 + $0x544] ss:$16 sps:$4 sm:$0xff]   ;;  %v7748_v46 = vld [vmem:[%s11368_s1 + $0x54c] ss:$16 sps:$4 sm:$0xff]  }
  0x6c   :  { %5060 = vmatprep.subr.bf16.mxu0 %v7652_v47  ;;  %5619 = vmatprep.subr.bf16.mxu1 %v7655_v48  ;;  %v7743_v47 = vld [vmem:[%s11368_s1 + $0x540] ss:$16 sps:$4 sm:$0xff]   ;;  %v7746_v48 = vld [vmem:[%s11368_s1 + $0x548] ss:$16 sps:$4 sm:$0xff]  }
  0x6f   :  { %5061 = vmatpush1.bf16.msra.mxu0 %v7650_v49  ;;  %5620 = vmatpush1.bf16.msra.mxu1 %v7653_v50  ;;  %v7751_v49 = vld [vmem:[%s11368_s1 + $0x564] ss:$16 sps:$4 sm:$0xff]   ;;  %v7754_v50 = vld [vmem:[%s11368_s1 + $0x56c] ss:$16 sps:$4 sm:$0xff]  }
  0x70   :  { %5062 = vmatprep.subr.bf16.mxu0 %v7658_v51  ;;  %5621 = vmatprep.subr.bf16.mxu1 %v7661_v52  ;;  %v7749_v51 = vld [vmem:[%s11368_s1 + $0x560] ss:$16 sps:$4 sm:$0xff]   ;;  %v7752_v52 = vld [vmem:[%s11368_s1 + $0x568] ss:$16 sps:$4 sm:$0xff]  }
  0x73   :  { %5063 = vmatpush1.bf16.msra.mxu0 %v7656_v53  ;;  %5622 = vmatpush1.bf16.msra.mxu1 %v7659_v54  ;;  %v7757_v53 = vld [vmem:[%s11368_s1 + $0x584] ss:$16 sps:$4 sm:$0xff]   ;;  %v7760_v54 = vld [vmem:[%s11368_s1 + $0x58c] ss:$16 sps:$4 sm:$0xff]  }
  0x74   :  { %5064 = vmatprep.subr.bf16.mxu0 %v7664_v55  ;;  %5623 = vmatprep.subr.bf16.mxu1 %v7667_v56  ;;  %v7755_v55 = vld [vmem:[%s11368_s1 + $0x580] ss:$16 sps:$4 sm:$0xff]   ;;  %v7758_v56 = vld [vmem:[%s11368_s1 + $0x588] ss:$16 sps:$4 sm:$0xff]  }
  0x77   :  { %5065 = vmatpush1.bf16.msra.mxu0 %v7662_v57  ;;  %5624 = vmatpush1.bf16.msra.mxu1 %v7665_v58  ;;  %v7763_v57 = vld [vmem:[%s11368_s1 + $0x5a4] ss:$16 sps:$4 sm:$0xff]   ;;  %v7766_v58 = vld [vmem:[%s11368_s1 + $0x5ac] ss:$16 sps:$4 sm:$0xff]  }
  0x78   :  { %5066 = vmatprep.subr.bf16.mxu0 %v7670_v59  ;;  %5625 = vmatprep.subr.bf16.mxu1 %v7673_v60  ;;  %v7761_v59 = vld [vmem:[%s11368_s1 + $0x5a0] ss:$16 sps:$4 sm:$0xff]   ;;  %v7764_v60 = vld [vmem:[%s11368_s1 + $0x5a8] ss:$16 sps:$4 sm:$0xff]  }
  0x7b   :  { %5067 = vmatpush1.bf16.msra.mxu0 %v7668_v61  ;;  %5626 = vmatpush1.bf16.msra.mxu1 %v7671_v62  ;;  %v7769_v61 = vld [vmem:[%s11368_s1 + $0x5c4] ss:$16 sps:$4 sm:$0xff]   ;;  %v7772_v62 = vld [vmem:[%s11368_s1 + $0x5cc] ss:$16 sps:$4 sm:$0xff]  }
  0x7c   :  { %5068 = vmatprep.subr.bf16.mxu0 %v7676_v63  ;;  %5627 = vmatprep.subr.bf16.mxu1 %v7679_v0  ;;  %v7767_v63 = vld [vmem:[%s11368_s1 + $0x5c0] ss:$16 sps:$4 sm:$0xff]   ;;  %v7770_v0 = vld [vmem:[%s11368_s1 + $0x5c8] ss:$16 sps:$4 sm:$0xff]  }
  0x7f   :  { %5069 = vmatpush1.bf16.msra.mxu0 %v7674_v1  ;;  %5628 = vmatpush1.bf16.msra.mxu1 %v7677_v2  ;;  %v7775_v1 = vld [vmem:[%s11368_s1 + $0x5e4] ss:$16 sps:$4 sm:$0xff]   ;;  %v7778_v2 = vld [vmem:[%s11368_s1 + $0x5ec] ss:$16 sps:$4 sm:$0xff]  }
  0x80   :  { %5081 = vmatprep.subr.bf16.mxu0 %v7685_v3  ;;  %5640 = vmatprep.subr.bf16.mxu1 %v7688_v4  ;;  %v7773_v3 = vld [vmem:[%s11368_s1 + $0x5e0] ss:$16 sps:$4 sm:$0xff]   ;;  %v7776_v4 = vld [vmem:[%s11368_s1 + $0x5e8] ss:$16 sps:$4 sm:$0xff]  }
  0x82   :  { %5071 = vmatmul.mubr.bf16.vlgmr.msra.gmra.mrb[0].mxu0 %v7680_v5  ;;  %5630 = vmatmul.mubr.bf16.vlgmr.msra.gmra.mrb[0].mxu1 %v7680_v5  ;;  %v7784_v5 = vld [vmem:[%s11368_s1 + $0x604] ss:$16 sps:$4 sm:$0xff]  }
  0x83   :  { %5082 = vmatpush1.bf16.msra.mxu0 %v7683_v6  ;;  %5641 = vmatpush1.bf16.msra.mxu1 %v7686_v7  ;;  %v7787_v6 = vld [vmem:[%s11368_s1 + $0x60c] ss:$16 sps:$4 sm:$0xff]   ;;  %v7779_v7 = vld [vmem:[%s11369_s0 + $0x10] ss:$100 sps:$4 sm:$0xff]  }
  0x84   :  { %5083 = vmatprep.subr.bf16.mxu0 %v7691_v8  ;;  %5642 = vmatprep.subr.bf16.mxu1 %v7694_v9  ;;  %v7782_v8 = vld [vmem:[%s11368_s1 + $0x600] ss:$16 sps:$4 sm:$0xff]   ;;  %v7785_v9 = vld [vmem:[%s11368_s1 + $0x608] ss:$16 sps:$4 sm:$0xff]  }
  0x85   :  { %5113 = vmatprep.mubr.bf16.mxu0 %v7781_v12  ;;  %5672 = vmatprep.mubr.bf16.mxu1 %v7781_v12  ;;  %v7880_v12 = vld [vmem:[%s11369_s0 + $0x1c] ss:$100 sps:$4 sm:$0xff]  }
  0x87   :  { %5084 = vmatpush1.bf16.msra.mxu0 %v7689_v10  ;;  %5643 = vmatpush1.bf16.msra.mxu1 %v7692_v11  ;;  %v7790_v10 = vld [vmem:[%s11368_s1 + $0x624] ss:$16 sps:$4 sm:$0xff]   ;;  %v7793_v11 = vld [vmem:[%s11368_s1 + $0x62c] ss:$16 sps:$4 sm:$0xff]  }
  0x88   :  { %5085 = vmatprep.subr.bf16.mxu0 %v7697_v13  ;;  %5644 = vmatprep.subr.bf16.mxu1 %v7700_v14  ;;  %v7788_v13 = vld [vmem:[%s11368_s1 + $0x620] ss:$16 sps:$4 sm:$0xff]   ;;  %v7791_v14 = vld [vmem:[%s11368_s1 + $0x628] ss:$16 sps:$4 sm:$0xff]  }
  0x8b   :  { %5086 = vmatpush1.bf16.msra.mxu0 %v7695_v15  ;;  %5645 = vmatpush1.bf16.msra.mxu1 %v7698_v16  ;;  %v7796_v15 = vld [vmem:[%s11368_s1 + $0x644] ss:$16 sps:$4 sm:$0xff]   ;;  %v7799_v16 = vld [vmem:[%s11368_s1 + $0x64c] ss:$16 sps:$4 sm:$0xff]  }
  0x8c   :  { %5087 = vmatprep.subr.bf16.mxu0 %v7703_v17  ;;  %5646 = vmatprep.subr.bf16.mxu1 %v7706_v18  ;;  %v7794_v17 = vld [vmem:[%s11368_s1 + $0x640] ss:$16 sps:$4 sm:$0xff]   ;;  %v7797_v18 = vld [vmem:[%s11368_s1 + $0x648] ss:$16 sps:$4 sm:$0xff]  }
  0x8f   :  { %5088 = vmatpush1.bf16.msra.mxu0 %v7701_v19  ;;  %5647 = vmatpush1.bf16.msra.mxu1 %v7704_v20  ;;  %v7802_v19 = vld [vmem:[%s11368_s1 + $0x664] ss:$16 sps:$4 sm:$0xff]   ;;  %v7805_v20 = vld [vmem:[%s11368_s1 + $0x66c] ss:$16 sps:$4 sm:$0xff]  }
  0x90   :  { %5089 = vmatprep.subr.bf16.mxu0 %v7709_v21  ;;  %5648 = vmatprep.subr.bf16.mxu1 %v7712_v22  ;;  %v7800_v21 = vld [vmem:[%s11368_s1 + $0x660] ss:$16 sps:$4 sm:$0xff]   ;;  %v7803_v22 = vld [vmem:[%s11368_s1 + $0x668] ss:$16 sps:$4 sm:$0xff]  }
  0x93   :  { %5090 = vmatpush1.bf16.msra.mxu0 %v7707_v23  ;;  %5649 = vmatpush1.bf16.msra.mxu1 %v7710_v24  ;;  %v7808_v23 = vld [vmem:[%s11368_s1 + $0x684] ss:$16 sps:$4 sm:$0xff]   ;;  %v7811_v24 = vld [vmem:[%s11368_s1 + $0x68c] ss:$16 sps:$4 sm:$0xff]  }
  0x94   :  { %5091 = vmatprep.subr.bf16.mxu0 %v7715_v25  ;;  %5650 = vmatprep.subr.bf16.mxu1 %v7718_v26  ;;  %v7806_v25 = vld [vmem:[%s11368_s1 + $0x680] ss:$16 sps:$4 sm:$0xff]   ;;  %v7809_v26 = vld [vmem:[%s11368_s1 + $0x688] ss:$16 sps:$4 sm:$0xff]  }
  0x97   :  { %5092 = vmatpush1.bf16.msra.mxu0 %v7713_v27  ;;  %5651 = vmatpush1.bf16.msra.mxu1 %v7716_v28  ;;  %v7814_v27 = vld [vmem:[%s11368_s1 + $0x6a4] ss:$16 sps:$4 sm:$0xff]   ;;  %v7817_v28 = vld [vmem:[%s11368_s1 + $0x6ac] ss:$16 sps:$4 sm:$0xff]  }
  0x98   :  { %5093 = vmatprep.subr.bf16.mxu0 %v7721_v29  ;;  %5652 = vmatprep.subr.bf16.mxu1 %v7724_v30  ;;  %v7812_v29 = vld [vmem:[%s11368_s1 + $0x6a0] ss:$16 sps:$4 sm:$0xff]   ;;  %v7815_v30 = vld [vmem:[%s11368_s1 + $0x6a8] ss:$16 sps:$4 sm:$0xff]  }
  0x9b   :  { %5094 = vmatpush1.bf16.msra.mxu0 %v7719_v31  ;;  %5653 = vmatpush1.bf16.msra.mxu1 %v7722_v32  ;;  %v7820_v31 = vld [vmem:[%s11368_s1 + $0x6c4] ss:$16 sps:$4 sm:$0xff]   ;;  %v7823_v32 = vld [vmem:[%s11368_s1 + $0x6cc] ss:$16 sps:$4 sm:$0xff]  }
  0x9c   :  { %5095 = vmatprep.subr.bf16.mxu0 %v7727_v33  ;;  %5654 = vmatprep.subr.bf16.mxu1 %v7730_v34  ;;  %v7818_v33 = vld [vmem:[%s11368_s1 + $0x6c0] ss:$16 sps:$4 sm:$0xff]   ;;  %v7821_v34 = vld [vmem:[%s11368_s1 + $0x6c8] ss:$16 sps:$4 sm:$0xff]  }
  0x9f   :  { %5096 = vmatpush1.bf16.msra.mxu0 %v7725_v35  ;;  %5655 = vmatpush1.bf16.msra.mxu1 %v7728_v36  ;;  %v7826_v35 = vld [vmem:[%s11368_s1 + $0x6e4] ss:$16 sps:$4 sm:$0xff]   ;;  %v7829_v36 = vld [vmem:[%s11368_s1 + $0x6ec] ss:$16 sps:$4 sm:$0xff]  }
  0xa0   :  { %5097 = vmatprep.subr.bf16.mxu0 %v7733_v37  ;;  %5656 = vmatprep.subr.bf16.mxu1 %v7736_v38  ;;  %v7824_v37 = vld [vmem:[%s11368_s1 + $0x6e0] ss:$16 sps:$4 sm:$0xff]   ;;  %v7827_v38 = vld [vmem:[%s11368_s1 + $0x6e8] ss:$16 sps:$4 sm:$0xff]  }
  0xa3   :  { %5098 = vmatpush1.bf16.msra.mxu0 %v7731_v39  ;;  %5657 = vmatpush1.bf16.msra.mxu1 %v7734_v40  ;;  %v7832_v39 = vld [vmem:[%s11368_s1 + $0x704] ss:$16 sps:$4 sm:$0xff]   ;;  %v7835_v40 = vld [vmem:[%s11368_s1 + $0x70c] ss:$16 sps:$4 sm:$0xff]  }
  0xa4   :  { %5099 = vmatprep.subr.bf16.mxu0 %v7739_v41  ;;  %5658 = vmatprep.subr.bf16.mxu1 %v7742_v42  ;;  %v7830_v41 = vld [vmem:[%s11368_s1 + $0x700] ss:$16 sps:$4 sm:$0xff]   ;;  %v7833_v42 = vld [vmem:[%s11368_s1 + $0x708] ss:$16 sps:$4 sm:$0xff]  }
  0xa7   :  { %5100 = vmatpush1.bf16.msra.mxu0 %v7737_v43  ;;  %5659 = vmatpush1.bf16.msra.mxu1 %v7740_v44  ;;  %v7838_v43 = vld [vmem:[%s11368_s1 + $0x724] ss:$16 sps:$4 sm:$0xff]   ;;  %v7841_v44 = vld [vmem:[%s11368_s1 + $0x72c] ss:$16 sps:$4 sm:$0xff]  }
  0xa8   :  { %5101 = vmatprep.subr.bf16.mxu0 %v7745_v45  ;;  %5660 = vmatprep.subr.bf16.mxu1 %v7748_v46  ;;  %v7836_v45 = vld [vmem:[%s11368_s1 + $0x720] ss:$16 sps:$4 sm:$0xff]   ;;  %v7839_v46 = vld [vmem:[%s11368_s1 + $0x728] ss:$16 sps:$4 sm:$0xff]  }
  0xab   :  { %5102 = vmatpush1.bf16.msra.mxu0 %v7743_v47  ;;  %5661 = vmatpush1.bf16.msra.mxu1 %v7746_v48  ;;  %v7844_v47 = vld [vmem:[%s11368_s1 + $0x744] ss:$16 sps:$4 sm:$0xff]   ;;  %v7847_v48 = vld [vmem:[%s11368_s1 + $0x74c] ss:$16 sps:$4 sm:$0xff]  }
  0xac   :  { %5103 = vmatprep.subr.bf16.mxu0 %v7751_v49  ;;  %5662 = vmatprep.subr.bf16.mxu1 %v7754_v50  ;;  %v7842_v49 = vld [vmem:[%s11368_s1 + $0x740] ss:$16 sps:$4 sm:$0xff]   ;;  %v7845_v50 = vld [vmem:[%s11368_s1 + $0x748] ss:$16 sps:$4 sm:$0xff]  }
  0xaf   :  { %5104 = vmatpush1.bf16.msra.mxu0 %v7749_v51  ;;  %5663 = vmatpush1.bf16.msra.mxu1 %v7752_v52  ;;  %v7850_v51 = vld [vmem:[%s11368_s1 + $0x764] ss:$16 sps:$4 sm:$0xff]   ;;  %v7853_v52 = vld [vmem:[%s11368_s1 + $0x76c] ss:$16 sps:$4 sm:$0xff]  }
  0xb0   :  { %5105 = vmatprep.subr.bf16.mxu0 %v7757_v53  ;;  %5664 = vmatprep.subr.bf16.mxu1 %v7760_v54  ;;  %v7848_v53 = vld [vmem:[%s11368_s1 + $0x760] ss:$16 sps:$4 sm:$0xff]   ;;  %v7851_v54 = vld [vmem:[%s11368_s1 + $0x768] ss:$16 sps:$4 sm:$0xff]  }
  0xb3   :  { %5106 = vmatpush1.bf16.msra.mxu0 %v7755_v55  ;;  %5665 = vmatpush1.bf16.msra.mxu1 %v7758_v56  ;;  %v7856_v55 = vld [vmem:[%s11368_s1 + $0x784] ss:$16 sps:$4 sm:$0xff]   ;;  %v7859_v56 = vld [vmem:[%s11368_s1 + $0x78c] ss:$16 sps:$4 sm:$0xff]  }
  0xb4   :  { %5107 = vmatprep.subr.bf16.mxu0 %v7763_v57  ;;  %5666 = vmatprep.subr.bf16.mxu1 %v7766_v58  ;;  %v7854_v57 = vld [vmem:[%s11368_s1 + $0x780] ss:$16 sps:$4 sm:$0xff]   ;;  %v7857_v58 = vld [vmem:[%s11368_s1 + $0x788] ss:$16 sps:$4 sm:$0xff]  }
  0xb7   :  { %5108 = vmatpush1.bf16.msra.mxu0 %v7761_v59  ;;  %5667 = vmatpush1.bf16.msra.mxu1 %v7764_v60  ;;  %v7862_v59 = vld [vmem:[%s11368_s1 + $0x7a4] ss:$16 sps:$4 sm:$0xff]   ;;  %v7865_v60 = vld [vmem:[%s11368_s1 + $0x7ac] ss:$16 sps:$4 sm:$0xff]  }
  0xb8   :  { %5109 = vmatprep.subr.bf16.mxu0 %v7769_v61  ;;  %5668 = vmatprep.subr.bf16.mxu1 %v7772_v62  ;;  %v7860_v61 = vld [vmem:[%s11368_s1 + $0x7a0] ss:$16 sps:$4 sm:$0xff]   ;;  %v7863_v62 = vld [vmem:[%s11368_s1 + $0x7a8] ss:$16 sps:$4 sm:$0xff]  }
  0xbb   :  { %5110 = vmatpush1.bf16.msra.mxu0 %v7767_v63  ;;  %5669 = vmatpush1.bf16.msra.mxu1 %v7770_v0  ;;  %v7868_v63 = vld [vmem:[%s11368_s1 + $0x7c4] ss:$16 sps:$4 sm:$0xff]   ;;  %v7871_v0 = vld [vmem:[%s11368_s1 + $0x7cc] ss:$16 sps:$4 sm:$0xff]  }
  0xbc   :  { %5111 = vmatprep.subr.bf16.mxu0 %v7775_v1  ;;  %5670 = vmatprep.subr.bf16.mxu1 %v7778_v2  ;;  %v7866_v1 = vld [vmem:[%s11368_s1 + $0x7c0] ss:$16 sps:$4 sm:$0xff]   ;;  %v7869_v2 = vld [vmem:[%s11368_s1 + $0x7c8] ss:$16 sps:$4 sm:$0xff]  }
  0xbf   :  { %5112 = vmatpush1.bf16.msra.mxu0 %v7773_v3  ;;  %5671 = vmatpush1.bf16.msra.mxu1 %v7776_v4  ;;  %v7874_v3 = vld [vmem:[%s11368_s1 + $0x7e4] ss:$16 sps:$4 sm:$0xff]   ;;  %v7877_v4 = vld [vmem:[%s11368_s1 + $0x7ec] ss:$16 sps:$4 sm:$0xff]  }
  0xc0   :  { %5124 = vmatprep.subr.bf16.mxu0 %v7784_v5  ;;  %5683 = vmatprep.subr.bf16.mxu1 %v7787_v6  ;;  %v7872_v5 = vld [vmem:[%s11368_s1 + $0x7e0] ss:$16 sps:$4 sm:$0xff]   ;;  %v7875_v6 = vld [vmem:[%s11368_s1 + $0x7e8] ss:$16 sps:$4 sm:$0xff]  }
  0xc2   :  { %5114 = vmatmul.mubr.bf16.vlgmr.msra.gmra.mrb[0].mxu0 %v7779_v7  ;;  %5673 = vmatmul.mubr.bf16.vlgmr.msra.gmra.mrb[0].mxu1 %v7779_v7  ;;  %v7883_v7 = vld [vmem:[%s11368_s1 + $0x804] ss:$16 sps:$4 sm:$0xff]  }
  0xc3   :  { %5125 = vmatpush1.bf16.msra.mxu0 %v7782_v8  ;;  %5684 = vmatpush1.bf16.msra.mxu1 %v7785_v9  ;;  %v7886_v8 = vld [vmem:[%s11368_s1 + $0x80c] ss:$16 sps:$4 sm:$0xff]  }
  0xc4   :  { %5126 = vmatprep.subr.bf16.mxu0 %v7790_v10  ;;  %5685 = vmatprep.subr.bf16.mxu1 %v7793_v11  ;;  %v7878_v9 = vld [vmem:[%s11369_s0 + $0x18] ss:$100 sps:$4 sm:$0xff]   ;;  %v7881_v10 = vld [vmem:[%s11368_s1 + $0x800] ss:$16 sps:$4 sm:$0xff]  }
  0xc5   :  { %5156 = vmatprep.mubr.bf16.mxu0 %v7880_v12  ;;  %5715 = vmatprep.mubr.bf16.mxu1 %v7880_v12  ;;  %v7884_v11 = vld [vmem:[%s11368_s1 + $0x808] ss:$16 sps:$4 sm:$0xff]   ;;  %v7889_v12 = vld [vmem:[%s11368_s1 + $0x824] ss:$16 sps:$4 sm:$0xff]  }
  0xc7   :  { %5127 = vmatpush1.bf16.msra.mxu0 %v7788_v13  ;;  %5686 = vmatpush1.bf16.msra.mxu1 %v7791_v14  ;;  %v7892_v13 = vld [vmem:[%s11368_s1 + $0x82c] ss:$16 sps:$4 sm:$0xff]   ;;  %v7979_v14 = vld [vmem:[%s11369_s0 + $0x24] ss:$100 sps:$4 sm:$0xff]  }
  0xc8   :  { %5128 = vmatprep.subr.bf16.mxu0 %v7796_v15  ;;  %5687 = vmatprep.subr.bf16.mxu1 %v7799_v16  ;;  %v7887_v15 = vld [vmem:[%s11368_s1 + $0x820] ss:$16 sps:$4 sm:$0xff]   ;;  %v7890_v16 = vld [vmem:[%s11368_s1 + $0x828] ss:$16 sps:$4 sm:$0xff]  }
  0xcb   :  { %5129 = vmatpush1.bf16.msra.mxu0 %v7794_v17  ;;  %5688 = vmatpush1.bf16.msra.mxu1 %v7797_v18  ;;  %v7895_v17 = vld [vmem:[%s11368_s1 + $0x844] ss:$16 sps:$4 sm:$0xff]   ;;  %v7898_v18 = vld [vmem:[%s11368_s1 + $0x84c] ss:$16 sps:$4 sm:$0xff]  }
  0xcc   :  { %5130 = vmatprep.subr.bf16.mxu0 %v7802_v19  ;;  %5689 = vmatprep.subr.bf16.mxu1 %v7805_v20  ;;  %v7893_v19 = vld [vmem:[%s11368_s1 + $0x840] ss:$16 sps:$4 sm:$0xff]   ;;  %v7896_v20 = vld [vmem:[%s11368_s1 + $0x848] ss:$16 sps:$4 sm:$0xff]  }
  0xcf   :  { %5131 = vmatpush1.bf16.msra.mxu0 %v7800_v21  ;;  %5690 = vmatpush1.bf16.msra.mxu1 %v7803_v22  ;;  %v7901_v21 = vld [vmem:[%s11368_s1 + $0x864] ss:$16 sps:$4 sm:$0xff]   ;;  %v7904_v22 = vld [vmem:[%s11368_s1 + $0x86c] ss:$16 sps:$4 sm:$0xff]  }
  0xd0   :  { %5132 = vmatprep.subr.bf16.mxu0 %v7808_v23  ;;  %5691 = vmatprep.subr.bf16.mxu1 %v7811_v24  ;;  %v7899_v23 = vld [vmem:[%s11368_s1 + $0x860] ss:$16 sps:$4 sm:$0xff]   ;;  %v7902_v24 = vld [vmem:[%s11368_s1 + $0x868] ss:$16 sps:$4 sm:$0xff]  }
  0xd3   :  { %5133 = vmatpush1.bf16.msra.mxu0 %v7806_v25  ;;  %5692 = vmatpush1.bf16.msra.mxu1 %v7809_v26  ;;  %v7907_v25 = vld [vmem:[%s11368_s1 + $0x884] ss:$16 sps:$4 sm:$0xff]   ;;  %v7910_v26 = vld [vmem:[%s11368_s1 + $0x88c] ss:$16 sps:$4 sm:$0xff]  }
  0xd4   :  { %5134 = vmatprep.subr.bf16.mxu0 %v7814_v27  ;;  %5693 = vmatprep.subr.bf16.mxu1 %v7817_v28  ;;  %v7905_v27 = vld [vmem:[%s11368_s1 + $0x880] ss:$16 sps:$4 sm:$0xff]   ;;  %v7908_v28 = vld [vmem:[%s11368_s1 + $0x888] ss:$16 sps:$4 sm:$0xff]  }
  0xd7   :  { %5135 = vmatpush1.bf16.msra.mxu0 %v7812_v29  ;;  %5694 = vmatpush1.bf16.msra.mxu1 %v7815_v30  ;;  %v7913_v29 = vld [vmem:[%s11368_s1 + $0x8a4] ss:$16 sps:$4 sm:$0xff]   ;;  %v7916_v30 = vld [vmem:[%s11368_s1 + $0x8ac] ss:$16 sps:$4 sm:$0xff]  }
  0xd8   :  { %5136 = vmatprep.subr.bf16.mxu0 %v7820_v31  ;;  %5695 = vmatprep.subr.bf16.mxu1 %v7823_v32  ;;  %v7911_v31 = vld [vmem:[%s11368_s1 + $0x8a0] ss:$16 sps:$4 sm:$0xff]   ;;  %v7914_v32 = vld [vmem:[%s11368_s1 + $0x8a8] ss:$16 sps:$4 sm:$0xff]  }
  0xdb   :  { %5137 = vmatpush1.bf16.msra.mxu0 %v7818_v33  ;;  %5696 = vmatpush1.bf16.msra.mxu1 %v7821_v34  ;;  %v7919_v33 = vld [vmem:[%s11368_s1 + $0x8c4] ss:$16 sps:$4 sm:$0xff]   ;;  %v7922_v34 = vld [vmem:[%s11368_s1 + $0x8cc] ss:$16 sps:$4 sm:$0xff]  }
  0xdc   :  { %5138 = vmatprep.subr.bf16.mxu0 %v7826_v35  ;;  %5697 = vmatprep.subr.bf16.mxu1 %v7829_v36  ;;  %v7917_v35 = vld [vmem:[%s11368_s1 + $0x8c0] ss:$16 sps:$4 sm:$0xff]   ;;  %v7920_v36 = vld [vmem:[%s11368_s1 + $0x8c8] ss:$16 sps:$4 sm:$0xff]  }
  0xdf   :  { %5139 = vmatpush1.bf16.msra.mxu0 %v7824_v37  ;;  %5698 = vmatpush1.bf16.msra.mxu1 %v7827_v38  ;;  %v7925_v37 = vld [vmem:[%s11368_s1 + $0x8e4] ss:$16 sps:$4 sm:$0xff]   ;;  %v7928_v38 = vld [vmem:[%s11368_s1 + $0x8ec] ss:$16 sps:$4 sm:$0xff]  }
  0xe0   :  { %5140 = vmatprep.subr.bf16.mxu0 %v7832_v39  ;;  %5699 = vmatprep.subr.bf16.mxu1 %v7835_v40  ;;  %v7923_v39 = vld [vmem:[%s11368_s1 + $0x8e0] ss:$16 sps:$4 sm:$0xff]   ;;  %v7926_v40 = vld [vmem:[%s11368_s1 + $0x8e8] ss:$16 sps:$4 sm:$0xff]  }
  0xe3   :  { %5141 = vmatpush1.bf16.msra.mxu0 %v7830_v41  ;;  %5700 = vmatpush1.bf16.msra.mxu1 %v7833_v42  ;;  %v7931_v41 = vld [vmem:[%s11368_s1 + $0x904] ss:$16 sps:$4 sm:$0xff]   ;;  %v7934_v42 = vld [vmem:[%s11368_s1 + $0x90c] ss:$16 sps:$4 sm:$0xff]  }
  0xe4   :  { %5142 = vmatprep.subr.bf16.mxu0 %v7838_v43  ;;  %5701 = vmatprep.subr.bf16.mxu1 %v7841_v44  ;;  %v7929_v43 = vld [vmem:[%s11368_s1 + $0x900] ss:$16 sps:$4 sm:$0xff]   ;;  %v7932_v44 = vld [vmem:[%s11368_s1 + $0x908] ss:$16 sps:$4 sm:$0xff]  }
  0xe7   :  { %5143 = vmatpush1.bf16.msra.mxu0 %v7836_v45  ;;  %5702 = vmatpush1.bf16.msra.mxu1 %v7839_v46  ;;  %v7937_v45 = vld [vmem:[%s11368_s1 + $0x924] ss:$16 sps:$4 sm:$0xff]   ;;  %v7940_v46 = vld [vmem:[%s11368_s1 + $0x92c] ss:$16 sps:$4 sm:$0xff]  }
  0xe8   :  { %5144 = vmatprep.subr.bf16.mxu0 %v7844_v47  ;;  %5703 = vmatprep.subr.bf16.mxu1 %v7847_v48  ;;  %v7935_v47 = vld [vmem:[%s11368_s1 + $0x920] ss:$16 sps:$4 sm:$0xff]   ;;  %v7938_v48 = vld [vmem:[%s11368_s1 + $0x928] ss:$16 sps:$4 sm:$0xff]  }
  0xeb   :  { %5145 = vmatpush1.bf16.msra.mxu0 %v7842_v49  ;;  %5704 = vmatpush1.bf16.msra.mxu1 %v7845_v50  ;;  %v7943_v49 = vld [vmem:[%s11368_s1 + $0x944] ss:$16 sps:$4 sm:$0xff]   ;;  %v7946_v50 = vld [vmem:[%s11368_s1 + $0x94c] ss:$16 sps:$4 sm:$0xff]  }
  0xec   :  { %5146 = vmatprep.subr.bf16.mxu0 %v7850_v51  ;;  %5705 = vmatprep.subr.bf16.mxu1 %v7853_v52  ;;  %v7941_v51 = vld [vmem:[%s11368_s1 + $0x940] ss:$16 sps:$4 sm:$0xff]   ;;  %v7944_v52 = vld [vmem:[%s11368_s1 + $0x948] ss:$16 sps:$4 sm:$0xff]  }
  0xef   :  { %5147 = vmatpush1.bf16.msra.mxu0 %v7848_v53  ;;  %5706 = vmatpush1.bf16.msra.mxu1 %v7851_v54  ;;  %v7949_v53 = vld [vmem:[%s11368_s1 + $0x964] ss:$16 sps:$4 sm:$0xff]   ;;  %v7952_v54 = vld [vmem:[%s11368_s1 + $0x96c] ss:$16 sps:$4 sm:$0xff]  }
  0xf0   :  { %5148 = vmatprep.subr.bf16.mxu0 %v7856_v55  ;;  %5707 = vmatprep.subr.bf16.mxu1 %v7859_v56  ;;  %v7947_v55 = vld [vmem:[%s11368_s1 + $0x960] ss:$16 sps:$4 sm:$0xff]   ;;  %v7950_v56 = vld [vmem:[%s11368_s1 + $0x968] ss:$16 sps:$4 sm:$0xff]  }
  0xf3   :  { %5149 = vmatpush1.bf16.msra.mxu0 %v7854_v57  ;;  %5708 = vmatpush1.bf16.msra.mxu1 %v7857_v58  ;;  %v7955_v57 = vld [vmem:[%s11368_s1 + $0x984] ss:$16 sps:$4 sm:$0xff]   ;;  %v7958_v58 = vld [vmem:[%s11368_s1 + $0x98c] ss:$16 sps:$4 sm:$0xff]  }
  0xf4   :  { %5150 = vmatprep.subr.bf16.mxu0 %v7862_v59  ;;  %5709 = vmatprep.subr.bf16.mxu1 %v7865_v60  ;;  %v7953_v59 = vld [vmem:[%s11368_s1 + $0x980] ss:$16 sps:$4 sm:$0xff]   ;;  %v7956_v60 = vld [vmem:[%s11368_s1 + $0x988] ss:$16 sps:$4 sm:$0xff]  }
  0xf7   :  { %5151 = vmatpush1.bf16.msra.mxu0 %v7860_v61  ;;  %5710 = vmatpush1.bf16.msra.mxu1 %v7863_v62  ;;  %v7961_v61 = vld [vmem:[%s11368_s1 + $0x9a4] ss:$16 sps:$4 sm:$0xff]   ;;  %v7964_v62 = vld [vmem:[%s11368_s1 + $0x9ac] ss:$16 sps:$4 sm:$0xff]  }
  0xf8   :  { %5152 = vmatprep.subr.bf16.mxu0 %v7868_v63  ;;  %5711 = vmatprep.subr.bf16.mxu1 %v7871_v0  ;;  %v7959_v63 = vld [vmem:[%s11368_s1 + $0x9a0] ss:$16 sps:$4 sm:$0xff]   ;;  %v7962_v0 = vld [vmem:[%s11368_s1 + $0x9a8] ss:$16 sps:$4 sm:$0xff]  }
  0xfb   :  { %5153 = vmatpush1.bf16.msra.mxu0 %v7866_v1  ;;  %5712 = vmatpush1.bf16.msra.mxu1 %v7869_v2  ;;  %v7967_v1 = vld [vmem:[%s11368_s1 + $0x9c4] ss:$16 sps:$4 sm:$0xff]   ;;  %v7970_v2 = vld [vmem:[%s11368_s1 + $0x9cc] ss:$16 sps:$4 sm:$0xff]  }
  0xfc   :  { %5154 = vmatprep.subr.bf16.mxu0 %v7874_v3  ;;  %5713 = vmatprep.subr.bf16.mxu1 %v7877_v4  ;;  %v7965_v3 = vld [vmem:[%s11368_s1 + $0x9c0] ss:$16 sps:$4 sm:$0xff]   ;;  %v7968_v4 = vld [vmem:[%s11368_s1 + $0x9c8] ss:$16 sps:$4 sm:$0xff]  }
  0xff   :  { %5155 = vmatpush1.bf16.msra.mxu0 %v7872_v5  ;;  %5714 = vmatpush1.bf16.msra.mxu1 %v7875_v6  ;;  %v7973_v5 = vld [vmem:[%s11368_s1 + $0x9e4] ss:$16 sps:$4 sm:$0xff]   ;;  %v7976_v6 = vld [vmem:[%s11368_s1 + $0x9ec] ss:$16 sps:$4 sm:$0xff]  }
 0x100   :  { %5167 = vmatprep.subr.bf16.mxu0 %v7883_v7  ;;  %5726 = vmatprep.subr.bf16.mxu1 %v7886_v8  ;;  %v7971_v7 = vld [vmem:[%s11368_s1 + $0x9e0] ss:$16 sps:$4 sm:$0xff]   ;;  %v7974_v8 = vld [vmem:[%s11368_s1 + $0x9e8] ss:$16 sps:$4 sm:$0xff]  }
 0x102   :  { %5157 = vmatmul.mubr.bf16.vlgmr.msra.gmra.mrb[0].mxu0 %v7878_v9  ;;  %5716 = vmatmul.mubr.bf16.vlgmr.msra.gmra.mrb[0].mxu1 %v7878_v9  ;;  %v7977_v9 = vld [vmem:[%s11369_s0 + $0x20] ss:$100 sps:$4 sm:$0xff]  }
 0x103   :  { %5168 = vmatpush1.bf16.msra.mxu0 %v7881_v10  ;;  %5727 = vmatpush1.bf16.msra.mxu1 %v7884_v11  ;;  %v7982_v10 = vld [vmem:[%s11368_s1 + $0xa04] ss:$16 sps:$4 sm:$0xff]   ;;  %v7985_v11 = vld [vmem:[%s11368_s1 + $0xa0c] ss:$16 sps:$4 sm:$0xff]  }
 0x104   :  { %5169 = vmatprep.subr.bf16.mxu0 %v7889_v12  ;;  %5728 = vmatprep.subr.bf16.mxu1 %v7892_v13  ;;  %v7980_v12 = vld [vmem:[%s11368_s1 + $0xa00] ss:$16 sps:$4 sm:$0xff]   ;;  %v7983_v13 = vld [vmem:[%s11368_s1 + $0xa08] ss:$16 sps:$4 sm:$0xff]  }
 0x105   :  { %5199 = vmatprep.mubr.bf16.mxu0 %v7979_v14  ;;  %5758 = vmatprep.mubr.bf16.mxu1 %v7979_v14  ;;  %v7988_v14 = vld [vmem:[%s11368_s1 + $0xa24] ss:$16 sps:$4 sm:$0xff]  }
 0x107   :  { %5170 = vmatpush1.bf16.msra.mxu0 %v7887_v15  ;;  %5729 = vmatpush1.bf16.msra.mxu1 %v7890_v16  ;;  %v7991_v15 = vld [vmem:[%s11368_s1 + $0xa2c] ss:$16 sps:$4 sm:$0xff]  }
 0x108   :  { %5171 = vmatprep.subr.bf16.mxu0 %v7895_v17  ;;  %5730 = vmatprep.subr.bf16.mxu1 %v7898_v18  ;;  %v8078_v16 = vld [vmem:[%s11369_s0 + $0x2c] ss:$100 sps:$4 sm:$0xff]   ;;  %v7989_v18 = vld [vmem:[%s11368_s1 + $0xa28] ss:$16 sps:$4 sm:$0xff]  }
 0x109   :  { %v7986_v17 = vld [vmem:[%s11368_s1 + $0xa20] ss:$16 sps:$4 sm:$0xff]  }
 0x10b   :  { %5172 = vmatpush1.bf16.msra.mxu0 %v7893_v19  ;;  %5731 = vmatpush1.bf16.msra.mxu1 %v7896_v20  ;;  %v7994_v19 = vld [vmem:[%s11368_s1 + $0xa44] ss:$16 sps:$4 sm:$0xff]   ;;  %v7997_v20 = vld [vmem:[%s11368_s1 + $0xa4c] ss:$16 sps:$4 sm:$0xff]  }
 0x10c   :  { %5173 = vmatprep.subr.bf16.mxu0 %v7901_v21  ;;  %5732 = vmatprep.subr.bf16.mxu1 %v7904_v22  ;;  %v7992_v21 = vld [vmem:[%s11368_s1 + $0xa40] ss:$16 sps:$4 sm:$0xff]   ;;  %v7995_v22 = vld [vmem:[%s11368_s1 + $0xa48] ss:$16 sps:$4 sm:$0xff]  }
 0x10f   :  { %5174 = vmatpush1.bf16.msra.mxu0 %v7899_v23  ;;  %5733 = vmatpush1.bf16.msra.mxu1 %v7902_v24  ;;  %v8000_v23 = vld [vmem:[%s11368_s1 + $0xa64] ss:$16 sps:$4 sm:$0xff]   ;;  %v8003_v24 = vld [vmem:[%s11368_s1 + $0xa6c] ss:$16 sps:$4 sm:$0xff]  }
 0x110   :  { %5175 = vmatprep.subr.bf16.mxu0 %v7907_v25  ;;  %5734 = vmatprep.subr.bf16.mxu1 %v7910_v26  ;;  %v7998_v25 = vld [vmem:[%s11368_s1 + $0xa60] ss:$16 sps:$4 sm:$0xff]   ;;  %v8001_v26 = vld [vmem:[%s11368_s1 + $0xa68] ss:$16 sps:$4 sm:$0xff]  }
 0x113   :  { %5176 = vmatpush1.bf16.msra.mxu0 %v7905_v27  ;;  %5735 = vmatpush1.bf16.msra.mxu1 %v7908_v28  ;;  %v8006_v27 = vld [vmem:[%s11368_s1 + $0xa84] ss:$16 sps:$4 sm:$0xff]   ;;  %v8009_v28 = vld [vmem:[%s11368_s1 + $0xa8c] ss:$16 sps:$4 sm:$0xff]  }
 0x114   :  { %5177 = vmatprep.subr.bf16.mxu0 %v7913_v29  ;;  %5736 = vmatprep.subr.bf16.mxu1 %v7916_v30  ;;  %v8004_v29 = vld [vmem:[%s11368_s1 + $0xa80] ss:$16 sps:$4 sm:$0xff]   ;;  %v8007_v30 = vld [vmem:[%s11368_s1 + $0xa88] ss:$16 sps:$4 sm:$0xff]  }
 0x117   :  { %5178 = vmatpush1.bf16.msra.mxu0 %v7911_v31  ;;  %5737 = vmatpush1.bf16.msra.mxu1 %v7914_v32  ;;  %v8012_v31 = vld [vmem:[%s11368_s1 + $0xaa4] ss:$16 sps:$4 sm:$0xff]   ;;  %v8015_v32 = vld [vmem:[%s11368_s1 + $0xaac] ss:$16 sps:$4 sm:$0xff]  }
 0x118   :  { %5179 = vmatprep.subr.bf16.mxu0 %v7919_v33  ;;  %5738 = vmatprep.subr.bf16.mxu1 %v7922_v34  ;;  %v8010_v33 = vld [vmem:[%s11368_s1 + $0xaa0] ss:$16 sps:$4 sm:$0xff]   ;;  %v8013_v34 = vld [vmem:[%s11368_s1 + $0xaa8] ss:$16 sps:$4 sm:$0xff]  }
 0x11b   :  { %5180 = vmatpush1.bf16.msra.mxu0 %v7917_v35  ;;  %5739 = vmatpush1.bf16.msra.mxu1 %v7920_v36  ;;  %v8018_v35 = vld [vmem:[%s11368_s1 + $0xac4] ss:$16 sps:$4 sm:$0xff]   ;;  %v8021_v36 = vld [vmem:[%s11368_s1 + $0xacc] ss:$16 sps:$4 sm:$0xff]  }
 0x11c   :  { %5181 = vmatprep.subr.bf16.mxu0 %v7925_v37  ;;  %5740 = vmatprep.subr.bf16.mxu1 %v7928_v38  ;;  %v8016_v37 = vld [vmem:[%s11368_s1 + $0xac0] ss:$16 sps:$4 sm:$0xff]   ;;  %v8019_v38 = vld [vmem:[%s11368_s1 + $0xac8] ss:$16 sps:$4 sm:$0xff]  }
 0x11f   :  { %5182 = vmatpush1.bf16.msra.mxu0 %v7923_v39  ;;  %5741 = vmatpush1.bf16.msra.mxu1 %v7926_v40  ;;  %v8024_v39 = vld [vmem:[%s11368_s1 + $0xae4] ss:$16 sps:$4 sm:$0xff]   ;;  %v8027_v40 = vld [vmem:[%s11368_s1 + $0xaec] ss:$16 sps:$4 sm:$0xff]  }
 0x120   :  { %5183 = vmatprep.subr.bf16.mxu0 %v7931_v41  ;;  %5742 = vmatprep.subr.bf16.mxu1 %v7934_v42  ;;  %v8022_v41 = vld [vmem:[%s11368_s1 + $0xae0] ss:$16 sps:$4 sm:$0xff]   ;;  %v8025_v42 = vld [vmem:[%s11368_s1 + $0xae8] ss:$16 sps:$4 sm:$0xff]  }
 0x123   :  { %5184 = vmatpush1.bf16.msra.mxu0 %v7929_v43  ;;  %5743 = vmatpush1.bf16.msra.mxu1 %v7932_v44  ;;  %v8030_v43 = vld [vmem:[%s11368_s1 + $0xb04] ss:$16 sps:$4 sm:$0xff]   ;;  %v8033_v44 = vld [vmem:[%s11368_s1 + $0xb0c] ss:$16 sps:$4 sm:$0xff]  }
 0x124   :  { %5185 = vmatprep.subr.bf16.mxu0 %v7937_v45  ;;  %5744 = vmatprep.subr.bf16.mxu1 %v7940_v46  ;;  %v8028_v45 = vld [vmem:[%s11368_s1 + $0xb00] ss:$16 sps:$4 sm:$0xff]   ;;  %v8031_v46 = vld [vmem:[%s11368_s1 + $0xb08] ss:$16 sps:$4 sm:$0xff]  }
 0x127   :  { %5186 = vmatpush1.bf16.msra.mxu0 %v7935_v47  ;;  %5745 = vmatpush1.bf16.msra.mxu1 %v7938_v48  ;;  %v8036_v47 = vld [vmem:[%s11368_s1 + $0xb24] ss:$16 sps:$4 sm:$0xff]   ;;  %v8039_v48 = vld [vmem:[%s11368_s1 + $0xb2c] ss:$16 sps:$4 sm:$0xff]  }
 0x128   :  { %5187 = vmatprep.subr.bf16.mxu0 %v7943_v49  ;;  %5746 = vmatprep.subr.bf16.mxu1 %v7946_v50  ;;  %v8034_v49 = vld [vmem:[%s11368_s1 + $0xb20] ss:$16 sps:$4 sm:$0xff]   ;;  %v8037_v50 = vld [vmem:[%s11368_s1 + $0xb28] ss:$16 sps:$4 sm:$0xff]  }
 0x12b   :  { %5188 = vmatpush1.bf16.msra.mxu0 %v7941_v51  ;;  %5747 = vmatpush1.bf16.msra.mxu1 %v7944_v52  ;;  %v8042_v51 = vld [vmem:[%s11368_s1 + $0xb44] ss:$16 sps:$4 sm:$0xff]   ;;  %v8045_v52 = vld [vmem:[%s11368_s1 + $0xb4c] ss:$16 sps:$4 sm:$0xff]  }
 0x12c   :  { %5189 = vmatprep.subr.bf16.mxu0 %v7949_v53  ;;  %5748 = vmatprep.subr.bf16.mxu1 %v7952_v54  ;;  %v8040_v53 = vld [vmem:[%s11368_s1 + $0xb40] ss:$16 sps:$4 sm:$0xff]   ;;  %v8043_v54 = vld [vmem:[%s11368_s1 + $0xb48] ss:$16 sps:$4 sm:$0xff]  }
 0x12f   :  { %5190 = vmatpush1.bf16.msra.mxu0 %v7947_v55  ;;  %5749 = vmatpush1.bf16.msra.mxu1 %v7950_v56  ;;  %v8048_v55 = vld [vmem:[%s11368_s1 + $0xb64] ss:$16 sps:$4 sm:$0xff]   ;;  %v8051_v56 = vld [vmem:[%s11368_s1 + $0xb6c] ss:$16 sps:$4 sm:$0xff]  }
 0x130   :  { %5191 = vmatprep.subr.bf16.mxu0 %v7955_v57  ;;  %5750 = vmatprep.subr.bf16.mxu1 %v7958_v58  ;;  %v8046_v57 = vld [vmem:[%s11368_s1 + $0xb60] ss:$16 sps:$4 sm:$0xff]   ;;  %v8049_v58 = vld [vmem:[%s11368_s1 + $0xb68] ss:$16 sps:$4 sm:$0xff]  }
 0x133   :  { %5192 = vmatpush1.bf16.msra.mxu0 %v7953_v59  ;;  %5751 = vmatpush1.bf16.msra.mxu1 %v7956_v60  ;;  %v8054_v59 = vld [vmem:[%s11368_s1 + $0xb84] ss:$16 sps:$4 sm:$0xff]   ;;  %v8057_v60 = vld [vmem:[%s11368_s1 + $0xb8c] ss:$16 sps:$4 sm:$0xff]  }
 0x134   :  { %5193 = vmatprep.subr.bf16.mxu0 %v7961_v61  ;;  %5752 = vmatprep.subr.bf16.mxu1 %v7964_v62  ;;  %v8052_v61 = vld [vmem:[%s11368_s1 + $0xb80] ss:$16 sps:$4 sm:$0xff]   ;;  %v8055_v62 = vld [vmem:[%s11368_s1 + $0xb88] ss:$16 sps:$4 sm:$0xff]  }
 0x137   :  { %5194 = vmatpush1.bf16.msra.mxu0 %v7959_v63  ;;  %5753 = vmatpush1.bf16.msra.mxu1 %v7962_v0  ;;  %v8060_v63 = vld [vmem:[%s11368_s1 + $0xba4] ss:$16 sps:$4 sm:$0xff]   ;;  %v8063_v0 = vld [vmem:[%s11368_s1 + $0xbac] ss:$16 sps:$4 sm:$0xff]  }
 0x138   :  { %5195 = vmatprep.subr.bf16.mxu0 %v7967_v1  ;;  %5754 = vmatprep.subr.bf16.mxu1 %v7970_v2  ;;  %v8058_v1 = vld [vmem:[%s11368_s1 + $0xba0] ss:$16 sps:$4 sm:$0xff]   ;;  %v8061_v2 = vld [vmem:[%s11368_s1 + $0xba8] ss:$16 sps:$4 sm:$0xff]  }
 0x13b   :  { %5196 = vmatpush1.bf16.msra.mxu0 %v7965_v3  ;;  %5755 = vmatpush1.bf16.msra.mxu1 %v7968_v4  ;;  %v8066_v3 = vld [vmem:[%s11368_s1 + $0xbc4] ss:$16 sps:$4 sm:$0xff]   ;;  %v8069_v4 = vld [vmem:[%s11368_s1 + $0xbcc] ss:$16 sps:$4 sm:$0xff]  }
 0x13c   :  { %5197 = vmatprep.subr.bf16.mxu0 %v7973_v5  ;;  %5756 = vmatprep.subr.bf16.mxu1 %v7976_v6  ;;  %v8064_v5 = vld [vmem:[%s11368_s1 + $0xbc0] ss:$16 sps:$4 sm:$0xff]   ;;  %v8067_v6 = vld [vmem:[%s11368_s1 + $0xbc8] ss:$16 sps:$4 sm:$0xff]  }
 0x13f   :  { %5198 = vmatpush1.bf16.msra.mxu0 %v7971_v7  ;;  %5757 = vmatpush1.bf16.msra.mxu1 %v7974_v8  ;;  %v8072_v7 = vld [vmem:[%s11368_s1 + $0xbe4] ss:$16 sps:$4 sm:$0xff]   ;;  %v8075_v8 = vld [vmem:[%s11368_s1 + $0xbec] ss:$16 sps:$4 sm:$0xff]  }
 0x140   :  { %5210 = vmatprep.subr.bf16.mxu0 %v7982_v10  ;;  %5769 = vmatprep.subr.bf16.mxu1 %v7985_v11  ;;  %v8073_v10 = vld [vmem:[%s11368_s1 + $0xbe8] ss:$16 sps:$4 sm:$0xff]  }
 0x141   :  { %v8076_v11 = vld [vmem:[%s11369_s0 + $0x28] ss:$100 sps:$4 sm:$0xff]  }
 0x142   :  { %5200 = vmatmul.mubr.bf16.vlgmr.msra.gmra.mrb[0].mxu0 %v7977_v9  ;;  %5759 = vmatmul.mubr.bf16.vlgmr.msra.gmra.mrb[0].mxu1 %v7977_v9  ;;  %v8070_v9 = vld [vmem:[%s11368_s1 + $0xbe0] ss:$16 sps:$4 sm:$0xff]  }
 0x143   :  { %5211 = vmatpush1.bf16.msra.mxu0 %v7980_v12  ;;  %5770 = vmatpush1.bf16.msra.mxu1 %v7983_v13  ;;  %v8081_v12 = vld [vmem:[%s11368_s1 + $0xc04] ss:$16 sps:$4 sm:$0xff]   ;;  %v8084_v13 = vld [vmem:[%s11368_s1 + $0xc0c] ss:$16 sps:$4 sm:$0xff]  }
 0x144   :  { %5212 = vmatprep.subr.bf16.mxu0 %v7988_v14  ;;  %5771 = vmatprep.subr.bf16.mxu1 %v7991_v15  ;;  %v8079_v14 = vld [vmem:[%s11368_s1 + $0xc00] ss:$16 sps:$4 sm:$0xff]   ;;  %v8082_v15 = vld [vmem:[%s11368_s1 + $0xc08] ss:$16 sps:$4 sm:$0xff]  }
 0x145   :  { %5242 = vmatprep.mubr.bf16.mxu0 %v8078_v16  ;;  %5801 = vmatprep.mubr.bf16.mxu1 %v8078_v16  ;;  %v8087_v16 = vld [vmem:[%s11368_s1 + $0xc24] ss:$16 sps:$4 sm:$0xff]  }
 0x147   :  { %5213 = vmatpush1.bf16.msra.mxu0 %v7986_v17  ;;  %5772 = vmatpush1.bf16.msra.mxu1 %v7989_v18  ;;  %v8090_v17 = vld [vmem:[%s11368_s1 + $0xc2c] ss:$16 sps:$4 sm:$0xff]   ;;  %v8177_v18 = vld [vmem:[%s11369_s0 + $0x34] ss:$100 sps:$4 sm:$0xff]  }
 0x148   :  { %5214 = vmatprep.subr.bf16.mxu0 %v7994_v19  ;;  %5773 = vmatprep.subr.bf16.mxu1 %v7997_v20  ;;  %v8085_v19 = vld [vmem:[%s11368_s1 + $0xc20] ss:$16 sps:$4 sm:$0xff]   ;;  %v8088_v20 = vld [vmem:[%s11368_s1 + $0xc28] ss:$16 sps:$4 sm:$0xff]  }
 0x14b   :  { %5215 = vmatpush1.bf16.msra.mxu0 %v7992_v21  ;;  %5774 = vmatpush1.bf16.msra.mxu1 %v7995_v22  ;;  %v8093_v21 = vld [vmem:[%s11368_s1 + $0xc44] ss:$16 sps:$4 sm:$0xff]   ;;  %v8096_v22 = vld [vmem:[%s11368_s1 + $0xc4c] ss:$16 sps:$4 sm:$0xff]  }
 0x14c   :  { %5216 = vmatprep.subr.bf16.mxu0 %v8000_v23  ;;  %5775 = vmatprep.subr.bf16.mxu1 %v8003_v24  ;;  %v8091_v23 = vld [vmem:[%s11368_s1 + $0xc40] ss:$16 sps:$4 sm:$0xff]   ;;  %v8094_v24 = vld [vmem:[%s11368_s1 + $0xc48] ss:$16 sps:$4 sm:$0xff]  }
 0x14f   :  { %5217 = vmatpush1.bf16.msra.mxu0 %v7998_v25  ;;  %5776 = vmatpush1.bf16.msra.mxu1 %v8001_v26  ;;  %v8099_v25 = vld [vmem:[%s11368_s1 + $0xc64] ss:$16 sps:$4 sm:$0xff]   ;;  %v8102_v26 = vld [vmem:[%s11368_s1 + $0xc6c] ss:$16 sps:$4 sm:$0xff]  }
 0x150   :  { %5218 = vmatprep.subr.bf16.mxu0 %v8006_v27  ;;  %5777 = vmatprep.subr.bf16.mxu1 %v8009_v28  ;;  %v8097_v27 = vld [vmem:[%s11368_s1 + $0xc60] ss:$16 sps:$4 sm:$0xff]   ;;  %v8100_v28 = vld [vmem:[%s11368_s1 + $0xc68] ss:$16 sps:$4 sm:$0xff]  }
 0x153   :  { %5219 = vmatpush1.bf16.msra.mxu0 %v8004_v29  ;;  %5778 = vmatpush1.bf16.msra.mxu1 %v8007_v30  ;;  %v8105_v29 = vld [vmem:[%s11368_s1 + $0xc84] ss:$16 sps:$4 sm:$0xff]   ;;  %v8108_v30 = vld [vmem:[%s11368_s1 + $0xc8c] ss:$16 sps:$4 sm:$0xff]  }
 0x154   :  { %5220 = vmatprep.subr.bf16.mxu0 %v8012_v31  ;;  %5779 = vmatprep.subr.bf16.mxu1 %v8015_v32  ;;  %v8103_v31 = vld [vmem:[%s11368_s1 + $0xc80] ss:$16 sps:$4 sm:$0xff]   ;;  %v8106_v32 = vld [vmem:[%s11368_s1 + $0xc88] ss:$16 sps:$4 sm:$0xff]  }
 0x157   :  { %5221 = vmatpush1.bf16.msra.mxu0 %v8010_v33  ;;  %5780 = vmatpush1.bf16.msra.mxu1 %v8013_v34  ;;  %v8111_v33 = vld [vmem:[%s11368_s1 + $0xca4] ss:$16 sps:$4 sm:$0xff]   ;;  %v8114_v34 = vld [vmem:[%s11368_s1 + $0xcac] ss:$16 sps:$4 sm:$0xff]  }
 0x158   :  { %5222 = vmatprep.subr.bf16.mxu0 %v8018_v35  ;;  %5781 = vmatprep.subr.bf16.mxu1 %v8021_v36  ;;  %v8109_v35 = vld [vmem:[%s11368_s1 + $0xca0] ss:$16 sps:$4 sm:$0xff]   ;;  %v8112_v36 = vld [vmem:[%s11368_s1 + $0xca8] ss:$16 sps:$4 sm:$0xff]  }
 0x15b   :  { %5223 = vmatpush1.bf16.msra.mxu0 %v8016_v37  ;;  %5782 = vmatpush1.bf16.msra.mxu1 %v8019_v38  ;;  %v8117_v37 = vld [vmem:[%s11368_s1 + $0xcc4] ss:$16 sps:$4 sm:$0xff]   ;;  %v8120_v38 = vld [vmem:[%s11368_s1 + $0xccc] ss:$16 sps:$4 sm:$0xff]  }
 0x15c   :  { %5224 = vmatprep.subr.bf16.mxu0 %v8024_v39  ;;  %5783 = vmatprep.subr.bf16.mxu1 %v8027_v40  ;;  %v8115_v39 = vld [vmem:[%s11368_s1 + $0xcc0] ss:$16 sps:$4 sm:$0xff]   ;;  %v8118_v40 = vld [vmem:[%s11368_s1 + $0xcc8] ss:$16 sps:$4 sm:$0xff]  }
 0x15f   :  { %5225 = vmatpush1.bf16.msra.mxu0 %v8022_v41  ;;  %5784 = vmatpush1.bf16.msra.mxu1 %v8025_v42  ;;  %v8123_v41 = vld [vmem:[%s11368_s1 + $0xce4] ss:$16 sps:$4 sm:$0xff]   ;;  %v8126_v42 = vld [vmem:[%s11368_s1 + $0xcec] ss:$16 sps:$4 sm:$0xff]  }
 0x160   :  { %5226 = vmatprep.subr.bf16.mxu0 %v8030_v43  ;;  %5785 = vmatprep.subr.bf16.mxu1 %v8033_v44  ;;  %v8121_v43 = vld [vmem:[%s11368_s1 + $0xce0] ss:$16 sps:$4 sm:$0xff]   ;;  %v8124_v44 = vld [vmem:[%s11368_s1 + $0xce8] ss:$16 sps:$4 sm:$0xff]  }
 0x163   :  { %5227 = vmatpush1.bf16.msra.mxu0 %v8028_v45  ;;  %5786 = vmatpush1.bf16.msra.mxu1 %v8031_v46  ;;  %v8129_v45 = vld [vmem:[%s11368_s1 + $0xd04] ss:$16 sps:$4 sm:$0xff]   ;;  %v8132_v46 = vld [vmem:[%s11368_s1 + $0xd0c] ss:$16 sps:$4 sm:$0xff]  }
 0x164   :  { %5228 = vmatprep.subr.bf16.mxu0 %v8036_v47  ;;  %5787 = vmatprep.subr.bf16.mxu1 %v8039_v48  ;;  %v8127_v47 = vld [vmem:[%s11368_s1 + $0xd00] ss:$16 sps:$4 sm:$0xff]   ;;  %v8130_v48 = vld [vmem:[%s11368_s1 + $0xd08] ss:$16 sps:$4 sm:$0xff]  }
 0x167   :  { %5229 = vmatpush1.bf16.msra.mxu0 %v8034_v49  ;;  %5788 = vmatpush1.bf16.msra.mxu1 %v8037_v50  ;;  %v8135_v49 = vld [vmem:[%s11368_s1 + $0xd24] ss:$16 sps:$4 sm:$0xff]   ;;  %v8138_v50 = vld [vmem:[%s11368_s1 + $0xd2c] ss:$16 sps:$4 sm:$0xff]  }
 0x168   :  { %5230 = vmatprep.subr.bf16.mxu0 %v8042_v51  ;;  %5789 = vmatprep.subr.bf16.mxu1 %v8045_v52  ;;  %v8133_v51 = vld [vmem:[%s11368_s1 + $0xd20] ss:$16 sps:$4 sm:$0xff]   ;;  %v8136_v52 = vld [vmem:[%s11368_s1 + $0xd28] ss:$16 sps:$4 sm:$0xff]  }
 0x16b   :  { %5231 = vmatpush1.bf16.msra.mxu0 %v8040_v53  ;;  %5790 = vmatpush1.bf16.msra.mxu1 %v8043_v54  ;;  %v8141_v53 = vld [vmem:[%s11368_s1 + $0xd44] ss:$16 sps:$4 sm:$0xff]   ;;  %v8144_v54 = vld [vmem:[%s11368_s1 + $0xd4c] ss:$16 sps:$4 sm:$0xff]  }
 0x16c   :  { %5232 = vmatprep.subr.bf16.mxu0 %v8048_v55  ;;  %5791 = vmatprep.subr.bf16.mxu1 %v8051_v56  ;;  %v8139_v55 = vld [vmem:[%s11368_s1 + $0xd40] ss:$16 sps:$4 sm:$0xff]   ;;  %v8142_v56 = vld [vmem:[%s11368_s1 + $0xd48] ss:$16 sps:$4 sm:$0xff]  }
 0x16f   :  { %5233 = vmatpush1.bf16.msra.mxu0 %v8046_v57  ;;  %5792 = vmatpush1.bf16.msra.mxu1 %v8049_v58  ;;  %v8147_v57 = vld [vmem:[%s11368_s1 + $0xd64] ss:$16 sps:$4 sm:$0xff]   ;;  %v8150_v58 = vld [vmem:[%s11368_s1 + $0xd6c] ss:$16 sps:$4 sm:$0xff]  }
 0x170   :  { %5234 = vmatprep.subr.bf16.mxu0 %v8054_v59  ;;  %5793 = vmatprep.subr.bf16.mxu1 %v8057_v60  ;;  %v8145_v59 = vld [vmem:[%s11368_s1 + $0xd60] ss:$16 sps:$4 sm:$0xff]   ;;  %v8148_v60 = vld [vmem:[%s11368_s1 + $0xd68] ss:$16 sps:$4 sm:$0xff]  }
 0x173   :  { %5235 = vmatpush1.bf16.msra.mxu0 %v8052_v61  ;;  %5794 = vmatpush1.bf16.msra.mxu1 %v8055_v62  ;;  %v8153_v61 = vld [vmem:[%s11368_s1 + $0xd84] ss:$16 sps:$4 sm:$0xff]   ;;  %v8156_v62 = vld [vmem:[%s11368_s1 + $0xd8c] ss:$16 sps:$4 sm:$0xff]  }
 0x174   :  { %5236 = vmatprep.subr.bf16.mxu0 %v8060_v63  ;;  %5795 = vmatprep.subr.bf16.mxu1 %v8063_v0  ;;  %v8151_v63 = vld [vmem:[%s11368_s1 + $0xd80] ss:$16 sps:$4 sm:$0xff]   ;;  %v8154_v0 = vld [vmem:[%s11368_s1 + $0xd88] ss:$16 sps:$4 sm:$0xff]  }
 0x177   :  { %5237 = vmatpush1.bf16.msra.mxu0 %v8058_v1  ;;  %5796 = vmatpush1.bf16.msra.mxu1 %v8061_v2  ;;  %v8159_v1 = vld [vmem:[%s11368_s1 + $0xda4] ss:$16 sps:$4 sm:$0xff]   ;;  %v8162_v2 = vld [vmem:[%s11368_s1 + $0xdac] ss:$16 sps:$4 sm:$0xff]  }
 0x178   :  { %5238 = vmatprep.subr.bf16.mxu0 %v8066_v3  ;;  %5797 = vmatprep.subr.bf16.mxu1 %v8069_v4  ;;  %v8157_v3 = vld [vmem:[%s11368_s1 + $0xda0] ss:$16 sps:$4 sm:$0xff]   ;;  %v8160_v4 = vld [vmem:[%s11368_s1 + $0xda8] ss:$16 sps:$4 sm:$0xff]  }
 0x17b   :  { %5239 = vmatpush1.bf16.msra.mxu0 %v8064_v5  ;;  %5798 = vmatpush1.bf16.msra.mxu1 %v8067_v6  ;;  %v8165_v5 = vld [vmem:[%s11368_s1 + $0xdc4] ss:$16 sps:$4 sm:$0xff]   ;;  %v8168_v6 = vld [vmem:[%s11368_s1 + $0xdcc] ss:$16 sps:$4 sm:$0xff]  }
 0x17c   :  { %5240 = vmatprep.subr.bf16.mxu0 %v8072_v7  ;;  %5799 = vmatprep.subr.bf16.mxu1 %v8075_v8  ;;  %v8163_v7 = vld [vmem:[%s11368_s1 + $0xdc0] ss:$16 sps:$4 sm:$0xff]   ;;  %v8166_v8 = vld [vmem:[%s11368_s1 + $0xdc8] ss:$16 sps:$4 sm:$0xff]  }
 0x17f   :  { %5241 = vmatpush1.bf16.msra.mxu0 %v8070_v9  ;;  %5800 = vmatpush1.bf16.msra.mxu1 %v8073_v10  ;;  %v8171_v9 = vld [vmem:[%s11368_s1 + $0xde4] ss:$16 sps:$4 sm:$0xff]   ;;  %v8174_v10 = vld [vmem:[%s11368_s1 + $0xdec] ss:$16 sps:$4 sm:$0xff]  }
 0x180   :  { %5253 = vmatprep.subr.bf16.mxu0 %v8081_v12  ;;  %5812 = vmatprep.subr.bf16.mxu1 %v8084_v13  ;;  %v8172_v12 = vld [vmem:[%s11368_s1 + $0xde8] ss:$16 sps:$4 sm:$0xff]   ;;  %v8175_v13 = vld [vmem:[%s11369_s0 + $0x30] ss:$100 sps:$4 sm:$0xff]  }
 0x182   :  { %5243 = vmatmul.mubr.bf16.vlgmr.msra.gmra.mrb[0].mxu0 %v8076_v11  ;;  %5802 = vmatmul.mubr.bf16.vlgmr.msra.gmra.mrb[0].mxu1 %v8076_v11  ;;  %v8169_v11 = vld [vmem:[%s11368_s1 + $0xde0] ss:$16 sps:$4 sm:$0xff]  }
 0x183   :  { %5254 = vmatpush1.bf16.msra.mxu0 %v8079_v14  ;;  %5813 = vmatpush1.bf16.msra.mxu1 %v8082_v15  ;;  %v8180_v14 = vld [vmem:[%s11368_s1 + $0xe04] ss:$16 sps:$4 sm:$0xff]   ;;  %v8183_v15 = vld [vmem:[%s11368_s1 + $0xe0c] ss:$16 sps:$4 sm:$0xff]  }
 0x184   :  { %5255 = vmatprep.subr.bf16.mxu0 %v8087_v16  ;;  %5814 = vmatprep.subr.bf16.mxu1 %v8090_v17  ;;  %v8178_v16 = vld [vmem:[%s11368_s1 + $0xe00] ss:$16 sps:$4 sm:$0xff]   ;;  %v8181_v17 = vld [vmem:[%s11368_s1 + $0xe08] ss:$16 sps:$4 sm:$0xff]  }
 0x185   :  { %5285 = vmatprep.mubr.bf16.mxu0 %v8177_v18  ;;  %5844 = vmatprep.mubr.bf16.mxu1 %v8177_v18  ;;  %v8186_v18 = vld [vmem:[%s11368_s1 + $0xe24] ss:$16 sps:$4 sm:$0xff]  }
 0x187   :  { %5256 = vmatpush1.bf16.msra.mxu0 %v8085_v19  ;;  %5815 = vmatpush1.bf16.msra.mxu1 %v8088_v20  ;;  %v8189_v19 = vld [vmem:[%s11368_s1 + $0xe2c] ss:$16 sps:$4 sm:$0xff]  }
 0x188   :  { %5257 = vmatprep.subr.bf16.mxu0 %v8093_v21  ;;  %5816 = vmatprep.subr.bf16.mxu1 %v8096_v22  ;;  %v8276_v20 = vld [vmem:[%s11369_s0 + $0x3c] ss:$100 sps:$4 sm:$0xff]   ;;  %v8187_v22 = vld [vmem:[%s11368_s1 + $0xe28] ss:$16 sps:$4 sm:$0xff]  }
 0x189   :  { %v8184_v21 = vld [vmem:[%s11368_s1 + $0xe20] ss:$16 sps:$4 sm:$0xff]  }
 0x18b   :  { %5258 = vmatpush1.bf16.msra.mxu0 %v8091_v23  ;;  %5817 = vmatpush1.bf16.msra.mxu1 %v8094_v24  ;;  %v8192_v23 = vld [vmem:[%s11368_s1 + $0xe44] ss:$16 sps:$4 sm:$0xff]   ;;  %v8195_v24 = vld [vmem:[%s11368_s1 + $0xe4c] ss:$16 sps:$4 sm:$0xff]  }
 0x18c   :  { %5259 = vmatprep.subr.bf16.mxu0 %v8099_v25  ;;  %5818 = vmatprep.subr.bf16.mxu1 %v8102_v26  ;;  %v8190_v25 = vld [vmem:[%s11368_s1 + $0xe40] ss:$16 sps:$4 sm:$0xff]   ;;  %v8193_v26 = vld [vmem:[%s11368_s1 + $0xe48] ss:$16 sps:$4 sm:$0xff]  }
 0x18f   :  { %5260 = vmatpush1.bf16.msra.mxu0 %v8097_v27  ;;  %5819 = vmatpush1.bf16.msra.mxu1 %v8100_v28  ;;  %v8198_v27 = vld [vmem:[%s11368_s1 + $0xe64] ss:$16 sps:$4 sm:$0xff]   ;;  %v8201_v28 = vld [vmem:[%s11368_s1 + $0xe6c] ss:$16 sps:$4 sm:$0xff]  }
 0x190   :  { %5261 = vmatprep.subr.bf16.mxu0 %v8105_v29  ;;  %5820 = vmatprep.subr.bf16.mxu1 %v8108_v30  ;;  %v8196_v29 = vld [vmem:[%s11368_s1 + $0xe60] ss:$16 sps:$4 sm:$0xff]   ;;  %v8199_v30 = vld [vmem:[%s11368_s1 + $0xe68] ss:$16 sps:$4 sm:$0xff]  }
 0x193   :  { %5262 = vmatpush1.bf16.msra.mxu0 %v8103_v31  ;;  %5821 = vmatpush1.bf16.msra.mxu1 %v8106_v32  ;;  %v8204_v31 = vld [vmem:[%s11368_s1 + $0xe84] ss:$16 sps:$4 sm:$0xff]   ;;  %v8207_v32 = vld [vmem:[%s11368_s1 + $0xe8c] ss:$16 sps:$4 sm:$0xff]  }
 0x194   :  { %5263 = vmatprep.subr.bf16.mxu0 %v8111_v33  ;;  %5822 = vmatprep.subr.bf16.mxu1 %v8114_v34  ;;  %v8202_v33 = vld [vmem:[%s11368_s1 + $0xe80] ss:$16 sps:$4 sm:$0xff]   ;;  %v8205_v34 = vld [vmem:[%s11368_s1 + $0xe88] ss:$16 sps:$4 sm:$0xff]  }
 0x197   :  { %5264 = vmatpush1.bf16.msra.mxu0 %v8109_v35  ;;  %5823 = vmatpush1.bf16.msra.mxu1 %v8112_v36  ;;  %v8210_v35 = vld [vmem:[%s11368_s1 + $0xea4] ss:$16 sps:$4 sm:$0xff]   ;;  %v8213_v36 = vld [vmem:[%s11368_s1 + $0xeac] ss:$16 sps:$4 sm:$0xff]  }
 0x198   :  { %5265 = vmatprep.subr.bf16.mxu0 %v8117_v37  ;;  %5824 = vmatprep.subr.bf16.mxu1 %v8120_v38  ;;  %v8208_v37 = vld [vmem:[%s11368_s1 + $0xea0] ss:$16 sps:$4 sm:$0xff]   ;;  %v8211_v38 = vld [vmem:[%s11368_s1 + $0xea8] ss:$16 sps:$4 sm:$0xff]  }
 0x19b   :  { %5266 = vmatpush1.bf16.msra.mxu0 %v8115_v39  ;;  %5825 = vmatpush1.bf16.msra.mxu1 %v8118_v40  ;;  %v8216_v39 = vld [vmem:[%s11368_s1 + $0xec4] ss:$16 sps:$4 sm:$0xff]   ;;  %v8219_v40 = vld [vmem:[%s11368_s1 + $0xecc] ss:$16 sps:$4 sm:$0xff]  }
 0x19c   :  { %5267 = vmatprep.subr.bf16.mxu0 %v8123_v41  ;;  %5826 = vmatprep.subr.bf16.mxu1 %v8126_v42  ;;  %v8214_v41 = vld [vmem:[%s11368_s1 + $0xec0] ss:$16 sps:$4 sm:$0xff]   ;;  %v8217_v42 = vld [vmem:[%s11368_s1 + $0xec8] ss:$16 sps:$4 sm:$0xff]  }
 0x19f   :  { %5268 = vmatpush1.bf16.msra.mxu0 %v8121_v43  ;;  %5827 = vmatpush1.bf16.msra.mxu1 %v8124_v44  ;;  %v8222_v43 = vld [vmem:[%s11368_s1 + $0xee4] ss:$16 sps:$4 sm:$0xff]   ;;  %v8225_v44 = vld [vmem:[%s11368_s1 + $0xeec] ss:$16 sps:$4 sm:$0xff]  }
 0x1a0   :  { %5269 = vmatprep.subr.bf16.mxu0 %v8129_v45  ;;  %5828 = vmatprep.subr.bf16.mxu1 %v8132_v46  ;;  %v8220_v45 = vld [vmem:[%s11368_s1 + $0xee0] ss:$16 sps:$4 sm:$0xff]   ;;  %v8223_v46 = vld [vmem:[%s11368_s1 + $0xee8] ss:$16 sps:$4 sm:$0xff]  }
 0x1a3   :  { %5270 = vmatpush1.bf16.msra.mxu0 %v8127_v47  ;;  %5829 = vmatpush1.bf16.msra.mxu1 %v8130_v48  ;;  %v8228_v47 = vld [vmem:[%s11368_s1 + $0xf04] ss:$16 sps:$4 sm:$0xff]   ;;  %v8231_v48 = vld [vmem:[%s11368_s1 + $0xf0c] ss:$16 sps:$4 sm:$0xff]  }
 0x1a4   :  { %5271 = vmatprep.subr.bf16.mxu0 %v8135_v49  ;;  %5830 = vmatprep.subr.bf16.mxu1 %v8138_v50  ;;  %v8226_v49 = vld [vmem:[%s11368_s1 + $0xf00] ss:$16 sps:$4 sm:$0xff]   ;;  %v8229_v50 = vld [vmem:[%s11368_s1 + $0xf08] ss:$16 sps:$4 sm:$0xff]  }
 0x1a7   :  { %5272 = vmatpush1.bf16.msra.mxu0 %v8133_v51  ;;  %5831 = vmatpush1.bf16.msra.mxu1 %v8136_v52  ;;  %v8234_v51 = vld [vmem:[%s11368_s1 + $0xf24] ss:$16 sps:$4 sm:$0xff]   ;;  %v8237_v52 = vld [vmem:[%s11368_s1 + $0xf2c] ss:$16 sps:$4 sm:$0xff]  }
 0x1a8   :  { %5273 = vmatprep.subr.bf16.mxu0 %v8141_v53  ;;  %5832 = vmatprep.subr.bf16.mxu1 %v8144_v54  ;;  %v8232_v53 = vld [vmem:[%s11368_s1 + $0xf20] ss:$16 sps:$4 sm:$0xff]   ;;  %v8235_v54 = vld [vmem:[%s11368_s1 + $0xf28] ss:$16 sps:$4 sm:$0xff]  }
 0x1ab   :  { %5274 = vmatpush1.bf16.msra.mxu0 %v8139_v55  ;;  %5833 = vmatpush1.bf16.msra.mxu1 %v8142_v56  ;;  %v8240_v55 = vld [vmem:[%s11368_s1 + $0xf44] ss:$16 sps:$4 sm:$0xff]   ;;  %v8243_v56 = vld [vmem:[%s11368_s1 + $0xf4c] ss:$16 sps:$4 sm:$0xff]  }
 0x1ac   :  { %5275 = vmatprep.subr.bf16.mxu0 %v8147_v57  ;;  %5834 = vmatprep.subr.bf16.mxu1 %v8150_v58  ;;  %v8238_v57 = vld [vmem:[%s11368_s1 + $0xf40] ss:$16 sps:$4 sm:$0xff]   ;;  %v8241_v58 = vld [vmem:[%s11368_s1 + $0xf48] ss:$16 sps:$4 sm:$0xff]  }
 0x1af   :  { %5276 = vmatpush1.bf16.msra.mxu0 %v8145_v59  ;;  %5835 = vmatpush1.bf16.msra.mxu1 %v8148_v60  ;;  %v8246_v59 = vld [vmem:[%s11368_s1 + $0xf64] ss:$16 sps:$4 sm:$0xff]   ;;  %v8249_v60 = vld [vmem:[%s11368_s1 + $0xf6c] ss:$16 sps:$4 sm:$0xff]  }
 0x1b0   :  { %5277 = vmatprep.subr.bf16.mxu0 %v8153_v61  ;;  %5836 = vmatprep.subr.bf16.mxu1 %v8156_v62  ;;  %v8244_v61 = vld [vmem:[%s11368_s1 + $0xf60] ss:$16 sps:$4 sm:$0xff]   ;;  %v8247_v62 = vld [vmem:[%s11368_s1 + $0xf68] ss:$16 sps:$4 sm:$0xff]  }
 0x1b3   :  { %5278 = vmatpush1.bf16.msra.mxu0 %v8151_v63  ;;  %5837 = vmatpush1.bf16.msra.mxu1 %v8154_v0  ;;  %v8252_v63 = vld [vmem:[%s11368_s1 + $0xf84] ss:$16 sps:$4 sm:$0xff]   ;;  %v8255_v0 = vld [vmem:[%s11368_s1 + $0xf8c] ss:$16 sps:$4 sm:$0xff]  }
 0x1b4   :  { %5279 = vmatprep.subr.bf16.mxu0 %v8159_v1  ;;  %5838 = vmatprep.subr.bf16.mxu1 %v8162_v2  ;;  %v8250_v1 = vld [vmem:[%s11368_s1 + $0xf80] ss:$16 sps:$4 sm:$0xff]   ;;  %v8253_v2 = vld [vmem:[%s11368_s1 + $0xf88] ss:$16 sps:$4 sm:$0xff]  }
 0x1b7   :  { %5280 = vmatpush1.bf16.msra.mxu0 %v8157_v3  ;;  %5839 = vmatpush1.bf16.msra.mxu1 %v8160_v4  ;;  %v8258_v3 = vld [vmem:[%s11368_s1 + $0xfa4] ss:$16 sps:$4 sm:$0xff]   ;;  %v8261_v4 = vld [vmem:[%s11368_s1 + $0xfac] ss:$16 sps:$4 sm:$0xff]  }
 0x1b8   :  { %5281 = vmatprep.subr.bf16.mxu0 %v8165_v5  ;;  %5840 = vmatprep.subr.bf16.mxu1 %v8168_v6  ;;  %v8256_v5 = vld [vmem:[%s11368_s1 + $0xfa0] ss:$16 sps:$4 sm:$0xff]   ;;  %v8259_v6 = vld [vmem:[%s11368_s1 + $0xfa8] ss:$16 sps:$4 sm:$0xff]  }
 0x1bb   :  { %5282 = vmatpush1.bf16.msra.mxu0 %v8163_v7  ;;  %5841 = vmatpush1.bf16.msra.mxu1 %v8166_v8  ;;  %v8264_v7 = vld [vmem:[%s11368_s1 + $0xfc4] ss:$16 sps:$4 sm:$0xff]   ;;  %v8267_v8 = vld [vmem:[%s11368_s1 + $0xfcc] ss:$16 sps:$4 sm:$0xff]  }
 0x1bc   :  { %5283 = vmatprep.subr.bf16.mxu0 %v8171_v9  ;;  %5842 = vmatprep.subr.bf16.mxu1 %v8174_v10  ;;  %v8262_v9 = vld [vmem:[%s11368_s1 + $0xfc0] ss:$16 sps:$4 sm:$0xff]   ;;  %v8265_v10 = vld [vmem:[%s11368_s1 + $0xfc8] ss:$16 sps:$4 sm:$0xff]  }
 0x1bf   :  { %5284 = vmatpush1.bf16.msra.mxu0 %v8169_v11  ;;  %5843 = vmatpush1.bf16.msra.mxu1 %v8172_v12  ;;  %v8270_v11 = vld [vmem:[%s11368_s1 + $0xfe4] ss:$16 sps:$4 sm:$0xff]   ;;  %v8273_v12 = vld [vmem:[%s11368_s1 + $0xfec] ss:$16 sps:$4 sm:$0xff]  }
 0x1c0   :  { %5296 = vmatprep.subr.bf16.mxu0 %v8180_v14  ;;  %5855 = vmatprep.subr.bf16.mxu1 %v8183_v15  ;;  %v8271_v14 = vld [vmem:[%s11368_s1 + $0xfe8] ss:$16 sps:$4 sm:$0xff]   ;;  %v8279_v15 = vld [vmem:[%s11368_s1 + $0x1004] ss:$16 sps:$4 sm:$0xff]  }
 0x1c2   :  { %5286 = vmatmul.mubr.bf16.vlgmr.msra.gmra.mrb[0].mxu0 %v8175_v13  ;;  %5845 = vmatmul.mubr.bf16.vlgmr.msra.gmra.mrb[0].mxu1 %v8175_v13  ;;  %v8268_v13 = vld [vmem:[%s11368_s1 + $0xfe0] ss:$16 sps:$4 sm:$0xff]  }
 0x1c3   :  { %5297 = vmatpush1.bf16.msra.mxu0 %v8178_v16  ;;  %5856 = vmatpush1.bf16.msra.mxu1 %v8181_v17  ;;  %v8282_v16 = vld [vmem:[%s11368_s1 + $0x100c] ss:$16 sps:$4 sm:$0xff]  }
 0x1c4   :  { %5298 = vmatprep.subr.bf16.mxu0 %v8186_v18  ;;  %5857 = vmatprep.subr.bf16.mxu1 %v8189_v19  ;;  %v8274_v17 = vld [vmem:[%s11369_s0 + $0x38] ss:$100 sps:$4 sm:$0xff]   ;;  %v8277_v18 = vld [vmem:[%s11368_s1 + $0x1000] ss:$16 sps:$4 sm:$0xff]  }
 0x1c5   :  { %5328 = vmatprep.mubr.bf16.mxu0 %v8276_v20  ;;  %5887 = vmatprep.mubr.bf16.mxu1 %v8276_v20  ;;  %v8280_v19 = vld [vmem:[%s11368_s1 + $0x1008] ss:$16 sps:$4 sm:$0xff]   ;;  %v8285_v20 = vld [vmem:[%s11368_s1 + $0x1024] ss:$16 sps:$4 sm:$0xff]  }
 0x1c7   :  { %5299 = vmatpush1.bf16.msra.mxu0 %v8184_v21  ;;  %5858 = vmatpush1.bf16.msra.mxu1 %v8187_v22  ;;  %v8288_v21 = vld [vmem:[%s11368_s1 + $0x102c] ss:$16 sps:$4 sm:$0xff]   ;;  %v8375_v22 = vld [vmem:[%s11369_s0 + $0x44] ss:$100 sps:$4 sm:$0xff]  }
 0x1c8   :  { %5300 = vmatprep.subr.bf16.mxu0 %v8192_v23  ;;  %5859 = vmatprep.subr.bf16.mxu1 %v8195_v24  ;;  %v8283_v23 = vld [vmem:[%s11368_s1 + $0x1020] ss:$16 sps:$4 sm:$0xff]   ;;  %v8286_v24 = vld [vmem:[%s11368_s1 + $0x1028] ss:$16 sps:$4 sm:$0xff]  }
 0x1cb   :  { %5301 = vmatpush1.bf16.msra.mxu0 %v8190_v25  ;;  %5860 = vmatpush1.bf16.msra.mxu1 %v8193_v26  ;;  %v8291_v25 = vld [vmem:[%s11368_s1 + $0x1044] ss:$16 sps:$4 sm:$0xff]   ;;  %v8294_v26 = vld [vmem:[%s11368_s1 + $0x104c] ss:$16 sps:$4 sm:$0xff]  }
 0x1cc   :  { %5302 = vmatprep.subr.bf16.mxu0 %v8198_v27  ;;  %5861 = vmatprep.subr.bf16.mxu1 %v8201_v28  ;;  %v8289_v27 = vld [vmem:[%s11368_s1 + $0x1040] ss:$16 sps:$4 sm:$0xff]   ;;  %v8292_v28 = vld [vmem:[%s11368_s1 + $0x1048] ss:$16 sps:$4 sm:$0xff]  }
 0x1cf   :  { %5303 = vmatpush1.bf16.msra.mxu0 %v8196_v29  ;;  %5862 = vmatpush1.bf16.msra.mxu1 %v8199_v30  ;;  %v8297_v29 = vld [vmem:[%s11368_s1 + $0x1064] ss:$16 sps:$4 sm:$0xff]   ;;  %v8300_v30 = vld [vmem:[%s11368_s1 + $0x106c] ss:$16 sps:$4 sm:$0xff]  }
 0x1d0   :  { %5304 = vmatprep.subr.bf16.mxu0 %v8204_v31  ;;  %5863 = vmatprep.subr.bf16.mxu1 %v8207_v32  ;;  %v8295_v31 = vld [vmem:[%s11368_s1 + $0x1060] ss:$16 sps:$4 sm:$0xff]   ;;  %v8298_v32 = vld [vmem:[%s11368_s1 + $0x1068] ss:$16 sps:$4 sm:$0xff]  }
 0x1d3   :  { %5305 = vmatpush1.bf16.msra.mxu0 %v8202_v33  ;;  %5864 = vmatpush1.bf16.msra.mxu1 %v8205_v34  ;;  %v8303_v33 = vld [vmem:[%s11368_s1 + $0x1084] ss:$16 sps:$4 sm:$0xff]   ;;  %v8306_v34 = vld [vmem:[%s11368_s1 + $0x108c] ss:$16 sps:$4 sm:$0xff]  }
 0x1d4   :  { %5306 = vmatprep.subr.bf16.mxu0 %v8210_v35  ;;  %5865 = vmatprep.subr.bf16.mxu1 %v8213_v36  ;;  %v8301_v35 = vld [vmem:[%s11368_s1 + $0x1080] ss:$16 sps:$4 sm:$0xff]   ;;  %v8304_v36 = vld [vmem:[%s11368_s1 + $0x1088] ss:$16 sps:$4 sm:$0xff]  }
 0x1d7   :  { %5307 = vmatpush1.bf16.msra.mxu0 %v8208_v37  ;;  %5866 = vmatpush1.bf16.msra.mxu1 %v8211_v38  ;;  %v8309_v37 = vld [vmem:[%s11368_s1 + $0x10a4] ss:$16 sps:$4 sm:$0xff]   ;;  %v8312_v38 = vld [vmem:[%s11368_s1 + $0x10ac] ss:$16 sps:$4 sm:$0xff]  }
 0x1d8   :  { %5308 = vmatprep.subr.bf16.mxu0 %v8216_v39  ;;  %5867 = vmatprep.subr.bf16.mxu1 %v8219_v40  ;;  %v8307_v39 = vld [vmem:[%s11368_s1 + $0x10a0] ss:$16 sps:$4 sm:$0xff]   ;;  %v8310_v40 = vld [vmem:[%s11368_s1 + $0x10a8] ss:$16 sps:$4 sm:$0xff]  }
 0x1db   :  { %5309 = vmatpush1.bf16.msra.mxu0 %v8214_v41  ;;  %5868 = vmatpush1.bf16.msra.mxu1 %v8217_v42  ;;  %v8315_v41 = vld [vmem:[%s11368_s1 + $0x10c4] ss:$16 sps:$4 sm:$0xff]   ;;  %v8318_v42 = vld [vmem:[%s11368_s1 + $0x10cc] ss:$16 sps:$4 sm:$0xff]  }
 0x1dc   :  { %5310 = vmatprep.subr.bf16.mxu0 %v8222_v43  ;;  %5869 = vmatprep.subr.bf16.mxu1 %v8225_v44  ;;  %v8313_v43 = vld [vmem:[%s11368_s1 + $0x10c0] ss:$16 sps:$4 sm:$0xff]   ;;  %v8316_v44 = vld [vmem:[%s11368_s1 + $0x10c8] ss:$16 sps:$4 sm:$0xff]  }
 0x1df   :  { %5311 = vmatpush1.bf16.msra.mxu0 %v8220_v45  ;;  %5870 = vmatpush1.bf16.msra.mxu1 %v8223_v46  ;;  %v8321_v45 = vld [vmem:[%s11368_s1 + $0x10e4] ss:$16 sps:$4 sm:$0xff]   ;;  %v8324_v46 = vld [vmem:[%s11368_s1 + $0x10ec] ss:$16 sps:$4 sm:$0xff]  }
 0x1e0   :  { %5312 = vmatprep.subr.bf16.mxu0 %v8228_v47  ;;  %5871 = vmatprep.subr.bf16.mxu1 %v8231_v48  ;;  %v8319_v47 = vld [vmem:[%s11368_s1 + $0x10e0] ss:$16 sps:$4 sm:$0xff]   ;;  %v8322_v48 = vld [vmem:[%s11368_s1 + $0x10e8] ss:$16 sps:$4 sm:$0xff]  }
 0x1e3   :  { %5313 = vmatpush1.bf16.msra.mxu0 %v8226_v49  ;;  %5872 = vmatpush1.bf16.msra.mxu1 %v8229_v50  ;;  %v8327_v49 = vld [vmem:[%s11368_s1 + $0x1104] ss:$16 sps:$4 sm:$0xff]   ;;  %v8330_v50 = vld [vmem:[%s11368_s1 + $0x110c] ss:$16 sps:$4 sm:$0xff]  }
 0x1e4   :  { %5314 = vmatprep.subr.bf16.mxu0 %v8234_v51  ;;  %5873 = vmatprep.subr.bf16.mxu1 %v8237_v52  ;;  %v8325_v51 = vld [vmem:[%s11368_s1 + $0x1100] ss:$16 sps:$4 sm:$0xff]   ;;  %v8328_v52 = vld [vmem:[%s11368_s1 + $0x1108] ss:$16 sps:$4 sm:$0xff]  }
 0x1e7   :  { %5315 = vmatpush1.bf16.msra.mxu0 %v8232_v53  ;;  %5874 = vmatpush1.bf16.msra.mxu1 %v8235_v54  ;;  %v8333_v53 = vld [vmem:[%s11368_s1 + $0x1124] ss:$16 sps:$4 sm:$0xff]   ;;  %v8336_v54 = vld [vmem:[%s11368_s1 + $0x112c] ss:$16 sps:$4 sm:$0xff]  }
 0x1e8   :  { %5316 = vmatprep.subr.bf16.mxu0 %v8240_v55  ;;  %5875 = vmatprep.subr.bf16.mxu1 %v8243_v56  ;;  %v8331_v55 = vld [vmem:[%s11368_s1 + $0x1120] ss:$16 sps:$4 sm:$0xff]   ;;  %v8334_v56 = vld [vmem:[%s11368_s1 + $0x1128] ss:$16 sps:$4 sm:$0xff]  }
 0x1eb   :  { %5317 = vmatpush1.bf16.msra.mxu0 %v8238_v57  ;;  %5876 = vmatpush1.bf16.msra.mxu1 %v8241_v58  ;;  %v8339_v57 = vld [vmem:[%s11368_s1 + $0x1144] ss:$16 sps:$4 sm:$0xff]   ;;  %v8342_v58 = vld [vmem:[%s11368_s1 + $0x114c] ss:$16 sps:$4 sm:$0xff]  }
 0x1ec   :  { %5318 = vmatprep.subr.bf16.mxu0 %v8246_v59  ;;  %5877 = vmatprep.subr.bf16.mxu1 %v8249_v60  ;;  %v8337_v59 = vld [vmem:[%s11368_s1 + $0x1140] ss:$16 sps:$4 sm:$0xff]   ;;  %v8340_v60 = vld [vmem:[%s11368_s1 + $0x1148] ss:$16 sps:$4 sm:$0xff]  }
 0x1ef   :  { %5319 = vmatpush1.bf16.msra.mxu0 %v8244_v61  ;;  %5878 = vmatpush1.bf16.msra.mxu1 %v8247_v62  ;;  %v8345_v61 = vld [vmem:[%s11368_s1 + $0x1164] ss:$16 sps:$4 sm:$0xff]   ;;  %v8348_v62 = vld [vmem:[%s11368_s1 + $0x116c] ss:$16 sps:$4 sm:$0xff]  }
 0x1f0   :  { %5320 = vmatprep.subr.bf16.mxu0 %v8252_v63  ;;  %5879 = vmatprep.subr.bf16.mxu1 %v8255_v0  ;;  %v8343_v63 = vld [vmem:[%s11368_s1 + $0x1160] ss:$16 sps:$4 sm:$0xff]   ;;  %v8346_v0 = vld [vmem:[%s11368_s1 + $0x1168] ss:$16 sps:$4 sm:$0xff]  }
 0x1f3   :  { %5321 = vmatpush1.bf16.msra.mxu0 %v8250_v1  ;;  %5880 = vmatpush1.bf16.msra.mxu1 %v8253_v2  ;;  %v8351_v1 = vld [vmem:[%s11368_s1 + $0x1184] ss:$16 sps:$4 sm:$0xff]   ;;  %v8354_v2 = vld [vmem:[%s11368_s1 + $0x118c] ss:$16 sps:$4 sm:$0xff]  }
 0x1f4   :  { %5322 = vmatprep.subr.bf16.mxu0 %v8258_v3  ;;  %5881 = vmatprep.subr.bf16.mxu1 %v8261_v4  ;;  %v8349_v3 = vld [vmem:[%s11368_s1 + $0x1180] ss:$16 sps:$4 sm:$0xff]   ;;  %v8352_v4 = vld [vmem:[%s11368_s1 + $0x1188] ss:$16 sps:$4 sm:$0xff]  }
 0x1f7   :  { %5323 = vmatpush1.bf16.msra.mxu0 %v8256_v5  ;;  %5882 = vmatpush1.bf16.msra.mxu1 %v8259_v6  ;;  %v8357_v5 = vld [vmem:[%s11368_s1 + $0x11a4] ss:$16 sps:$4 sm:$0xff]   ;;  %v8360_v6 = vld [vmem:[%s11368_s1 + $0x11ac] ss:$16 sps:$4 sm:$0xff]  }
 0x1f8   :  { %5324 = vmatprep.subr.bf16.mxu0 %v8264_v7  ;;  %5883 = vmatprep.subr.bf16.mxu1 %v8267_v8  ;;  %v8355_v7 = vld [vmem:[%s11368_s1 + $0x11a0] ss:$16 sps:$4 sm:$0xff]   ;;  %v8358_v8 = vld [vmem:[%s11368_s1 + $0x11a8] ss:$16 sps:$4 sm:$0xff]  }
 0x1fb   :  { %5325 = vmatpush1.bf16.msra.mxu0 %v8262_v9  ;;  %5884 = vmatpush1.bf16.msra.mxu1 %v8265_v10  ;;  %v8363_v9 = vld [vmem:[%s11368_s1 + $0x11c4] ss:$16 sps:$4 sm:$0xff]   ;;  %v8366_v10 = vld [vmem:[%s11368_s1 + $0x11cc] ss:$16 sps:$4 sm:$0xff]  }
 0x1fc   :  { %5326 = vmatprep.subr.bf16.mxu0 %v8270_v11  ;;  %5885 = vmatprep.subr.bf16.mxu1 %v8273_v12  ;;  %v8361_v11 = vld [vmem:[%s11368_s1 + $0x11c0] ss:$16 sps:$4 sm:$0xff]   ;;  %v8364_v12 = vld [vmem:[%s11368_s1 + $0x11c8] ss:$16 sps:$4 sm:$0xff]  }
 0x1ff   :  { %5327 = vmatpush1.bf16.msra.mxu0 %v8268_v13  ;;  %5886 = vmatpush1.bf16.msra.mxu1 %v8271_v14  ;;  %v8369_v13 = vld [vmem:[%s11368_s1 + $0x11e4] ss:$16 sps:$4 sm:$0xff]   ;;  %v8372_v14 = vld [vmem:[%s11368_s1 + $0x11ec] ss:$16 sps:$4 sm:$0xff]  }
 0x200   :  { %5339 = vmatprep.subr.bf16.mxu0 %v8279_v15  ;;  %5898 = vmatprep.subr.bf16.mxu1 %v8282_v16  ;;  %v8367_v15 = vld [vmem:[%s11368_s1 + $0x11e0] ss:$16 sps:$4 sm:$0xff]   ;;  %v8370_v16 = vld [vmem:[%s11368_s1 + $0x11e8] ss:$16 sps:$4 sm:$0xff]  }
 0x202   :  { %5329 = vmatmul.mubr.bf16.vlgmr.msra.gmra.mrb[0].mxu0 %v8274_v17  ;;  %5888 = vmatmul.mubr.bf16.vlgmr.msra.gmra.mrb[0].mxu1 %v8274_v17  ;;  %v8378_v17 = vld [vmem:[%s11368_s1 + $0x1204] ss:$16 sps:$4 sm:$0xff]  }
 0x203   :  { %5340 = vmatpush1.bf16.msra.mxu0 %v8277_v18  ;;  %5899 = vmatpush1.bf16.msra.mxu1 %v8280_v19  ;;  %v8381_v18 = vld [vmem:[%s11368_s1 + $0x120c] ss:$16 sps:$4 sm:$0xff]   ;;  %v8373_v19 = vld [vmem:[%s11369_s0 + $0x40] ss:$100 sps:$4 sm:$0xff]  }
 0x204   :  { %5341 = vmatprep.subr.bf16.mxu0 %v8285_v20  ;;  %5900 = vmatprep.subr.bf16.mxu1 %v8288_v21  ;;  %v8376_v20 = vld [vmem:[%s11368_s1 + $0x1200] ss:$16 sps:$4 sm:$0xff]   ;;  %v8379_v21 = vld [vmem:[%s11368_s1 + $0x1208] ss:$16 sps:$4 sm:$0xff]  }
 0x205   :  { %5371 = vmatprep.mubr.bf16.mxu0 %v8375_v22  ;;  %5930 = vmatprep.mubr.bf16.mxu1 %v8375_v22  ;;  %v8384_v22 = vld [vmem:[%s11368_s1 + $0x1224] ss:$16 sps:$4 sm:$0xff]  }
 0x207   :  { %5342 = vmatpush1.bf16.msra.mxu0 %v8283_v23  ;;  %5901 = vmatpush1.bf16.msra.mxu1 %v8286_v24  ;;  %v8387_v23 = vld [vmem:[%s11368_s1 + $0x122c] ss:$16 sps:$4 sm:$0xff]  }
 0x208   :  { %5343 = vmatprep.subr.bf16.mxu0 %v8291_v25  ;;  %5902 = vmatprep.subr.bf16.mxu1 %v8294_v26  ;;  %v8474_v24 = vld [vmem:[%s11369_s0 + $0x4c] ss:$100 sps:$4 sm:$0xff]   ;;  %v8385_v26 = vld [vmem:[%s11368_s1 + $0x1228] ss:$16 sps:$4 sm:$0xff]  }
 0x209   :  { %v8382_v25 = vld [vmem:[%s11368_s1 + $0x1220] ss:$16 sps:$4 sm:$0xff]  }
 0x20b   :  { %5344 = vmatpush1.bf16.msra.mxu0 %v8289_v27  ;;  %5903 = vmatpush1.bf16.msra.mxu1 %v8292_v28  ;;  %v8390_v27 = vld [vmem:[%s11368_s1 + $0x1244] ss:$16 sps:$4 sm:$0xff]   ;;  %v8393_v28 = vld [vmem:[%s11368_s1 + $0x124c] ss:$16 sps:$4 sm:$0xff]  }
 0x20c   :  { %5345 = vmatprep.subr.bf16.mxu0 %v8297_v29  ;;  %5904 = vmatprep.subr.bf16.mxu1 %v8300_v30  ;;  %v8388_v29 = vld [vmem:[%s11368_s1 + $0x1240] ss:$16 sps:$4 sm:$0xff]   ;;  %v8391_v30 = vld [vmem:[%s11368_s1 + $0x1248] ss:$16 sps:$4 sm:$0xff]  }
 0x20f   :  { %5346 = vmatpush1.bf16.msra.mxu0 %v8295_v31  ;;  %5905 = vmatpush1.bf16.msra.mxu1 %v8298_v32  ;;  %v8396_v31 = vld [vmem:[%s11368_s1 + $0x1264] ss:$16 sps:$4 sm:$0xff]   ;;  %v8399_v32 = vld [vmem:[%s11368_s1 + $0x126c] ss:$16 sps:$4 sm:$0xff]  }
 0x210   :  { %5347 = vmatprep.subr.bf16.mxu0 %v8303_v33  ;;  %5906 = vmatprep.subr.bf16.mxu1 %v8306_v34  ;;  %v8394_v33 = vld [vmem:[%s11368_s1 + $0x1260] ss:$16 sps:$4 sm:$0xff]   ;;  %v8397_v34 = vld [vmem:[%s11368_s1 + $0x1268] ss:$16 sps:$4 sm:$0xff]  }
 0x213   :  { %5348 = vmatpush1.bf16.msra.mxu0 %v8301_v35  ;;  %5907 = vmatpush1.bf16.msra.mxu1 %v8304_v36  ;;  %v8402_v35 = vld [vmem:[%s11368_s1 + $0x1284] ss:$16 sps:$4 sm:$0xff]   ;;  %v8405_v36 = vld [vmem:[%s11368_s1 + $0x128c] ss:$16 sps:$4 sm:$0xff]  }
 0x214   :  { %5349 = vmatprep.subr.bf16.mxu0 %v8309_v37  ;;  %5908 = vmatprep.subr.bf16.mxu1 %v8312_v38  ;;  %v8400_v37 = vld [vmem:[%s11368_s1 + $0x1280] ss:$16 sps:$4 sm:$0xff]   ;;  %v8403_v38 = vld [vmem:[%s11368_s1 + $0x1288] ss:$16 sps:$4 sm:$0xff]  }
 0x217   :  { %5350 = vmatpush1.bf16.msra.mxu0 %v8307_v39  ;;  %5909 = vmatpush1.bf16.msra.mxu1 %v8310_v40  ;;  %v8408_v39 = vld [vmem:[%s11368_s1 + $0x12a4] ss:$16 sps:$4 sm:$0xff]   ;;  %v8411_v40 = vld [vmem:[%s11368_s1 + $0x12ac] ss:$16 sps:$4 sm:$0xff]  }
 0x218   :  { %5351 = vmatprep.subr.bf16.mxu0 %v8315_v41  ;;  %5910 = vmatprep.subr.bf16.mxu1 %v8318_v42  ;;  %v8406_v41 = vld [vmem:[%s11368_s1 + $0x12a0] ss:$16 sps:$4 sm:$0xff]   ;;  %v8409_v42 = vld [vmem:[%s11368_s1 + $0x12a8] ss:$16 sps:$4 sm:$0xff]  }
 0x21b   :  { %5352 = vmatpush1.bf16.msra.mxu0 %v8313_v43  ;;  %5911 = vmatpush1.bf16.msra.mxu1 %v8316_v44  ;;  %v8414_v43 = vld [vmem:[%s11368_s1 + $0x12c4] ss:$16 sps:$4 sm:$0xff]   ;;  %v8417_v44 = vld [vmem:[%s11368_s1 + $0x12cc] ss:$16 sps:$4 sm:$0xff]  }
 0x21c   :  { %5353 = vmatprep.subr.bf16.mxu0 %v8321_v45  ;;  %5912 = vmatprep.subr.bf16.mxu1 %v8324_v46  ;;  %v8412_v45 = vld [vmem:[%s11368_s1 + $0x12c0] ss:$16 sps:$4 sm:$0xff]   ;;  %v8415_v46 = vld [vmem:[%s11368_s1 + $0x12c8] ss:$16 sps:$4 sm:$0xff]  }
 0x21f   :  { %5354 = vmatpush1.bf16.msra.mxu0 %v8319_v47  ;;  %5913 = vmatpush1.bf16.msra.mxu1 %v8322_v48  ;;  %v8420_v47 = vld [vmem:[%s11368_s1 + $0x12e4] ss:$16 sps:$4 sm:$0xff]   ;;  %v8423_v48 = vld [vmem:[%s11368_s1 + $0x12ec] ss:$16 sps:$4 sm:$0xff]  }
 0x220   :  { %5355 = vmatprep.subr.bf16.mxu0 %v8327_v49  ;;  %5914 = vmatprep.subr.bf16.mxu1 %v8330_v50  ;;  %v8418_v49 = vld [vmem:[%s11368_s1 + $0x12e0] ss:$16 sps:$4 sm:$0xff]   ;;  %v8421_v50 = vld [vmem:[%s11368_s1 + $0x12e8] ss:$16 sps:$4 sm:$0xff]  }
 0x223   :  { %5356 = vmatpush1.bf16.msra.mxu0 %v8325_v51  ;;  %5915 = vmatpush1.bf16.msra.mxu1 %v8328_v52  ;;  %v8426_v51 = vld [vmem:[%s11368_s1 + $0x1304] ss:$16 sps:$4 sm:$0xff]   ;;  %v8429_v52 = vld [vmem:[%s11368_s1 + $0x130c] ss:$16 sps:$4 sm:$0xff]  }
 0x224   :  { %5357 = vmatprep.subr.bf16.mxu0 %v8333_v53  ;;  %5916 = vmatprep.subr.bf16.mxu1 %v8336_v54  ;;  %v8424_v53 = vld [vmem:[%s11368_s1 + $0x1300] ss:$16 sps:$4 sm:$0xff]   ;;  %v8427_v54 = vld [vmem:[%s11368_s1 + $0x1308] ss:$16 sps:$4 sm:$0xff]  }
 0x227   :  { %5358 = vmatpush1.bf16.msra.mxu0 %v8331_v55  ;;  %5917 = vmatpush1.bf16.msra.mxu1 %v8334_v56  ;;  %v8432_v55 = vld [vmem:[%s11368_s1 + $0x1324] ss:$16 sps:$4 sm:$0xff]   ;;  %v8435_v56 = vld [vmem:[%s11368_s1 + $0x132c] ss:$16 sps:$4 sm:$0xff]  }
 0x228   :  { %5359 = vmatprep.subr.bf16.mxu0 %v8339_v57  ;;  %5918 = vmatprep.subr.bf16.mxu1 %v8342_v58  ;;  %v8430_v57 = vld [vmem:[%s11368_s1 + $0x1320] ss:$16 sps:$4 sm:$0xff]   ;;  %v8433_v58 = vld [vmem:[%s11368_s1 + $0x1328] ss:$16 sps:$4 sm:$0xff]  }
 0x22b   :  { %5360 = vmatpush1.bf16.msra.mxu0 %v8337_v59  ;;  %5919 = vmatpush1.bf16.msra.mxu1 %v8340_v60  ;;  %v8438_v59 = vld [vmem:[%s11368_s1 + $0x1344] ss:$16 sps:$4 sm:$0xff]   ;;  %v8441_v60 = vld [vmem:[%s11368_s1 + $0x134c] ss:$16 sps:$4 sm:$0xff]  }
 0x22c   :  { %5361 = vmatprep.subr.bf16.mxu0 %v8345_v61  ;;  %5920 = vmatprep.subr.bf16.mxu1 %v8348_v62  ;;  %v8436_v61 = vld [vmem:[%s11368_s1 + $0x1340] ss:$16 sps:$4 sm:$0xff]   ;;  %v8439_v62 = vld [vmem:[%s11368_s1 + $0x1348] ss:$16 sps:$4 sm:$0xff]  }
 0x22f   :  { %5362 = vmatpush1.bf16.msra.mxu0 %v8343_v63  ;;  %5921 = vmatpush1.bf16.msra.mxu1 %v8346_v0  ;;  %v8444_v63 = vld [vmem:[%s11368_s1 + $0x1364] ss:$16 sps:$4 sm:$0xff]   ;;  %v8447_v0 = vld [vmem:[%s11368_s1 + $0x136c] ss:$16 sps:$4 sm:$0xff]  }
 0x230   :  { %5363 = vmatprep.subr.bf16.mxu0 %v8351_v1  ;;  %5922 = vmatprep.subr.bf16.mxu1 %v8354_v2  ;;  %v8442_v1 = vld [vmem:[%s11368_s1 + $0x1360] ss:$16 sps:$4 sm:$0xff]   ;;  %v8445_v2 = vld [vmem:[%s11368_s1 + $0x1368] ss:$16 sps:$4 sm:$0xff]  }
 0x233   :  { %5364 = vmatpush1.bf16.msra.mxu0 %v8349_v3  ;;  %5923 = vmatpush1.bf16.msra.mxu1 %v8352_v4  ;;  %v8450_v3 = vld [vmem:[%s11368_s1 + $0x1384] ss:$16 sps:$4 sm:$0xff]   ;;  %v8453_v4 = vld [vmem:[%s11368_s1 + $0x138c] ss:$16 sps:$4 sm:$0xff]  }
 0x234   :  { %5365 = vmatprep.subr.bf16.mxu0 %v8357_v5  ;;  %5924 = vmatprep.subr.bf16.mxu1 %v8360_v6  ;;  %v8448_v5 = vld [vmem:[%s11368_s1 + $0x1380] ss:$16 sps:$4 sm:$0xff]   ;;  %v8451_v6 = vld [vmem:[%s11368_s1 + $0x1388] ss:$16 sps:$4 sm:$0xff]  }
 0x237   :  { %5366 = vmatpush1.bf16.msra.mxu0 %v8355_v7  ;;  %5925 = vmatpush1.bf16.msra.mxu1 %v8358_v8  ;;  %v8456_v7 = vld [vmem:[%s11368_s1 + $0x13a4] ss:$16 sps:$4 sm:$0xff]   ;;  %v8459_v8 = vld [vmem:[%s11368_s1 + $0x13ac] ss:$16 sps:$4 sm:$0xff]  }
 0x238   :  { %5367 = vmatprep.subr.bf16.mxu0 %v8363_v9  ;;  %5926 = vmatprep.subr.bf16.mxu1 %v8366_v10  ;;  %v8454_v9 = vld [vmem:[%s11368_s1 + $0x13a0] ss:$16 sps:$4 sm:$0xff]   ;;  %v8457_v10 = vld [vmem:[%s11368_s1 + $0x13a8] ss:$16 sps:$4 sm:$0xff]  }
 0x23b   :  { %5368 = vmatpush1.bf16.msra.mxu0 %v8361_v11  ;;  %5927 = vmatpush1.bf16.msra.mxu1 %v8364_v12  ;;  %v8462_v11 = vld [vmem:[%s11368_s1 + $0x13c4] ss:$16 sps:$4 sm:$0xff]   ;;  %v8465_v12 = vld [vmem:[%s11368_s1 + $0x13cc] ss:$16 sps:$4 sm:$0xff]  }
 0x23c   :  { %5369 = vmatprep.subr.bf16.mxu0 %v8369_v13  ;;  %5928 = vmatprep.subr.bf16.mxu1 %v8372_v14  ;;  %v8460_v13 = vld [vmem:[%s11368_s1 + $0x13c0] ss:$16 sps:$4 sm:$0xff]   ;;  %v8463_v14 = vld [vmem:[%s11368_s1 + $0x13c8] ss:$16 sps:$4 sm:$0xff]  }
 0x23f   :  { %5370 = vmatpush1.bf16.msra.mxu0 %v8367_v15  ;;  %5929 = vmatpush1.bf16.msra.mxu1 %v8370_v16  ;;  %v8468_v15 = vld [vmem:[%s11368_s1 + $0x13e4] ss:$16 sps:$4 sm:$0xff]   ;;  %v8471_v16 = vld [vmem:[%s11368_s1 + $0x13ec] ss:$16 sps:$4 sm:$0xff]  }
 0x240   :  { %5382 = vmatprep.subr.bf16.mxu0 %v8378_v17  ;;  %5941 = vmatprep.subr.bf16.mxu1 %v8381_v18  ;;  %v8466_v17 = vld [vmem:[%s11368_s1 + $0x13e0] ss:$16 sps:$4 sm:$0xff]   ;;  %v8469_v18 = vld [vmem:[%s11368_s1 + $0x13e8] ss:$16 sps:$4 sm:$0xff]  }
 0x242   :  { %5372 = vmatmul.mubr.bf16.vlgmr.msra.gmra.mrb[0].mxu0 %v8373_v19  ;;  %5931 = vmatmul.mubr.bf16.vlgmr.msra.gmra.mrb[0].mxu1 %v8373_v19  ;;  %v8477_v19 = vld [vmem:[%s11368_s1 + $0x1404] ss:$16 sps:$4 sm:$0xff]  }
 0x243   :  { %5383 = vmatpush1.bf16.msra.mxu0 %v8376_v20  ;;  %5942 = vmatpush1.bf16.msra.mxu1 %v8379_v21  ;;  %v8480_v20 = vld [vmem:[%s11368_s1 + $0x140c] ss:$16 sps:$4 sm:$0xff]  }
 0x244   :  { %5384 = vmatprep.subr.bf16.mxu0 %v8384_v22  ;;  %5943 = vmatprep.subr.bf16.mxu1 %v8387_v23  ;;  %v8472_v21 = vld [vmem:[%s11369_s0 + $0x48] ss:$100 sps:$4 sm:$0xff]   ;;  %v8475_v22 = vld [vmem:[%s11368_s1 + $0x1400] ss:$16 sps:$4 sm:$0xff]  }
 0x245   :  { %5414 = vmatprep.mubr.bf16.mxu0 %v8474_v24  ;;  %5973 = vmatprep.mubr.bf16.mxu1 %v8474_v24  ;;  %v8478_v23 = vld [vmem:[%s11368_s1 + $0x1408] ss:$16 sps:$4 sm:$0xff]   ;;  %v8483_v24 = vld [vmem:[%s11368_s1 + $0x1424] ss:$16 sps:$4 sm:$0xff]  }
 0x247   :  { %5385 = vmatpush1.bf16.msra.mxu0 %v8382_v25  ;;  %5944 = vmatpush1.bf16.msra.mxu1 %v8385_v26  ;;  %v8486_v25 = vld [vmem:[%s11368_s1 + $0x142c] ss:$16 sps:$4 sm:$0xff]   ;;  %v8573_v26 = vld [vmem:[%s11369_s0 + $0x54] ss:$100 sps:$4 sm:$0xff]  }
 0x248   :  { %5386 = vmatprep.subr.bf16.mxu0 %v8390_v27  ;;  %5945 = vmatprep.subr.bf16.mxu1 %v8393_v28  ;;  %v8481_v27 = vld [vmem:[%s11368_s1 + $0x1420] ss:$16 sps:$4 sm:$0xff]   ;;  %v8484_v28 = vld [vmem:[%s11368_s1 + $0x1428] ss:$16 sps:$4 sm:$0xff]  }
 0x24b   :  { %5387 = vmatpush1.bf16.msra.mxu0 %v8388_v29  ;;  %5946 = vmatpush1.bf16.msra.mxu1 %v8391_v30  ;;  %v8489_v29 = vld [vmem:[%s11368_s1 + $0x1444] ss:$16 sps:$4 sm:$0xff]   ;;  %v8492_v30 = vld [vmem:[%s11368_s1 + $0x144c] ss:$16 sps:$4 sm:$0xff]  }
 0x24c   :  { %5388 = vmatprep.subr.bf16.mxu0 %v8396_v31  ;;  %5947 = vmatprep.subr.bf16.mxu1 %v8399_v32  ;;  %v8487_v31 = vld [vmem:[%s11368_s1 + $0x1440] ss:$16 sps:$4 sm:$0xff]   ;;  %v8490_v32 = vld [vmem:[%s11368_s1 + $0x1448] ss:$16 sps:$4 sm:$0xff]  }
 0x24f   :  { %5389 = vmatpush1.bf16.msra.mxu0 %v8394_v33  ;;  %5948 = vmatpush1.bf16.msra.mxu1 %v8397_v34  ;;  %v8495_v33 = vld [vmem:[%s11368_s1 + $0x1464] ss:$16 sps:$4 sm:$0xff]   ;;  %v8498_v34 = vld [vmem:[%s11368_s1 + $0x146c] ss:$16 sps:$4 sm:$0xff]  }
 0x250   :  { %5390 = vmatprep.subr.bf16.mxu0 %v8402_v35  ;;  %5949 = vmatprep.subr.bf16.mxu1 %v8405_v36  ;;  %v8493_v35 = vld [vmem:[%s11368_s1 + $0x1460] ss:$16 sps:$4 sm:$0xff]   ;;  %v8496_v36 = vld [vmem:[%s11368_s1 + $0x1468] ss:$16 sps:$4 sm:$0xff]  }
 0x253   :  { %5391 = vmatpush1.bf16.msra.mxu0 %v8400_v37  ;;  %5950 = vmatpush1.bf16.msra.mxu1 %v8403_v38  ;;  %v8501_v37 = vld [vmem:[%s11368_s1 + $0x1484] ss:$16 sps:$4 sm:$0xff]   ;;  %v8504_v38 = vld [vmem:[%s11368_s1 + $0x148c] ss:$16 sps:$4 sm:$0xff]  }
 0x254   :  { %5392 = vmatprep.subr.bf16.mxu0 %v8408_v39  ;;  %5951 = vmatprep.subr.bf16.mxu1 %v8411_v40  ;;  %v8499_v39 = vld [vmem:[%s11368_s1 + $0x1480] ss:$16 sps:$4 sm:$0xff]   ;;  %v8502_v40 = vld [vmem:[%s11368_s1 + $0x1488] ss:$16 sps:$4 sm:$0xff]  }
 0x257   :  { %5393 = vmatpush1.bf16.msra.mxu0 %v8406_v41  ;;  %5952 = vmatpush1.bf16.msra.mxu1 %v8409_v42  ;;  %v8507_v41 = vld [vmem:[%s11368_s1 + $0x14a4] ss:$16 sps:$4 sm:$0xff]   ;;  %v8510_v42 = vld [vmem:[%s11368_s1 + $0x14ac] ss:$16 sps:$4 sm:$0xff]  }
 0x258   :  { %5394 = vmatprep.subr.bf16.mxu0 %v8414_v43  ;;  %5953 = vmatprep.subr.bf16.mxu1 %v8417_v44  ;;  %v8505_v43 = vld [vmem:[%s11368_s1 + $0x14a0] ss:$16 sps:$4 sm:$0xff]   ;;  %v8508_v44 = vld [vmem:[%s11368_s1 + $0x14a8] ss:$16 sps:$4 sm:$0xff]  }
 0x25b   :  { %5395 = vmatpush1.bf16.msra.mxu0 %v8412_v45  ;;  %5954 = vmatpush1.bf16.msra.mxu1 %v8415_v46  ;;  %v8513_v45 = vld [vmem:[%s11368_s1 + $0x14c4] ss:$16 sps:$4 sm:$0xff]   ;;  %v8516_v46 = vld [vmem:[%s11368_s1 + $0x14cc] ss:$16 sps:$4 sm:$0xff]  }
 0x25c   :  { %5396 = vmatprep.subr.bf16.mxu0 %v8420_v47  ;;  %5955 = vmatprep.subr.bf16.mxu1 %v8423_v48  ;;  %v8511_v47 = vld [vmem:[%s11368_s1 + $0x14c0] ss:$16 sps:$4 sm:$0xff]   ;;  %v8514_v48 = vld [vmem:[%s11368_s1 + $0x14c8] ss:$16 sps:$4 sm:$0xff]  }
 0x25f   :  { %5397 = vmatpush1.bf16.msra.mxu0 %v8418_v49  ;;  %5956 = vmatpush1.bf16.msra.mxu1 %v8421_v50  ;;  %v8519_v49 = vld [vmem:[%s11368_s1 + $0x14e4] ss:$16 sps:$4 sm:$0xff]   ;;  %v8522_v50 = vld [vmem:[%s11368_s1 + $0x14ec] ss:$16 sps:$4 sm:$0xff]  }
 0x260   :  { %5398 = vmatprep.subr.bf16.mxu0 %v8426_v51  ;;  %5957 = vmatprep.subr.bf16.mxu1 %v8429_v52  ;;  %v8517_v51 = vld [vmem:[%s11368_s1 + $0x14e0] ss:$16 sps:$4 sm:$0xff]   ;;  %v8520_v52 = vld [vmem:[%s11368_s1 + $0x14e8] ss:$16 sps:$4 sm:$0xff]  }
 0x263   :  { %5399 = vmatpush1.bf16.msra.mxu0 %v8424_v53  ;;  %5958 = vmatpush1.bf16.msra.mxu1 %v8427_v54  ;;  %v8525_v53 = vld [vmem:[%s11368_s1 + $0x1504] ss:$16 sps:$4 sm:$0xff]   ;;  %v8528_v54 = vld [vmem:[%s11368_s1 + $0x150c] ss:$16 sps:$4 sm:$0xff]  }
 0x264   :  { %5400 = vmatprep.subr.bf16.mxu0 %v8432_v55  ;;  %5959 = vmatprep.subr.bf16.mxu1 %v8435_v56  ;;  %v8523_v55 = vld [vmem:[%s11368_s1 + $0x1500] ss:$16 sps:$4 sm:$0xff]   ;;  %v8526_v56 = vld [vmem:[%s11368_s1 + $0x1508] ss:$16 sps:$4 sm:$0xff]  }
 0x267   :  { %5401 = vmatpush1.bf16.msra.mxu0 %v8430_v57  ;;  %5960 = vmatpush1.bf16.msra.mxu1 %v8433_v58  ;;  %v8531_v57 = vld [vmem:[%s11368_s1 + $0x1524] ss:$16 sps:$4 sm:$0xff]   ;;  %v8534_v58 = vld [vmem:[%s11368_s1 + $0x152c] ss:$16 sps:$4 sm:$0xff]  }
 0x268   :  { %5402 = vmatprep.subr.bf16.mxu0 %v8438_v59  ;;  %5961 = vmatprep.subr.bf16.mxu1 %v8441_v60  ;;  %v8529_v59 = vld [vmem:[%s11368_s1 + $0x1520] ss:$16 sps:$4 sm:$0xff]   ;;  %v8532_v60 = vld [vmem:[%s11368_s1 + $0x1528] ss:$16 sps:$4 sm:$0xff]  }
 0x26b   :  { %5403 = vmatpush1.bf16.msra.mxu0 %v8436_v61  ;;  %5962 = vmatpush1.bf16.msra.mxu1 %v8439_v62  ;;  %v8537_v61 = vld [vmem:[%s11368_s1 + $0x1544] ss:$16 sps:$4 sm:$0xff]   ;;  %v8540_v62 = vld [vmem:[%s11368_s1 + $0x154c] ss:$16 sps:$4 sm:$0xff]  }
 0x26c   :  { %5404 = vmatprep.subr.bf16.mxu0 %v8444_v63  ;;  %5963 = vmatprep.subr.bf16.mxu1 %v8447_v0  ;;  %v8535_v63 = vld [vmem:[%s11368_s1 + $0x1540] ss:$16 sps:$4 sm:$0xff]   ;;  %v8538_v0 = vld [vmem:[%s11368_s1 + $0x1548] ss:$16 sps:$4 sm:$0xff]  }
 0x26f   :  { %5405 = vmatpush1.bf16.msra.mxu0 %v8442_v1  ;;  %5964 = vmatpush1.bf16.msra.mxu1 %v8445_v2  ;;  %v8543_v1 = vld [vmem:[%s11368_s1 + $0x1564] ss:$16 sps:$4 sm:$0xff]   ;;  %v8546_v2 = vld [vmem:[%s11368_s1 + $0x156c] ss:$16 sps:$4 sm:$0xff]  }
 0x270   :  { %5406 = vmatprep.subr.bf16.mxu0 %v8450_v3  ;;  %5965 = vmatprep.subr.bf16.mxu1 %v8453_v4  ;;  %v8541_v3 = vld [vmem:[%s11368_s1 + $0x1560] ss:$16 sps:$4 sm:$0xff]   ;;  %v8544_v4 = vld [vmem:[%s11368_s1 + $0x1568] ss:$16 sps:$4 sm:$0xff]  }
 0x273   :  { %5407 = vmatpush1.bf16.msra.mxu0 %v8448_v5  ;;  %5966 = vmatpush1.bf16.msra.mxu1 %v8451_v6  ;;  %v8549_v5 = vld [vmem:[%s11368_s1 + $0x1584] ss:$16 sps:$4 sm:$0xff]   ;;  %v8552_v6 = vld [vmem:[%s11368_s1 + $0x158c] ss:$16 sps:$4 sm:$0xff]  }
 0x274   :  { %5408 = vmatprep.subr.bf16.mxu0 %v8456_v7  ;;  %5967 = vmatprep.subr.bf16.mxu1 %v8459_v8  ;;  %v8547_v7 = vld [vmem:[%s11368_s1 + $0x1580] ss:$16 sps:$4 sm:$0xff]   ;;  %v8550_v8 = vld [vmem:[%s11368_s1 + $0x1588] ss:$16 sps:$4 sm:$0xff]  }
 0x277   :  { %5409 = vmatpush1.bf16.msra.mxu0 %v8454_v9  ;;  %5968 = vmatpush1.bf16.msra.mxu1 %v8457_v10  ;;  %v8555_v9 = vld [vmem:[%s11368_s1 + $0x15a4] ss:$16 sps:$4 sm:$0xff]   ;;  %v8558_v10 = vld [vmem:[%s11368_s1 + $0x15ac] ss:$16 sps:$4 sm:$0xff]  }
 0x278   :  { %5410 = vmatprep.subr.bf16.mxu0 %v8462_v11  ;;  %5969 = vmatprep.subr.bf16.mxu1 %v8465_v12  ;;  %v8553_v11 = vld [vmem:[%s11368_s1 + $0x15a0] ss:$16 sps:$4 sm:$0xff]   ;;  %v8556_v12 = vld [vmem:[%s11368_s1 + $0x15a8] ss:$16 sps:$4 sm:$0xff]  }
 0x27b   :  { %5411 = vmatpush1.bf16.msra.mxu0 %v8460_v13  ;;  %5970 = vmatpush1.bf16.msra.mxu1 %v8463_v14  ;;  %v8561_v13 = vld [vmem:[%s11368_s1 + $0x15c4] ss:$16 sps:$4 sm:$0xff]   ;;  %v8564_v14 = vld [vmem:[%s11368_s1 + $0x15cc] ss:$16 sps:$4 sm:$0xff]  }
 0x27c   :  { %5412 = vmatprep.subr.bf16.mxu0 %v8468_v15  ;;  %5971 = vmatprep.subr.bf16.mxu1 %v8471_v16  ;;  %v8559_v15 = vld [vmem:[%s11368_s1 + $0x15c0] ss:$16 sps:$4 sm:$0xff]   ;;  %v8562_v16 = vld [vmem:[%s11368_s1 + $0x15c8] ss:$16 sps:$4 sm:$0xff]  }
 0x27f   :  { %5413 = vmatpush1.bf16.msra.mxu0 %v8466_v17  ;;  %5972 = vmatpush1.bf16.msra.mxu1 %v8469_v18  ;;  %v8567_v17 = vld [vmem:[%s11368_s1 + $0x15e4] ss:$16 sps:$4 sm:$0xff]   ;;  %v8570_v18 = vld [vmem:[%s11368_s1 + $0x15ec] ss:$16 sps:$4 sm:$0xff]  }
 0x280   :  { %5425 = vmatprep.subr.bf16.mxu0 %v8477_v19  ;;  %5984 = vmatprep.subr.bf16.mxu1 %v8480_v20  ;;  %v8565_v19 = vld [vmem:[%s11368_s1 + $0x15e0] ss:$16 sps:$4 sm:$0xff]   ;;  %v8568_v20 = vld [vmem:[%s11368_s1 + $0x15e8] ss:$16 sps:$4 sm:$0xff]  }
 0x282   :  { %5415 = vmatmul.mubr.bf16.vlgmr.msra.gmra.mrb[0].mxu0 %v8472_v21  ;;  %5974 = vmatmul.mubr.bf16.vlgmr.msra.gmra.mrb[0].mxu1 %v8472_v21  ;;  %v8576_v21 = vld [vmem:[%s11368_s1 + $0x1604] ss:$16 sps:$4 sm:$0xff]  }
 0x283   :  { %5426 = vmatpush1.bf16.msra.mxu0 %v8475_v22  ;;  %5985 = vmatpush1.bf16.msra.mxu1 %v8478_v23  ;;  %v8579_v22 = vld [vmem:[%s11368_s1 + $0x160c] ss:$16 sps:$4 sm:$0xff]   ;;  %v8571_v23 = vld [vmem:[%s11369_s0 + $0x50] ss:$100 sps:$4 sm:$0xff]  }
 0x284   :  { %5427 = vmatprep.subr.bf16.mxu0 %v8483_v24  ;;  %5986 = vmatprep.subr.bf16.mxu1 %v8486_v25  ;;  %v8574_v24 = vld [vmem:[%s11368_s1 + $0x1600] ss:$16 sps:$4 sm:$0xff]   ;;  %v8577_v25 = vld [vmem:[%s11368_s1 + $0x1608] ss:$16 sps:$4 sm:$0xff]  }
 0x285   :  { %5457 = vmatprep.mubr.bf16.mxu0 %v8573_v26  ;;  %6016 = vmatprep.mubr.bf16.mxu1 %v8573_v26  ;;  %v8582_v26 = vld [vmem:[%s11368_s1 + $0x1624] ss:$16 sps:$4 sm:$0xff]  }
 0x287   :  { %5428 = vmatpush1.bf16.msra.mxu0 %v8481_v27  ;;  %5987 = vmatpush1.bf16.msra.mxu1 %v8484_v28  ;;  %v8585_v27 = vld [vmem:[%s11368_s1 + $0x162c] ss:$16 sps:$4 sm:$0xff]  }
 0x288   :  { %5429 = vmatprep.subr.bf16.mxu0 %v8489_v29  ;;  %5988 = vmatprep.subr.bf16.mxu1 %v8492_v30  ;;  %v8672_v28 = vld [vmem:[%s11369_s0 + $0x5c] ss:$100 sps:$4 sm:$0xff]   ;;  %v8583_v30 = vld [vmem:[%s11368_s1 + $0x1628] ss:$16 sps:$4 sm:$0xff]  }
 0x289   :  { %v8580_v29 = vld [vmem:[%s11368_s1 + $0x1620] ss:$16 sps:$4 sm:$0xff]  }
 0x28b   :  { %5430 = vmatpush1.bf16.msra.mxu0 %v8487_v31  ;;  %5989 = vmatpush1.bf16.msra.mxu1 %v8490_v32  ;;  %v8588_v31 = vld [vmem:[%s11368_s1 + $0x1644] ss:$16 sps:$4 sm:$0xff]   ;;  %v8591_v32 = vld [vmem:[%s11368_s1 + $0x164c] ss:$16 sps:$4 sm:$0xff]  }
 0x28c   :  { %5431 = vmatprep.subr.bf16.mxu0 %v8495_v33  ;;  %5990 = vmatprep.subr.bf16.mxu1 %v8498_v34  ;;  %v8586_v33 = vld [vmem:[%s11368_s1 + $0x1640] ss:$16 sps:$4 sm:$0xff]   ;;  %v8589_v34 = vld [vmem:[%s11368_s1 + $0x1648] ss:$16 sps:$4 sm:$0xff]  }
 0x28f   :  { %5432 = vmatpush1.bf16.msra.mxu0 %v8493_v35  ;;  %5991 = vmatpush1.bf16.msra.mxu1 %v8496_v36  ;;  %v8594_v35 = vld [vmem:[%s11368_s1 + $0x1664] ss:$16 sps:$4 sm:$0xff]   ;;  %v8597_v36 = vld [vmem:[%s11368_s1 + $0x166c] ss:$16 sps:$4 sm:$0xff]  }
 0x290   :  { %5433 = vmatprep.subr.bf16.mxu0 %v8501_v37  ;;  %5992 = vmatprep.subr.bf16.mxu1 %v8504_v38  ;;  %v8592_v37 = vld [vmem:[%s11368_s1 + $0x1660] ss:$16 sps:$4 sm:$0xff]   ;;  %v8595_v38 = vld [vmem:[%s11368_s1 + $0x1668] ss:$16 sps:$4 sm:$0xff]  }
 0x293   :  { %5434 = vmatpush1.bf16.msra.mxu0 %v8499_v39  ;;  %5993 = vmatpush1.bf16.msra.mxu1 %v8502_v40  ;;  %v8600_v39 = vld [vmem:[%s11368_s1 + $0x1684] ss:$16 sps:$4 sm:$0xff]   ;;  %v8603_v40 = vld [vmem:[%s11368_s1 + $0x168c] ss:$16 sps:$4 sm:$0xff]  }
 0x294   :  { %5435 = vmatprep.subr.bf16.mxu0 %v8507_v41  ;;  %5994 = vmatprep.subr.bf16.mxu1 %v8510_v42  ;;  %v8598_v41 = vld [vmem:[%s11368_s1 + $0x1680] ss:$16 sps:$4 sm:$0xff]   ;;  %v8601_v42 = vld [vmem:[%s11368_s1 + $0x1688] ss:$16 sps:$4 sm:$0xff]  }
 0x297   :  { %5436 = vmatpush1.bf16.msra.mxu0 %v8505_v43  ;;  %5995 = vmatpush1.bf16.msra.mxu1 %v8508_v44  ;;  %v8606_v43 = vld [vmem:[%s11368_s1 + $0x16a4] ss:$16 sps:$4 sm:$0xff]   ;;  %v8609_v44 = vld [vmem:[%s11368_s1 + $0x16ac] ss:$16 sps:$4 sm:$0xff]  }
 0x298   :  { %5437 = vmatprep.subr.bf16.mxu0 %v8513_v45  ;;  %5996 = vmatprep.subr.bf16.mxu1 %v8516_v46  ;;  %v8604_v45 = vld [vmem:[%s11368_s1 + $0x16a0] ss:$16 sps:$4 sm:$0xff]   ;;  %v8607_v46 = vld [vmem:[%s11368_s1 + $0x16a8] ss:$16 sps:$4 sm:$0xff]  }
 0x29b   :  { %5438 = vmatpush1.bf16.msra.mxu0 %v8511_v47  ;;  %5997 = vmatpush1.bf16.msra.mxu1 %v8514_v48  ;;  %v8612_v47 = vld [vmem:[%s11368_s1 + $0x16c4] ss:$16 sps:$4 sm:$0xff]   ;;  %v8615_v48 = vld [vmem:[%s11368_s1 + $0x16cc] ss:$16 sps:$4 sm:$0xff]  }
 0x29c   :  { %5439 = vmatprep.subr.bf16.mxu0 %v8519_v49  ;;  %5998 = vmatprep.subr.bf16.mxu1 %v8522_v50  ;;  %v8610_v49 = vld [vmem:[%s11368_s1 + $0x16c0] ss:$16 sps:$4 sm:$0xff]   ;;  %v8613_v50 = vld [vmem:[%s11368_s1 + $0x16c8] ss:$16 sps:$4 sm:$0xff]  }
 0x29f   :  { %5440 = vmatpush1.bf16.msra.mxu0 %v8517_v51  ;;  %5999 = vmatpush1.bf16.msra.mxu1 %v8520_v52  ;;  %v8618_v51 = vld [vmem:[%s11368_s1 + $0x16e4] ss:$16 sps:$4 sm:$0xff]   ;;  %v8621_v52 = vld [vmem:[%s11368_s1 + $0x16ec] ss:$16 sps:$4 sm:$0xff]  }
 0x2a0   :  { %5441 = vmatprep.subr.bf16.mxu0 %v8525_v53  ;;  %6000 = vmatprep.subr.bf16.mxu1 %v8528_v54  ;;  %v8616_v53 = vld [vmem:[%s11368_s1 + $0x16e0] ss:$16 sps:$4 sm:$0xff]   ;;  %v8619_v54 = vld [vmem:[%s11368_s1 + $0x16e8] ss:$16 sps:$4 sm:$0xff]  }
 0x2a3   :  { %5442 = vmatpush1.bf16.msra.mxu0 %v8523_v55  ;;  %6001 = vmatpush1.bf16.msra.mxu1 %v8526_v56  ;;  %v8624_v55 = vld [vmem:[%s11368_s1 + $0x1704] ss:$16 sps:$4 sm:$0xff]   ;;  %v8627_v56 = vld [vmem:[%s11368_s1 + $0x170c] ss:$16 sps:$4 sm:$0xff]  }
 0x2a4   :  { %5443 = vmatprep.subr.bf16.mxu0 %v8531_v57  ;;  %6002 = vmatprep.subr.bf16.mxu1 %v8534_v58  ;;  %v8622_v57 = vld [vmem:[%s11368_s1 + $0x1700] ss:$16 sps:$4 sm:$0xff]   ;;  %v8625_v58 = vld [vmem:[%s11368_s1 + $0x1708] ss:$16 sps:$4 sm:$0xff]  }
 0x2a7   :  { %5444 = vmatpush1.bf16.msra.mxu0 %v8529_v59  ;;  %6003 = vmatpush1.bf16.msra.mxu1 %v8532_v60  ;;  %v8630_v59 = vld [vmem:[%s11368_s1 + $0x1724] ss:$16 sps:$4 sm:$0xff]   ;;  %v8633_v60 = vld [vmem:[%s11368_s1 + $0x172c] ss:$16 sps:$4 sm:$0xff]  }
 0x2a8   :  { %5445 = vmatprep.subr.bf16.mxu0 %v8537_v61  ;;  %6004 = vmatprep.subr.bf16.mxu1 %v8540_v62  ;;  %v8628_v61 = vld [vmem:[%s11368_s1 + $0x1720] ss:$16 sps:$4 sm:$0xff]   ;;  %v8631_v62 = vld [vmem:[%s11368_s1 + $0x1728] ss:$16 sps:$4 sm:$0xff]  }
 0x2ab   :  { %5446 = vmatpush1.bf16.msra.mxu0 %v8535_v63  ;;  %6005 = vmatpush1.bf16.msra.mxu1 %v8538_v0  ;;  %v8636_v63 = vld [vmem:[%s11368_s1 + $0x1744] ss:$16 sps:$4 sm:$0xff]   ;;  %v8639_v0 = vld [vmem:[%s11368_s1 + $0x174c] ss:$16 sps:$4 sm:$0xff]  }
 0x2ac   :  { %5447 = vmatprep.subr.bf16.mxu0 %v8543_v1  ;;  %6006 = vmatprep.subr.bf16.mxu1 %v8546_v2  ;;  %v8634_v1 = vld [vmem:[%s11368_s1 + $0x1740] ss:$16 sps:$4 sm:$0xff]   ;;  %v8637_v2 = vld [vmem:[%s11368_s1 + $0x1748] ss:$16 sps:$4 sm:$0xff]  }
 0x2af   :  { %5448 = vmatpush1.bf16.msra.mxu0 %v8541_v3  ;;  %6007 = vmatpush1.bf16.msra.mxu1 %v8544_v4  ;;  %v8642_v3 = vld [vmem:[%s11368_s1 + $0x1764] ss:$16 sps:$4 sm:$0xff]   ;;  %v8645_v4 = vld [vmem:[%s11368_s1 + $0x176c] ss:$16 sps:$4 sm:$0xff]  }
 0x2b0   :  { %5449 = vmatprep.subr.bf16.mxu0 %v8549_v5  ;;  %6008 = vmatprep.subr.bf16.mxu1 %v8552_v6  ;;  %v8640_v5 = vld [vmem:[%s11368_s1 + $0x1760] ss:$16 sps:$4 sm:$0xff]   ;;  %v8643_v6 = vld [vmem:[%s11368_s1 + $0x1768] ss:$16 sps:$4 sm:$0xff]  }
 0x2b3   :  { %5450 = vmatpush1.bf16.msra.mxu0 %v8547_v7  ;;  %6009 = vmatpush1.bf16.msra.mxu1 %v8550_v8  ;;  %v8648_v7 = vld [vmem:[%s11368_s1 + $0x1784] ss:$16 sps:$4 sm:$0xff]   ;;  %v8651_v8 = vld [vmem:[%s11368_s1 + $0x178c] ss:$16 sps:$4 sm:$0xff]  }
 0x2b4   :  { %5451 = vmatprep.subr.bf16.mxu0 %v8555_v9  ;;  %6010 = vmatprep.subr.bf16.mxu1 %v8558_v10  ;;  %v8646_v9 = vld [vmem:[%s11368_s1 + $0x1780] ss:$16 sps:$4 sm:$0xff]   ;;  %v8649_v10 = vld [vmem:[%s11368_s1 + $0x1788] ss:$16 sps:$4 sm:$0xff]  }
 0x2b7   :  { %5452 = vmatpush1.bf16.msra.mxu0 %v8553_v11  ;;  %6011 = vmatpush1.bf16.msra.mxu1 %v8556_v12  ;;  %v8654_v11 = vld [vmem:[%s11368_s1 + $0x17a4] ss:$16 sps:$4 sm:$0xff]   ;;  %v8657_v12 = vld [vmem:[%s11368_s1 + $0x17ac] ss:$16 sps:$4 sm:$0xff]  }
 0x2b8   :  { %5453 = vmatprep.subr.bf16.mxu0 %v8561_v13  ;;  %6012 = vmatprep.subr.bf16.mxu1 %v8564_v14  ;;  %v8652_v13 = vld [vmem:[%s11368_s1 + $0x17a0] ss:$16 sps:$4 sm:$0xff]   ;;  %v8655_v14 = vld [vmem:[%s11368_s1 + $0x17a8] ss:$16 sps:$4 sm:$0xff]  }
 0x2bb   :  { %5454 = vmatpush1.bf16.msra.mxu0 %v8559_v15  ;;  %6013 = vmatpush1.bf16.msra.mxu1 %v8562_v16  ;;  %v8660_v15 = vld [vmem:[%s11368_s1 + $0x17c4] ss:$16 sps:$4 sm:$0xff]   ;;  %v8663_v16 = vld [vmem:[%s11368_s1 + $0x17cc] ss:$16 sps:$4 sm:$0xff]  }
 0x2bc   :  { %5455 = vmatprep.subr.bf16.mxu0 %v8567_v17  ;;  %6014 = vmatprep.subr.bf16.mxu1 %v8570_v18  ;;  %v8658_v17 = vld [vmem:[%s11368_s1 + $0x17c0] ss:$16 sps:$4 sm:$0xff]   ;;  %v8661_v18 = vld [vmem:[%s11368_s1 + $0x17c8] ss:$16 sps:$4 sm:$0xff]  }
 0x2bf   :  { %5456 = vmatpush1.bf16.msra.mxu0 %v8565_v19  ;;  %6015 = vmatpush1.bf16.msra.mxu1 %v8568_v20  ;;  %v8666_v19 = vld [vmem:[%s11368_s1 + $0x17e4] ss:$16 sps:$4 sm:$0xff]   ;;  %v8669_v20 = vld [vmem:[%s11368_s1 + $0x17ec] ss:$16 sps:$4 sm:$0xff]  }
 0x2c0   :  { %5468 = vmatprep.subr.bf16.mxu0 %v8576_v21  ;;  %6027 = vmatprep.subr.bf16.mxu1 %v8579_v22  ;;  %v8664_v21 = vld [vmem:[%s11368_s1 + $0x17e0] ss:$16 sps:$4 sm:$0xff]   ;;  %v8667_v22 = vld [vmem:[%s11368_s1 + $0x17e8] ss:$16 sps:$4 sm:$0xff]  }
 0x2c2   :  { %5458 = vmatmul.mubr.bf16.vlgmr.msra.gmra.mrb[0].mxu0 %v8571_v23  ;;  %6017 = vmatmul.mubr.bf16.vlgmr.msra.gmra.mrb[0].mxu1 %v8571_v23  ;;  %v8675_v23 = vld [vmem:[%s11368_s1 + $0x1804] ss:$16 sps:$4 sm:$0xff]  }
 0x2c3   :  { %5469 = vmatpush1.bf16.msra.mxu0 %v8574_v24  ;;  %6028 = vmatpush1.bf16.msra.mxu1 %v8577_v25  ;;  %v8678_v24 = vld [vmem:[%s11368_s1 + $0x180c] ss:$16 sps:$4 sm:$0xff]  }
 0x2c4   :  { %5470 = vmatprep.subr.bf16.mxu0 %v8582_v26  ;;  %6029 = vmatprep.subr.bf16.mxu1 %v8585_v27  ;;  %v8670_v25 = vld [vmem:[%s11369_s0 + $0x58] ss:$100 sps:$4 sm:$0xff]   ;;  %v8673_v26 = vld [vmem:[%s11368_s1 + $0x1800] ss:$16 sps:$4 sm:$0xff]  }
 0x2c5   :  { %5500 = vmatprep.mubr.bf16.mxu0 %v8672_v28  ;;  %6059 = vmatprep.mubr.bf16.mxu1 %v8672_v28  ;;  %v8676_v27 = vld [vmem:[%s11368_s1 + $0x1808] ss:$16 sps:$4 sm:$0xff]   ;;  %v8681_v28 = vld [vmem:[%s11368_s1 + $0x1824] ss:$16 sps:$4 sm:$0xff]  }
 0x2c7   :  { %5471 = vmatpush1.bf16.msra.mxu0 %v8580_v29  ;;  %6030 = vmatpush1.bf16.msra.mxu1 %v8583_v30  ;;  %v8684_v29 = vld [vmem:[%s11368_s1 + $0x182c] ss:$16 sps:$4 sm:$0xff]   ;;  %v8679_v30 = vld [vmem:[%s11368_s1 + $0x1820] ss:$16 sps:$4 sm:$0xff]  }
 0x2c8   :  { %5472 = vmatprep.subr.bf16.mxu0 %v8588_v31  ;;  %6031 = vmatprep.subr.bf16.mxu1 %v8591_v32  ;;  %v8682_v31 = vld [vmem:[%s11368_s1 + $0x1828] ss:$16 sps:$4 sm:$0xff]   ;;  %v8687_v32 = vld [vmem:[%s11368_s1 + $0x1844] ss:$16 sps:$4 sm:$0xff]  }
 0x2cb   :  { %5473 = vmatpush1.bf16.msra.mxu0 %v8586_v33  ;;  %6032 = vmatpush1.bf16.msra.mxu1 %v8589_v34  ;;  %v8690_v33 = vld [vmem:[%s11368_s1 + $0x184c] ss:$16 sps:$4 sm:$0xff]   ;;  %v8754_v34 = vmov 0  }
 0x2cc   :  { %5474 = vmatprep.subr.bf16.mxu0 %v8594_v35  ;;  %6033 = vmatprep.subr.bf16.mxu1 %v8597_v36  ;;  %v8685_v35 = vld [vmem:[%s11368_s1 + $0x1840] ss:$16 sps:$4 sm:$0xff]   ;;  %v8688_v36 = vld [vmem:[%s11368_s1 + $0x1848] ss:$16 sps:$4 sm:$0xff]  }
 0x2cf   :  { %5475 = vmatpush1.bf16.msra.mxu0 %v8592_v37  ;;  %6034 = vmatpush1.bf16.msra.mxu1 %v8595_v38  ;;  %v8693_v37 = vld [vmem:[%s11368_s1 + $0x1864] ss:$16 sps:$4 sm:$0xff]   ;;  %v8696_v38 = vld [vmem:[%s11368_s1 + $0x186c] ss:$16 sps:$4 sm:$0xff]  }
 0x2d0   :  { %5476 = vmatprep.subr.bf16.mxu0 %v8600_v39  ;;  %6035 = vmatprep.subr.bf16.mxu1 %v8603_v40  ;;  %v8691_v39 = vld [vmem:[%s11368_s1 + $0x1860] ss:$16 sps:$4 sm:$0xff]   ;;  %v8694_v40 = vld [vmem:[%s11368_s1 + $0x1868] ss:$16 sps:$4 sm:$0xff]  }
 0x2d3   :  { %5477 = vmatpush1.bf16.msra.mxu0 %v8598_v41  ;;  %6036 = vmatpush1.bf16.msra.mxu1 %v8601_v42  ;;  %v8699_v41 = vld [vmem:[%s11368_s1 + $0x1884] ss:$16 sps:$4 sm:$0xff]   ;;  %v8702_v42 = vld [vmem:[%s11368_s1 + $0x188c] ss:$16 sps:$4 sm:$0xff]  }
 0x2d4   :  { %5478 = vmatprep.subr.bf16.mxu0 %v8606_v43  ;;  %6037 = vmatprep.subr.bf16.mxu1 %v8609_v44  ;;  %v8697_v43 = vld [vmem:[%s11368_s1 + $0x1880] ss:$16 sps:$4 sm:$0xff]   ;;  %v8700_v44 = vld [vmem:[%s11368_s1 + $0x1888] ss:$16 sps:$4 sm:$0xff]  }
 0x2d7   :  { %5479 = vmatpush1.bf16.msra.mxu0 %v8604_v45  ;;  %6038 = vmatpush1.bf16.msra.mxu1 %v8607_v46  ;;  %v8705_v45 = vld [vmem:[%s11368_s1 + $0x18a4] ss:$16 sps:$4 sm:$0xff]   ;;  %v8708_v46 = vld [vmem:[%s11368_s1 + $0x18ac] ss:$16 sps:$4 sm:$0xff]  }
 0x2d8   :  { %5480 = vmatprep.subr.bf16.mxu0 %v8612_v47  ;;  %6039 = vmatprep.subr.bf16.mxu1 %v8615_v48  ;;  %v8703_v47 = vld [vmem:[%s11368_s1 + $0x18a0] ss:$16 sps:$4 sm:$0xff]   ;;  %v8706_v48 = vld [vmem:[%s11368_s1 + $0x18a8] ss:$16 sps:$4 sm:$0xff]  }
 0x2db   :  { %5481 = vmatpush1.bf16.msra.mxu0 %v8610_v49  ;;  %6040 = vmatpush1.bf16.msra.mxu1 %v8613_v50  ;;  %v8711_v49 = vld [vmem:[%s11368_s1 + $0x18c4] ss:$16 sps:$4 sm:$0xff]   ;;  %v8714_v50 = vld [vmem:[%s11368_s1 + $0x18cc] ss:$16 sps:$4 sm:$0xff]  }
 0x2dc   :  { %5482 = vmatprep.subr.bf16.mxu0 %v8618_v51  ;;  %6041 = vmatprep.subr.bf16.mxu1 %v8621_v52  ;;  %v8709_v51 = vld [vmem:[%s11368_s1 + $0x18c0] ss:$16 sps:$4 sm:$0xff]   ;;  %v8712_v52 = vld [vmem:[%s11368_s1 + $0x18c8] ss:$16 sps:$4 sm:$0xff]  }
 0x2df   :  { %5483 = vmatpush1.bf16.msra.mxu0 %v8616_v53  ;;  %6042 = vmatpush1.bf16.msra.mxu1 %v8619_v54  ;;  %v8717_v53 = vld [vmem:[%s11368_s1 + $0x18e4] ss:$16 sps:$4 sm:$0xff]   ;;  %v8720_v54 = vld [vmem:[%s11368_s1 + $0x18ec] ss:$16 sps:$4 sm:$0xff]  }
 0x2e0   :  { %5484 = vmatprep.subr.bf16.mxu0 %v8624_v55  ;;  %6043 = vmatprep.subr.bf16.mxu1 %v8627_v56  ;;  %v8715_v55 = vld [vmem:[%s11368_s1 + $0x18e0] ss:$16 sps:$4 sm:$0xff]   ;;  %v8718_v56 = vld [vmem:[%s11368_s1 + $0x18e8] ss:$16 sps:$4 sm:$0xff]  }
 0x2e3   :  { %5485 = vmatpush1.bf16.msra.mxu0 %v8622_v57  ;;  %6044 = vmatpush1.bf16.msra.mxu1 %v8625_v58  ;;  %v8722_v57 = vld [vmem:[%s11370_s3 + $0x40] sm:$0xff]  }
 0x2e4   :  { %5486 = vmatprep.subr.bf16.mxu0 %v8630_v59  ;;  %6045 = vmatprep.subr.bf16.mxu1 %v8633_v60  ;;  %v8723_v58 = vld [vmem:[%s11370_s3 + $0xc0] sm:$0xff]  }
 0x2e5   :  { %v8721_v59 = vld [vmem:[%s11369_s0 + $0x60] ss:$100 sps:$4 sm:$0xff]  }
 0x2e6   :  { %v8724_v60 = vld [vmem:[%s11370_s3] sm:$0xff]  }
 0x2e7   :  { %5487 = vmatpush1.bf16.msra.mxu0 %v8628_v61  ;;  %6046 = vmatpush1.bf16.msra.mxu1 %v8631_v62  ;;  %v8725_v61 = vld [vmem:[%s11370_s3 + $0x80] sm:$0xff]   ;;  %v8726_v62 = vld [vmem:[%s11370_s3 + $0x48] sm:$0xff]  }
 0x2e8   :  { %5488 = vmatprep.subr.bf16.mxu0 %v8636_v63  ;;  %6047 = vmatprep.subr.bf16.mxu1 %v8639_v0  ;;  %v8727_v63 = vld [vmem:[%s11370_s3 + $0xc8] sm:$0xff]  }
 0x2e9   :  { %v8728_v0 = vld [vmem:[%s11370_s3 + $0x8] sm:$0xff]  }
 0x2eb   :  { %5489 = vmatpush1.bf16.msra.mxu0 %v8634_v1  ;;  %6048 = vmatpush1.bf16.msra.mxu1 %v8637_v2  ;;  %v8729_v1 = vld [vmem:[%s11370_s3 + $0x88] sm:$0xff]   ;;  %v8730_v2 = vld [vmem:[%s11370_s3 + $0x50] sm:$0xff]  }
 0x2ec   :  { %5490 = vmatprep.subr.bf16.mxu0 %v8642_v3  ;;  %6049 = vmatprep.subr.bf16.mxu1 %v8645_v4  ;;  %v8731_v3 = vld [vmem:[%s11370_s3 + $0xd0] sm:$0xff]  }
 0x2ed   :  { %v8732_v4 = vld [vmem:[%s11370_s3 + $0x10] sm:$0xff]  }
 0x2ef   :  { %5491 = vmatpush1.bf16.msra.mxu0 %v8640_v5  ;;  %6050 = vmatpush1.bf16.msra.mxu1 %v8643_v6  ;;  %v8733_v5 = vld [vmem:[%s11370_s3 + $0x90] sm:$0xff]   ;;  %v8734_v6 = vld [vmem:[%s11370_s3 + $0x58] sm:$0xff]  }
 0x2f0   :  { %5492 = vmatprep.subr.bf16.mxu0 %v8648_v7  ;;  %6051 = vmatprep.subr.bf16.mxu1 %v8651_v8  ;;  %v8735_v7 = vld [vmem:[%s11370_s3 + $0xd8] sm:$0xff]  }
 0x2f1   :  { %v8736_v8 = vld [vmem:[%s11370_s3 + $0x18] sm:$0xff]  }
 0x2f3   :  { %5493 = vmatpush1.bf16.msra.mxu0 %v8646_v9  ;;  %6052 = vmatpush1.bf16.msra.mxu1 %v8649_v10  ;;  %v8737_v9 = vld [vmem:[%s11370_s3 + $0x98] sm:$0xff]   ;;  %v8738_v10 = vld [vmem:[%s11370_s3 + $0x60] sm:$0xff]  }
 0x2f4   :  { %5494 = vmatprep.subr.bf16.mxu0 %v8654_v11  ;;  %6053 = vmatprep.subr.bf16.mxu1 %v8657_v12  ;;  %v8739_v11 = vld [vmem:[%s11370_s3 + $0xe0] sm:$0xff]  }
 0x2f5   :  { %v8740_v12 = vld [vmem:[%s11370_s3 + $0x20] sm:$0xff]  }
 0x2f7   :  { %5495 = vmatpush1.bf16.msra.mxu0 %v8652_v13  ;;  %6054 = vmatpush1.bf16.msra.mxu1 %v8655_v14  ;;  %v8741_v13 = vld [vmem:[%s11370_s3 + $0xa0] sm:$0xff]   ;;  %v8742_v14 = vld [vmem:[%s11370_s3 + $0x68] sm:$0xff]  }
 0x2f8   :  { %5496 = vmatprep.subr.bf16.mxu0 %v8660_v15  ;;  %6055 = vmatprep.subr.bf16.mxu1 %v8663_v16  ;;  %v8743_v15 = vld [vmem:[%s11370_s3 + $0xe8] sm:$0xff]  }
 0x2f9   :  { %v8744_v16 = vld [vmem:[%s11370_s3 + $0x28] sm:$0xff]  }
 0x2fb   :  { %5497 = vmatpush1.bf16.msra.mxu0 %v8658_v17  ;;  %6056 = vmatpush1.bf16.msra.mxu1 %v8661_v18  ;;  %v8745_v17 = vld [vmem:[%s11370_s3 + $0xa8] sm:$0xff]   ;;  %v8746_v18 = vld [vmem:[%s11370_s3 + $0x70] sm:$0xff]  }
 0x2fc   :  { %5498 = vmatprep.subr.bf16.mxu0 %v8666_v19  ;;  %6057 = vmatprep.subr.bf16.mxu1 %v8669_v20  ;;  %v8747_v19 = vld [vmem:[%s11370_s3 + $0xf0] sm:$0xff]  }
 0x2fd   :  { %v8748_v20 = vld [vmem:[%s11370_s3 + $0x30] sm:$0xff]  }
 0x2ff   :  { %5499 = vmatpush1.bf16.msra.mxu0 %v8664_v21  ;;  %6058 = vmatpush1.bf16.msra.mxu1 %v8667_v22  ;;  %v8749_v21 = vld [vmem:[%s11370_s3 + $0xb0] sm:$0xff]   ;;  %v8750_v22 = vld [vmem:[%s11370_s3 + $0x78] sm:$0xff]  }
 0x300   :  { %5511 = vmatprep.subr.bf16.mxu0 %v8675_v23  ;;  %6070 = vmatprep.subr.bf16.mxu1 %v8678_v24  ;;  %v8751_v23 = vld [vmem:[%s11370_s3 + $0xf8] sm:$0xff]  }
 0x301   :  { %v8752_v24 = vld [vmem:[%s11370_s3 + $0x38] sm:$0xff]  }
 0x302   :  { %5501 = vmatmul.mubr.bf16.vlgmr.msra.gmra.mrb[0].mxu0 %v8670_v25  ;;  %6060 = vmatmul.mubr.bf16.vlgmr.msra.gmra.mrb[0].mxu1 %v8670_v25  ;;  %v8753_v25 = vld [vmem:[%s11370_s3 + $0xb8] sm:$0xff]  }
 0x303   :  { %5512 = vmatpush1.bf16.msra.mxu0 %v8673_v26  ;;  %6071 = vmatpush1.bf16.msra.mxu1 %v8676_v27  ;;  %v849_v26 = vlaneseq }
 0x304   :  { %5513 = vmatprep.subr.bf16.mxu0 %v8681_v28  ;;  %6072 = vmatprep.subr.bf16.mxu1 %v8684_v29 }
 0x305   :  { %5543 = vmatprep.mubr.bf16.mxu0 %v8754_v34  ;;  %6102 = vmatprep.mubr.bf16.mxu1 %v8754_v34  ;;  %v850_v27 = vshrl.u32 %v849_v26, 7 }
 0x307   :  { %5514 = vmatpush1.bf16.msra.mxu0 %v8679_v30  ;;  %6073 = vmatpush1.bf16.msra.mxu1 %v8682_v31  ;;  %v851_v28 = vsub.s32 0, %v850_v27  ;;  %v859_v29 = vsub.s32 2, %v850_v27  ;;  %v847_v30 = vld [vmem:[%s11371_s2] sm:$0xf]  ;;  %v855_v31 = vsub.s32 1, %v850_v27 }
 0x308   :  { %5515 = vmatprep.subr.bf16.mxu0 %v8687_v32  ;;  %6074 = vmatprep.subr.bf16.mxu1 %v8690_v33  ;;  %v863_v32 = vsub.s32 3, %v850_v27 }
 0x309   :  { %v852_v33 = vrot.slane %v847_v30, %v851_v28  ;;  %v860_v34 = vrot.slane %v847_v30, %v859_v29 }
 0x30b   :  { %5516 = vmatpush1.bf16.msra.mxu0 %v8685_v35  ;;  %6075 = vmatpush1.bf16.msra.mxu1 %v8688_v36  ;;  %v856_v35 = vrot.slane %v847_v30, %v855_v31  ;;  %v864_v36 = vrot.slane %v847_v30, %v863_v32 }
 0x30c   :  { %5517 = vmatprep.subr.bf16.mxu0 %v8693_v37  ;;  %6076 = vmatprep.subr.bf16.mxu1 %v8696_v38 }
 0x30f   :  { %5518 = vmatpush1.bf16.msra.mxu0 %v8691_v39  ;;  %6077 = vmatpush1.bf16.msra.mxu1 %v8694_v40 }
 0x310   :  { %5519 = vmatprep.subr.bf16.mxu0 %v8699_v41  ;;  %6078 = vmatprep.subr.bf16.mxu1 %v8702_v42 }
 0x313   :  { %5520 = vmatpush1.bf16.msra.mxu0 %v8697_v43  ;;  %6079 = vmatpush1.bf16.msra.mxu1 %v8700_v44 }
 0x314   :  { %5521 = vmatprep.subr.bf16.mxu0 %v8705_v45  ;;  %6080 = vmatprep.subr.bf16.mxu1 %v8708_v46 }
 0x317   :  { %5522 = vmatpush1.bf16.msra.mxu0 %v8703_v47  ;;  %6081 = vmatpush1.bf16.msra.mxu1 %v8706_v48 }
 0x318   :  { %5523 = vmatprep.subr.bf16.mxu0 %v8711_v49  ;;  %6082 = vmatprep.subr.bf16.mxu1 %v8714_v50 }
 0x31b   :  { %5524 = vmatpush1.bf16.msra.mxu0 %v8709_v51  ;;  %6083 = vmatpush1.bf16.msra.mxu1 %v8712_v52 }
 0x31c   :  { %5525 = vmatprep.subr.bf16.mxu0 %v8717_v53  ;;  %6084 = vmatprep.subr.bf16.mxu1 %v8720_v54 }
 0x31f   :  { %5526 = vmatpush1.bf16.msra.mxu0 %v8715_v55  ;;  %6085 = vmatpush1.bf16.msra.mxu1 %v8718_v56 }
 0x320   :  { %7336 = vmatprep.subr.bf16.mxu0 %v8722_v57  ;;  %7358 = vmatprep.subr.bf16.mxu1 %v8723_v58 }
 0x322   :  { %5544 = vmatmul.mubr.bf16.vlgmr.msra.gmra.mrb[0].mxu0 %v8721_v59  ;;  %6103 = vmatmul.mubr.bf16.vlgmr.msra.gmra.mrb[0].mxu1 %v8721_v59 }
 0x323   :  { %7337 = vmatpush3.bf16.msra.mxu0 %v8724_v60  ;;  %7359 = vmatpush3.bf16.msra.mxu1 %v8725_v61 }
 0x324   :  { %7338 = vmatprep.subr.bf16.mxu0 %v8726_v62  ;;  %7360 = vmatprep.subr.bf16.mxu1 %v8727_v63 }
 0x327   :  { %7339 = vmatpush3.bf16.msra.mxu0 %v8728_v0  ;;  %7361 = vmatpush3.bf16.msra.mxu1 %v8729_v1 }
 0x328   :  { %7340 = vmatprep.subr.bf16.mxu0 %v8730_v2  ;;  %7362 = vmatprep.subr.bf16.mxu1 %v8731_v3  ;;  %v7303_v3 = vld [vmem:[%s11372_s4] ss:$0 sm:$0xff] }
 0x32b   :  { %7341 = vmatpush3.bf16.msra.mxu0 %v8732_v4  ;;  %7363 = vmatpush3.bf16.msra.mxu1 %v8733_v5 }
 0x32c   :  { %7342 = vmatprep.subr.bf16.mxu0 %v8734_v6  ;;  %7364 = vmatprep.subr.bf16.mxu1 %v8735_v7 }
 0x32f   :  { %7343 = vmatpush3.bf16.msra.mxu0 %v8736_v8  ;;  %7365 = vmatpush3.bf16.msra.mxu1 %v8737_v9 }
 0x330   :  { %7344 = vmatprep.subr.bf16.mxu0 %v8738_v10  ;;  %7366 = vmatprep.subr.bf16.mxu1 %v8739_v11 }
 0x333   :  { %7345 = vmatpush3.bf16.msra.mxu0 %v8740_v12  ;;  %7367 = vmatpush3.bf16.msra.mxu1 %v8741_v13 }
 0x334   :  { %7346 = vmatprep.subr.bf16.mxu0 %v8742_v14  ;;  %7368 = vmatprep.subr.bf16.mxu1 %v8743_v15 }
 0x337   :  { %7347 = vmatpush3.bf16.msra.mxu0 %v8744_v16  ;;  %7369 = vmatpush3.bf16.msra.mxu1 %v8745_v17 }
 0x338   :  { %7348 = vmatprep.subr.bf16.mxu0 %v8746_v18  ;;  %7370 = vmatprep.subr.bf16.mxu1 %v8747_v19 }
 0x33b   :  { %7349 = vmatpush3.bf16.msra.mxu0 %v8748_v20  ;;  %7371 = vmatpush3.bf16.msra.mxu1 %v8749_v21 }
 0x33c   :  { %7350 = vmatprep.subr.bf16.mxu0 %v8750_v22  ;;  %7372 = vmatprep.subr.bf16.mxu1 %v8751_v23 }
 0x33f   :  { %7351 = vmatpush3.bf16.msra.mxu0 %v8752_v24  ;;  %7373 = vmatpush3.bf16.msra.mxu1 %v8753_v25 }
 0x3f5   :  { %v5545_v37 = vpop.f32.mrb[0].mxu0  ;;  %v6104_v38 = vpop.f32.mrb[0].mxu1 }
 0x3f6   :  { %v7380_v39 = vadd.f32 %v5545_v37, %v852_v33  ;;  %v7384_v40 = vadd.f32 %v6104_v38, %v860_v34  ;;  %v5547_v41 = vpop.f32.mrb[1].mxu0  ;;  %v6106_v42 = vpop.f32.mrb[1].mxu1 }
 0x3f7   :  { %v7381_v43 = vadd.f32 %v5547_v41, %v856_v35  ;;  %v7385_v44 = vadd.f32 %v6106_v42, %v864_v36  ;;  %v5549_v45 = vpop.f32.mrb[2].mxu0  ;;  %v6108_v46 = vpop.f32.mrb[2].mxu1 }
 0x3f8   :  { %v7382_v47 = vadd.f32 %v5549_v45, %v852_v33  ;;  %v7386_v48 = vadd.f32 %v6108_v46, %v860_v34  ;;  %v5551_v49 = vpop.f32.mrb[3].mxu0  ;;  %v6110_v50 = vpop.f32.mrb[3].mxu1  ;;  %v6113_v53 = vmax.f32 %v7380_v39, 0.0  ;;  %v6115_v54 = vmax.f32 %v7384_v40, 0.0 }
 0x3f9   :  { %v7383_v51 = vadd.f32 %v5551_v49, %v856_v35  ;;  %v7387_v52 = vadd.f32 %v6110_v50, %v864_v36  ;;  %v6114_v57 = vmax.f32 %v7381_v43, 0.0  ;;  %v6116_v58 = vmax.f32 %v7385_v44, 0.0 }
 0x3fa   :  { %v6117_v55 = vmax.f32 %v7382_v47, 0.0  ;;  %v6119_v56 = vmax.f32 %v7386_v48, 0.0 }
 0x3fb   :  { %v6118_v59 = vmax.f32 %v7383_v51, 0.0  ;;  %v6120_v60 = vmax.f32 %v7387_v52, 0.0 }
 0x3fc   :  { %v6121_v61 = vpack.c.bf16 %v6117_v55, %v6113_v53  ;;  %v6123_v62 = vpack.c.bf16 %v6119_v56, %v6115_v54 }
 0x3fd   :  { %v6122_v63 = vpack.c.bf16 %v6118_v59, %v6114_v57  ;;  %v6124_v0 = vpack.c.bf16 %v6120_v60, %v6116_v58 }
 0x3ff   :  { %6420 = vmatprep.mubr.bf16.mxu0 %v6122_v63  ;;  %6461 = vmatprep.mubr.bf16.mxu1 %v6124_v0 }
 0x400   :  { %6421 = vmatmul.mubr.bf16.vlgmr.msra.gmra.mrb[4].mxu0 %v6121_v61  ;;  %6462 = vmatmul.mubr.bf16.vlgmr.msra.gmra.mrb[4].mxu1 %v6123_v62 }
 0x4d3   :  { %v7352_v1 = vpop.f32.mrb[4].mxu0  ;;  %v7374_v2 = vpop.f32.mrb[4].mxu1 }
 0x4d4   :  { %v7353_v4 = vpop.f32.mrb[5].mxu0  ;;  %v7375_v5 = vpop.f32.mrb[5].mxu1 }
 0x4d5   :  { %v7354_v6 = vadd.f32 %v7353_v4, %v7352_v1  ;;  %v7376_v7 = vadd.f32 %v7375_v5, %v7374_v2  ;;  %v7355_v8 = vpop.f32.mrb[6].mxu0  ;;  %v7377_v9 = vpop.f32.mrb[6].mxu1 }
 0x4d6   :  { %v7356_v10 = vpop.f32.mrb[7].mxu0  ;;  %v7378_v11 = vpop.f32.mrb[7].mxu1 }
 0x4d7   :  { %v6423_v12 = vadd.f32 %v7354_v6, %v7303_v3  ;;  %v7357_v13 = vadd.f32 %v7356_v10, %v7355_v8  ;;  %v7379_v14 = vadd.f32 %v7378_v11, %v7377_v9 }
 0x4d9   :  { %v6464_v15 = vadd.f32 %v7376_v7, %v6423_v12  ;;  %v6426_v16 = vadd.f32 %v7357_v13, %v7303_v3 }
 0x4db   :  { %v6470_v17 = vmax.f32 %v6464_v15, 0.0  ;;  %v6467_v18 = vadd.f32 %v7379_v14, %v6426_v16 }
 0x4dd   :  { %6472 = vst [vmem:[%s11373_s5] sm:$0xff] %v6470_v17  ;;  %v6471_v19 = vmax.f32 %v6467_v18, 0.0 }
 0x4df   :  { %6473 = vst [vmem:[%s11373_s5 + $0x8] sm:$0xff] %v6471_v19 }

</bundles_post_ra>
